<compile_context>
chip_gen: v6e
topology: v6e:2x2x1
jax: 0.10.0
libtpu: 0.0.40
codegen_flags: <defaults>
</compile_context>

<pallas_src>
import functools

import jax
import jax.numpy as jnp
from jax.experimental import pallas as pl
from jax.experimental.pallas import tpu as pltpu

EPS = 1e-5
K = 4  # kernel_size of every ConvTranspose2d in the model

# For ConvTranspose2d(k=4, s=2, p=1): output parity r (0/1) and input shift dy (0..2 over the
# pad-1 input) map to kernel tap index KIDX[r][dy] (None = no contribution).
#   out[2p]   = x[p-1]*w[3] + x[p]  *w[1]
#   out[2p+1] = x[p]  *w[2] + x[p+1]*w[0]
_KIDX = ((3, 1, None), (None, 2, 0))


def _round_up(x, m):
    return ((x + m - 1) // m) * m


# ----------------------------- Pallas kernels --------------------------------

def _mm_bn_relu_kernel(a_ref, w_ref, g_ref, b_ref, o_ref, *, cout, n_groups):
    """acc = A @ W (MXU, bf16 in / f32 acc); fused BatchNorm(batch stats) + ReLU.

    Output columns are laid out as n_groups groups of `cout` channels (parities or kernel
    taps), zero-padded up to o_ref.shape[1].  BN statistics for channel c pool all groups.
    """
    acc = jnp.dot(a_ref[...], w_ref[...], preferred_element_type=jnp.float32)  # (M, Npad)
    m_rows = acc.shape[0]

    s1 = jnp.zeros((1, cout), jnp.float32)
    s2 = jnp.zeros((1, cout), jnp.float32)
    for r in range(n_groups):
        blk = acc[:, r * cout:(r + 1) * cout]
        s1 = s1 + jnp.sum(blk, axis=0, keepdims=True)
        s2 = s2 + jnp.sum(blk * blk, axis=0, keepdims=True)
    cnt = float(m_rows * n_groups)
    mean = s1 / cnt
    var = s2 / cnt - mean * mean                      # biased (training-mode) variance
    scale = g_ref[...] * jax.lax.rsqrt(var + EPS)     # (1, cout)
    bias = b_ref[...] - mean * scale                  # (1, cout)

    npad = o_ref.shape[1]
    sp = [scale] * n_groups
    bp = [bias] * n_groups
    padw = npad - n_groups * cout
    if padw > 0:
        z = jnp.zeros((1, padw), jnp.float32)
        sp.append(z)
        bp.append(z)
    scale_f = jnp.concatenate(sp, axis=1)             # (1, Npad)
    bias_f = jnp.concatenate(bp, axis=1)              # (1, Npad)

    # Full-width lane-dense store; zero-padded columns stay exactly 0.
    o_ref[...] = jnp.maximum(acc * scale_f + bias_f, 0.0)


def _mm_tanh_kernel(a_ref, w_ref, o_ref):
    acc = jnp.dot(a_ref[...], w_ref[...], preferred_element_type=jnp.float32)
    o_ref[...] = jnp.tanh(acc)


def fused_matmul_bn_relu(a, w, gamma, beta, *, cout, n_groups):
    """(M, Kd)@(Kd, Npad) with fused BN+ReLU.  Single grid step (BN needs whole-batch stats)."""
    M, Kd = a.shape
    Npad = w.shape[1]
    g = gamma.reshape(1, cout).astype(jnp.float32)
    b = beta.reshape(1, cout).astype(jnp.float32)
    kernel = functools.partial(_mm_bn_relu_kernel, cout=cout, n_groups=n_groups)
    return pl.pallas_call(
        kernel,
        out_shape=jax.ShapeDtypeStruct((M, Npad), jnp.float32),
        grid=(1,),
        in_specs=[
            pl.BlockSpec((M, Kd), lambda i: (0, 0)),
            pl.BlockSpec((Kd, Npad), lambda i: (0, 0)),
            pl.BlockSpec((1, cout), lambda i: (0, 0)),
            pl.BlockSpec((1, cout), lambda i: (0, 0)),
        ],
        out_specs=pl.BlockSpec((M, Npad), lambda i: (0, 0)),
        compiler_params=pltpu.CompilerParams(dimension_semantics=("arbitrary",)),
    )(a, w, g, b)


def matmul_tanh(a, w, *, tm_max=1024):
    """(M, Kd)@(Kd, Npad) with fused tanh, tiled over M ('parallel' -> both TCs on v7x)."""
    M, Kd = a.shape
    Npad = w.shape[1]
    tm = tm_max if (M > tm_max and M % tm_max == 0) else M
    return pl.pallas_call(
        _mm_tanh_kernel,
        out_shape=jax.ShapeDtypeStruct((M, Npad), jnp.float32),
        grid=(M // tm,),
        in_specs=[
            pl.BlockSpec((tm, Kd), lambda i: (i, 0)),
            pl.BlockSpec((Kd, Npad), lambda i: (0, 0)),
        ],
        out_specs=pl.BlockSpec((tm, Npad), lambda i: (i, 0)),
        compiler_params=pltpu.CompilerParams(dimension_semantics=("parallel",)),
    )(a, w)


# ------------------------------ JAX glue --------------------------------------

def nine_shift_patches(h_nhwc):
    """(N,H,W,C) -> (N*H*W, 9*C) bf16: the 3x3 shift window of the pad-1 input (no zero dilation)."""
    N, H, W, C = h_nhwc.shape
    hp = jnp.pad(h_nhwc.astype(jnp.bfloat16), ((0, 0), (1, 1), (1, 1), (0, 0)))
    cols = [hp[:, dy:dy + H, dx:dx + W, :] for dy in range(3) for dx in range(3)]
    p = jnp.concatenate(cols, axis=-1)                 # (N, H, W, 9C)
    return p.reshape(N * H * W, 9 * C)


def build_w9(w_pt, npad):
    """Block-structured sub-pixel weight (9*Cin, npad) for ConvT(k=4,s=2,p=1), bf16.

    Columns are ordered (parity r = 2*ry+rx, cout), zero-padded to npad (multiple of 128).
    Rows are ordered (shift s = 3*dy+dx, cin).
    """
    Cin, Cout = w_pt.shape[0], w_pt.shape[1]
    w9 = jnp.zeros((9 * Cin, npad), jnp.float32)
    for ry in range(2):
        for rx in range(2):
            r = 2 * ry + rx
            for dy in range(3):
                kh = _KIDX[ry][dy]
                if kh is None:
                    continue
                for dx in range(3):
                    kw = _KIDX[rx][dx]
                    if kw is None:
                        continue
                    s = 3 * dy + dx
                    w9 = w9.at[s * Cin:(s + 1) * Cin, r * Cout:(r + 1) * Cout].set(
                        w_pt[:, :, kh, kw])
    return w9.astype(jnp.bfloat16)


def _depth_to_space(y, n, h, w, cout):
    """(N*H*W, >=4*cout) with columns (ry, rx, co) -> (N, 2H, 2W, cout)."""
    y = y[:, :4 * cout].reshape(n, h, w, 2, 2, cout)
    y = y.transpose(0, 1, 3, 2, 4, 5)
    return y.reshape(n, 2 * h, 2 * w, cout)


def dc_generator_forward(x_nchw, params):
    (w1, g1, b1, w2, g2, b2, w3, g3, b3, w4, g4, b4, w5) = params
    N = x_nchw.shape[0]
    Cin, C1 = w1.shape[0], w1.shape[1]

    # Weight prep (tiny; bf16, lane-dense, block-structured).
    # Layer-1 columns pre-permuted to (kh, kw, co) so the output is directly NHWC.
    w1m = w1.transpose(0, 2, 3, 1).reshape(Cin, K * K * C1).astype(jnp.bfloat16)
    conv_ws = []
    for w in (w2, w3, w4, w5):
        co = w.shape[1]
        conv_ws.append((build_w9(w, _round_up(4 * co, 128)), co))

    # Layer 1: ConvT(k4, s1, p0) on a 1x1 input == matmul; fused BN + ReLU.
    x0 = x_nchw.reshape(N, Cin).astype(jnp.bfloat16)
    y = fused_matmul_bn_relu(x0, w1m, g1, b1, cout=C1, n_groups=K * K)   # (N, 16*C1)
    h = y.reshape(N, K, K, C1)                                           # NHWC (N,4,4,C1)

    # Layers 2-4: ConvT(k4, s2, p1) via sub-pixel decomposition + fused BN + ReLU.
    for (w9, co), (g, b) in zip(conv_ws[:3], ((g2, b2), (g3, b3), (g4, b4))):
        nb, hh, ww, _ = h.shape
        p = nine_shift_patches(h)
        y = fused_matmul_bn_relu(p, w9, g, b, cout=co, n_groups=4)
        h = _depth_to_space(y, nb, hh, ww, co)

    # Layer 5: ConvT(k4, s2, p1) + Tanh (tanh fused; no BN, so M is split across 2 parallel
    # grid steps for megacore).  Output columns padded to 128 lanes.
    w9_5, co5 = conv_ws[3]
    nb, hh, ww, _ = h.shape
    p = nine_shift_patches(h)
    y = matmul_tanh(p, w9_5)
    out = _depth_to_space(y, nb, hh, ww, co5)          # (N, 64, 64, 1)
    return out.transpose(0, 3, 1, 2)                    # NCHW


# -------------------------- pure-JAX reference --------------------------------

def reference_forward(x, params):
    def convT(x, w, stride, padding):
        k = w.shape[2]
        kern = jnp.flip(w, axis=(2, 3)).transpose(1, 0, 2, 3)  # (Cout, Cin, kh, kw)
        return jax.lax.conv_general_dilated(
            x, kern, window_strides=(1, 1),
            padding=[(k - 1 - padding, k - 1 - padding)] * 2,
            lhs_dilation=(stride, stride),
            dimension_numbers=("NCHW", "OIHW", "NCHW"))

    def bn_relu(x, g, b):
        mean = x.mean(axis=(0, 2, 3), keepdims=True)
        var = jnp.square(x - mean).mean(axis=(0, 2, 3), keepdims=True)
        y = (x - mean) * jax.lax.rsqrt(var + EPS)
        y = y * g.reshape(1, -1, 1, 1) + b.reshape(1, -1, 1, 1)
        return jnp.maximum(y, 0.0)

    (w1, g1, b1, w2, g2, b2, w3, g3, b3, w4, g4, b4, w5) = params
    h = bn_relu(convT(x, w1, 1, 0), g1, b1)
    h = bn_relu(convT(h, w2, 2, 1), g2, b2)
    h = bn_relu(convT(h, w3, 2, 1), g3, b3)
    h = bn_relu(convT(h, w4, 2, 1), g4, b4)
    return jnp.tanh(convT(h, w5, 2, 1))


# ----------------------------------- main --------------------------------------

if __name__ == "__main__":
    in_c, hid_c, out_c = 32, 16, 1
    N = 2

    key = jax.random.PRNGKey(0)
    ks = jax.random.split(key, 6)

    def w_init(k, shape):
        return jax.random.normal(k, shape, jnp.float32) * 0.05

    # ConvTranspose2d weights: (in_channels, out_channels, 4, 4), bias=False
    w1 = w_init(ks[0], (in_c, hid_c * 8, K, K))
    w2 = w_init(ks[1], (hid_c * 8, hid_c * 4, K, K))
    w3 = w_init(ks[2], (hid_c * 4, hid_c * 2, K, K))
    w4 = w_init(ks[3], (hid_c * 2, hid_c, K, K))
    w5 = w_init(ks[4], (hid_c, out_c, K, K))
    # BatchNorm2d params (PyTorch default init: gamma=1, beta=0)
    g1, b1 = jnp.ones(hid_c * 8, jnp.float32), jnp.zeros(hid_c * 8, jnp.float32)
    g2, b2 = jnp.ones(hid_c * 4, jnp.float32), jnp.zeros(hid_c * 4, jnp.float32)
    g3, b3 = jnp.ones(hid_c * 2, jnp.float32), jnp.zeros(hid_c * 2, jnp.float32)
    g4, b4 = jnp.ones(hid_c, jnp.float32), jnp.zeros(hid_c, jnp.float32)
    params = (w1, g1, b1, w2, g2, b2, w3, g3, b3, w4, g4, b4, w5)

    x = jax.random.normal(ks[5], (N, in_c, 1, 1), jnp.float32)

    fwd = jax.jit(dc_generator_forward)
    out = jax.block_until_ready(fwd(x, params))
    assert out.shape == (N, out_c, 64, 64), out.shape

    ref = jax.block_until_ready(jax.jit(reference_forward)(x, params))
    max_err = float(jnp.max(jnp.abs(out - ref)))
    assert max_err < 5e-2, f"max abs diff {max_err}"

    print("KERNEL_OK")
</pallas_src>

<mosaic_0001>
module attributes {stable_mosaic.version = 11 : i64} {
  func.func @_mm_bn_relu_kernel(%arg0: i32, %arg1: memref<2x32xbf16, #tpu.memory_space<vmem>>, %arg2: memref<32x2048xbf16, #tpu.memory_space<vmem>>, %arg3: memref<1x128xf32, #tpu.memory_space<vmem>>, %arg4: memref<1x128xf32, #tpu.memory_space<vmem>>, %arg5: memref<2x2048xf32, #tpu.memory_space<vmem>>) attributes {dimension_semantics = [#tpu.dimension_semantics<arbitrary>], iteration_bounds = array<i64: 1>, scalar_prefetch = 0 : i64, scratch_operands = 0 : i64, tpu.core_type = #tpu.core_type<tc>, window_params = [{pipeline_mode = #tpu.pipeline_mode<synchronous>, transform_indices = @transform_0, window_bounds = array<i64: 2, 32>}, {pipeline_mode = #tpu.pipeline_mode<synchronous>, transform_indices = @transform_1, window_bounds = array<i64: 32, 2048>}, {pipeline_mode = #tpu.pipeline_mode<synchronous>, transform_indices = @transform_2, window_bounds = array<i64: 1, 128>}, {pipeline_mode = #tpu.pipeline_mode<synchronous>, transform_indices = @transform_3, window_bounds = array<i64: 1, 128>}, {pipeline_mode = #tpu.pipeline_mode<synchronous>, transform_indices = @transform_4, window_bounds = array<i64: 2, 2048>}]} {
    %c0 = arith.constant 0 : index
    %c0_0 = arith.constant 0 : index
    %0 = vector.load %arg1[%c0, %c0_0] : memref<2x32xbf16, #tpu.memory_space<vmem>>, vector<2x32xbf16>
    %c0_1 = arith.constant 0 : index
    %c0_2 = arith.constant 0 : index
    %1 = vector.load %arg2[%c0_1, %c0_2] : memref<32x2048xbf16, #tpu.memory_space<vmem>>, vector<32x2048xbf16>
    %cst = arith.constant dense<0.000000e+00> : vector<2x2048xf32>
    %2 = tpu.matmul %0, %1, %cst {dimension_numbers = #tpu.dot_dimension_numbers<[1], [0], [0], [1], [0, 0, 1, 1], [], []>} : vector<2x32xbf16>, vector<32x2048xbf16>, vector<2x2048xf32> -> vector<2x2048xf32>
    %cst_3 = arith.constant 0.000000e+00 : f32
    %3 = vector.broadcast %cst_3 : f32 to vector<1x128xf32>
    %cst_4 = arith.constant 0.000000e+00 : f32
    %4 = vector.broadcast %cst_4 : f32 to vector<1x128xf32>
    %5 = vector.extract_strided_slice %2 {offsets = [0, 0], sizes = [2, 128], strides = [1, 1]} : vector<2x2048xf32> to vector<2x128xf32>
    %cst_5 = arith.constant dense<0.000000e+00> : vector<128xf32>
    %6 = vector.multi_reduction <add>, %5, %cst_5 [0] : vector<2x128xf32> to vector<128xf32>
    %7 = vector.shape_cast %6 : vector<128xf32> to vector<1x128xf32>
    %8 = arith.addf %3, %7 : vector<1x128xf32>
    %9 = arith.mulf %5, %5 : vector<2x128xf32>
    %cst_6 = arith.constant dense<0.000000e+00> : vector<128xf32>
    %10 = vector.multi_reduction <add>, %9, %cst_6 [0] : vector<2x128xf32> to vector<128xf32>
    %11 = vector.shape_cast %10 : vector<128xf32> to vector<1x128xf32>
    %12 = arith.addf %4, %11 : vector<1x128xf32>
    %13 = vector.extract_strided_slice %2 {offsets = [0, 128], sizes = [2, 128], strides = [1, 1]} : vector<2x2048xf32> to vector<2x128xf32>
    %cst_7 = arith.constant dense<0.000000e+00> : vector<128xf32>
    %14 = vector.multi_reduction <add>, %13, %cst_7 [0] : vector<2x128xf32> to vector<128xf32>
    %15 = vector.shape_cast %14 : vector<128xf32> to vector<1x128xf32>
    %16 = arith.addf %8, %15 : vector<1x128xf32>
    %17 = arith.mulf %13, %13 : vector<2x128xf32>
    %cst_8 = arith.constant dense<0.000000e+00> : vector<128xf32>
    %18 = vector.multi_reduction <add>, %17, %cst_8 [0] : vector<2x128xf32> to vector<128xf32>
    %19 = vector.shape_cast %18 : vector<128xf32> to vector<1x128xf32>
    %20 = arith.addf %12, %19 : vector<1x128xf32>
    %21 = vector.extract_strided_slice %2 {offsets = [0, 256], sizes = [2, 128], strides = [1, 1]} : vector<2x2048xf32> to vector<2x128xf32>
    %cst_9 = arith.constant dense<0.000000e+00> : vector<128xf32>
    %22 = vector.multi_reduction <add>, %21, %cst_9 [0] : vector<2x128xf32> to vector<128xf32>
    %23 = vector.shape_cast %22 : vector<128xf32> to vector<1x128xf32>
    %24 = arith.addf %16, %23 : vector<1x128xf32>
    %25 = arith.mulf %21, %21 : vector<2x128xf32>
    %cst_10 = arith.constant dense<0.000000e+00> : vector<128xf32>
    %26 = vector.multi_reduction <add>, %25, %cst_10 [0] : vector<2x128xf32> to vector<128xf32>
    %27 = vector.shape_cast %26 : vector<128xf32> to vector<1x128xf32>
    %28 = arith.addf %20, %27 : vector<1x128xf32>
    %29 = vector.extract_strided_slice %2 {offsets = [0, 384], sizes = [2, 128], strides = [1, 1]} : vector<2x2048xf32> to vector<2x128xf32>
    %cst_11 = arith.constant dense<0.000000e+00> : vector<128xf32>
    %30 = vector.multi_reduction <add>, %29, %cst_11 [0] : vector<2x128xf32> to vector<128xf32>
    %31 = vector.shape_cast %30 : vector<128xf32> to vector<1x128xf32>
    %32 = arith.addf %24, %31 : vector<1x128xf32>
    %33 = arith.mulf %29, %29 : vector<2x128xf32>
    %cst_12 = arith.constant dense<0.000000e+00> : vector<128xf32>
    %34 = vector.multi_reduction <add>, %33, %cst_12 [0] : vector<2x128xf32> to vector<128xf32>
    %35 = vector.shape_cast %34 : vector<128xf32> to vector<1x128xf32>
    %36 = arith.addf %28, %35 : vector<1x128xf32>
    %37 = vector.extract_strided_slice %2 {offsets = [0, 512], sizes = [2, 128], strides = [1, 1]} : vector<2x2048xf32> to vector<2x128xf32>
    %cst_13 = arith.constant dense<0.000000e+00> : vector<128xf32>
    %38 = vector.multi_reduction <add>, %37, %cst_13 [0] : vector<2x128xf32> to vector<128xf32>
    %39 = vector.shape_cast %38 : vector<128xf32> to vector<1x128xf32>
    %40 = arith.addf %32, %39 : vector<1x128xf32>
    %41 = arith.mulf %37, %37 : vector<2x128xf32>
    %cst_14 = arith.constant dense<0.000000e+00> : vector<128xf32>
    %42 = vector.multi_reduction <add>, %41, %cst_14 [0] : vector<2x128xf32> to vector<128xf32>
    %43 = vector.shape_cast %42 : vector<128xf32> to vector<1x128xf32>
    %44 = arith.addf %36, %43 : vector<1x128xf32>
    %45 = vector.extract_strided_slice %2 {offsets = [0, 640], sizes = [2, 128], strides = [1, 1]} : vector<2x2048xf32> to vector<2x128xf32>
    %cst_15 = arith.constant dense<0.000000e+00> : vector<128xf32>
    %46 = vector.multi_reduction <add>, %45, %cst_15 [0] : vector<2x128xf32> to vector<128xf32>
    %47 = vector.shape_cast %46 : vector<128xf32> to vector<1x128xf32>
    %48 = arith.addf %40, %47 : vector<1x128xf32>
    %49 = arith.mulf %45, %45 : vector<2x128xf32>
    %cst_16 = arith.constant dense<0.000000e+00> : vector<128xf32>
    %50 = vector.multi_reduction <add>, %49, %cst_16 [0] : vector<2x128xf32> to vector<128xf32>
    %51 = vector.shape_cast %50 : vector<128xf32> to vector<1x128xf32>
    %52 = arith.addf %44, %51 : vector<1x128xf32>
    %53 = vector.extract_strided_slice %2 {offsets = [0, 768], sizes = [2, 128], strides = [1, 1]} : vector<2x2048xf32> to vector<2x128xf32>
    %cst_17 = arith.constant dense<0.000000e+00> : vector<128xf32>
    %54 = vector.multi_reduction <add>, %53, %cst_17 [0] : vector<2x128xf32> to vector<128xf32>
    %55 = vector.shape_cast %54 : vector<128xf32> to vector<1x128xf32>
    %56 = arith.addf %48, %55 : vector<1x128xf32>
    %57 = arith.mulf %53, %53 : vector<2x128xf32>
    %cst_18 = arith.constant dense<0.000000e+00> : vector<128xf32>
    %58 = vector.multi_reduction <add>, %57, %cst_18 [0] : vector<2x128xf32> to vector<128xf32>
    %59 = vector.shape_cast %58 : vector<128xf32> to vector<1x128xf32>
    %60 = arith.addf %52, %59 : vector<1x128xf32>
    %61 = vector.extract_strided_slice %2 {offsets = [0, 896], sizes = [2, 128], strides = [1, 1]} : vector<2x2048xf32> to vector<2x128xf32>
    %cst_19 = arith.constant dense<0.000000e+00> : vector<128xf32>
    %62 = vector.multi_reduction <add>, %61, %cst_19 [0] : vector<2x128xf32> to vector<128xf32>
    %63 = vector.shape_cast %62 : vector<128xf32> to vector<1x128xf32>
    %64 = arith.addf %56, %63 : vector<1x128xf32>
    %65 = arith.mulf %61, %61 : vector<2x128xf32>
    %cst_20 = arith.constant dense<0.000000e+00> : vector<128xf32>
    %66 = vector.multi_reduction <add>, %65, %cst_20 [0] : vector<2x128xf32> to vector<128xf32>
    %67 = vector.shape_cast %66 : vector<128xf32> to vector<1x128xf32>
    %68 = arith.addf %60, %67 : vector<1x128xf32>
    %69 = vector.extract_strided_slice %2 {offsets = [0, 1024], sizes = [2, 128], strides = [1, 1]} : vector<2x2048xf32> to vector<2x128xf32>
    %cst_21 = arith.constant dense<0.000000e+00> : vector<128xf32>
    %70 = vector.multi_reduction <add>, %69, %cst_21 [0] : vector<2x128xf32> to vector<128xf32>
    %71 = vector.shape_cast %70 : vector<128xf32> to vector<1x128xf32>
    %72 = arith.addf %64, %71 : vector<1x128xf32>
    %73 = arith.mulf %69, %69 : vector<2x128xf32>
    %cst_22 = arith.constant dense<0.000000e+00> : vector<128xf32>
    %74 = vector.multi_reduction <add>, %73, %cst_22 [0] : vector<2x128xf32> to vector<128xf32>
    %75 = vector.shape_cast %74 : vector<128xf32> to vector<1x128xf32>
    %76 = arith.addf %68, %75 : vector<1x128xf32>
    %77 = vector.extract_strided_slice %2 {offsets = [0, 1152], sizes = [2, 128], strides = [1, 1]} : vector<2x2048xf32> to vector<2x128xf32>
    %cst_23 = arith.constant dense<0.000000e+00> : vector<128xf32>
    %78 = vector.multi_reduction <add>, %77, %cst_23 [0] : vector<2x128xf32> to vector<128xf32>
    %79 = vector.shape_cast %78 : vector<128xf32> to vector<1x128xf32>
    %80 = arith.addf %72, %79 : vector<1x128xf32>
    %81 = arith.mulf %77, %77 : vector<2x128xf32>
    %cst_24 = arith.constant dense<0.000000e+00> : vector<128xf32>
    %82 = vector.multi_reduction <add>, %81, %cst_24 [0] : vector<2x128xf32> to vector<128xf32>
    %83 = vector.shape_cast %82 : vector<128xf32> to vector<1x128xf32>
    %84 = arith.addf %76, %83 : vector<1x128xf32>
    %85 = vector.extract_strided_slice %2 {offsets = [0, 1280], sizes = [2, 128], strides = [1, 1]} : vector<2x2048xf32> to vector<2x128xf32>
    %cst_25 = arith.constant dense<0.000000e+00> : vector<128xf32>
    %86 = vector.multi_reduction <add>, %85, %cst_25 [0] : vector<2x128xf32> to vector<128xf32>
    %87 = vector.shape_cast %86 : vector<128xf32> to vector<1x128xf32>
    %88 = arith.addf %80, %87 : vector<1x128xf32>
    %89 = arith.mulf %85, %85 : vector<2x128xf32>
    %cst_26 = arith.constant dense<0.000000e+00> : vector<128xf32>
    %90 = vector.multi_reduction <add>, %89, %cst_26 [0] : vector<2x128xf32> to vector<128xf32>
    %91 = vector.shape_cast %90 : vector<128xf32> to vector<1x128xf32>
    %92 = arith.addf %84, %91 : vector<1x128xf32>
    %93 = vector.extract_strided_slice %2 {offsets = [0, 1408], sizes = [2, 128], strides = [1, 1]} : vector<2x2048xf32> to vector<2x128xf32>
    %cst_27 = arith.constant dense<0.000000e+00> : vector<128xf32>
    %94 = vector.multi_reduction <add>, %93, %cst_27 [0] : vector<2x128xf32> to vector<128xf32>
    %95 = vector.shape_cast %94 : vector<128xf32> to vector<1x128xf32>
    %96 = arith.addf %88, %95 : vector<1x128xf32>
    %97 = arith.mulf %93, %93 : vector<2x128xf32>
    %cst_28 = arith.constant dense<0.000000e+00> : vector<128xf32>
    %98 = vector.multi_reduction <add>, %97, %cst_28 [0] : vector<2x128xf32> to vector<128xf32>
    %99 = vector.shape_cast %98 : vector<128xf32> to vector<1x128xf32>
    %100 = arith.addf %92, %99 : vector<1x128xf32>
    %101 = vector.extract_strided_slice %2 {offsets = [0, 1536], sizes = [2, 128], strides = [1, 1]} : vector<2x2048xf32> to vector<2x128xf32>
    %cst_29 = arith.constant dense<0.000000e+00> : vector<128xf32>
    %102 = vector.multi_reduction <add>, %101, %cst_29 [0] : vector<2x128xf32> to vector<128xf32>
    %103 = vector.shape_cast %102 : vector<128xf32> to vector<1x128xf32>
    %104 = arith.addf %96, %103 : vector<1x128xf32>
    %105 = arith.mulf %101, %101 : vector<2x128xf32>
    %cst_30 = arith.constant dense<0.000000e+00> : vector<128xf32>
    %106 = vector.multi_reduction <add>, %105, %cst_30 [0] : vector<2x128xf32> to vector<128xf32>
    %107 = vector.shape_cast %106 : vector<128xf32> to vector<1x128xf32>
    %108 = arith.addf %100, %107 : vector<1x128xf32>
    %109 = vector.extract_strided_slice %2 {offsets = [0, 1664], sizes = [2, 128], strides = [1, 1]} : vector<2x2048xf32> to vector<2x128xf32>
    %cst_31 = arith.constant dense<0.000000e+00> : vector<128xf32>
    %110 = vector.multi_reduction <add>, %109, %cst_31 [0] : vector<2x128xf32> to vector<128xf32>
    %111 = vector.shape_cast %110 : vector<128xf32> to vector<1x128xf32>
    %112 = arith.addf %104, %111 : vector<1x128xf32>
    %113 = arith.mulf %109, %109 : vector<2x128xf32>
    %cst_32 = arith.constant dense<0.000000e+00> : vector<128xf32>
    %114 = vector.multi_reduction <add>, %113, %cst_32 [0] : vector<2x128xf32> to vector<128xf32>
    %115 = vector.shape_cast %114 : vector<128xf32> to vector<1x128xf32>
    %116 = arith.addf %108, %115 : vector<1x128xf32>
    %117 = vector.extract_strided_slice %2 {offsets = [0, 1792], sizes = [2, 128], strides = [1, 1]} : vector<2x2048xf32> to vector<2x128xf32>
    %cst_33 = arith.constant dense<0.000000e+00> : vector<128xf32>
    %118 = vector.multi_reduction <add>, %117, %cst_33 [0] : vector<2x128xf32> to vector<128xf32>
    %119 = vector.shape_cast %118 : vector<128xf32> to vector<1x128xf32>
    %120 = arith.addf %112, %119 : vector<1x128xf32>
    %121 = arith.mulf %117, %117 : vector<2x128xf32>
    %cst_34 = arith.constant dense<0.000000e+00> : vector<128xf32>
    %122 = vector.multi_reduction <add>, %121, %cst_34 [0] : vector<2x128xf32> to vector<128xf32>
    %123 = vector.shape_cast %122 : vector<128xf32> to vector<1x128xf32>
    %124 = arith.addf %116, %123 : vector<1x128xf32>
    %125 = vector.extract_strided_slice %2 {offsets = [0, 1920], sizes = [2, 128], strides = [1, 1]} : vector<2x2048xf32> to vector<2x128xf32>
    %cst_35 = arith.constant dense<0.000000e+00> : vector<128xf32>
    %126 = vector.multi_reduction <add>, %125, %cst_35 [0] : vector<2x128xf32> to vector<128xf32>
    %127 = vector.shape_cast %126 : vector<128xf32> to vector<1x128xf32>
    %128 = arith.addf %120, %127 : vector<1x128xf32>
    %129 = arith.mulf %125, %125 : vector<2x128xf32>
    %cst_36 = arith.constant dense<0.000000e+00> : vector<128xf32>
    %130 = vector.multi_reduction <add>, %129, %cst_36 [0] : vector<2x128xf32> to vector<128xf32>
    %131 = vector.shape_cast %130 : vector<128xf32> to vector<1x128xf32>
    %132 = arith.addf %124, %131 : vector<1x128xf32>
    %cst_37 = arith.constant 3.200000e+01 : f32
    %133 = vector.broadcast %cst_37 : f32 to vector<1x128xf32>
    %134 = arith.divf %128, %133 : vector<1x128xf32>
    %cst_38 = arith.constant 3.200000e+01 : f32
    %135 = vector.broadcast %cst_38 : f32 to vector<1x128xf32>
    %136 = arith.divf %132, %135 : vector<1x128xf32>
    %137 = arith.mulf %134, %134 : vector<1x128xf32>
    %138 = arith.subf %136, %137 : vector<1x128xf32>
    %c0_39 = arith.constant 0 : index
    %c0_40 = arith.constant 0 : index
    %139 = vector.load %arg3[%c0_39, %c0_40] : memref<1x128xf32, #tpu.memory_space<vmem>>, vector<1x128xf32>
    %cst_41 = arith.constant 9.99999974E-6 : f32
    %140 = vector.broadcast %cst_41 : f32 to vector<1x128xf32>
    %141 = arith.addf %138, %140 : vector<1x128xf32>
    %142 = math.rsqrt %141 : vector<1x128xf32>
    %143 = arith.mulf %139, %142 : vector<1x128xf32>
    %c0_42 = arith.constant 0 : index
    %c0_43 = arith.constant 0 : index
    %144 = vector.load %arg4[%c0_42, %c0_43] : memref<1x128xf32, #tpu.memory_space<vmem>>, vector<1x128xf32>
    %145 = arith.mulf %134, %143 : vector<1x128xf32>
    %146 = arith.subf %144, %145 : vector<1x128xf32>
    %147 = tpu.concatenate %143, %143, %143, %143, %143, %143, %143, %143, %143, %143, %143, %143, %143, %143, %143, %143 in 1 : vector<1x128xf32>, vector<1x128xf32>, vector<1x128xf32>, vector<1x128xf32>, vector<1x128xf32>, vector<1x128xf32>, vector<1x128xf32>, vector<1x128xf32>, vector<1x128xf32>, vector<1x128xf32>, vector<1x128xf32>, vector<1x128xf32>, vector<1x128xf32>, vector<1x128xf32>, vector<1x128xf32>, vector<1x128xf32> -> vector<1x2048xf32>
    %148 = tpu.concatenate %146, %146, %146, %146, %146, %146, %146, %146, %146, %146, %146, %146, %146, %146, %146, %146 in 1 : vector<1x128xf32>, vector<1x128xf32>, vector<1x128xf32>, vector<1x128xf32>, vector<1x128xf32>, vector<1x128xf32>, vector<1x128xf32>, vector<1x128xf32>, vector<1x128xf32>, vector<1x128xf32>, vector<1x128xf32>, vector<1x128xf32>, vector<1x128xf32>, vector<1x128xf32>, vector<1x128xf32>, vector<1x128xf32> -> vector<1x2048xf32>
    %149 = vector.broadcast %147 : vector<1x2048xf32> to vector<2x2048xf32>
    %150 = arith.mulf %2, %149 : vector<2x2048xf32>
    %151 = vector.broadcast %148 : vector<1x2048xf32> to vector<2x2048xf32>
    %152 = arith.addf %150, %151 : vector<2x2048xf32>
    %cst_44 = arith.constant 0.000000e+00 : f32
    %153 = vector.broadcast %cst_44 : f32 to vector<2x2048xf32>
    %154 = arith.maximumf %152, %153 : vector<2x2048xf32>
    %c0_45 = arith.constant 0 : index
    %c0_46 = arith.constant 0 : index
    %155 = vector.load %arg5[%c0_45, %c0_46] : memref<2x2048xf32, #tpu.memory_space<vmem>>, vector<2x2048xf32>
    tpu.vector_store %arg5[%c0_45, %c0_46], %154 {strides = array<i32>} : memref<2x2048xf32, #tpu.memory_space<vmem>>, vector<2x2048xf32>,
    return
  }
  func.func @transform_0(%arg0: i32) -> (i32, i32) {
    %c0_i32 = arith.constant 0 : i32
    %c0_i32_0 = arith.constant 0 : i32
    %c0_i32_1 = arith.constant 0 : i32
    return %c0_i32, %c0_i32_0 : i32, i32
  }
  func.func @transform_1(%arg0: i32) -> (i32, i32) {
    %c0_i32 = arith.constant 0 : i32
    %c0_i32_0 = arith.constant 0 : i32
    %c0_i32_1 = arith.constant 0 : i32
    return %c0_i32, %c0_i32_0 : i32, i32
  }
  func.func @transform_2(%arg0: i32) -> (i32, i32) {
    %c0_i32 = arith.constant 0 : i32
    %c0_i32_0 = arith.constant 0 : i32
    %c0_i32_1 = arith.constant 0 : i32
    return %c0_i32, %c0_i32_0 : i32, i32
  }
  func.func @transform_3(%arg0: i32) -> (i32, i32) {
    %c0_i32 = arith.constant 0 : i32
    %c0_i32_0 = arith.constant 0 : i32
    %c0_i32_1 = arith.constant 0 : i32
    return %c0_i32, %c0_i32_0 : i32, i32
  }
  func.func @transform_4(%arg0: i32) -> (i32, i32) {
    %c0_i32 = arith.constant 0 : i32
    %c0_i32_0 = arith.constant 0 : i32
    %c0_i32_1 = arith.constant 0 : i32
    return %c0_i32, %c0_i32_0 : i32, i32
  }
}

module attributes {stable_mosaic.version = 11 : i64} {
  func.func @_mm_bn_relu_kernel(%arg0: i32, %arg1: memref<32x1152xbf16, #tpu.memory_space<vmem>>, %arg2: memref<1152x256xbf16, #tpu.memory_space<vmem>>, %arg3: memref<1x64xf32, #tpu.memory_space<vmem>>, %arg4: memref<1x64xf32, #tpu.memory_space<vmem>>, %arg5: memref<32x256xf32, #tpu.memory_space<vmem>>) attributes {dimension_semantics = [#tpu.dimension_semantics<arbitrary>], iteration_bounds = array<i64: 1>, scalar_prefetch = 0 : i64, scratch_operands = 0 : i64, tpu.core_type = #tpu.core_type<tc>, window_params = [{pipeline_mode = #tpu.pipeline_mode<synchronous>, transform_indices = @transform_0, window_bounds = array<i64: 32, 1152>}, {pipeline_mode = #tpu.pipeline_mode<synchronous>, transform_indices = @transform_1, window_bounds = array<i64: 1152, 256>}, {pipeline_mode = #tpu.pipeline_mode<synchronous>, transform_indices = @transform_2, window_bounds = array<i64: 1, 64>}, {pipeline_mode = #tpu.pipeline_mode<synchronous>, transform_indices = @transform_3, window_bounds = array<i64: 1, 64>}, {pipeline_mode = #tpu.pipeline_mode<synchronous>, transform_indices = @transform_4, window_bounds = array<i64: 32, 256>}]} {
    %c0 = arith.constant 0 : index
    %c0_0 = arith.constant 0 : index
    %0 = vector.load %arg1[%c0, %c0_0] : memref<32x1152xbf16, #tpu.memory_space<vmem>>, vector<32x1152xbf16>
    %c0_1 = arith.constant 0 : index
    %c0_2 = arith.constant 0 : index
    %1 = vector.load %arg2[%c0_1, %c0_2] : memref<1152x256xbf16, #tpu.memory_space<vmem>>, vector<1152x256xbf16>
    %cst = arith.constant dense<0.000000e+00> : vector<32x256xf32>
    %2 = tpu.matmul %0, %1, %cst {dimension_numbers = #tpu.dot_dimension_numbers<[1], [0], [0], [1], [0, 0, 1, 1], [], []>} : vector<32x1152xbf16>, vector<1152x256xbf16>, vector<32x256xf32> -> vector<32x256xf32>
    %cst_3 = arith.constant 0.000000e+00 : f32
    %3 = vector.broadcast %cst_3 : f32 to vector<1x64xf32>
    %cst_4 = arith.constant 0.000000e+00 : f32
    %4 = vector.broadcast %cst_4 : f32 to vector<1x64xf32>
    %5 = vector.extract_strided_slice %2 {offsets = [0, 0], sizes = [32, 64], strides = [1, 1]} : vector<32x256xf32> to vector<32x64xf32>
    %cst_5 = arith.constant dense<0.000000e+00> : vector<64xf32>
    %6 = vector.multi_reduction <add>, %5, %cst_5 [0] : vector<32x64xf32> to vector<64xf32>
    %7 = vector.shape_cast %6 : vector<64xf32> to vector<1x64xf32>
    %8 = arith.addf %3, %7 : vector<1x64xf32>
    %9 = arith.mulf %5, %5 : vector<32x64xf32>
    %cst_6 = arith.constant dense<0.000000e+00> : vector<64xf32>
    %10 = vector.multi_reduction <add>, %9, %cst_6 [0] : vector<32x64xf32> to vector<64xf32>
    %11 = vector.shape_cast %10 : vector<64xf32> to vector<1x64xf32>
    %12 = arith.addf %4, %11 : vector<1x64xf32>
    %13 = vector.extract_strided_slice %2 {offsets = [0, 64], sizes = [32, 64], strides = [1, 1]} : vector<32x256xf32> to vector<32x64xf32>
    %cst_7 = arith.constant dense<0.000000e+00> : vector<64xf32>
    %14 = vector.multi_reduction <add>, %13, %cst_7 [0] : vector<32x64xf32> to vector<64xf32>
    %15 = vector.shape_cast %14 : vector<64xf32> to vector<1x64xf32>
    %16 = arith.addf %8, %15 : vector<1x64xf32>
    %17 = arith.mulf %13, %13 : vector<32x64xf32>
    %cst_8 = arith.constant dense<0.000000e+00> : vector<64xf32>
    %18 = vector.multi_reduction <add>, %17, %cst_8 [0] : vector<32x64xf32> to vector<64xf32>
    %19 = vector.shape_cast %18 : vector<64xf32> to vector<1x64xf32>
    %20 = arith.addf %12, %19 : vector<1x64xf32>
    %21 = vector.extract_strided_slice %2 {offsets = [0, 128], sizes = [32, 64], strides = [1, 1]} : vector<32x256xf32> to vector<32x64xf32>
    %cst_9 = arith.constant dense<0.000000e+00> : vector<64xf32>
    %22 = vector.multi_reduction <add>, %21, %cst_9 [0] : vector<32x64xf32> to vector<64xf32>
    %23 = vector.shape_cast %22 : vector<64xf32> to vector<1x64xf32>
    %24 = arith.addf %16, %23 : vector<1x64xf32>
    %25 = arith.mulf %21, %21 : vector<32x64xf32>
    %cst_10 = arith.constant dense<0.000000e+00> : vector<64xf32>
    %26 = vector.multi_reduction <add>, %25, %cst_10 [0] : vector<32x64xf32> to vector<64xf32>
    %27 = vector.shape_cast %26 : vector<64xf32> to vector<1x64xf32>
    %28 = arith.addf %20, %27 : vector<1x64xf32>
    %29 = vector.extract_strided_slice %2 {offsets = [0, 192], sizes = [32, 64], strides = [1, 1]} : vector<32x256xf32> to vector<32x64xf32>
    %cst_11 = arith.constant dense<0.000000e+00> : vector<64xf32>
    %30 = vector.multi_reduction <add>, %29, %cst_11 [0] : vector<32x64xf32> to vector<64xf32>
    %31 = vector.shape_cast %30 : vector<64xf32> to vector<1x64xf32>
    %32 = arith.addf %24, %31 : vector<1x64xf32>
    %33 = arith.mulf %29, %29 : vector<32x64xf32>
    %cst_12 = arith.constant dense<0.000000e+00> : vector<64xf32>
    %34 = vector.multi_reduction <add>, %33, %cst_12 [0] : vector<32x64xf32> to vector<64xf32>
    %35 = vector.shape_cast %34 : vector<64xf32> to vector<1x64xf32>
    %36 = arith.addf %28, %35 : vector<1x64xf32>
    %cst_13 = arith.constant 1.280000e+02 : f32
    %37 = vector.broadcast %cst_13 : f32 to vector<1x64xf32>
    %38 = arith.divf %32, %37 : vector<1x64xf32>
    %cst_14 = arith.constant 1.280000e+02 : f32
    %39 = vector.broadcast %cst_14 : f32 to vector<1x64xf32>
    %40 = arith.divf %36, %39 : vector<1x64xf32>
    %41 = arith.mulf %38, %38 : vector<1x64xf32>
    %42 = arith.subf %40, %41 : vector<1x64xf32>
    %c0_15 = arith.constant 0 : index
    %c0_16 = arith.constant 0 : index
    %43 = vector.load %arg3[%c0_15, %c0_16] : memref<1x64xf32, #tpu.memory_space<vmem>>, vector<1x64xf32>
    %cst_17 = arith.constant 9.99999974E-6 : f32
    %44 = vector.broadcast %cst_17 : f32 to vector<1x64xf32>
    %45 = arith.addf %42, %44 : vector<1x64xf32>
    %46 = math.rsqrt %45 : vector<1x64xf32>
    %47 = arith.mulf %43, %46 : vector<1x64xf32>
    %c0_18 = arith.constant 0 : index
    %c0_19 = arith.constant 0 : index
    %48 = vector.load %arg4[%c0_18, %c0_19] : memref<1x64xf32, #tpu.memory_space<vmem>>, vector<1x64xf32>
    %49 = arith.mulf %38, %47 : vector<1x64xf32>
    %50 = arith.subf %48, %49 : vector<1x64xf32>
    %51 = tpu.concatenate %47, %47, %47, %47 in 1 : vector<1x64xf32>, vector<1x64xf32>, vector<1x64xf32>, vector<1x64xf32> -> vector<1x256xf32>
    %52 = tpu.concatenate %50, %50, %50, %50 in 1 : vector<1x64xf32>, vector<1x64xf32>, vector<1x64xf32>, vector<1x64xf32> -> vector<1x256xf32>
    %53 = vector.broadcast %51 : vector<1x256xf32> to vector<32x256xf32>
    %54 = arith.mulf %2, %53 : vector<32x256xf32>
    %55 = vector.broadcast %52 : vector<1x256xf32> to vector<32x256xf32>
    %56 = arith.addf %54, %55 : vector<32x256xf32>
    %cst_20 = arith.constant 0.000000e+00 : f32
    %57 = vector.broadcast %cst_20 : f32 to vector<32x256xf32>
    %58 = arith.maximumf %56, %57 : vector<32x256xf32>
    %c0_21 = arith.constant 0 : index
    %c0_22 = arith.constant 0 : index
    %59 = vector.load %arg5[%c0_21, %c0_22] : memref<32x256xf32, #tpu.memory_space<vmem>>, vector<32x256xf32>
    tpu.vector_store %arg5[%c0_21, %c0_22], %58 {strides = array<i32>} : memref<32x256xf32, #tpu.memory_space<vmem>>, vector<32x256xf32>,
    return
  }
  func.func @transform_0(%arg0: i32) -> (i32, i32) {
    %c0_i32 = arith.constant 0 : i32
    %c0_i32_0 = arith.constant 0 : i32
    %c0_i32_1 = arith.constant 0 : i32
    return %c0_i32, %c0_i32_0 : i32, i32
  }
  func.func @transform_1(%arg0: i32) -> (i32, i32) {
    %c0_i32 = arith.constant 0 : i32
    %c0_i32_0 = arith.constant 0 : i32
    %c0_i32_1 = arith.constant 0 : i32
    return %c0_i32, %c0_i32_0 : i32, i32
  }
  func.func @transform_2(%arg0: i32) -> (i32, i32) {
    %c0_i32 = arith.constant 0 : i32
    %c0_i32_0 = arith.constant 0 : i32
    %c0_i32_1 = arith.constant 0 : i32
    return %c0_i32, %c0_i32_0 : i32, i32
  }
  func.func @transform_3(%arg0: i32) -> (i32, i32) {
    %c0_i32 = arith.constant 0 : i32
    %c0_i32_0 = arith.constant 0 : i32
    %c0_i32_1 = arith.constant 0 : i32
    return %c0_i32, %c0_i32_0 : i32, i32
  }
  func.func @transform_4(%arg0: i32) -> (i32, i32) {
    %c0_i32 = arith.constant 0 : i32
    %c0_i32_0 = arith.constant 0 : i32
    %c0_i32_1 = arith.constant 0 : i32
    return %c0_i32, %c0_i32_0 : i32, i32
  }
}

module attributes {stable_mosaic.version = 11 : i64} {
  func.func @_mm_bn_relu_kernel(%arg0: i32, %arg1: memref<128x576xbf16, #tpu.memory_space<vmem>>, %arg2: memref<576x128xbf16, #tpu.memory_space<vmem>>, %arg3: memref<1x32xf32, #tpu.memory_space<vmem>>, %arg4: memref<1x32xf32, #tpu.memory_space<vmem>>, %arg5: memref<128x128xf32, #tpu.memory_space<vmem>>) attributes {dimension_semantics = [#tpu.dimension_semantics<arbitrary>], iteration_bounds = array<i64: 1>, scalar_prefetch = 0 : i64, scratch_operands = 0 : i64, tpu.core_type = #tpu.core_type<tc>, window_params = [{pipeline_mode = #tpu.pipeline_mode<synchronous>, transform_indices = @transform_0, window_bounds = array<i64: 128, 576>}, {pipeline_mode = #tpu.pipeline_mode<synchronous>, transform_indices = @transform_1, window_bounds = array<i64: 576, 128>}, {pipeline_mode = #tpu.pipeline_mode<synchronous>, transform_indices = @transform_2, window_bounds = array<i64: 1, 32>}, {pipeline_mode = #tpu.pipeline_mode<synchronous>, transform_indices = @transform_3, window_bounds = array<i64: 1, 32>}, {pipeline_mode = #tpu.pipeline_mode<synchronous>, transform_indices = @transform_4, window_bounds = array<i64: 128, 128>}]} {
    %c0 = arith.constant 0 : index
    %c0_0 = arith.constant 0 : index
    %0 = vector.load %arg1[%c0, %c0_0] : memref<128x576xbf16, #tpu.memory_space<vmem>>, vector<128x576xbf16>
    %c0_1 = arith.constant 0 : index
    %c0_2 = arith.constant 0 : index
    %1 = vector.load %arg2[%c0_1, %c0_2] : memref<576x128xbf16, #tpu.memory_space<vmem>>, vector<576x128xbf16>
    %cst = arith.constant dense<0.000000e+00> : vector<128x128xf32>
    %2 = tpu.matmul %0, %1, %cst {dimension_numbers = #tpu.dot_dimension_numbers<[1], [0], [0], [1], [0, 0, 1, 1], [], []>} : vector<128x576xbf16>, vector<576x128xbf16>, vector<128x128xf32> -> vector<128x128xf32>
    %cst_3 = arith.constant 0.000000e+00 : f32
    %3 = vector.broadcast %cst_3 : f32 to vector<1x32xf32>
    %cst_4 = arith.constant 0.000000e+00 : f32
    %4 = vector.broadcast %cst_4 : f32 to vector<1x32xf32>
    %5 = vector.extract_strided_slice %2 {offsets = [0, 0], sizes = [128, 32], strides = [1, 1]} : vector<128x128xf32> to vector<128x32xf32>
    %cst_5 = arith.constant dense<0.000000e+00> : vector<32xf32>
    %6 = vector.multi_reduction <add>, %5, %cst_5 [0] : vector<128x32xf32> to vector<32xf32>
    %7 = vector.shape_cast %6 : vector<32xf32> to vector<1x32xf32>
    %8 = arith.addf %3, %7 : vector<1x32xf32>
    %9 = arith.mulf %5, %5 : vector<128x32xf32>
    %cst_6 = arith.constant dense<0.000000e+00> : vector<32xf32>
    %10 = vector.multi_reduction <add>, %9, %cst_6 [0] : vector<128x32xf32> to vector<32xf32>
    %11 = vector.shape_cast %10 : vector<32xf32> to vector<1x32xf32>
    %12 = arith.addf %4, %11 : vector<1x32xf32>
    %13 = vector.extract_strided_slice %2 {offsets = [0, 32], sizes = [128, 32], strides = [1, 1]} : vector<128x128xf32> to vector<128x32xf32>
    %cst_7 = arith.constant dense<0.000000e+00> : vector<32xf32>
    %14 = vector.multi_reduction <add>, %13, %cst_7 [0] : vector<128x32xf32> to vector<32xf32>
    %15 = vector.shape_cast %14 : vector<32xf32> to vector<1x32xf32>
    %16 = arith.addf %8, %15 : vector<1x32xf32>
    %17 = arith.mulf %13, %13 : vector<128x32xf32>
    %cst_8 = arith.constant dense<0.000000e+00> : vector<32xf32>
    %18 = vector.multi_reduction <add>, %17, %cst_8 [0] : vector<128x32xf32> to vector<32xf32>
    %19 = vector.shape_cast %18 : vector<32xf32> to vector<1x32xf32>
    %20 = arith.addf %12, %19 : vector<1x32xf32>
    %21 = vector.extract_strided_slice %2 {offsets = [0, 64], sizes = [128, 32], strides = [1, 1]} : vector<128x128xf32> to vector<128x32xf32>
    %cst_9 = arith.constant dense<0.000000e+00> : vector<32xf32>
    %22 = vector.multi_reduction <add>, %21, %cst_9 [0] : vector<128x32xf32> to vector<32xf32>
    %23 = vector.shape_cast %22 : vector<32xf32> to vector<1x32xf32>
    %24 = arith.addf %16, %23 : vector<1x32xf32>
    %25 = arith.mulf %21, %21 : vector<128x32xf32>
    %cst_10 = arith.constant dense<0.000000e+00> : vector<32xf32>
    %26 = vector.multi_reduction <add>, %25, %cst_10 [0] : vector<128x32xf32> to vector<32xf32>
    %27 = vector.shape_cast %26 : vector<32xf32> to vector<1x32xf32>
    %28 = arith.addf %20, %27 : vector<1x32xf32>
    %29 = vector.extract_strided_slice %2 {offsets = [0, 96], sizes = [128, 32], strides = [1, 1]} : vector<128x128xf32> to vector<128x32xf32>
    %cst_11 = arith.constant dense<0.000000e+00> : vector<32xf32>
    %30 = vector.multi_reduction <add>, %29, %cst_11 [0] : vector<128x32xf32> to vector<32xf32>
    %31 = vector.shape_cast %30 : vector<32xf32> to vector<1x32xf32>
    %32 = arith.addf %24, %31 : vector<1x32xf32>
    %33 = arith.mulf %29, %29 : vector<128x32xf32>
    %cst_12 = arith.constant dense<0.000000e+00> : vector<32xf32>
    %34 = vector.multi_reduction <add>, %33, %cst_12 [0] : vector<128x32xf32> to vector<32xf32>
    %35 = vector.shape_cast %34 : vector<32xf32> to vector<1x32xf32>
    %36 = arith.addf %28, %35 : vector<1x32xf32>
    %cst_13 = arith.constant 5.120000e+02 : f32
    %37 = vector.broadcast %cst_13 : f32 to vector<1x32xf32>
    %38 = arith.divf %32, %37 : vector<1x32xf32>
    %cst_14 = arith.constant 5.120000e+02 : f32
    %39 = vector.broadcast %cst_14 : f32 to vector<1x32xf32>
    %40 = arith.divf %36, %39 : vector<1x32xf32>
    %41 = arith.mulf %38, %38 : vector<1x32xf32>
    %42 = arith.subf %40, %41 : vector<1x32xf32>
    %c0_15 = arith.constant 0 : index
    %c0_16 = arith.constant 0 : index
    %43 = vector.load %arg3[%c0_15, %c0_16] : memref<1x32xf32, #tpu.memory_space<vmem>>, vector<1x32xf32>
    %cst_17 = arith.constant 9.99999974E-6 : f32
    %44 = vector.broadcast %cst_17 : f32 to vector<1x32xf32>
    %45 = arith.addf %42, %44 : vector<1x32xf32>
    %46 = math.rsqrt %45 : vector<1x32xf32>
    %47 = arith.mulf %43, %46 : vector<1x32xf32>
    %c0_18 = arith.constant 0 : index
    %c0_19 = arith.constant 0 : index
    %48 = vector.load %arg4[%c0_18, %c0_19] : memref<1x32xf32, #tpu.memory_space<vmem>>, vector<1x32xf32>
    %49 = arith.mulf %38, %47 : vector<1x32xf32>
    %50 = arith.subf %48, %49 : vector<1x32xf32>
    %51 = tpu.concatenate %47, %47, %47, %47 in 1 : vector<1x32xf32>, vector<1x32xf32>, vector<1x32xf32>, vector<1x32xf32> -> vector<1x128xf32>
    %52 = tpu.concatenate %50, %50, %50, %50 in 1 : vector<1x32xf32>, vector<1x32xf32>, vector<1x32xf32>, vector<1x32xf32> -> vector<1x128xf32>
    %53 = vector.broadcast %51 : vector<1x128xf32> to vector<128x128xf32>
    %54 = arith.mulf %2, %53 : vector<128x128xf32>
    %55 = vector.broadcast %52 : vector<1x128xf32> to vector<128x128xf32>
    %56 = arith.addf %54, %55 : vector<128x128xf32>
    %cst_20 = arith.constant 0.000000e+00 : f32
    %57 = vector.broadcast %cst_20 : f32 to vector<128x128xf32>
    %58 = arith.maximumf %56, %57 : vector<128x128xf32>
    %c0_21 = arith.constant 0 : index
    %c0_22 = arith.constant 0 : index
    %59 = vector.load %arg5[%c0_21, %c0_22] : memref<128x128xf32, #tpu.memory_space<vmem>>, vector<128x128xf32>
    tpu.vector_store %arg5[%c0_21, %c0_22], %58 {strides = array<i32>} : memref<128x128xf32, #tpu.memory_space<vmem>>, vector<128x128xf32>,
    return
  }
  func.func @transform_0(%arg0: i32) -> (i32, i32) {
    %c0_i32 = arith.constant 0 : i32
    %c0_i32_0 = arith.constant 0 : i32
    %c0_i32_1 = arith.constant 0 : i32
    return %c0_i32, %c0_i32_0 : i32, i32
  }
  func.func @transform_1(%arg0: i32) -> (i32, i32) {
    %c0_i32 = arith.constant 0 : i32
    %c0_i32_0 = arith.constant 0 : i32
    %c0_i32_1 = arith.constant 0 : i32
    return %c0_i32, %c0_i32_0 : i32, i32
  }
  func.func @transform_2(%arg0: i32) -> (i32, i32) {
    %c0_i32 = arith.constant 0 : i32
    %c0_i32_0 = arith.constant 0 : i32
    %c0_i32_1 = arith.constant 0 : i32
    return %c0_i32, %c0_i32_0 : i32, i32
  }
  func.func @transform_3(%arg0: i32) -> (i32, i32) {
    %c0_i32 = arith.constant 0 : i32
    %c0_i32_0 = arith.constant 0 : i32
    %c0_i32_1 = arith.constant 0 : i32
    return %c0_i32, %c0_i32_0 : i32, i32
  }
  func.func @transform_4(%arg0: i32) -> (i32, i32) {
    %c0_i32 = arith.constant 0 : i32
    %c0_i32_0 = arith.constant 0 : i32
    %c0_i32_1 = arith.constant 0 : i32
    return %c0_i32, %c0_i32_0 : i32, i32
  }
}

module attributes {stable_mosaic.version = 11 : i64} {
  func.func @_mm_bn_relu_kernel(%arg0: i32, %arg1: memref<512x288xbf16, #tpu.memory_space<vmem>>, %arg2: memref<288x128xbf16, #tpu.memory_space<vmem>>, %arg3: memref<1x16xf32, #tpu.memory_space<vmem>>, %arg4: memref<1x16xf32, #tpu.memory_space<vmem>>, %arg5: memref<512x128xf32, #tpu.memory_space<vmem>>) attributes {dimension_semantics = [#tpu.dimension_semantics<arbitrary>], iteration_bounds = array<i64: 1>, scalar_prefetch = 0 : i64, scratch_operands = 0 : i64, tpu.core_type = #tpu.core_type<tc>, window_params = [{pipeline_mode = #tpu.pipeline_mode<synchronous>, transform_indices = @transform_0, window_bounds = array<i64: 512, 288>}, {pipeline_mode = #tpu.pipeline_mode<synchronous>, transform_indices = @transform_1, window_bounds = array<i64: 288, 128>}, {pipeline_mode = #tpu.pipeline_mode<synchronous>, transform_indices = @transform_2, window_bounds = array<i64: 1, 16>}, {pipeline_mode = #tpu.pipeline_mode<synchronous>, transform_indices = @transform_3, window_bounds = array<i64: 1, 16>}, {pipeline_mode = #tpu.pipeline_mode<synchronous>, transform_indices = @transform_4, window_bounds = array<i64: 512, 128>}]} {
    %c0 = arith.constant 0 : index
    %c0_0 = arith.constant 0 : index
    %0 = vector.load %arg1[%c0, %c0_0] : memref<512x288xbf16, #tpu.memory_space<vmem>>, vector<512x288xbf16>
    %c0_1 = arith.constant 0 : index
    %c0_2 = arith.constant 0 : index
    %1 = vector.load %arg2[%c0_1, %c0_2] : memref<288x128xbf16, #tpu.memory_space<vmem>>, vector<288x128xbf16>
    %cst = arith.constant dense<0.000000e+00> : vector<512x128xf32>
    %2 = tpu.matmul %0, %1, %cst {dimension_numbers = #tpu.dot_dimension_numbers<[1], [0], [0], [1], [0, 0, 1, 1], [], []>} : vector<512x288xbf16>, vector<288x128xbf16>, vector<512x128xf32> -> vector<512x128xf32>
    %cst_3 = arith.constant 0.000000e+00 : f32
    %3 = vector.broadcast %cst_3 : f32 to vector<1x16xf32>
    %cst_4 = arith.constant 0.000000e+00 : f32
    %4 = vector.broadcast %cst_4 : f32 to vector<1x16xf32>
    %5 = vector.extract_strided_slice %2 {offsets = [0, 0], sizes = [512, 16], strides = [1, 1]} : vector<512x128xf32> to vector<512x16xf32>
    %cst_5 = arith.constant dense<0.000000e+00> : vector<16xf32>
    %6 = vector.multi_reduction <add>, %5, %cst_5 [0] : vector<512x16xf32> to vector<16xf32>
    %7 = vector.shape_cast %6 : vector<16xf32> to vector<1x16xf32>
    %8 = arith.addf %3, %7 : vector<1x16xf32>
    %9 = arith.mulf %5, %5 : vector<512x16xf32>
    %cst_6 = arith.constant dense<0.000000e+00> : vector<16xf32>
    %10 = vector.multi_reduction <add>, %9, %cst_6 [0] : vector<512x16xf32> to vector<16xf32>
    %11 = vector.shape_cast %10 : vector<16xf32> to vector<1x16xf32>
    %12 = arith.addf %4, %11 : vector<1x16xf32>
    %13 = vector.extract_strided_slice %2 {offsets = [0, 16], sizes = [512, 16], strides = [1, 1]} : vector<512x128xf32> to vector<512x16xf32>
    %cst_7 = arith.constant dense<0.000000e+00> : vector<16xf32>
    %14 = vector.multi_reduction <add>, %13, %cst_7 [0] : vector<512x16xf32> to vector<16xf32>
    %15 = vector.shape_cast %14 : vector<16xf32> to vector<1x16xf32>
    %16 = arith.addf %8, %15 : vector<1x16xf32>
    %17 = arith.mulf %13, %13 : vector<512x16xf32>
    %cst_8 = arith.constant dense<0.000000e+00> : vector<16xf32>
    %18 = vector.multi_reduction <add>, %17, %cst_8 [0] : vector<512x16xf32> to vector<16xf32>
    %19 = vector.shape_cast %18 : vector<16xf32> to vector<1x16xf32>
    %20 = arith.addf %12, %19 : vector<1x16xf32>
    %21 = vector.extract_strided_slice %2 {offsets = [0, 32], sizes = [512, 16], strides = [1, 1]} : vector<512x128xf32> to vector<512x16xf32>
    %cst_9 = arith.constant dense<0.000000e+00> : vector<16xf32>
    %22 = vector.multi_reduction <add>, %21, %cst_9 [0] : vector<512x16xf32> to vector<16xf32>
    %23 = vector.shape_cast %22 : vector<16xf32> to vector<1x16xf32>
    %24 = arith.addf %16, %23 : vector<1x16xf32>
    %25 = arith.mulf %21, %21 : vector<512x16xf32>
    %cst_10 = arith.constant dense<0.000000e+00> : vector<16xf32>
    %26 = vector.multi_reduction <add>, %25, %cst_10 [0] : vector<512x16xf32> to vector<16xf32>
    %27 = vector.shape_cast %26 : vector<16xf32> to vector<1x16xf32>
    %28 = arith.addf %20, %27 : vector<1x16xf32>
    %29 = vector.extract_strided_slice %2 {offsets = [0, 48], sizes = [512, 16], strides = [1, 1]} : vector<512x128xf32> to vector<512x16xf32>
    %cst_11 = arith.constant dense<0.000000e+00> : vector<16xf32>
    %30 = vector.multi_reduction <add>, %29, %cst_11 [0] : vector<512x16xf32> to vector<16xf32>
    %31 = vector.shape_cast %30 : vector<16xf32> to vector<1x16xf32>
    %32 = arith.addf %24, %31 : vector<1x16xf32>
    %33 = arith.mulf %29, %29 : vector<512x16xf32>
    %cst_12 = arith.constant dense<0.000000e+00> : vector<16xf32>
    %34 = vector.multi_reduction <add>, %33, %cst_12 [0] : vector<512x16xf32> to vector<16xf32>
    %35 = vector.shape_cast %34 : vector<16xf32> to vector<1x16xf32>
    %36 = arith.addf %28, %35 : vector<1x16xf32>
    %cst_13 = arith.constant 2.048000e+03 : f32
    %37 = vector.broadcast %cst_13 : f32 to vector<1x16xf32>
    %38 = arith.divf %32, %37 : vector<1x16xf32>
    %cst_14 = arith.constant 2.048000e+03 : f32
    %39 = vector.broadcast %cst_14 : f32 to vector<1x16xf32>
    %40 = arith.divf %36, %39 : vector<1x16xf32>
    %41 = arith.mulf %38, %38 : vector<1x16xf32>
    %42 = arith.subf %40, %41 : vector<1x16xf32>
    %c0_15 = arith.constant 0 : index
    %c0_16 = arith.constant 0 : index
    %43 = vector.load %arg3[%c0_15, %c0_16] : memref<1x16xf32, #tpu.memory_space<vmem>>, vector<1x16xf32>
    %cst_17 = arith.constant 9.99999974E-6 : f32
    %44 = vector.broadcast %cst_17 : f32 to vector<1x16xf32>
    %45 = arith.addf %42, %44 : vector<1x16xf32>
    %46 = math.rsqrt %45 : vector<1x16xf32>
    %47 = arith.mulf %43, %46 : vector<1x16xf32>
    %c0_18 = arith.constant 0 : index
    %c0_19 = arith.constant 0 : index
    %48 = vector.load %arg4[%c0_18, %c0_19] : memref<1x16xf32, #tpu.memory_space<vmem>>, vector<1x16xf32>
    %49 = arith.mulf %38, %47 : vector<1x16xf32>
    %50 = arith.subf %48, %49 : vector<1x16xf32>
    %cst_20 = arith.constant 0.000000e+00 : f32
    %51 = vector.broadcast %cst_20 : f32 to vector<1x64xf32>
    %52 = tpu.concatenate %47, %47, %47, %47, %51 in 1 : vector<1x16xf32>, vector<1x16xf32>, vector<1x16xf32>, vector<1x16xf32>, vector<1x64xf32> -> vector<1x128xf32>
    %53 = tpu.concatenate %50, %50, %50, %50, %51 in 1 : vector<1x16xf32>, vector<1x16xf32>, vector<1x16xf32>, vector<1x16xf32>, vector<1x64xf32> -> vector<1x128xf32>
    %54 = vector.broadcast %52 : vector<1x128xf32> to vector<512x128xf32>
    %55 = arith.mulf %2, %54 : vector<512x128xf32>
    %56 = vector.broadcast %53 : vector<1x128xf32> to vector<512x128xf32>
    %57 = arith.addf %55, %56 : vector<512x128xf32>
    %cst_21 = arith.constant 0.000000e+00 : f32
    %58 = vector.broadcast %cst_21 : f32 to vector<512x128xf32>
    %59 = arith.maximumf %57, %58 : vector<512x128xf32>
    %c0_22 = arith.constant 0 : index
    %c0_23 = arith.constant 0 : index
    %60 = vector.load %arg5[%c0_22, %c0_23] : memref<512x128xf32, #tpu.memory_space<vmem>>, vector<512x128xf32>
    tpu.vector_store %arg5[%c0_22, %c0_23], %59 {strides = array<i32>} : memref<512x128xf32, #tpu.memory_space<vmem>>, vector<512x128xf32>,
    return
  }
  func.func @transform_0(%arg0: i32) -> (i32, i32) {
    %c0_i32 = arith.constant 0 : i32
    %c0_i32_0 = arith.constant 0 : i32
    %c0_i32_1 = arith.constant 0 : i32
    return %c0_i32, %c0_i32_0 : i32, i32
  }
  func.func @transform_1(%arg0: i32) -> (i32, i32) {
    %c0_i32 = arith.constant 0 : i32
    %c0_i32_0 = arith.constant 0 : i32
    %c0_i32_1 = arith.constant 0 : i32
    return %c0_i32, %c0_i32_0 : i32, i32
  }
  func.func @transform_2(%arg0: i32) -> (i32, i32) {
    %c0_i32 = arith.constant 0 : i32
    %c0_i32_0 = arith.constant 0 : i32
    %c0_i32_1 = arith.constant 0 : i32
    return %c0_i32, %c0_i32_0 : i32, i32
  }
  func.func @transform_3(%arg0: i32) -> (i32, i32) {
    %c0_i32 = arith.constant 0 : i32
    %c0_i32_0 = arith.constant 0 : i32
    %c0_i32_1 = arith.constant 0 : i32
    return %c0_i32, %c0_i32_0 : i32, i32
  }
  func.func @transform_4(%arg0: i32) -> (i32, i32) {
    %c0_i32 = arith.constant 0 : i32
    %c0_i32_0 = arith.constant 0 : i32
    %c0_i32_1 = arith.constant 0 : i32
    return %c0_i32, %c0_i32_0 : i32, i32
  }
}

module attributes {stable_mosaic.version = 11 : i64} {
  func.func @_mm_tanh_kernel(%arg0: i32, %arg1: memref<1024x144xbf16, #tpu.memory_space<vmem>>, %arg2: memref<144x128xbf16, #tpu.memory_space<vmem>>, %arg3: memref<1024x128xf32, #tpu.memory_space<vmem>>) attributes {dimension_semantics = [#tpu.dimension_semantics<parallel>], iteration_bounds = array<i64: 2>, scalar_prefetch = 0 : i64, scratch_operands = 0 : i64, tpu.core_type = #tpu.core_type<tc>, window_params = [{transform_indices = @transform_0, window_bounds = array<i64: 1024, 144>}, {pipeline_mode = #tpu.pipeline_mode<synchronous>, transform_indices = @transform_1, window_bounds = array<i64: 144, 128>}, {transform_indices = @transform_2, window_bounds = array<i64: 1024, 128>}]} {
    %c0 = arith.constant 0 : index
    %c0_0 = arith.constant 0 : index
    %0 = vector.load %arg1[%c0, %c0_0] : memref<1024x144xbf16, #tpu.memory_space<vmem>>, vector<1024x144xbf16>
    %c0_1 = arith.constant 0 : index
    %c0_2 = arith.constant 0 : index
    %1 = vector.load %arg2[%c0_1, %c0_2] : memref<144x128xbf16, #tpu.memory_space<vmem>>, vector<144x128xbf16>
    %cst = arith.constant dense<0.000000e+00> : vector<1024x128xf32>
    %2 = tpu.matmul %0, %1, %cst {dimension_numbers = #tpu.dot_dimension_numbers<[1], [0], [0], [1], [0, 0, 1, 1], [], []>} : vector<1024x144xbf16>, vector<144x128xbf16>, vector<1024x128xf32> -> vector<1024x128xf32>
    %3 = math.tanh %2 : vector<1024x128xf32>
    %c0_3 = arith.constant 0 : index
    %c0_4 = arith.constant 0 : index
    %4 = vector.load %arg3[%c0_3, %c0_4] : memref<1024x128xf32, #tpu.memory_space<vmem>>, vector<1024x128xf32>
    tpu.vector_store %arg3[%c0_3, %c0_4], %3 {strides = array<i32>} : memref<1024x128xf32, #tpu.memory_space<vmem>>, vector<1024x128xf32>,
    return
  }
  func.func @transform_0(%arg0: i32) -> (i32, i32) {
    %c0_i32 = arith.constant 0 : i32
    %c0_i32_0 = arith.constant 0 : i32
    return %arg0, %c0_i32 : i32, i32
  }
  func.func @transform_1(%arg0: i32) -> (i32, i32) {
    %c0_i32 = arith.constant 0 : i32
    %c0_i32_0 = arith.constant 0 : i32
    %c0_i32_1 = arith.constant 0 : i32
    return %c0_i32, %c0_i32_0 : i32, i32
  }
  func.func @transform_2(%arg0: i32) -> (i32, i32) {
    %c0_i32 = arith.constant 0 : i32
    %c0_i32_0 = arith.constant 0 : i32
    return %arg0, %c0_i32 : i32, i32
  }
}

</mosaic_0001>

<bundles_post_ra>
// kernel: dc_generator_forward.5
= control target key start
LH: loop header
LB: loop body
LE: loop exit
PB: predicated region body
PF: predicated region fallthrough
CT: control target
= control target key end

     0   :  { %v1024_v3 = vmov 0   ;;  %vm211_vm0 = vcmask 261120   ;;  %vm543_vm1 = vcmask 1041408   ;;  %s1332_s1 = inlined_call_operand.vmem [shape: bf16[32,2048], index: 1, kind: input, shape index: {}]   ;;  %s1333_s0 = inlined_call_operand.vmem [shape: bf16[2,32], index: 0, kind: input, shape index: {}]   ;;  %s1334_s2 = inlined_call_operand.vmem [shape: f32[1,128], index: 2, kind: input, shape index: {}]   ;;  %s1335_s3 = inlined_call_operand.vmem [shape: f32[1,128], index: 3, kind: input, shape index: {}]   ;;  %s1336_s4 = inlined_call_operand.vmem [shape: f32[2,2048], index: 4, kind: output, shape index: {}]  }
   0x1   :  { %v35_v0 = vld [vmem:[%s1332_s1 + $0x80] sm:$0xff]  ;;  %v36_v2 = vld [vmem:[%s1332_s1 + $0x88] sm:$0xff]  ;;  %247 = vmatprep.mubr.bf16.mxu0 %v1024_v3  ;;  %288 = vmatprep.mubr.bf16.mxu1 %v1024_v3  ;;  %v37_v15 = vld [vmem:[%s1332_s1 + $0x90] sm:$0xff] }
   0x2   :  { %v43_v1 = vld [vmem:[%s1332_s1 + $0xc0] sm:$0xff]  ;;  %v44_v5 = vld [vmem:[%s1332_s1 + $0xc8] sm:$0xff]  ;;  %v45_v16 = vld [vmem:[%s1332_s1 + $0xd0] sm:$0xff] }
   0x3   :  { %v997_v4 = vcombine.high %v35_v0, %v43_v1  ;;  %v996_v6 = vcombine.low %v35_v0, %v43_v1  ;;  %v19_v7 = vld [vmem:[%s1332_s1] sm:$0xff]  ;;  %v999_v9 = vcombine.high %v36_v2, %v44_v5  ;;  %v998_v10 = vcombine.low %v36_v2, %v44_v5  ;;  %v20_v12 = vld [vmem:[%s1332_s1 + $0x8] sm:$0xff]  ;;  %v38_v17 = vld [vmem:[%s1332_s1 + $0x98] sm:$0xff] }
   0x4   :  { %v27_v8 = vld [vmem:[%s1332_s1 + $0x40] sm:$0xff]  ;;  %v28_v13 = vld [vmem:[%s1332_s1 + $0x48] sm:$0xff]  ;;  %v46_v19 = vld [vmem:[%s1332_s1 + $0xd8] sm:$0xff]  ;;  %v1001_v21 = vcombine.high %v37_v15, %v45_v16  ;;  %v1000_v28 = vcombine.low %v37_v15, %v45_v16 }
   0x5   :  { %v981_v11 = vcombine.high %v19_v7, %v27_v8  ;;  %227 = vmatprep.subr.bf16.mxu0 %v997_v4  ;;  %v983_v14 = vcombine.high %v20_v12, %v28_v13  ;;  %268 = vmatprep.subr.bf16.mxu1 %v999_v9  ;;  %v980_v18 = vcombine.low %v19_v7, %v27_v8  ;;  %v21_v23 = vld [vmem:[%s1332_s1 + $0x10] sm:$0xff]  ;;  %v22_v25 = vld [vmem:[%s1332_s1 + $0x18] sm:$0xff]  ;;  %v1104_v27 = vld [vmem:[%s1333_s0] sm:$0x1] }
   0x6   :  { %228 = vmatpush1.bf16.msra.mxu0 %v996_v6  ;;  %269 = vmatpush1.bf16.msra.mxu1 %v998_v10  ;;  %v982_v20 = vcombine.low %v20_v12, %v28_v13  ;;  %v1003_v22 = vcombine.high %v38_v17, %v46_v19  ;;  %v29_v24 = vld [vmem:[%s1332_s1 + $0x50] sm:$0xff]  ;;  %v30_v26 = vld [vmem:[%s1332_s1 + $0x58] sm:$0xff]  ;;  %v1002_v29 = vcombine.low %v38_v17, %v46_v19  ;;  %v39_v32 = vld [vmem:[%s1332_s1 + $0xa0] sm:$0xff] }
   0x7   :  { %229 = vmatprep.subr.bf16.mxu0 %v981_v11  ;;  %270 = vmatprep.subr.bf16.mxu1 %v983_v14  ;;  %v985_v30 = vcombine.high %v21_v23, %v29_v24  ;;  %v987_v31 = vcombine.high %v22_v25, %v30_v26  ;;  %v47_v33 = vld [vmem:[%s1332_s1 + $0xe0] sm:$0xff]  ;;  %v40_v34 = vld [vmem:[%s1332_s1 + $0xa8] sm:$0xff]  ;;  %v984_v36 = vcombine.low %v21_v23, %v29_v24  ;;  %v41_v48 = vld [vmem:[%s1332_s1 + $0xb0] sm:$0xff] }
   0x8   :  { %v48_v35 = vld [vmem:[%s1332_s1 + $0xe8] sm:$0xff]  ;;  %v986_v37 = vcombine.low %v22_v25, %v30_v26  ;;  %v1005_v38 = vcombine.high %v39_v32, %v47_v33  ;;  %v23_v40 = vld [vmem:[%s1332_s1 + $0x20] sm:$0xff]  ;;  %v1004_v44 = vcombine.low %v39_v32, %v47_v33  ;;  %v49_v49 = vld [vmem:[%s1332_s1 + $0xf0] sm:$0xff] }
   0x9   :  { %v1007_v39 = vcombine.high %v40_v34, %v48_v35  ;;  %v31_v41 = vld [vmem:[%s1332_s1 + $0x60] sm:$0xff]  ;;  %v24_v42 = vld [vmem:[%s1332_s1 + $0x28] sm:$0xff]  ;;  %v1006_v45 = vcombine.low %v40_v34, %v48_v35  ;;  %v42_v50 = vld [vmem:[%s1332_s1 + $0xb8] sm:$0xff]  ;;  %v1009_v54 = vcombine.high %v41_v48, %v49_v49  ;;  %v1008_v60 = vcombine.low %v41_v48, %v49_v49 }
   0xa   :  { %230 = vmatpush1.bf16.msra.mxu0 %v980_v18  ;;  %271 = vmatpush1.bf16.msra.mxu1 %v982_v20  ;;  %v32_v43 = vld [vmem:[%s1332_s1 + $0x68] sm:$0xff]  ;;  %v989_v46 = vcombine.high %v23_v40, %v31_v41  ;;  %v50_v51 = vld [vmem:[%s1332_s1 + $0xf8] sm:$0xff]  ;;  %v988_v52 = vcombine.low %v23_v40, %v31_v41  ;;  %v25_v56 = vld [vmem:[%s1332_s1 + $0x30] sm:$0xff] }
   0xb   :  { %309 = vmatprep.subr.bf16.mxu0 %v1001_v21  ;;  %350 = vmatprep.subr.bf16.mxu1 %v1003_v22  ;;  %v991_v47 = vcombine.high %v24_v42, %v32_v43  ;;  %v990_v53 = vcombine.low %v24_v42, %v32_v43  ;;  %v1011_v55 = vcombine.high %v42_v50, %v50_v51  ;;  %v33_v57 = vld [vmem:[%s1332_s1 + $0x70] sm:$0xff]  ;;  %v26_v58 = vld [vmem:[%s1332_s1 + $0x38] sm:$0xff] }
   0xc   :  { %v34_v59 = vld [vmem:[%s1332_s1 + $0x78] sm:$0xff]  ;;  %v1010_v61 = vcombine.low %v42_v50, %v50_v51  ;;  %v993_v62 = vcombine.high %v25_v56, %v33_v57  ;;  %v992_v0 = vcombine.low %v25_v56, %v33_v57 }
   0xd   :  { %1012 = vmatmul.mubr.msk.bf16.vlgmr.msra.gmra.mxu0 %vm211_vm0, %v1104_v27  ;;  %1013 = vmatmul.mubr.msk.bf16.vlgmr.msra.gmra.mxu1 %vm211_vm0, %v1104_v27  ;;  %v995_v63 = vcombine.high %v26_v58, %v34_v59  ;;  %v994_v1 = vcombine.low %v26_v58, %v34_v59 }
   0xe   :  { %310 = vmatpush1.bf16.msra.mxu0 %v1000_v28  ;;  %351 = vmatpush1.bf16.msra.mxu1 %v1002_v29 }
   0xf   :  { %311 = vmatprep.subr.bf16.mxu0 %v985_v30  ;;  %352 = vmatprep.subr.bf16.mxu1 %v987_v31 }
  0x10   :  { %329 = vmatprep.mubr.bf16.mxu0 %v1024_v3  ;;  %370 = vmatprep.mubr.bf16.mxu1 %v1024_v3 }
  0x12   :  { %312 = vmatpush1.bf16.msra.mxu0 %v984_v36  ;;  %353 = vmatpush1.bf16.msra.mxu1 %v986_v37 }
  0x13   :  { %391 = vmatprep.subr.bf16.mxu0 %v1005_v38  ;;  %432 = vmatprep.subr.bf16.mxu1 %v1007_v39 }
  0x15   :  { %1014 = vmatmul.mubr.msk.bf16.vlgmr.msra.gmra.mxu0 %vm211_vm0, %v1104_v27  ;;  %1015 = vmatmul.mubr.msk.bf16.vlgmr.msra.gmra.mxu1 %vm211_vm0, %v1104_v27 }
  0x16   :  { %392 = vmatpush1.bf16.msra.mxu0 %v1004_v44  ;;  %433 = vmatpush1.bf16.msra.mxu1 %v1006_v45 }
  0x17   :  { %393 = vmatprep.subr.bf16.mxu0 %v989_v46  ;;  %434 = vmatprep.subr.bf16.mxu1 %v991_v47 }
  0x18   :  { %411 = vmatprep.mubr.bf16.mxu0 %v1024_v3  ;;  %452 = vmatprep.mubr.bf16.mxu1 %v1024_v3 }
  0x1a   :  { %394 = vmatpush1.bf16.msra.mxu0 %v988_v52  ;;  %435 = vmatpush1.bf16.msra.mxu1 %v990_v53 }
  0x1b   :  { %473 = vmatprep.subr.bf16.mxu0 %v1009_v54  ;;  %514 = vmatprep.subr.bf16.mxu1 %v1011_v55 }
  0x1d   :  { %1016 = vmatmul.mubr.msk.bf16.vlgmr.msra.gmra.mxu0 %vm211_vm0, %v1104_v27  ;;  %1017 = vmatmul.mubr.msk.bf16.vlgmr.msra.gmra.mxu1 %vm211_vm0, %v1104_v27 }
  0x1e   :  { %474 = vmatpush1.bf16.msra.mxu0 %v1008_v60  ;;  %515 = vmatpush1.bf16.msra.mxu1 %v1010_v61 }
  0x1f   :  { %475 = vmatprep.subr.bf16.mxu0 %v993_v62  ;;  %516 = vmatprep.subr.bf16.mxu1 %v995_v63 }
  0x20   :  { %493 = vmatprep.mubr.bf16.mxu0 %v1024_v3  ;;  %534 = vmatprep.mubr.bf16.mxu1 %v1024_v3 }
  0x22   :  { %476 = vmatpush1.bf16.msra.mxu0 %v992_v0  ;;  %517 = vmatpush1.bf16.msra.mxu1 %v994_v1 }
  0x25   :  { %1018 = vmatmul.mubr.msk.bf16.vlgmr.msra.gmra.mxu0 %vm211_vm0, %v1104_v27  ;;  %1019 = vmatmul.mubr.msk.bf16.vlgmr.msra.gmra.mxu1 %vm211_vm0, %v1104_v27 }
  0xcd   :  { %v1176_v2 = vpop.f32.mrf.mxu0  ;;  %v1182_v6 = vpop.f32.mrf.mxu1 }
  0xce   :  { %v544_v4 = vsel %vm543_vm1, %v1176_v2, 0.0  ;;  %v552_v5 = vmul.f32 %v1176_v2, %v1176_v2  ;;  %v578_v7 = vsel %vm543_vm1, %v1182_v6, 0.0  ;;  %v586_v8 = vmul.f32 %v1182_v6, %v1182_v6 }
  0xcf   :  { %v545_v3 = vrot.slane %v544_v4, 4  ;;  %v1188_v9 = vpop.f32.mrf.mxu0  ;;  %v579_v11 = vrot.slane %v578_v7, 4  ;;  %v1195_v14 = vpop.f32.mrf.mxu1 }
  0xd0   :  { %v553_v10 = vsel %vm543_vm1, %v552_v5, 0.0  ;;  %v561_v12 = vsel %vm543_vm1, %v1188_v9, 0.0  ;;  %v569_v13 = vmul.f32 %v1188_v9, %v1188_v9  ;;  %v587_v17 = vsel %vm543_vm1, %v586_v8, 0.0 }
  0xd1   :  { %v546_v15 = vadd.f32 %v545_v3, %v544_v4  ;;  %v554_v16 = vrot.slane %v553_v10, 4  ;;  %v562_v18 = vrot.slane %v561_v12, 4  ;;  %v253_v19 = vpop.f32.mrf.mxu0  ;;  %v580_v20 = vadd.f32 %v579_v11, %v578_v7  ;;  %v294_v24 = vpop.f32.mrf.mxu1 }
  0xd2   :  { %v588_v21 = vrot.slane %v587_v17, 4  ;;  %v570_v22 = vsel %vm543_vm1, %v569_v13, 0.0  ;;  %v595_v23 = vsel %vm543_vm1, %v1195_v14, 0.0  ;;  %v603_v33 = vmul.f32 %v1195_v14, %v1195_v14 }
  0xd3   :  { %v547_v25 = vrot.slane %v546_v15, 2  ;;  %v555_v26 = vadd.f32 %v554_v16, %v553_v10  ;;  %v563_v27 = vadd.f32 %v562_v18, %v561_v12  ;;  %v571_v28 = vrot.slane %v570_v22, 4  ;;  %v254_v29 = vpop.f32.mrf.mxu0  ;;  %v295_v34 = vpop.f32.mrf.mxu1 }
  0xd4   :  { %v581_v30 = vrot.slane %v580_v20, 2  ;;  %v589_v31 = vadd.f32 %v588_v21, %v587_v17  ;;  %v596_v32 = vrot.slane %v595_v23, 4  ;;  %v604_v43 = vsel %vm543_vm1, %v603_v33, 0.0 }
  0xd5   :  { %v548_v35 = vadd.f32 %v547_v25, %v546_v15  ;;  %v556_v36 = vrot.slane %v555_v26, 2  ;;  %v564_v37 = vrot.slane %v563_v27, 2  ;;  %v572_v38 = vadd.f32 %v571_v28, %v570_v22  ;;  %v1203_v39 = vpop.f32.mrf.mxu0  ;;  %v1206_v44 = vpop.f32.mrf.mxu1 }
  0xd6   :  { %v582_v40 = vadd.f32 %v581_v30, %v580_v20  ;;  %v590_v41 = vrot.slane %v589_v31, 2  ;;  %v597_v42 = vadd.f32 %v596_v32, %v595_v23  ;;  %v605_v53 = vrot.slane %v604_v43, 4 }
  0xd7   :  { %v549_v45 = vrot.slane %v548_v35, 1  ;;  %v557_v46 = vadd.f32 %v556_v36, %v555_v26  ;;  %v565_v47 = vadd.f32 %v564_v37, %v563_v27  ;;  %v573_v48 = vrot.slane %v572_v38, 2  ;;  %v1208_v49 = vpop.f32.mrf.mxu0  ;;  %v1210_v54 = vpop.f32.mrf.mxu1 }
  0xd8   :  { %v583_v50 = vrot.slane %v582_v40, 1  ;;  %v591_v51 = vadd.f32 %v590_v41, %v589_v31  ;;  %v598_v52 = vrot.slane %v597_v42, 2  ;;  %v606_v63 = vadd.f32 %v605_v53, %v604_v43 }
  0xd9   :  { %v550_v55 = vadd.f32 %v549_v45, %v548_v35  ;;  %v558_v56 = vrot.slane %v557_v46, 1  ;;  %v566_v57 = vrot.slane %v565_v47, 1  ;;  %v574_v58 = vadd.f32 %v573_v48, %v572_v38  ;;  %v335_v59 = vpop.f32.mrf.mxu0  ;;  %v376_v0 = vpop.f32.mrf.mxu1 }
  0xda   :  { %v584_v60 = vadd.f32 %v583_v50, %v582_v40  ;;  %v592_v61 = vrot.slane %v591_v51, 1  ;;  %v599_v62 = vadd.f32 %v598_v52, %v597_v42  ;;  %v612_v3 = vsel %vm543_vm1, %v1203_v39, 0.0 }
  0xdb   :  { %v559_v1 = vadd.f32 %v558_v56, %v557_v46  ;;  %v567_v4 = vadd.f32 %v566_v57, %v565_v47  ;;  %v575_v5 = vrot.slane %v574_v58, 1  ;;  %v336_v7 = vpop.f32.mrf.mxu0  ;;  %v607_v11 = vrot.slane %v606_v63, 2  ;;  %v377_v13 = vpop.f32.mrf.mxu1 }
  0xdc   :  { %v593_v8 = vadd.f32 %v592_v61, %v591_v51  ;;  %v600_v10 = vrot.slane %v599_v62, 1  ;;  %v613_v12 = vrot.slane %v612_v3, 4  ;;  %v620_v17 = vmul.f32 %v1203_v39, %v1203_v39 }
  0xdd   :  { %v568_v15 = vadd.f32 %v567_v4, %v550_v55  ;;  %v576_v16 = vadd.f32 %v575_v5, %v574_v58  ;;  %v646_v18 = vsel %vm543_vm1, %v1206_v44, 0.0  ;;  %v1218_v19 = vpop.f32.mrf.mxu0  ;;  %v608_v21 = vadd.f32 %v607_v11, %v606_v63  ;;  %v1220_v24 = vpop.f32.mrf.mxu1 }
  0xde   :  { %v601_v20 = vadd.f32 %v600_v10, %v599_v62  ;;  %v614_v22 = vadd.f32 %v613_v12, %v612_v3  ;;  %v647_v23 = vrot.slane %v646_v18, 4  ;;  %v621_v27 = vsel %vm543_vm1, %v620_v17, 0.0 }
  0xdf   :  { %v577_v25 = vadd.f32 %v576_v16, %v559_v1  ;;  %v585_v26 = vadd.f32 %v584_v60, %v568_v15  ;;  %v654_v28 = vmul.f32 %v1206_v44, %v1206_v44  ;;  %v1225_v29 = vpop.f32.mrf.mxu0  ;;  %v609_v30 = vrot.slane %v608_v21, 1  ;;  %v1227_v34 = vpop.f32.mrf.mxu1 }
  0xe0   :  { %v615_v31 = vrot.slane %v614_v22, 2  ;;  %v622_v32 = vrot.slane %v621_v27, 4  ;;  %v648_v33 = vadd.f32 %v647_v23, %v646_v18  ;;  %v629_v37 = vsel %vm543_vm1, %v1208_v49, 0.0 }
  0xe1   :  { %v594_v35 = vadd.f32 %v593_v8, %v577_v25  ;;  %v655_v36 = vsel %vm543_vm1, %v654_v28, 0.0  ;;  %v417_v38 = vpop.f32.mrf.mxu0  ;;  %v602_v40 = vadd.f32 %v601_v20, %v585_v26  ;;  %v458_v45 = vpop.f32.mrf.mxu1  ;;  %v630_v47 = vrot.slane %v629_v37, 4 }
  0xe2   :  { %v616_v41 = vadd.f32 %v615_v31, %v614_v22  ;;  %v623_v42 = vadd.f32 %v622_v32, %v621_v27  ;;  %v649_v43 = vrot.slane %v648_v33, 2  ;;  %v656_v46 = vrot.slane %v655_v36, 4 }
  0xe3   :  { %v637_v48 = vmul.f32 %v1208_v49, %v1208_v49  ;;  %v663_v50 = vsel %vm543_vm1, %v1210_v54, 0.0  ;;  %v418_v51 = vpop.f32.mrf.mxu0  ;;  %v610_v52 = vadd.f32 %v609_v30, %v608_v21  ;;  %v459_v57 = vpop.f32.mrf.mxu1  ;;  %v631_v59 = vadd.f32 %v630_v47, %v629_v37 }
  0xe4   :  { %v617_v53 = vrot.slane %v616_v41, 1  ;;  %v624_v55 = vrot.slane %v623_v42, 2  ;;  %v650_v56 = vadd.f32 %v649_v43, %v648_v33  ;;  %v657_v58 = vadd.f32 %v656_v46, %v655_v36 }
  0xe5   :  { %v638_v60 = vsel %vm543_vm1, %v637_v48, 0.0  ;;  %v664_v61 = vrot.slane %v663_v50, 4  ;;  %v1237_v62 = vpop.f32.mrf.mxu0  ;;  %v611_v63 = vadd.f32 %v610_v52, %v594_v35  ;;  %v1239_v5 = vpop.f32.mrf.mxu1  ;;  %v632_v7 = vrot.slane %v631_v59, 2 }
  0xe6   :  { %v618_v0 = vadd.f32 %v617_v53, %v616_v41  ;;  %v625_v1 = vadd.f32 %v624_v55, %v623_v42  ;;  %v639_v4 = vrot.slane %v638_v60, 4  ;;  %v658_v3 = vrot.slane %v657_v58, 2 }
  0xe7   :  { %v665_v8 = vadd.f32 %v664_v61, %v663_v50  ;;  %v671_v10 = vmul.f32 %v1210_v54, %v1210_v54  ;;  %v1243_v11 = vpop.f32.mrf.mxu0  ;;  %v651_v15 = vrot.slane %v650_v56, 1  ;;  %v1245_v17 = vpop.f32.mrf.mxu1  ;;  %v633_v20 = vadd.f32 %v632_v7, %v631_v59 }
  0xe8   :  { %v619_v12 = vadd.f32 %v618_v0, %v602_v40  ;;  %v626_v13 = vrot.slane %v625_v1, 1  ;;  %v640_v16 = vadd.f32 %v639_v4, %v638_v60  ;;  %v659_v18 = vadd.f32 %v658_v3, %v657_v58 }
  0xe9   :  { %v666_v21 = vrot.slane %v665_v8, 2  ;;  %v672_v22 = vsel %vm543_vm1, %v671_v10, 0.0  ;;  %v499_v23 = vpop.f32.mrf.mxu0  ;;  %v680_v28 = vsel %vm543_vm1, %v1218_v19, 0.0  ;;  %v540_v30 = vpop.f32.mrf.mxu1  ;;  %v634_v32 = vrot.slane %v633_v20, 1 }
  0xea   :  { %v627_v25 = vadd.f32 %v626_v13, %v625_v1  ;;  %v641_v26 = vrot.slane %v640_v16, 2  ;;  %v673_v27 = vrot.slane %v672_v22, 4  ;;  %v660_v31 = vrot.slane %v659_v18, 1 }
  0xeb   :  { %v667_v33 = vadd.f32 %v666_v21, %v665_v8  ;;  %v681_v35 = vrot.slane %v680_v28, 4  ;;  %v500_v36 = vpop.f32.mrf.mxu0  ;;  %v652_v37 = vadd.f32 %v651_v15, %v650_v56  ;;  %v688_v41 = vmul.f32 %v1218_v19, %v1218_v19  ;;  %v541_v42 = vpop.f32.mrf.mxu1 }
  0xec   :  { %v642_v38 = vadd.f32 %v641_v26, %v640_v16  ;;  %v674_v40 = vadd.f32 %v673_v27, %v672_v22  ;;  %v628_v43 = vadd.f32 %v627_v25, %v611_v63  ;;  %v635_v45 = vadd.f32 %v634_v32, %v633_v20 }
  0xed   :  { %v668_v46 = vrot.slane %v667_v33, 1  ;;  %v682_v47 = vadd.f32 %v681_v35, %v680_v28  ;;  %v689_v51 = vsel %vm543_vm1, %v688_v41, 0.0  ;;  %v714_v52 = vsel %vm543_vm1, %v1220_v24, 0.0 }
  0xee   :  { %v643_v48 = vrot.slane %v642_v38, 1  ;;  %v675_v50 = vrot.slane %v674_v40, 2  ;;  %v661_v53 = vadd.f32 %v660_v31, %v659_v18  ;;  %v636_v55 = vadd.f32 %v635_v45, %v619_v12 }
  0xef   :  { %v683_v56 = vrot.slane %v682_v47, 2  ;;  %v690_v57 = vrot.slane %v689_v51, 4  ;;  %v715_v60 = vrot.slane %v714_v52, 4  ;;  %v722_v61 = vmul.f32 %v1220_v24, %v1220_v24 }
  0xf0   :  { %v644_v58 = vadd.f32 %v643_v48, %v642_v38  ;;  %v676_v59 = vadd.f32 %v675_v50, %v674_v40  ;;  %v653_v63 = vadd.f32 %v652_v37, %v636_v55  ;;  %v697_v4 = vsel %vm543_vm1, %v1225_v29, 0.0 }
  0xf1   :  { %v684_v0 = vadd.f32 %v683_v56, %v682_v47  ;;  %v691_v1 = vadd.f32 %v690_v57, %v689_v51  ;;  %v669_v7 = vadd.f32 %v668_v46, %v667_v33  ;;  %v716_v8 = vadd.f32 %v715_v60, %v714_v52 }
  0xf2   :  { %v645_v3 = vadd.f32 %v644_v58, %v628_v43  ;;  %v723_v10 = vsel %vm543_vm1, %v722_v61, 0.0  ;;  %v677_v12 = vrot.slane %v676_v59, 1  ;;  %v698_v21 = vrot.slane %v697_v4, 4 }
  0xf3   :  { %v685_v13 = vrot.slane %v684_v0, 1  ;;  %v692_v15 = vrot.slane %v691_v1, 2  ;;  %v724_v16 = vrot.slane %v723_v10, 4  ;;  %v670_v18 = vadd.f32 %v669_v7, %v653_v63 }
  0xf4   :  { %v717_v20 = vrot.slane %v716_v8, 2  ;;  %v662_v22 = vadd.f32 %v661_v53, %v645_v3  ;;  %v705_v26 = vmul.f32 %v1225_v29, %v1225_v29  ;;  %v699_v30 = vadd.f32 %v698_v21, %v697_v4 }
  0xf5   :  { %v693_v23 = vadd.f32 %v692_v15, %v691_v1  ;;  %v725_v25 = vadd.f32 %v724_v16, %v723_v10  ;;  %v686_v27 = vadd.f32 %v685_v13, %v684_v0  ;;  %v731_v31 = vsel %vm543_vm1, %v1227_v34, 0.0 }
  0xf6   :  { %v718_v28 = vadd.f32 %v717_v20, %v716_v8  ;;  %v678_v32 = vadd.f32 %v677_v12, %v676_v59  ;;  %v706_v36 = vsel %vm543_vm1, %v705_v26, 0.0  ;;  %v700_v38 = vrot.slane %v699_v30, 2 }
  0xf7   :  { %v694_v33 = vrot.slane %v693_v23, 1  ;;  %v726_v35 = vrot.slane %v725_v25, 2  ;;  %v707_v40 = vrot.slane %v706_v36, 4  ;;  %v732_v41 = vrot.slane %v731_v31, 4 }
  0xf8   :  { %v719_v37 = vrot.slane %v718_v28, 1  ;;  %v679_v42 = vadd.f32 %v678_v32, %v662_v22  ;;  %v739_v45 = vmul.f32 %v1227_v34, %v1227_v34  ;;  %v748_v46 = vsel %vm543_vm1, %v1237_v62, 0.0 }
  0xf9   :  { %v695_v43 = vadd.f32 %v694_v33, %v693_v23  ;;  %v687_v47 = vadd.f32 %v686_v27, %v670_v18  ;;  %v701_v48 = vadd.f32 %v700_v38, %v699_v30  ;;  %v708_v50 = vadd.f32 %v707_v40, %v706_v36 }
  0xfa   :  { %v733_v51 = vadd.f32 %v732_v41, %v731_v31  ;;  %v720_v52 = vadd.f32 %v719_v37, %v718_v28  ;;  %v727_v53 = vadd.f32 %v726_v35, %v725_v25  ;;  %v740_v55 = vsel %vm543_vm1, %v739_v45, 0.0 }
  0xfb   :  { %v749_v56 = vrot.slane %v748_v46, 4  ;;  %v702_v57 = vrot.slane %v701_v48, 1  ;;  %v709_v58 = vrot.slane %v708_v50, 2  ;;  %v741_v60 = vrot.slane %v740_v55, 4 }
  0xfc   :  { %v734_v59 = vrot.slane %v733_v51, 2  ;;  %v696_v61 = vadd.f32 %v695_v43, %v679_v42  ;;  %v756_v0 = vmul.f32 %v1237_v62, %v1237_v62  ;;  %v782_v1 = vsel %vm543_vm1, %v1239_v5, 0.0 }
  0xfd   :  { %v750_v63 = vadd.f32 %v749_v56, %v748_v46  ;;  %v703_v4 = vadd.f32 %v702_v57, %v701_v48  ;;  %v710_v3 = vadd.f32 %v709_v58, %v708_v50  ;;  %v742_v8 = vadd.f32 %v741_v60, %v740_v55 }
  0xfe   :  { %v735_v7 = vadd.f32 %v734_v59, %v733_v51  ;;  %v757_v12 = vsel %vm543_vm1, %v756_v0, 0.0  ;;  %v783_v13 = vrot.slane %v782_v1, 4  ;;  %v790_v15 = vmul.f32 %v1239_v5, %v1239_v5 }
  0xff   :  { %v751_v10 = vrot.slane %v750_v63, 2  ;;  %v704_v16 = vadd.f32 %v703_v4, %v687_v47  ;;  %v711_v18 = vrot.slane %v710_v3, 1  ;;  %v743_v21 = vrot.slane %v742_v8, 2 }
 0x100   :  { %v736_v20 = vrot.slane %v735_v7, 1  ;;  %v758_v23 = vrot.slane %v757_v12, 4  ;;  %v784_v25 = vadd.f32 %v783_v13, %v782_v1  ;;  %v791_v26 = vsel %vm543_vm1, %v790_v15, 0.0 }
 0x101   :  { %v752_v22 = vadd.f32 %v751_v10, %v750_v63  ;;  %v728_v27 = vrot.slane %v727_v53, 1  ;;  %v712_v28 = vadd.f32 %v711_v18, %v710_v3  ;;  %v744_v30 = vadd.f32 %v743_v21, %v742_v8 }
 0x102   :  { %v721_v31 = vadd.f32 %v720_v52, %v704_v16  ;;  %v759_v33 = vadd.f32 %v758_v23, %v757_v12  ;;  %v792_v35 = vrot.slane %v791_v26, 4  ;;  %v765_v37 = vsel %vm543_vm1, %v1243_v11, 0.0 }
 0x103   :  { %v753_v32 = vrot.slane %v752_v22, 1  ;;  %v713_v36 = vadd.f32 %v712_v28, %v696_v61  ;;  %v737_v38 = vadd.f32 %v736_v20, %v735_v7  ;;  %v785_v41 = vrot.slane %v784_v25, 2 }
 0x104   :  { %v760_v40 = vrot.slane %v759_v33, 2  ;;  %v793_v42 = vadd.f32 %v792_v35, %v791_v26  ;;  %v729_v43 = vadd.f32 %v728_v27, %v727_v53  ;;  %v745_v45 = vrot.slane %v744_v30, 1 }
 0x105   :  { %v766_v46 = vrot.slane %v765_v37, 4  ;;  %v773_v47 = vmul.f32 %v1243_v11, %v1243_v11  ;;  %v738_v48 = vadd.f32 %v737_v38, %v721_v31  ;;  %v754_v50 = vadd.f32 %v753_v32, %v752_v22 }
 0x106   :  { %v761_v51 = vadd.f32 %v760_v40, %v759_v33  ;;  %v730_v52 = vadd.f32 %v729_v43, %v713_v36  ;;  %v799_v57 = vsel %vm543_vm1, %v1245_v17, 0.0  ;;  %v786_v59 = vadd.f32 %v785_v41, %v784_v25 }
 0x107   :  { %v767_v55 = vadd.f32 %v766_v46, %v765_v37  ;;  %v774_v56 = vsel %vm543_vm1, %v773_v47, 0.0  ;;  %v794_v60 = vrot.slane %v793_v42, 2  ;;  %v746_v53 = vadd.f32 %v745_v45, %v744_v30 }
 0x108   :  { %v762_v58 = vrot.slane %v761_v51, 1  ;;  %v775_v61 = vrot.slane %v774_v56, 4  ;;  %v800_v0 = vrot.slane %v799_v57, 4  ;;  %v807_v1 = vmul.f32 %v1245_v17, %v1245_v17 }
 0x109   :  { %v768_v63 = vrot.slane %v767_v55, 2  ;;  %v747_v3 = vadd.f32 %v746_v53, %v730_v52  ;;  %v795_v13 = vadd.f32 %v794_v60, %v793_v42  ;;  %v755_v18 = vadd.f32 %v754_v50, %v738_v48  ;;  %v821_v60 = vld [vmem:[%s1334_s2] sm:$0x1] }
 0x10a   :  { %v776_v4 = vadd.f32 %v775_v61, %v774_v56  ;;  %v801_v8 = vadd.f32 %v800_v0, %v799_v57  ;;  %v808_v10 = vsel %vm543_vm1, %v807_v1, 0.0  ;;  %v763_v12 = vadd.f32 %v762_v58, %v761_v51 }
 0x10b   :  { %v769_v7 = vadd.f32 %v768_v63, %v767_v55  ;;  %v809_v16 = vrot.slane %v808_v10, 4  ;;  %v787_v20 = vrot.slane %v786_v59, 1  ;;  %v796_v30 = vrot.slane %v795_v13, 1 }
 0x10c   :  { %v777_v15 = vrot.slane %v776_v4, 2  ;;  %v802_v22 = vrot.slane %v801_v8, 2  ;;  %v764_v28 = vadd.f32 %v763_v12, %v747_v3  ;;  %v828_v58 = vlaneseq }
 0x10d   :  { %v770_v21 = vrot.slane %v769_v7, 1  ;;  %v810_v25 = vadd.f32 %v809_v16, %v808_v10  ;;  %v788_v33 = vadd.f32 %v787_v20, %v786_v59  ;;  %v797_v42 = vadd.f32 %v796_v30, %v795_v13 }
 0x10e   :  { %v778_v23 = vadd.f32 %v777_v15, %v776_v4  ;;  %v803_v27 = vadd.f32 %v802_v22, %v801_v8  ;;  %v829_v59 = vshrl.u32 %v828_v58, 7  ;;  %v1025_v61 = vmov 1983009808   ;;  %v825_v4 = vld [vmem:[%s1335_s3] sm:$0x1] }
 0x10f   :  { %v771_v26 = vadd.f32 %v770_v21, %v769_v7  ;;  %v811_v32 = vrot.slane %v810_v25, 2  ;;  %v903_v53 = vunpack.c.l.s4 %v1025_v61 }
 0x110   :  { %v779_v31 = vrot.slane %v778_v23, 1  ;;  %v804_v36 = vrot.slane %v803_v27, 1  ;;  %v830_v63 = vsub.s32 0, %v829_v59 }
 0x111   :  { %v772_v35 = vadd.f32 %v771_v26, %v755_v18  ;;  %v812_v38 = vadd.f32 %v811_v32, %v810_v25  ;;  %v904_v3 = vunpack.c.0.s8 %v903_v53 }
 0x112   :  { %v780_v37 = vadd.f32 %v779_v31, %v778_v23  ;;  %v805_v41 = vadd.f32 %v804_v36, %v803_v27 }
 0x113   :  { %v789_v40 = vadd.f32 %v788_v33, %v772_v35  ;;  %v813_v45 = vrot.slane %v812_v38, 1  ;;  %v1295_v13 = vsub.s32 %v904_v3, %v829_v59 }
 0x114   :  { %v781_v43 = vadd.f32 %v780_v37, %v764_v28 }
 0x115   :  { %v806_v46 = vadd.f32 %v805_v41, %v789_v40  ;;  %v814_v48 = vadd.f32 %v813_v45, %v812_v38 }
 0x116   :  { %v798_v47 = vadd.f32 %v797_v42, %v781_v43 }
 0x117   :  { %v817_v50 = vmul.f32 0.03125, %v806_v46 }
 0x118   :  { %v815_v51 = vadd.f32 %v814_v48, %v798_v47 }
 0x119   :  { %v819_v52 = vmul.f32 %v817_v50, %v817_v50 }
 0x11a   :  { %v818_v55 = vmul.f32 0.03125, %v815_v51 }
 0x11c   :  { %v820_v56 = vsub.f32 %v818_v55, %v819_v52 }
 0x11e   :  { %v822_v57 = vadd.f32 1e-05, %v820_v56 }
 0x120   :  { %1022 = vrsqrt.f32 %v822_v57 }
 0x12d   :  { %v1023_v0 = vpop.eup %1022 }
 0x12e   :  { %v824_v1 = vmul.f32 %v1023_v0, %v821_v60 }
 0x130   :  { %v826_v7 = vmul.f32 %v824_v1, %v817_v50  ;;  %v831_v8 = vrot.slane %v824_v1, %v830_v63 }
 0x132   :  { %v827_v10 = vsub.f32 %v825_v4, %v826_v7  ;;  %v832_v12 = vmul.f32 %v831_v8, %v1176_v2  ;;  %v833_v15 = vmul.f32 %v831_v8, %v1188_v9  ;;  %v834_v16 = vmul.f32 %v831_v8, %v1182_v6 }
 0x133   :  { %v835_v18 = vmul.f32 %v831_v8, %v1195_v14  ;;  %v836_v20 = vmul.f32 %v831_v8, %v1203_v39  ;;  %v837_v21 = vmul.f32 %v831_v8, %v1208_v49  ;;  %v838_v22 = vmul.f32 %v831_v8, %v1206_v44 }
 0x134   :  { %v839_v23 = vmul.f32 %v831_v8, %v1210_v54  ;;  %v840_v25 = vmul.f32 %v831_v8, %v1218_v19  ;;  %v841_v2 = vmul.f32 %v831_v8, %v1225_v29  ;;  %v842_v26 = vmul.f32 %v831_v8, %v1220_v24 }
 0x135   :  { %v843_v9 = vmul.f32 %v831_v8, %v1227_v34  ;;  %v851_v27 = vrot.slane %v827_v10, %v830_v63  ;;  %v844_v6 = vmul.f32 %v831_v8, %v1237_v62  ;;  %v845_v14 = vmul.f32 %v831_v8, %v1243_v11 }
 0x136   :  { %v846_v39 = vmul.f32 %v831_v8, %v1239_v5  ;;  %v847_v49 = vmul.f32 %v831_v8, %v1245_v17 }
 0x137   :  { %v852_v44 = vadd.f32 %v851_v27, %v832_v12  ;;  %v853_v28 = vadd.f32 %v851_v27, %v833_v15  ;;  %v854_v54 = vadd.f32 %v851_v27, %v834_v16  ;;  %v855_v30 = vadd.f32 %v851_v27, %v835_v18 }
 0x138   :  { %v856_v19 = vadd.f32 %v851_v27, %v836_v20  ;;  %v857_v31 = vadd.f32 %v851_v27, %v837_v21  ;;  %v858_v29 = vadd.f32 %v851_v27, %v838_v22  ;;  %v859_v32 = vadd.f32 %v851_v27, %v839_v23 }
 0x139   :  { %v860_v24 = vadd.f32 %v851_v27, %v840_v25  ;;  %v861_v33 = vadd.f32 %v851_v27, %v841_v2  ;;  %v862_v34 = vadd.f32 %v851_v27, %v842_v26  ;;  %v863_v35 = vadd.f32 %v851_v27, %v843_v9 }
 0x13a   :  { %v864_v36 = vadd.f32 %v851_v27, %v844_v6  ;;  %v865_v62 = vadd.f32 %v851_v27, %v845_v14  ;;  %v866_v37 = vadd.f32 %v851_v27, %v846_v39  ;;  %v867_v11 = vadd.f32 %v851_v27, %v847_v49 }
 0x13b   :  { %v868_v38 = vmax.f32 %v852_v44, 0.0  ;;  %v869_v5 = vmax.f32 %v853_v28, 0.0  ;;  %v870_v40 = vmax.f32 %v854_v54, 0.0  ;;  %v871_v17 = vmax.f32 %v855_v30, 0.0 }
 0x13c   :  { %v872_v41 = vmax.f32 %v856_v19, 0.0  ;;  %v873_v42 = vmax.f32 %v857_v31, 0.0  ;;  %v874_v43 = vmax.f32 %v858_v29, 0.0  ;;  %v875_v45 = vmax.f32 %v859_v32, 0.0 }
 0x13d   :  { %v876_v46 = vmax.f32 %v860_v24, 0.0  ;;  %v877_v47 = vmax.f32 %v861_v33, 0.0  ;;  %v878_v48 = vmax.f32 %v862_v34, 0.0  ;;  %v879_v50 = vmax.f32 %v863_v35, 0.0 }
 0x13e   :  { %v880_v51 = vmax.f32 %v864_v36, 0.0  ;;  %v881_v52 = vmax.f32 %v865_v62, 0.0  ;;  %v882_v55 = vmax.f32 %v866_v37, 0.0  ;;  %v883_v56 = vmax.f32 %v867_v11, 0.0 }
 0x13f   :  { %v900_v57 = vcombine.low %v868_v38, %v869_v5  ;;  %v901_v58 = vcombine.low %v870_v40, %v871_v17  ;;  %v917_v59 = vcombine.low %v872_v41, %v873_v42  ;;  %v918_v60 = vcombine.low %v874_v43, %v875_v45 }
 0x140   :  { %v934_v61 = vcombine.low %v876_v46, %v877_v47  ;;  %v935_v53 = vcombine.low %v878_v48, %v879_v50  ;;  %v951_v63 = vcombine.low %v880_v51, %v881_v52  ;;  %v952_v0 = vcombine.low %v882_v55, %v883_v56 }
 0x141   :  { %v908_v1 = vrot.slane %v900_v57, %v1295_v13  ;;  %v915_v4 = vrot.slane %v901_v58, %v1295_v13  ;;  %v925_v3 = vrot.slane %v917_v59, %v1295_v13  ;;  %v932_v7 = vrot.slane %v918_v60, %v1295_v13 }
 0x142   :  { %v942_v8 = vrot.slane %v934_v61, %v1295_v13  ;;  %v949_v10 = vrot.slane %v935_v53, %v1295_v13  ;;  %v959_v12 = vrot.slane %v951_v63, %v1295_v13  ;;  %v966_v15 = vrot.slane %v952_v0, %v1295_v13 }
 0x143   :  { %v916_v16 = vcombine.low %v908_v1, %v915_v4  ;;  %v933_v18 = vcombine.low %v925_v3, %v932_v7 }
 0x144   :  { %v950_v20 = vcombine.low %v942_v8, %v949_v10  ;;  %v967_v21 = vcombine.low %v959_v12, %v966_v15 }
 0x145   :  { %972 = vst [vmem:[%s1336_s4] sm:$0xff] %v916_v16  ;;  %973 = vst [vmem:[%s1336_s4 + $0x8] sm:$0xff] %v933_v18 }
 0x146   :  { %974 = vst [vmem:[%s1336_s4 + $0x10] sm:$0xff] %v950_v20  ;;  %975 = vst [vmem:[%s1336_s4 + $0x18] sm:$0xff] %v967_v21 }

// kernel: dc_generator_forward.6
= control target key start
LH: loop header
LB: loop body
LE: loop exit
PB: predicated region body
PF: predicated region fallthrough
CT: control target
= control target key end

     0   :  { %vm1292_vm0 = vcmask 1048064   ;;  %vm1259_vm1 = vcmask 523264   ;;  %s2534_s1 = inlined_call_operand.vmem [shape: bf16[1152,256], index: 1, kind: input, shape index: {}]   ;;  %s2535_s0 = inlined_call_operand.vmem [shape: bf16[32,1152], index: 0, kind: input, shape index: {}]   ;;  %s2536_s2 = inlined_call_operand.vmem [shape: f32[1,64], index: 2, kind: input, shape index: {}]   ;;  %s2537_s3 = inlined_call_operand.vmem [shape: f32[1,64], index: 3, kind: input, shape index: {}]   ;;  %s2538_s4 = inlined_call_operand.vmem [shape: f32[32,256], index: 4, kind: output, shape index: {}]  }
   0x1   :  { %v1651_v0 = vld [vmem:[%s2534_s1 + $0x74] ss:$8 sps:$4 sm:$0xff]   ;;  %v1655_v2 = vld [vmem:[%s2534_s1 + $0x70] ss:$8 sps:$4 sm:$0xff]   ;;  %v1657_v4 = vld [vmem:[%s2534_s1 + $0x64] ss:$8 sps:$4 sm:$0xff]  }
   0x2   :  { %v1653_v1 = vld [vmem:[%s2534_s1 + $0x174] ss:$8 sps:$4 sm:$0xff]   ;;  %994 = vmatprep.subr.bf16.mxu0 %v1651_v0  ;;  %v1656_v3 = vld [vmem:[%s2534_s1 + $0x170] ss:$8 sps:$4 sm:$0xff]   ;;  %v1659_v5 = vld [vmem:[%s2534_s1 + $0x164] ss:$8 sps:$4 sm:$0xff]  }
   0x3   :  { %1047 = vmatprep.subr.bf16.mxu1 %v1653_v1  ;;  %995 = vmatpush1.bf16.msra.mxu0 %v1655_v2  ;;  %v1661_v6 = vld [vmem:[%s2534_s1 + $0x60] ss:$8 sps:$4 sm:$0xff]   ;;  %v1663_v8 = vld [vmem:[%s2534_s1 + $0x54] ss:$8 sps:$4 sm:$0xff]   ;;  %v1667_v10 = vld [vmem:[%s2534_s1 + $0x50] ss:$8 sps:$4 sm:$0xff]  }
   0x4   :  { %1048 = vmatpush1.bf16.msra.mxu1 %v1656_v3  ;;  %996 = vmatprep.subr.bf16.mxu0 %v1657_v4  ;;  %v1662_v7 = vld [vmem:[%s2534_s1 + $0x160] ss:$8 sps:$4 sm:$0xff]   ;;  %v1665_v9 = vld [vmem:[%s2534_s1 + $0x154] ss:$8 sps:$4 sm:$0xff]   ;;  %v1668_v11 = vld [vmem:[%s2534_s1 + $0x150] ss:$8 sps:$4 sm:$0xff]  }
   0x5   :  { %1049 = vmatprep.subr.bf16.mxu1 %v1659_v5  ;;  %v1669_v12 = vld [vmem:[%s2534_s1 + $0x44] ss:$8 sps:$4 sm:$0xff]   ;;  %v1673_v14 = vld [vmem:[%s2534_s1 + $0x40] ss:$8 sps:$4 sm:$0xff]   ;;  %v1675_v16 = vld [vmem:[%s2534_s1 + $0x34] ss:$8 sps:$4 sm:$0xff]  }
   0x6   :  { %v1671_v13 = vld [vmem:[%s2534_s1 + $0x144] ss:$8 sps:$4 sm:$0xff]   ;;  %v1674_v15 = vld [vmem:[%s2534_s1 + $0x140] ss:$8 sps:$4 sm:$0xff]   ;;  %v1677_v17 = vld [vmem:[%s2534_s1 + $0x134] ss:$8 sps:$4 sm:$0xff]  }
   0x7   :  { %997 = vmatpush1.bf16.msra.mxu0 %v1661_v6  ;;  %v1679_v18 = vld [vmem:[%s2534_s1 + $0x30] ss:$8 sps:$4 sm:$0xff]   ;;  %v1681_v20 = vld [vmem:[%s2534_s1 + $0x24] ss:$8 sps:$4 sm:$0xff]   ;;  %v1685_v22 = vld [vmem:[%s2534_s1 + $0x20] ss:$8 sps:$4 sm:$0xff]  }
   0x8   :  { %1050 = vmatpush1.bf16.msra.mxu1 %v1662_v7  ;;  %998 = vmatprep.subr.bf16.mxu0 %v1663_v8  ;;  %v1680_v19 = vld [vmem:[%s2534_s1 + $0x130] ss:$8 sps:$4 sm:$0xff]   ;;  %v1683_v21 = vld [vmem:[%s2534_s1 + $0x124] ss:$8 sps:$4 sm:$0xff]   ;;  %v1686_v23 = vld [vmem:[%s2534_s1 + $0x120] ss:$8 sps:$4 sm:$0xff]  }
   0x9   :  { %1051 = vmatprep.subr.bf16.mxu1 %v1665_v9  ;;  %v1687_v24 = vld [vmem:[%s2534_s1 + $0x14] ss:$8 sps:$4 sm:$0xff]   ;;  %v1691_v26 = vld [vmem:[%s2534_s1 + $0x10] ss:$8 sps:$4 sm:$0xff]   ;;  %v1693_v28 = vld [vmem:[%s2534_s1 + $0x4] ss:$8 sps:$4 sm:$0xff]  }
   0xa   :  { %v1689_v25 = vld [vmem:[%s2534_s1 + $0x114] ss:$8 sps:$4 sm:$0xff]   ;;  %v1692_v27 = vld [vmem:[%s2534_s1 + $0x110] ss:$8 sps:$4 sm:$0xff]   ;;  %v1695_v29 = vld [vmem:[%s2534_s1 + $0x104] ss:$8 sps:$4 sm:$0xff]  }
   0xb   :  { %999 = vmatpush1.bf16.msra.mxu0 %v1667_v10  ;;  %v1697_v30 = vld [vmem:[%s2534_s1] ss:$8 sps:$4 sm:$0xff]   ;;  %v1699_v32 = vld [vmem:[%s2534_s1 + $0xf4] ss:$8 sps:$4 sm:$0xff]   ;;  %v1703_v34 = vld [vmem:[%s2534_s1 + $0xf0] ss:$8 sps:$4 sm:$0xff]  }
   0xc   :  { %1052 = vmatpush1.bf16.msra.mxu1 %v1668_v11  ;;  %1000 = vmatprep.subr.bf16.mxu0 %v1669_v12  ;;  %v1698_v31 = vld [vmem:[%s2534_s1 + $0x100] ss:$8 sps:$4 sm:$0xff]   ;;  %v1701_v33 = vld [vmem:[%s2534_s1 + $0x1f4] ss:$8 sps:$4 sm:$0xff]   ;;  %v1704_v35 = vld [vmem:[%s2534_s1 + $0x1f0] ss:$8 sps:$4 sm:$0xff]  }
   0xd   :  { %1053 = vmatprep.subr.bf16.mxu1 %v1671_v13  ;;  %v1705_v36 = vld [vmem:[%s2534_s1 + $0xe4] ss:$8 sps:$4 sm:$0xff]   ;;  %v1709_v38 = vld [vmem:[%s2534_s1 + $0xe0] ss:$8 sps:$4 sm:$0xff]   ;;  %v1711_v40 = vld [vmem:[%s2534_s1 + $0xd4] ss:$8 sps:$4 sm:$0xff]  }
   0xe   :  { %v1707_v37 = vld [vmem:[%s2534_s1 + $0x1e4] ss:$8 sps:$4 sm:$0xff]   ;;  %v1710_v39 = vld [vmem:[%s2534_s1 + $0x1e0] ss:$8 sps:$4 sm:$0xff]   ;;  %v1713_v41 = vld [vmem:[%s2534_s1 + $0x1d4] ss:$8 sps:$4 sm:$0xff]  }
   0xf   :  { %1001 = vmatpush1.bf16.msra.mxu0 %v1673_v14  ;;  %v1715_v42 = vld [vmem:[%s2534_s1 + $0xd0] ss:$8 sps:$4 sm:$0xff]   ;;  %v1717_v44 = vld [vmem:[%s2534_s1 + $0xc4] ss:$8 sps:$4 sm:$0xff]   ;;  %v1721_v46 = vld [vmem:[%s2534_s1 + $0xc0] ss:$8 sps:$4 sm:$0xff]  }
  0x10   :  { %1054 = vmatpush1.bf16.msra.mxu1 %v1674_v15  ;;  %1002 = vmatprep.subr.bf16.mxu0 %v1675_v16  ;;  %v1716_v43 = vld [vmem:[%s2534_s1 + $0x1d0] ss:$8 sps:$4 sm:$0xff]   ;;  %v1719_v45 = vld [vmem:[%s2534_s1 + $0x1c4] ss:$8 sps:$4 sm:$0xff]   ;;  %v1722_v47 = vld [vmem:[%s2534_s1 + $0x1c0] ss:$8 sps:$4 sm:$0xff]  }
  0x11   :  { %1055 = vmatprep.subr.bf16.mxu1 %v1677_v17  ;;  %v1723_v48 = vld [vmem:[%s2534_s1 + $0xb4] ss:$8 sps:$4 sm:$0xff]   ;;  %v1749_v49 = vld [vmem:[%s2535_s0 + $0x4] ss:$36 sps:$4 sm:$0xff]   ;;  %v1752_v51 = vld [vmem:[%s2535_s0 + $0xc] ss:$36 sps:$4 sm:$0xff]  }
  0x12   :  { %v1725_v50 = vld [vmem:[%s2534_s1 + $0x1b4] ss:$8 sps:$4 sm:$0xff]   ;;  %1026 = vmatprep.mubr.bf16.mxu0 %v1749_v49  ;;  %v1727_v52 = vld [vmem:[%s2534_s1 + $0xb0] ss:$8 sps:$4 sm:$0xff]   ;;  %1079 = vmatprep.mubr.bf16.mxu1 %v1752_v51  ;;  %v1729_v54 = vld [vmem:[%s2534_s1 + $0xa4] ss:$8 sps:$4 sm:$0xff]  }
  0x13   :  { %1003 = vmatpush1.bf16.msra.mxu0 %v1679_v18  ;;  %v1728_v53 = vld [vmem:[%s2534_s1 + $0x1b0] ss:$8 sps:$4 sm:$0xff]   ;;  %v1731_v55 = vld [vmem:[%s2534_s1 + $0x1a4] ss:$8 sps:$4 sm:$0xff]   ;;  %v1733_v56 = vld [vmem:[%s2534_s1 + $0xa0] ss:$8 sps:$4 sm:$0xff]  }
  0x14   :  { %1056 = vmatpush1.bf16.msra.mxu1 %v1680_v19  ;;  %1004 = vmatprep.subr.bf16.mxu0 %v1681_v20  ;;  %v1734_v57 = vld [vmem:[%s2534_s1 + $0x1a0] ss:$8 sps:$4 sm:$0xff]   ;;  %v1735_v58 = vld [vmem:[%s2534_s1 + $0x94] ss:$8 sps:$4 sm:$0xff]   ;;  %v1739_v60 = vld [vmem:[%s2534_s1 + $0x90] ss:$8 sps:$4 sm:$0xff]  }
  0x15   :  { %1057 = vmatprep.subr.bf16.mxu1 %v1683_v21  ;;  %v1737_v59 = vld [vmem:[%s2534_s1 + $0x194] ss:$8 sps:$4 sm:$0xff]   ;;  %v1740_v61 = vld [vmem:[%s2534_s1 + $0x190] ss:$8 sps:$4 sm:$0xff]   ;;  %v1741_v62 = vld [vmem:[%s2534_s1 + $0x84] ss:$8 sps:$4 sm:$0xff]  }
  0x16   :  { %v1743_v63 = vld [vmem:[%s2534_s1 + $0x184] ss:$8 sps:$4 sm:$0xff]   ;;  %v1745_v0 = vld [vmem:[%s2534_s1 + $0x80] ss:$8 sps:$4 sm:$0xff]   ;;  %v1755_v2 = vld [vmem:[%s2534_s1 + $0x274] ss:$8 sps:$4 sm:$0xff]  }
  0x17   :  { %1005 = vmatpush1.bf16.msra.mxu0 %v1685_v22  ;;  %v1746_v1 = vld [vmem:[%s2534_s1 + $0x180] ss:$8 sps:$4 sm:$0xff]   ;;  %v1758_v3 = vld [vmem:[%s2534_s1 + $0x374] ss:$8 sps:$4 sm:$0xff]   ;;  %v1753_v6 = vld [vmem:[%s2534_s1 + $0x270] ss:$8 sps:$4 sm:$0xff]  }
  0x18   :  { %1058 = vmatpush1.bf16.msra.mxu1 %v1686_v23  ;;  %1006 = vmatprep.subr.bf16.mxu0 %v1687_v24  ;;  %v1747_v4 = vld [vmem:[%s2535_s0] ss:$36 sps:$4 sm:$0xff]   ;;  %v1750_v5 = vld [vmem:[%s2535_s0 + $0x8] ss:$36 sps:$4 sm:$0xff]   ;;  %v1756_v7 = vld [vmem:[%s2534_s1 + $0x370] ss:$8 sps:$4 sm:$0xff]  }
  0x19   :  { %1059 = vmatprep.subr.bf16.mxu1 %v1689_v25  ;;  %v1761_v8 = vld [vmem:[%s2534_s1 + $0x264] ss:$8 sps:$4 sm:$0xff]   ;;  %v1759_v10 = vld [vmem:[%s2534_s1 + $0x260] ss:$8 sps:$4 sm:$0xff]   ;;  %v1767_v12 = vld [vmem:[%s2534_s1 + $0x254] ss:$8 sps:$4 sm:$0xff]  }
  0x1a   :  { %v1764_v9 = vld [vmem:[%s2534_s1 + $0x364] ss:$8 sps:$4 sm:$0xff]   ;;  %v1762_v11 = vld [vmem:[%s2534_s1 + $0x360] ss:$8 sps:$4 sm:$0xff]   ;;  %v1770_v13 = vld [vmem:[%s2534_s1 + $0x354] ss:$8 sps:$4 sm:$0xff]  }
  0x1b   :  { %1007 = vmatpush1.bf16.msra.mxu0 %v1691_v26  ;;  %v1765_v14 = vld [vmem:[%s2534_s1 + $0x250] ss:$8 sps:$4 sm:$0xff]   ;;  %v1773_v16 = vld [vmem:[%s2534_s1 + $0x244] ss:$8 sps:$4 sm:$0xff]   ;;  %v1771_v18 = vld [vmem:[%s2534_s1 + $0x240] ss:$8 sps:$4 sm:$0xff]  }
  0x1c   :  { %1060 = vmatpush1.bf16.msra.mxu1 %v1692_v27  ;;  %1008 = vmatprep.subr.bf16.mxu0 %v1693_v28  ;;  %v1768_v15 = vld [vmem:[%s2534_s1 + $0x350] ss:$8 sps:$4 sm:$0xff]   ;;  %v1776_v17 = vld [vmem:[%s2534_s1 + $0x344] ss:$8 sps:$4 sm:$0xff]   ;;  %v1774_v19 = vld [vmem:[%s2534_s1 + $0x340] ss:$8 sps:$4 sm:$0xff]  }
  0x1d   :  { %1061 = vmatprep.subr.bf16.mxu1 %v1695_v29  ;;  %v1779_v20 = vld [vmem:[%s2534_s1 + $0x234] ss:$8 sps:$4 sm:$0xff]   ;;  %v1777_v22 = vld [vmem:[%s2534_s1 + $0x230] ss:$8 sps:$4 sm:$0xff]   ;;  %v1785_v24 = vld [vmem:[%s2534_s1 + $0x224] ss:$8 sps:$4 sm:$0xff]  }
  0x1e   :  { %v1782_v21 = vld [vmem:[%s2534_s1 + $0x334] ss:$8 sps:$4 sm:$0xff]   ;;  %v1780_v23 = vld [vmem:[%s2534_s1 + $0x330] ss:$8 sps:$4 sm:$0xff]   ;;  %v1788_v25 = vld [vmem:[%s2534_s1 + $0x324] ss:$8 sps:$4 sm:$0xff]  }
  0x1f   :  { %1009 = vmatpush1.bf16.msra.mxu0 %v1697_v30  ;;  %v1831_v26 = vld [vmem:[%s2535_s0 + $0x4c] ss:$36 sps:$4 sm:$0xff]   ;;  %v1833_v27 = vld [vmem:[%s2535_s0 + $0x54] ss:$36 sps:$4 sm:$0xff]   ;;  %v1783_v30 = vld [vmem:[%s2534_s1 + $0x220] ss:$8 sps:$4 sm:$0xff]  }
  0x20   :  { %1062 = vmatpush1.bf16.msra.mxu1 %v1698_v31  ;;  %1010 = vmatprep.subr.bf16.mxu0 %v1699_v32  ;;  %v1835_v28 = vld [vmem:[%s2535_s0 + $0x48] ss:$36 sps:$4 sm:$0xff]   ;;  %v1836_v29 = vld [vmem:[%s2535_s0 + $0x50] ss:$36 sps:$4 sm:$0xff]  }
  0x21   :  { %1063 = vmatprep.subr.bf16.mxu1 %v1701_v33  ;;  %v1786_v31 = vld [vmem:[%s2534_s1 + $0x320] ss:$8 sps:$4 sm:$0xff]   ;;  %v1791_v32 = vld [vmem:[%s2534_s1 + $0x214] ss:$8 sps:$4 sm:$0xff]  }
  0x22   :  { %v1794_v33 = vld [vmem:[%s2534_s1 + $0x314] ss:$8 sps:$4 sm:$0xff]   ;;  %v1810_v49 = vld [vmem:[%s2534_s1 + $0x3e0] ss:$8 sps:$4 sm:$0xff]  }
  0x23   :  { %1011 = vmatpush2.bf16.msra.mxu0 %v1703_v34  ;;  %v1789_v34 = vld [vmem:[%s2534_s1 + $0x210] ss:$8 sps:$4 sm:$0xff]   ;;  %v1818_v51 = vld [vmem:[%s2534_s1 + $0x3d4] ss:$8 sps:$4 sm:$0xff]  }
  0x24   :  { %1064 = vmatpush2.bf16.msra.mxu1 %v1704_v35  ;;  %1012 = vmatprep.subr.bf16.mxu0 %v1705_v36  ;;  %v1792_v35 = vld [vmem:[%s2534_s1 + $0x310] ss:$8 sps:$4 sm:$0xff]   ;;  %v1797_v36 = vld [vmem:[%s2534_s1 + $0x204] ss:$8 sps:$4 sm:$0xff]  }
  0x25   :  { %1065 = vmatprep.subr.bf16.mxu1 %v1707_v37  ;;  %v1800_v37 = vld [vmem:[%s2534_s1 + $0x304] ss:$8 sps:$4 sm:$0xff]  }
  0x27   :  { %1013 = vmatpush2.bf16.msra.mxu0 %v1709_v38  ;;  %v1795_v38 = vld [vmem:[%s2534_s1 + $0x200] ss:$8 sps:$4 sm:$0xff]  }
  0x28   :  { %1066 = vmatpush2.bf16.msra.mxu1 %v1710_v39  ;;  %1014 = vmatprep.subr.bf16.mxu0 %v1711_v40  ;;  %v1798_v39 = vld [vmem:[%s2534_s1 + $0x300] ss:$8 sps:$4 sm:$0xff]   ;;  %v1803_v40 = vld [vmem:[%s2534_s1 + $0x2f4] ss:$8 sps:$4 sm:$0xff]  }
  0x29   :  { %1067 = vmatprep.subr.bf16.mxu1 %v1713_v41  ;;  %v1857_v41 = vld [vmem:[%s2535_s0 + $0x14] ss:$36 sps:$4 sm:$0xff]  }
  0x2b   :  { %1015 = vmatpush2.bf16.msra.mxu0 %v1715_v42  ;;  %v1806_v42 = vld [vmem:[%s2534_s1 + $0x3f4] ss:$8 sps:$4 sm:$0xff]  }
  0x2c   :  { %1068 = vmatpush2.bf16.msra.mxu1 %v1716_v43  ;;  %1016 = vmatprep.subr.bf16.mxu0 %v1717_v44  ;;  %v1860_v43 = vld [vmem:[%s2535_s0 + $0x1c] ss:$36 sps:$4 sm:$0xff]   ;;  %v1801_v44 = vld [vmem:[%s2534_s1 + $0x2f0] ss:$8 sps:$4 sm:$0xff]  }
  0x2d   :  { %1069 = vmatprep.subr.bf16.mxu1 %v1719_v45  ;;  %v1804_v45 = vld [vmem:[%s2534_s1 + $0x3f0] ss:$8 sps:$4 sm:$0xff]  }
  0x2f   :  { %1017 = vmatpush2.bf16.msra.mxu0 %v1721_v46  ;;  %v1809_v46 = vld [vmem:[%s2534_s1 + $0x2e4] ss:$8 sps:$4 sm:$0xff]  }
  0x30   :  { %1070 = vmatpush2.bf16.msra.mxu1 %v1722_v47  ;;  %1018 = vmatprep.subr.bf16.mxu0 %v1723_v48  ;;  %v1812_v47 = vld [vmem:[%s2534_s1 + $0x3e4] ss:$8 sps:$4 sm:$0xff]   ;;  %v1807_v48 = vld [vmem:[%s2534_s1 + $0x2e0] ss:$8 sps:$4 sm:$0xff]  }
  0x31   :  { %1071 = vmatprep.subr.bf16.mxu1 %v1725_v50  ;;  %v1815_v50 = vld [vmem:[%s2534_s1 + $0x2d4] ss:$8 sps:$4 sm:$0xff]  }
  0x33   :  { %1019 = vmatpush2.bf16.msra.mxu0 %v1727_v52  ;;  %v1813_v52 = vld [vmem:[%s2534_s1 + $0x2d0] ss:$8 sps:$4 sm:$0xff]  }
  0x34   :  { %1072 = vmatpush2.bf16.msra.mxu1 %v1728_v53  ;;  %1020 = vmatprep.subr.bf16.mxu0 %v1729_v54  ;;  %v1816_v53 = vld [vmem:[%s2534_s1 + $0x3d0] ss:$8 sps:$4 sm:$0xff]   ;;  %v1821_v54 = vld [vmem:[%s2534_s1 + $0x2c4] ss:$8 sps:$4 sm:$0xff]  }
  0x35   :  { %1073 = vmatprep.subr.bf16.mxu1 %v1731_v55  ;;  %v1824_v55 = vld [vmem:[%s2534_s1 + $0x3c4] ss:$8 sps:$4 sm:$0xff]  }
  0x37   :  { %1021 = vmatpush2.bf16.msra.mxu0 %v1733_v56  ;;  %v1819_v56 = vld [vmem:[%s2534_s1 + $0x2c0] ss:$8 sps:$4 sm:$0xff]  }
  0x38   :  { %1074 = vmatpush2.bf16.msra.mxu1 %v1734_v57  ;;  %1022 = vmatprep.subr.bf16.mxu0 %v1735_v58  ;;  %v1822_v57 = vld [vmem:[%s2534_s1 + $0x3c0] ss:$8 sps:$4 sm:$0xff]   ;;  %v1827_v58 = vld [vmem:[%s2534_s1 + $0x2b4] ss:$8 sps:$4 sm:$0xff]  }
  0x39   :  { %1075 = vmatprep.subr.bf16.mxu1 %v1737_v59  ;;  %v1830_v59 = vld [vmem:[%s2534_s1 + $0x3b4] ss:$8 sps:$4 sm:$0xff]  }
  0x3b   :  { %1023 = vmatpush2.bf16.msra.mxu0 %v1739_v60  ;;  %v1825_v60 = vld [vmem:[%s2534_s1 + $0x2b0] ss:$8 sps:$4 sm:$0xff]  }
  0x3c   :  { %1076 = vmatpush2.bf16.msra.mxu1 %v1740_v61  ;;  %1024 = vmatprep.subr.bf16.mxu0 %v1741_v62  ;;  %v1828_v61 = vld [vmem:[%s2534_s1 + $0x3b0] ss:$8 sps:$4 sm:$0xff]   ;;  %v1839_v62 = vld [vmem:[%s2534_s1 + $0x2a4] ss:$8 sps:$4 sm:$0xff]  }
  0x3d   :  { %1077 = vmatprep.subr.bf16.mxu1 %v1743_v63  ;;  %v1842_v63 = vld [vmem:[%s2534_s1 + $0x3a4] ss:$8 sps:$4 sm:$0xff]  }
  0x3f   :  { %1025 = vmatpush2.bf16.msra.mxu0 %v1745_v0  ;;  %v1837_v0 = vld [vmem:[%s2534_s1 + $0x2a0] ss:$8 sps:$4 sm:$0xff]  }
  0x40   :  { %1078 = vmatpush2.bf16.msra.mxu1 %v1746_v1  ;;  %1100 = vmatprep.subr.bf16.mxu0 %v1755_v2  ;;  %v1840_v1 = vld [vmem:[%s2534_s1 + $0x3a0] ss:$8 sps:$4 sm:$0xff]   ;;  %v1845_v2 = vld [vmem:[%s2534_s1 + $0x294] ss:$8 sps:$4 sm:$0xff]  }
  0x41   :  { %1153 = vmatprep.subr.bf16.mxu1 %v1758_v3  ;;  %v1848_v3 = vld [vmem:[%s2534_s1 + $0x394] ss:$8 sps:$4 sm:$0xff]  }
  0x42   :  { %1027 = vmatmul.mubr.bf16.vlgmr.msra.gmra.mxu0 %v1747_v4  ;;  %v1843_v4 = vld [vmem:[%s2534_s1 + $0x290] ss:$8 sps:$4 sm:$0xff]  }
  0x43   :  { %1080 = vmatmul.mubr.bf16.vlgmr.msra.gmra.mxu1 %v1750_v5  ;;  %1101 = vmatpush1.bf16.msra.mxu0 %v1753_v6  ;;  %v1846_v5 = vld [vmem:[%s2534_s1 + $0x390] ss:$8 sps:$4 sm:$0xff]   ;;  %v1851_v6 = vld [vmem:[%s2534_s1 + $0x284] ss:$8 sps:$4 sm:$0xff]  }
  0x44   :  { %1154 = vmatpush1.bf16.msra.mxu1 %v1756_v7  ;;  %1102 = vmatprep.subr.bf16.mxu0 %v1761_v8  ;;  %v1854_v7 = vld [vmem:[%s2534_s1 + $0x384] ss:$8 sps:$4 sm:$0xff]   ;;  %v1849_v8 = vld [vmem:[%s2534_s1 + $0x280] ss:$8 sps:$4 sm:$0xff]  }
  0x45   :  { %1155 = vmatprep.subr.bf16.mxu1 %v1764_v9  ;;  %1036 = vmatprep.mubr.bf16.mxu0 %v1831_v26  ;;  %v1852_v9 = vld [vmem:[%s2534_s1 + $0x380] ss:$8 sps:$4 sm:$0xff]   ;;  %v1879_v26 = vld [vmem:[%s2534_s1 + $0x430] ss:$8 sps:$4 sm:$0xff]  }
  0x46   :  { %1089 = vmatprep.mubr.bf16.mxu1 %v1833_v27  ;;  %v1884_v27 = vld [vmem:[%s2534_s1 + $0x424] ss:$8 sps:$4 sm:$0xff]  }
  0x47   :  { %1103 = vmatpush1.bf16.msra.mxu0 %v1759_v10  ;;  %v1863_v10 = vld [vmem:[%s2534_s1 + $0x474] ss:$8 sps:$4 sm:$0xff]  }
  0x48   :  { %1156 = vmatpush1.bf16.msra.mxu1 %v1762_v11  ;;  %1104 = vmatprep.subr.bf16.mxu0 %v1767_v12  ;;  %v1855_v11 = vld [vmem:[%s2535_s0 + $0x10] ss:$36 sps:$4 sm:$0xff]   ;;  %v1858_v12 = vld [vmem:[%s2535_s0 + $0x18] ss:$36 sps:$4 sm:$0xff]  }
  0x49   :  { %1157 = vmatprep.subr.bf16.mxu1 %v1770_v13  ;;  %v1861_v13 = vld [vmem:[%s2534_s1 + $0x470] ss:$8 sps:$4 sm:$0xff]  }
  0x4a   :  { %1037 = vmatmul.mubr.bf16.gmra.mxu0 %v1835_v28  ;;  %v1882_v28 = vld [vmem:[%s2534_s1 + $0x420] ss:$8 sps:$4 sm:$0xff]  }
  0x4b   :  { %1105 = vmatpush1.bf16.msra.mxu0 %v1765_v14  ;;  %1090 = vmatmul.mubr.bf16.gmra.mxu1 %v1836_v29  ;;  %v1866_v14 = vld [vmem:[%s2534_s1 + $0x464] ss:$8 sps:$4 sm:$0xff]   ;;  %v1887_v29 = vld [vmem:[%s2534_s1 + $0x414] ss:$8 sps:$4 sm:$0xff]  }
  0x4c   :  { %1158 = vmatpush1.bf16.msra.mxu1 %v1768_v15  ;;  %1106 = vmatprep.subr.bf16.mxu0 %v1773_v16  ;;  %v1867_v15 = vld [vmem:[%s2535_s0 + $0x5c] ss:$36 sps:$4 sm:$0xff]   ;;  %v1873_v16 = vld [vmem:[%s2535_s0 + $0x64] ss:$36 sps:$4 sm:$0xff]  }
  0x4d   :  { %1159 = vmatprep.subr.bf16.mxu1 %v1776_v17  ;;  %1132 = vmatprep.mubr.bf16.mxu0 %v1857_v41  ;;  %v1864_v17 = vld [vmem:[%s2534_s1 + $0x460] ss:$8 sps:$4 sm:$0xff]  }
  0x4e   :  { %1185 = vmatprep.mubr.bf16.mxu1 %v1860_v43 }
  0x4f   :  { %1107 = vmatpush1.bf16.msra.mxu0 %v1771_v18  ;;  %v1872_v18 = vld [vmem:[%s2534_s1 + $0x454] ss:$8 sps:$4 sm:$0xff]  }
  0x50   :  { %1160 = vmatpush1.bf16.msra.mxu1 %v1774_v19  ;;  %1108 = vmatprep.subr.bf16.mxu0 %v1779_v20  ;;  %v1869_v19 = vld [vmem:[%s2535_s0 + $0x58] ss:$36 sps:$4 sm:$0xff]   ;;  %v1875_v20 = vld [vmem:[%s2535_s0 + $0x60] ss:$36 sps:$4 sm:$0xff]  }
  0x51   :  { %1161 = vmatprep.subr.bf16.mxu1 %v1782_v21  ;;  %v1870_v21 = vld [vmem:[%s2534_s1 + $0x450] ss:$8 sps:$4 sm:$0xff]  }
  0x53   :  { %1109 = vmatpush1.bf16.msra.mxu0 %v1777_v22  ;;  %v1878_v22 = vld [vmem:[%s2534_s1 + $0x444] ss:$8 sps:$4 sm:$0xff]  }
  0x54   :  { %1162 = vmatpush1.bf16.msra.mxu1 %v1780_v23  ;;  %1110 = vmatprep.subr.bf16.mxu0 %v1785_v24  ;;  %v1876_v23 = vld [vmem:[%s2534_s1 + $0x440] ss:$8 sps:$4 sm:$0xff]   ;;  %v1881_v24 = vld [vmem:[%s2534_s1 + $0x434] ss:$8 sps:$4 sm:$0xff]  }
  0x55   :  { %1163 = vmatprep.subr.bf16.mxu1 %v1788_v25  ;;  %v1895_v25 = vmov 0  }
  0x57   :  { %1111 = vmatpush1.bf16.msra.mxu0 %v1783_v30  ;;  %v1885_v30 = vld [vmem:[%s2534_s1 + $0x410] ss:$8 sps:$4 sm:$0xff]  }
  0x58   :  { %1164 = vmatpush1.bf16.msra.mxu1 %v1786_v31  ;;  %1112 = vmatprep.subr.bf16.mxu0 %v1791_v32  ;;  %v1890_v31 = vld [vmem:[%s2534_s1 + $0x404] ss:$8 sps:$4 sm:$0xff]   ;;  %v1888_v32 = vld [vmem:[%s2534_s1 + $0x400] ss:$8 sps:$4 sm:$0xff]  }
  0x59   :  { %1165 = vmatprep.subr.bf16.mxu1 %v1794_v33  ;;  %v1891_v33 = vld [vmem:[%s2535_s0 + $0x20] ss:$36 sps:$4 sm:$0xff]  }
  0x5b   :  { %1113 = vmatpush1.bf16.msra.mxu0 %v1789_v34  ;;  %v1892_v34 = vld [vmem:[%s2535_s0 + $0x68] ss:$36 sps:$4 sm:$0xff]   ;;  %s1896_s0 = smov 64  }
  0x5c   :  { %1166 = vmatpush1.bf16.msra.mxu1 %v1792_v35  ;;  %1114 = vmatprep.subr.bf16.mxu0 %v1797_v36 }
  0x5d   :  { %1167 = vmatprep.subr.bf16.mxu1 %v1800_v37 }
  0x5f   :  { %1115 = vmatpush1.bf16.msra.mxu0 %v1795_v38 }
  0x60   :  { %1168 = vmatpush1.bf16.msra.mxu1 %v1798_v39  ;;  %1116 = vmatprep.subr.bf16.mxu0 %v1803_v40 }
  0x61   :  { %1169 = vmatprep.subr.bf16.mxu1 %v1806_v42 }
  0x63   :  { %1117 = vmatpush2.bf16.msra.mxu0 %v1801_v44 }
  0x64   :  { %1170 = vmatpush2.bf16.msra.mxu1 %v1804_v45  ;;  %1118 = vmatprep.subr.bf16.mxu0 %v1809_v46 }
  0x65   :  { %1171 = vmatprep.subr.bf16.mxu1 %v1812_v47 }
  0x67   :  { %1119 = vmatpush2.bf16.msra.mxu0 %v1807_v48 }
  0x68   :  { %1172 = vmatpush2.bf16.msra.mxu1 %v1810_v49  ;;  %1120 = vmatprep.subr.bf16.mxu0 %v1815_v50 }
  0x69   :  { %1173 = vmatprep.subr.bf16.mxu1 %v1818_v51 }
  0x6b   :  { %1121 = vmatpush2.bf16.msra.mxu0 %v1813_v52 }
  0x6c   :  { %1174 = vmatpush2.bf16.msra.mxu1 %v1816_v53  ;;  %1122 = vmatprep.subr.bf16.mxu0 %v1821_v54 }
  0x6d   :  { %1175 = vmatprep.subr.bf16.mxu1 %v1824_v55 }
  0x6f   :  { %1123 = vmatpush2.bf16.msra.mxu0 %v1819_v56 }
  0x70   :  { %1176 = vmatpush2.bf16.msra.mxu1 %v1822_v57  ;;  %1124 = vmatprep.subr.bf16.mxu0 %v1827_v58 }
  0x71   :  { %1177 = vmatprep.subr.bf16.mxu1 %v1830_v59 }
  0x73   :  { %1125 = vmatpush2.bf16.msra.mxu0 %v1825_v60 }
  0x74   :  { %1178 = vmatpush2.bf16.msra.mxu1 %v1828_v61  ;;  %1126 = vmatprep.subr.bf16.mxu0 %v1839_v62 }
  0x75   :  { %1179 = vmatprep.subr.bf16.mxu1 %v1842_v63 }
  0x77   :  { %1127 = vmatpush2.bf16.msra.mxu0 %v1837_v0 }
  0x78   :  { %1180 = vmatpush2.bf16.msra.mxu1 %v1840_v1  ;;  %1128 = vmatprep.subr.bf16.mxu0 %v1845_v2 }
  0x79   :  { %1181 = vmatprep.subr.bf16.mxu1 %v1848_v3 }
  0x7b   :  { %1129 = vmatpush2.bf16.msra.mxu0 %v1843_v4 }
  0x7c   :  { %1182 = vmatpush2.bf16.msra.mxu1 %v1846_v5  ;;  %1130 = vmatprep.subr.bf16.mxu0 %v1851_v6 }
  0x7d   :  { %1183 = vmatprep.subr.bf16.mxu1 %v1854_v7 }
  0x7f   :  { %1131 = vmatpush2.bf16.msra.mxu0 %v1849_v8 }
  0x80   :  { %1184 = vmatpush2.bf16.msra.mxu1 %v1852_v9  ;;  %1206 = vmatprep.subr.bf16.mxu0 %v1863_v10 }
  0x81   :  { %1633 = vmatprep.subr.bf16.mxu1 %v1863_v10 }
  0x82   :  { %1133 = vmatmul.mubr.bf16.vlgmr.msra.gmra.mxu0 %v1855_v11 }
  0x83   :  { %1186 = vmatmul.mubr.bf16.vlgmr.msra.gmra.mxu1 %v1858_v12  ;;  %1207 = vmatpush1.bf16.msra.mxu0 %v1861_v13 }
  0x84   :  { %1641 = vmatpush1.bf16.msra.mxu1 %v1861_v13  ;;  %1208 = vmatprep.subr.bf16.mxu0 %v1866_v14 }
  0x85   :  { %1634 = vmatprep.subr.bf16.mxu1 %v1866_v14  ;;  %1142 = vmatprep.mubr.bf16.mxu0 %v1867_v15 }
  0x86   :  { %1195 = vmatprep.mubr.bf16.mxu1 %v1873_v16 }
  0x87   :  { %1209 = vmatpush1.bf16.msra.mxu0 %v1864_v17 }
  0x88   :  { %1642 = vmatpush1.bf16.msra.mxu1 %v1864_v17  ;;  %1210 = vmatprep.subr.bf16.mxu0 %v1872_v18 }
  0x89   :  { %1635 = vmatprep.subr.bf16.mxu1 %v1872_v18 }
  0x8a   :  { %1143 = vmatmul.mubr.bf16.gmra.mxu0 %v1869_v19 }
  0x8b   :  { %1196 = vmatmul.mubr.bf16.gmra.mxu1 %v1875_v20  ;;  %1211 = vmatpush1.bf16.msra.mxu0 %v1870_v21 }
  0x8c   :  { %1643 = vmatpush1.bf16.msra.mxu1 %v1870_v21  ;;  %1212 = vmatprep.subr.bf16.mxu0 %v1878_v22 }
  0x8d   :  { %1636 = vmatprep.subr.bf16.mxu1 %v1878_v22  ;;  %1238 = vmatprep.mubr.bf16.mxu0 %v1895_v25 }
  0x8e   :  { %1248 = vmatprep.mubr.bf16.mxu1 %v1895_v25 }
  0x8f   :  { %1213 = vmatpush1.bf16.msra.mxu0 %v1876_v23 }
  0x90   :  { %1644 = vmatpush1.bf16.msra.mxu1 %v1876_v23  ;;  %1214 = vmatprep.subr.bf16.mxu0 %v1881_v24 }
  0x91   :  { %1637 = vmatprep.subr.bf16.mxu1 %v1881_v24 }
  0x93   :  { %1215 = vmatpush1.bf16.msra.mxu0 %v1879_v26 }
  0x94   :  { %1645 = vmatpush1.bf16.msra.mxu1 %v1879_v26  ;;  %1216 = vmatprep.subr.bf16.mxu0 %v1884_v27 }
  0x95   :  { %1638 = vmatprep.subr.bf16.mxu1 %v1884_v27 }
  0x97   :  { %1217 = vmatpush1.bf16.msra.mxu0 %v1882_v28 }
  0x98   :  { %1646 = vmatpush1.bf16.msra.mxu1 %v1882_v28  ;;  %1218 = vmatprep.subr.bf16.mxu0 %v1887_v29 }
  0x99   :  { %1639 = vmatprep.subr.bf16.mxu1 %v1887_v29 }
  0x9b   :  { %1219 = vmatpush1.bf16.msra.mxu0 %v1885_v30 }
  0x9c   :  { %1647 = vmatpush1.bf16.msra.mxu1 %v1885_v30  ;;  %1220 = vmatprep.subr.bf16.mxu0 %v1890_v31 }
  0x9d   :  { %1640 = vmatprep.subr.bf16.mxu1 %v1890_v31 }
  0x9f   :  { %1221 = vmatpush1.bf16.msra.mxu0 %v1888_v32 }
  0xa0   :  { %1648 = vmatpush1.bf16.msra.mxu1 %v1888_v32 }
  0xa2   :  { %1239 = vmatmul.mubr.bf16.vlgmr.msra.gmra.mxu0 %v1891_v33 }
  0xa3   :  { %1249 = vmatmul.mubr.bf16.vlgmr.msra.gmra.mxu1 %v1892_v34 }
 0x102   :  { %v1028_v35 = vpop.f32.mrf.mxu0 }
 0x103   :  { %v1081_v36 = vpop.f32.mrf.mxu1 }
 0x104   :  { %v1030_v37 = vpop.f32.mrf.mxu0  ;;  %v1082_v63 = vadd.f32 %v1081_v36, %v1028_v35 }
 0x105   :  { %v1083_v38 = vpop.f32.mrf.mxu1 }
 0x106   :  { %v1032_v39 = vpop.f32.mrf.mxu0  ;;  %v1084_v4 = vadd.f32 %v1083_v38, %v1030_v37 }
 0x107   :  { %v1085_v40 = vpop.f32.mrf.mxu1 }
 0x108   :  { %v1034_v41 = vpop.f32.mrf.mxu0  ;;  %v1086_v5 = vadd.f32 %v1085_v40, %v1032_v39 }
 0x109   :  { %v1087_v42 = vpop.f32.mrf.mxu1 }
 0x10a   :  { %v1038_v43 = vpop.f32.mrf.mxu0  ;;  %v1088_v12 = vadd.f32 %v1087_v42, %v1034_v41 }
 0x10b   :  { %v1091_v44 = vpop.f32.mrf.mxu1 }
 0x10c   :  { %v1040_v45 = vpop.f32.mrf.mxu0  ;;  %v1092_v2 = vadd.f32 %v1091_v44, %v1038_v43 }
 0x10d   :  { %v1093_v46 = vpop.f32.mrf.mxu1 }
 0x10e   :  { %v1042_v47 = vpop.f32.mrf.mxu0  ;;  %v1094_v13 = vadd.f32 %v1093_v46, %v1040_v45 }
 0x10f   :  { %v1095_v48 = vpop.f32.mrf.mxu1 }
 0x110   :  { %v1044_v49 = vpop.f32.mrf.mxu0  ;;  %v1096_v16 = vadd.f32 %v1095_v48, %v1042_v47 }
 0x111   :  { %v1097_v50 = vpop.f32.mrf.mxu1 }
 0x112   :  { %v1098_v17 = vadd.f32 %v1097_v50, %v1044_v49 }
 0x142   :  { %v1134_v51 = vpop.f32.mrf.mxu0 }
 0x143   :  { %v1187_v52 = vpop.f32.mrf.mxu1  ;;  %v1135_v3 = vadd.f32 %v1134_v51, %v1082_v63 }
 0x144   :  { %v1136_v53 = vpop.f32.mrf.mxu0 }
 0x145   :  { %v1189_v54 = vpop.f32.mrf.mxu1  ;;  %v1137_v7 = vadd.f32 %v1136_v53, %v1084_v4  ;;  %v1188_v11 = vadd.f32 %v1187_v52, %v1135_v3 }
 0x146   :  { %v1138_v55 = vpop.f32.mrf.mxu0 }
 0x147   :  { %v1191_v56 = vpop.f32.mrf.mxu1  ;;  %v1139_v8 = vadd.f32 %v1138_v55, %v1086_v5  ;;  %v1190_v20 = vadd.f32 %v1189_v54, %v1137_v7 }
 0x148   :  { %v1140_v57 = vpop.f32.mrf.mxu0 }
 0x149   :  { %v1193_v58 = vpop.f32.mrf.mxu1  ;;  %v1192_v21 = vadd.f32 %v1191_v56, %v1139_v8  ;;  %v1141_v25 = vadd.f32 %v1140_v57, %v1088_v12 }
 0x14a   :  { %v1144_v59 = vpop.f32.mrf.mxu0 }
 0x14b   :  { %v1197_v60 = vpop.f32.mrf.mxu1  ;;  %v1145_v6 = vadd.f32 %v1144_v59, %v1092_v2  ;;  %v1194_v35 = vadd.f32 %v1193_v58, %v1141_v25 }
 0x14c   :  { %v1146_v61 = vpop.f32.mrf.mxu0 }
 0x14d   :  { %v1199_v62 = vpop.f32.mrf.mxu1  ;;  %v1198_v18 = vadd.f32 %v1197_v60, %v1145_v6  ;;  %v1147_v22 = vadd.f32 %v1146_v61, %v1094_v13 }
 0x14e   :  { %v1148_v0 = vpop.f32.mrf.mxu0 }
 0x14f   :  { %v1201_v1 = vpop.f32.mrf.mxu1  ;;  %v1149_v26 = vadd.f32 %v1148_v0, %v1096_v16  ;;  %v1200_v34 = vadd.f32 %v1199_v62, %v1147_v22 }
 0x150   :  { %v1150_v9 = vpop.f32.mrf.mxu0 }
 0x151   :  { %v1203_v10 = vpop.f32.mrf.mxu1  ;;  %v1151_v27 = vadd.f32 %v1150_v9, %v1098_v17  ;;  %v1202_v36 = vadd.f32 %v1201_v1, %v1149_v26 }
 0x153   :  { %v1204_v37 = vadd.f32 %v1203_v10, %v1151_v27 }
 0x162   :  { %v1240_v14 = vpop.f32.mrf.mxu0 }
 0x163   :  { %v1250_v15 = vpop.f32.mrf.mxu1  ;;  %v2408_v19 = vadd.f32 %v1240_v14, %v1188_v11 }
 0x164   :  { %v1242_v23 = vpop.f32.mrf.mxu0  ;;  %v2410_v28 = vadd.f32 %v1250_v15, %v1198_v18 }
 0x165   :  { %v1252_v24 = vpop.f32.mrf.mxu1  ;;  %v1274_v30 = vmul.f32 %v2408_v19, %v2408_v19  ;;  %v2414_v31 = vadd.f32 %v1242_v23, %v1190_v20  ;;  %v1293_v39 = vsel %vm1292_vm0, %v2408_v19, 0.0 }
 0x166   :  { %v1244_v29 = vpop.f32.mrf.mxu0  ;;  %v1276_v38 = vmul.f32 %v2410_v28, %v2410_v28  ;;  %v1296_v40 = vsel %vm1292_vm0, %v2410_v28, 0.0  ;;  %v2424_v41 = vadd.f32 %v1252_v24, %v1200_v34 }
 0x167   :  { %v2416_v32 = vadd.f32 %v1244_v29, %v1192_v21  ;;  %v1254_v33 = vpop.f32.mrf.mxu1  ;;  %v1278_v44 = vsel %vm1259_vm1, %v1274_v30, 0.0  ;;  %v1311_v45 = vsel %vm1292_vm0, %v1274_v30, 0.0  ;;  %v1343_v46 = vmul.f32 %v2414_v31, %v2414_v31 }
 0x168   :  { %v1246_v43 = vpop.f32.mrf.mxu0  ;;  %v2436_v52 = vadd.f32 %v1254_v33, %v1202_v36  ;;  %v1281_v53 = vsel %vm1259_vm1, %v1276_v38, 0.0  ;;  %v1314_v54 = vsel %vm1292_vm0, %v1276_v38, 0.0  ;;  %v1361_v57 = vsel %vm1292_vm0, %v2414_v31, 0.0 }
 0x169   :  { %v1275_v42 = vmul.f32 %v2416_v32, %v2416_v32  ;;  %v1294_v47 = vsel %vm1292_vm0, %v2416_v32, 0.0  ;;  %v1256_v48 = vpop.f32.mrf.mxu1  ;;  %v2440_v56 = vadd.f32 %v1246_v43, %v1194_v35  ;;  %v1345_v58 = vmul.f32 %v2424_v41, %v2424_v41 }
 0x16a   :  { %v1295_v50 = vadd.f32 %v1294_v47, %v1293_v39  ;;  %v2446_v59 = vadd.f32 %v1256_v48, %v1204_v37  ;;  %v1347_v61 = vsel %vm1259_vm1, %v1343_v46, 0.0  ;;  %v1277_v1 = vmul.f32 %v2436_v52, %v2436_v52 }
 0x16b   :  { %v1279_v49 = vsel %vm1259_vm1, %v1275_v42, 0.0  ;;  %v1312_v51 = vsel %vm1292_vm0, %v1275_v42, 0.0  ;;  %v1344_v63 = vmul.f32 %v2440_v56, %v2440_v56  ;;  %v1362_v0 = vsel %vm1292_vm0, %v2440_v56, 0.0 }
 0x16c   :  { %v1280_v55 = vadd.f32 %v1279_v49, %v1278_v44  ;;  %v1297_v60 = vadd.f32 %v1296_v40, %v1295_v50  ;;  %v1313_v62 = vadd.f32 %v1312_v51, %v1311_v45  ;;  %v1363_v2 = vadd.f32 %v1362_v0, %v1361_v57 }
 0x16d   :  { %v1346_v3 = vmul.f32 %v2446_v59, %v2446_v59  ;;  %v1298_v4 = vsel %vm1292_vm0, %v2436_v52, 0.0  ;;  %v1379_v5 = vsel %vm1292_vm0, %v1343_v46, 0.0  ;;  %v1348_v6 = vsel %vm1259_vm1, %v1344_v63, 0.0 }
 0x16e   :  { %v1380_v7 = vsel %vm1292_vm0, %v1344_v63, 0.0  ;;  %v1299_v8 = vadd.f32 %v1298_v4, %v1297_v60  ;;  %v1350_v9 = vsel %vm1259_vm1, %v1345_v58, 0.0  ;;  %v1364_v10 = vsel %vm1292_vm0, %v2424_v41, 0.0 }
 0x16f   :  { %v1349_v11 = vadd.f32 %v1348_v6, %v1347_v61  ;;  %v1381_v12 = vadd.f32 %v1380_v7, %v1379_v5  ;;  %v1382_v13 = vsel %vm1292_vm0, %v1345_v58, 0.0  ;;  %v1365_v15 = vadd.f32 %v1364_v10, %v1363_v2 }
 0x170   :  { %v1300_v14 = vrot.slane %v1299_v8, 4  ;;  %v1315_v16 = vadd.f32 %v1314_v54, %v1313_v62  ;;  %v1316_v17 = vsel %vm1292_vm0, %v1277_v1, 0.0  ;;  %v1384_v18 = vsel %vm1292_vm0, %v1346_v3, 0.0 }
 0x171   :  { %v1366_v20 = vsel %vm1292_vm0, %v2446_v59, 0.0  ;;  %v1383_v21 = vadd.f32 %v1382_v13, %v1381_v12  ;;  %v1282_v25 = vadd.f32 %v1281_v53, %v1280_v55  ;;  %v1352_v26 = vsel %vm1259_vm1, %v1346_v3, 0.0 }
 0x172   :  { %v1301_v22 = vadd.f32 %v1300_v14, %v1299_v8  ;;  %v1367_v23 = vadd.f32 %v1366_v20, %v1365_v15  ;;  %v1317_v24 = vadd.f32 %v1316_v17, %v1315_v16  ;;  %v1283_v29 = vsel %vm1259_vm1, %v1277_v1, 0.0 }
 0x173   :  { %v1385_v27 = vadd.f32 %v1384_v18, %v1383_v21  ;;  %v1351_v30 = vadd.f32 %v1350_v9, %v1349_v11  ;;  %v1284_v36 = vadd.f32 %v1283_v29, %v1282_v25  ;;  %v1261_v61 = vsel %vm1259_vm1, %v2416_v32, 0.0 }
 0x174   :  { %v1302_v33 = vrot.slane %v1301_v22, 2  ;;  %v1368_v34 = vrot.slane %v1367_v23, 4  ;;  %v1318_v35 = vrot.slane %v1317_v24, 4  ;;  %v1260_v62 = vsel %vm1259_vm1, %v2408_v19, 0.0 }
 0x175   :  { %v1386_v37 = vrot.slane %v1385_v27, 4  ;;  %v1353_v38 = vadd.f32 %v1352_v26, %v1351_v30  ;;  %v1330_v63 = vsel %vm1259_vm1, %v2440_v56, 0.0  ;;  %v1262_v0 = vadd.f32 %v1261_v61, %v1260_v62 }
 0x176   :  { %v1303_v39 = vadd.f32 %v1302_v33, %v1301_v22  ;;  %v1369_v40 = vadd.f32 %v1368_v34, %v1367_v23  ;;  %v1319_v42 = vadd.f32 %v1318_v35, %v1317_v24  ;;  %v1329_v1 = vsel %vm1259_vm1, %v2414_v31, 0.0 }
 0x177   :  { %v1387_v43 = vadd.f32 %v1386_v37, %v1385_v27  ;;  %v1331_v2 = vadd.f32 %v1330_v63, %v1329_v1  ;;  %v1263_v3 = vsel %vm1259_vm1, %v2410_v28, 0.0  ;;  %v1332_v5 = vsel %vm1259_vm1, %v2424_v41, 0.0 }
 0x178   :  { %v1304_v44 = vrot.slane %v1303_v39, 1  ;;  %v1370_v45 = vrot.slane %v1369_v40, 2  ;;  %v1320_v46 = vrot.slane %v1319_v42, 2  ;;  %v1264_v4 = vadd.f32 %v1263_v3, %v1262_v0  ;;  %v1406_v0 = vld [vmem:[%s2537_s3] sm:$0x1] }
 0x179   :  { %v1388_v47 = vrot.slane %v1387_v43, 2  ;;  %v1333_v6 = vadd.f32 %v1332_v5, %v1331_v2  ;;  %v1265_v7 = vsel %vm1259_vm1, %v2436_v52, 0.0  ;;  %v1334_v9 = vsel %vm1259_vm1, %v2446_v59, 0.0 }
 0x17a   :  { %v1305_v48 = vadd.f32 %v1304_v44, %v1303_v39  ;;  %v1371_v49 = vadd.f32 %v1370_v45, %v1369_v40  ;;  %v1321_v50 = vadd.f32 %v1320_v46, %v1319_v42  ;;  %v1266_v8 = vadd.f32 %v1265_v7, %v1264_v4 }
 0x17b   :  { %v1389_v51 = vadd.f32 %v1388_v47, %v1387_v43  ;;  %v1335_v10 = vadd.f32 %v1334_v9, %v1333_v6  ;;  %v1285_v14 = vrot.slane %v1284_v36, 4  ;;  %v1354_v16 = vrot.slane %v1353_v38, 4 }
 0x17c   :  { %1307 = vrot.lane.b32.xlu0 %v1305_v48, %s1896_s0  ;;  %v1372_v53 = vrot.slane %v1371_v49, 1  ;;  %v1322_v54 = vrot.slane %v1321_v50, 1  ;;  %v1267_v11 = vrot.slane %v1266_v8, 4 }
 0x17d   :  { %v1390_v58 = vrot.slane %v1389_v51, 1  ;;  %v1336_v12 = vrot.slane %v1335_v10, 4  ;;  %v1286_v18 = vadd.f32 %v1285_v14, %v1284_v36  ;;  %v1355_v21 = vadd.f32 %v1354_v16, %v1353_v38 }
 0x17e   :  { %v1373_v55 = vadd.f32 %v1372_v53, %v1371_v49  ;;  %v1323_v57 = vadd.f32 %v1322_v54, %v1321_v50  ;;  %v1268_v13 = vadd.f32 %v1267_v11, %v1266_v8 }
 0x17f   :  { %v1391_v60 = vadd.f32 %v1390_v58, %v1389_v51  ;;  %v1337_v15 = vadd.f32 %v1336_v12, %v1335_v10  ;;  %v1287_v23 = vrot.slane %v1286_v18, 2  ;;  %v1356_v25 = vrot.slane %v1355_v21, 2 }
 0x180   :  { %1375 = vrot.lane.b32.xlu1 %v1373_v55, %s1896_s0  ;;  %1325 = vrot.lane.b32.xlu0 %v1323_v57, %s1896_s0  ;;  %v1269_v17 = vrot.slane %v1268_v13, 2  ;;  %v1410_v57 = vlaneseq }
 0x181   :  { %v1338_v20 = vrot.slane %v1337_v15, 2  ;;  %v1288_v27 = vadd.f32 %v1287_v23, %v1286_v18  ;;  %v1357_v30 = vadd.f32 %v1356_v25, %v1355_v21 }
 0x182   :  { %v1270_v22 = vadd.f32 %v1269_v17, %v1268_v13  ;;  %v1411_v58 = vshrl.u32 %v1410_v57, 7 }
 0x183   :  { %v1339_v24 = vadd.f32 %v1338_v20, %v1337_v15  ;;  %v1289_v34 = vrot.slane %v1288_v27, 1  ;;  %v1358_v40 = vrot.slane %v1357_v30, 1 }
 0x184   :  { %1393 = vrot.lane.b32.xlu1 %v1391_v60, %s1896_s0  ;;  %v1271_v26 = vrot.slane %v1270_v22, 1  ;;  %v1402_v60 = vld [vmem:[%s2536_s2] sm:$0x1]  ;;  %v1412_v61 = vsub.s32 0, %v1411_v58 }
 0x185   :  { %v1340_v29 = vrot.slane %v1339_v24, 1  ;;  %v1290_v43 = vadd.f32 %v1289_v34, %v1288_v27  ;;  %v1359_v46 = vadd.f32 %v1358_v40, %v1357_v30 }
 0x186   :  { %v1272_v33 = vadd.f32 %v1271_v26, %v1270_v22 }
 0x187   :  { %v1341_v39 = vadd.f32 %v1340_v29, %v1339_v24 }
 0x1ee   :  { %v1308_v35 = vpop.permute.xlu0 %1307 }
 0x1ef   :  { %v1310_v37 = vadd.f32 %v1308_v35, %v1272_v33 }
 0x1f1   :  { %v1342_v42 = vadd.f32 %v1341_v39, %v1310_v37 }
 0x1f2   :  { %v1376_v44 = vpop.permute.xlu1 %1375  ;;  %v1326_v36 = vpop.permute.xlu0 %1325 }
 0x1f3   :  { %v1378_v45 = vadd.f32 %v1376_v44, %v1342_v42  ;;  %v1328_v38 = vadd.f32 %v1326_v36, %v1290_v43 }
 0x1f5   :  { %v1398_v47 = vmul.f32 0.0078125, %v1378_v45  ;;  %v1360_v48 = vadd.f32 %v1359_v46, %v1328_v38 }
 0x1f6   :  { %v1394_v49 = vpop.permute.xlu1 %1393 }
 0x1f7   :  { %v1396_v50 = vadd.f32 %v1394_v49, %v1360_v48  ;;  %v1400_v51 = vmul.f32 %v1398_v47, %v1398_v47 }
 0x1f9   :  { %v1399_v53 = vmul.f32 0.0078125, %v1396_v50 }
 0x1fb   :  { %v1401_v54 = vsub.f32 %v1399_v53, %v1400_v51 }
 0x1fd   :  { %v1403_v55 = vadd.f32 1e-05, %v1401_v54 }
 0x1ff   :  { %1893 = vrsqrt.f32 %v1403_v55 }
 0x20c   :  { %v1894_v62 = vpop.eup %1893 }
 0x20d   :  { %v1405_v63 = vmul.f32 %v1894_v62, %v1402_v60 }
 0x20f   :  { %v1413_v1 = vrot.slane %v1405_v63, %v1412_v61  ;;  %v1407_v2 = vmul.f32 %v1405_v63, %v1398_v47 }
 0x211   :  { %1414 = vrot.lane.b32.xlu0 %v1413_v1, %s1896_s0  ;;  %v1408_v3 = vsub.f32 %v1406_v0, %v1407_v2 }
 0x213   :  { %v1422_v4 = vrot.slane %v1408_v3, %v1412_v61 }
 0x215   :  { %1423 = vrot.lane.b32.xlu1 %v1422_v4, %s1896_s0 }
 0x283   :  { %v1415_v5 = vpop.permute.xlu0 %1414 }
 0x284   :  { %v1417_v6 = vsel %vm1259_vm1, %v1405_v63, %v1415_v5 }
 0x285   :  { %v1430_v7 = vrot.slane %v1417_v6, %v1412_v61 }
 0x287   :  { %v1424_v8 = vpop.permute.xlu1 %1423  ;;  %v1431_v9 = vmul.f32 %v1430_v7, %v2408_v19  ;;  %v1432_v11 = vmul.f32 %v1430_v7, %v2414_v31  ;;  %v1433_v12 = vmul.f32 %v1430_v7, %v2416_v32  ;;  %v1434_v13 = vmul.f32 %v1430_v7, %v2440_v56 }
 0x288   :  { %v1426_v10 = vsel %vm1259_vm1, %v1408_v3, %v1424_v8  ;;  %v1435_v15 = vmul.f32 %v1430_v7, %v2410_v28  ;;  %v1436_v16 = vmul.f32 %v1430_v7, %v2424_v41  ;;  %v1437_v17 = vmul.f32 %v1430_v7, %v2436_v52 }
 0x289   :  { %v1442_v14 = vrot.slane %v1426_v10, %v1412_v61  ;;  %v1438_v18 = vmul.f32 %v1430_v7, %v2446_v59 }
 0x28b   :  { %v1443_v20 = vadd.f32 %v1442_v14, %v1431_v9  ;;  %v1444_v21 = vadd.f32 %v1442_v14, %v1432_v11  ;;  %v1445_v19 = vadd.f32 %v1442_v14, %v1433_v12  ;;  %v1446_v22 = vadd.f32 %v1442_v14, %v1434_v13 }
 0x28c   :  { %v1447_v23 = vadd.f32 %v1442_v14, %v1435_v15  ;;  %v1448_v24 = vadd.f32 %v1442_v14, %v1436_v16  ;;  %v1449_v31 = vadd.f32 %v1442_v14, %v1437_v17  ;;  %v1450_v25 = vadd.f32 %v1442_v14, %v1438_v18 }
 0x28d   :  { %v1451_v32 = vmax.f32 %v1443_v20, 0.0  ;;  %v1452_v26 = vmax.f32 %v1444_v21, 0.0  ;;  %v1453_v56 = vmax.f32 %v1445_v19, 0.0  ;;  %v1454_v27 = vmax.f32 %v1446_v22, 0.0 }
 0x28e   :  { %v1455_v29 = vmax.f32 %v1447_v23, 0.0  ;;  %v1456_v28 = vmax.f32 %v1448_v24, 0.0  ;;  %v1457_v30 = vmax.f32 %v1449_v31, 0.0  ;;  %v1458_v41 = vmax.f32 %v1450_v25, 0.0 }
 0x28f   :  { %1459 = vst [vmem:[%s2538_s4] sm:$0xff] %v1451_v32  ;;  %1460 = vst [vmem:[%s2538_s4 + $0x8] sm:$0xff] %v1452_v26 }
 0x290   :  { %1461 = vst [vmem:[%s2538_s4 + $0x10] sm:$0xff] %v1453_v56  ;;  %1462 = vst [vmem:[%s2538_s4 + $0x18] sm:$0xff] %v1454_v27 }
 0x291   :  { %1463 = vst [vmem:[%s2538_s4 + $0x20] sm:$0xff] %v1455_v29  ;;  %1464 = vst [vmem:[%s2538_s4 + $0x28] sm:$0xff] %v1456_v28 }
 0x292   :  { %1465 = vst [vmem:[%s2538_s4 + $0x30] sm:$0xff] %v1457_v30  ;;  %1466 = vst [vmem:[%s2538_s4 + $0x38] sm:$0xff] %v1458_v41 }

// kernel: dc_generator_forward.7
= control target key start
LH: loop header
LB: loop body
LE: loop exit
PB: predicated region body
PF: predicated region fallthrough
CT: control target
= control target key end

     0   :  { %vm554_vm0 = vcmask 523264   ;;  %vm963_vm1 = vcmask 523520   ;;  %vm1048_vm2 = vcmask 785920   ;;  %vm1133_vm3 = vcmask 1048320   ;;  %s1695_s9 = smov 96   ;;  %s1696_s10 = smov 32   ;;  %s2437_s1 = inlined_call_operand.vmem [shape: bf16[576,128], index: 1, kind: input, shape index: {}]   ;;  %s2438_s0 = inlined_call_operand.vmem [shape: bf16[128,576], index: 0, kind: input, shape index: {}]   ;;  %s2439_s2 = inlined_call_operand.vmem [shape: f32[1,32], index: 2, kind: input, shape index: {}]   ;;  %s2440_s3 = inlined_call_operand.vmem [shape: f32[1,32], index: 3, kind: input, shape index: {}]   ;;  %s2441_s4 = inlined_call_operand.vmem [shape: f32[128,128], index: 4, kind: output, shape index: {}]  }
   0x1   :  { %v1600_v0 = vld [vmem:[%s2437_s1 + $0x78] sm:$0xff]   ;;  %v1604_v4 = vld [vmem:[%s2437_s1 + $0x70] sm:$0xff]   ;;  %v1608_v8 = vld [vmem:[%s2437_s1 + $0x68] sm:$0xff]   ;;  %vm870_vm4 = vcmask 261120   ;;  %vm1246_vm5 = vcmask 785408  }
   0x2   :  { %v1601_v1 = vld [vmem:[%s2437_s1 + $0xf8] sm:$0xff]   ;;  %1425 = vmatprep.subr.bf16.mxu0 %v1600_v0  ;;  %v1605_v5 = vld [vmem:[%s2437_s1 + $0xf0] sm:$0xff]   ;;  %v1609_v9 = vld [vmem:[%s2437_s1 + $0xe8] sm:$0xff]  }
   0x3   :  { %v1602_v2 = vld [vmem:[%s2437_s1 + $0x38] sm:$0xff]   ;;  %1489 = vmatprep.subr.bf16.mxu1 %v1601_v1  ;;  %v1606_v6 = vld [vmem:[%s2437_s1 + $0x30] sm:$0xff]   ;;  %v1610_v10 = vld [vmem:[%s2437_s1 + $0x28] sm:$0xff]  }
   0x4   :  { %v1603_v3 = vld [vmem:[%s2437_s1 + $0xb8] sm:$0xff]   ;;  %1426 = vmatpush3.bf16.msra.mxu0 %v1602_v2  ;;  %v1607_v7 = vld [vmem:[%s2437_s1 + $0xb0] sm:$0xff]   ;;  %v1611_v11 = vld [vmem:[%s2437_s1 + $0xa8] sm:$0xff]  }
   0x5   :  { %1490 = vmatpush3.bf16.msra.mxu1 %v1603_v3  ;;  %1427 = vmatprep.subr.bf16.mxu0 %v1604_v4  ;;  %v1612_v12 = vld [vmem:[%s2437_s1 + $0x60] sm:$0xff]   ;;  %v1616_v16 = vld [vmem:[%s2437_s1 + $0x58] sm:$0xff]   ;;  %v1620_v20 = vld [vmem:[%s2437_s1 + $0x50] sm:$0xff]  }
   0x6   :  { %1491 = vmatprep.subr.bf16.mxu1 %v1605_v5  ;;  %v1613_v13 = vld [vmem:[%s2437_s1 + $0xe0] sm:$0xff]   ;;  %v1617_v17 = vld [vmem:[%s2437_s1 + $0xd8] sm:$0xff]   ;;  %v1621_v21 = vld [vmem:[%s2437_s1 + $0xd0] sm:$0xff]  }
   0x7   :  { %v1614_v14 = vld [vmem:[%s2437_s1 + $0x20] sm:$0xff]   ;;  %v1618_v18 = vld [vmem:[%s2437_s1 + $0x18] sm:$0xff]   ;;  %v1622_v22 = vld [vmem:[%s2437_s1 + $0x10] sm:$0xff]  }
   0x8   :  { %1428 = vmatpush3.bf16.msra.mxu0 %v1606_v6  ;;  %v1615_v15 = vld [vmem:[%s2437_s1 + $0xa0] sm:$0xff]   ;;  %v1619_v19 = vld [vmem:[%s2437_s1 + $0x98] sm:$0xff]   ;;  %v1623_v23 = vld [vmem:[%s2437_s1 + $0x90] sm:$0xff]  }
   0x9   :  { %1492 = vmatpush3.bf16.msra.mxu1 %v1607_v7  ;;  %1429 = vmatprep.subr.bf16.mxu0 %v1608_v8  ;;  %v1624_v24 = vld [vmem:[%s2437_s1 + $0x48] sm:$0xff]   ;;  %v1628_v28 = vld [vmem:[%s2437_s1 + $0x40] sm:$0xff]   ;;  %v1638_v36 = vld [vmem:[%s2437_s1 + $0x118] sm:$0xff]  }
   0xa   :  { %1493 = vmatprep.subr.bf16.mxu1 %v1609_v9  ;;  %v1625_v25 = vld [vmem:[%s2437_s1 + $0xc8] sm:$0xff]   ;;  %v1629_v29 = vld [vmem:[%s2437_s1 + $0xc0] sm:$0xff]   ;;  %v1651_v42 = vld [vmem:[%s2437_s1 + $0x110] sm:$0xff]  }
   0xb   :  { %v1626_v26 = vld [vmem:[%s2437_s1 + $0x8] sm:$0xff]   ;;  %v1630_v30 = vld [vmem:[%s2437_s1] sm:$0xff]   ;;  %v1647_v43 = vld [vmem:[%s2438_s0 + $0x5c] ss:$20 sps:$4 sm:$0xff]  }
   0xc   :  { %1430 = vmatpush3.bf16.msra.mxu0 %v1610_v10  ;;  %v1627_v27 = vld [vmem:[%s2437_s1 + $0x88] sm:$0xff]   ;;  %v1631_v31 = vld [vmem:[%s2437_s1 + $0x80] sm:$0xff]   ;;  %v1652_v47 = vld [vmem:[%s2438_s0 + $0x7c] ss:$20 sps:$4 sm:$0xff]  }
   0xd   :  { %1494 = vmatpush3.bf16.msra.mxu1 %v1611_v11  ;;  %1431 = vmatprep.subr.bf16.mxu0 %v1612_v12  ;;  %v1632_v32 = vld [vmem:[%s2438_s0] ss:$20 sps:$4 sm:$0xff]   ;;  %v1634_v33 = vld [vmem:[%s2438_s0 + $0x4] ss:$20 sps:$4 sm:$0xff]   ;;  %v1635_v34 = vld [vmem:[%s2438_s0 + $0x8] ss:$20 sps:$4 sm:$0xff]  }
   0xe   :  { %1495 = vmatprep.subr.bf16.mxu1 %v1613_v13  ;;  %v1637_v35 = vld [vmem:[%s2438_s0 + $0xc] ss:$20 sps:$4 sm:$0xff]   ;;  %611 = vmatprep.mubr.bf16.mxu0 %v1634_v33  ;;  %v1641_v38 = vld [vmem:[%s2438_s0 + $0x34] ss:$20 sps:$4 sm:$0xff]   ;;  %v1644_v40 = vld [vmem:[%s2438_s0 + $0x30] ss:$20 sps:$4 sm:$0xff]  }
   0xf   :  { %708 = vmatprep.mubr.bf16.mxu1 %v1637_v35  ;;  %v1639_v37 = vld [vmem:[%s2438_s0 + $0x2c] ss:$20 sps:$4 sm:$0xff]   ;;  %v1643_v39 = vld [vmem:[%s2438_s0 + $0x28] ss:$20 sps:$4 sm:$0xff]   ;;  %v1649_v44 = vld [vmem:[%s2438_s0 + $0x50] ss:$20 sps:$4 sm:$0xff]  }
  0x10   :  { %1432 = vmatpush3.bf16.msra.mxu0 %v1614_v14  ;;  %v1645_v41 = vld [vmem:[%s2438_s0 + $0x54] ss:$20 sps:$4 sm:$0xff]   ;;  %v1650_v45 = vld [vmem:[%s2438_s0 + $0x58] ss:$20 sps:$4 sm:$0xff]   ;;  %v1677_v49 = vld [vmem:[%s2437_s1 + $0x100] sm:$0xff]  }
  0x11   :  { %1496 = vmatpush3.bf16.msra.mxu1 %v1615_v15  ;;  %1433 = vmatprep.subr.bf16.mxu0 %v1616_v16  ;;  %v1664_v46 = vld [vmem:[%s2437_s1 + $0x108] sm:$0xff]   ;;  %v1654_v48 = vld [vmem:[%s2438_s0 + $0x84] ss:$20 sps:$4 sm:$0xff]   ;;  %v1657_v51 = vld [vmem:[%s2438_s0 + $0x80] ss:$20 sps:$4 sm:$0xff]  }
  0x12   :  { %1497 = vmatprep.subr.bf16.mxu1 %v1617_v17  ;;  %v1656_v50 = vld [vmem:[%s2438_s0 + $0x78] ss:$20 sps:$4 sm:$0xff]   ;;  %v1662_v54 = vld [vmem:[%s2438_s0 + $0xa0] ss:$20 sps:$4 sm:$0xff]   ;;  %v1663_v55 = vld [vmem:[%s2438_s0 + $0xa8] ss:$20 sps:$4 sm:$0xff]  }
  0x13   :  { %v1658_v52 = vld [vmem:[%s2438_s0 + $0xa4] ss:$20 sps:$4 sm:$0xff]   ;;  %v1660_v53 = vld [vmem:[%s2438_s0 + $0xac] ss:$20 sps:$4 sm:$0xff]   ;;  %v1667_v57 = vld [vmem:[%s2438_s0 + $0xd4] ss:$20 sps:$4 sm:$0xff]  }
  0x14   :  { %1434 = vmatpush3.bf16.msra.mxu0 %v1618_v18  ;;  %v1665_v56 = vld [vmem:[%s2438_s0 + $0xcc] ss:$20 sps:$4 sm:$0xff]   ;;  %v1669_v58 = vld [vmem:[%s2438_s0 + $0xc8] ss:$20 sps:$4 sm:$0xff]   ;;  %v1670_v59 = vld [vmem:[%s2438_s0 + $0xd0] ss:$20 sps:$4 sm:$0xff]  }
  0x15   :  { %1498 = vmatpush3.bf16.msra.mxu1 %v1619_v19  ;;  %1435 = vmatprep.subr.bf16.mxu0 %v1620_v20  ;;  %v1671_v60 = vld [vmem:[%s2438_s0 + $0xf4] ss:$20 sps:$4 sm:$0xff]   ;;  %v1673_v61 = vld [vmem:[%s2438_s0 + $0xfc] ss:$20 sps:$4 sm:$0xff]   ;;  %v1676_v63 = vld [vmem:[%s2438_s0 + $0xf8] ss:$20 sps:$4 sm:$0xff]  }
  0x16   :  { %1499 = vmatprep.subr.bf16.mxu1 %v1621_v21  ;;  %v1675_v62 = vld [vmem:[%s2438_s0 + $0xf0] ss:$20 sps:$4 sm:$0xff]   ;;  %v1682_v2 = vld [vmem:[%s2438_s0 + $0x118] ss:$20 sps:$4 sm:$0xff]   ;;  %v1683_v3 = vld [vmem:[%s2438_s0 + $0x120] ss:$20 sps:$4 sm:$0xff]  }
  0x17   :  { %v1678_v0 = vld [vmem:[%s2438_s0 + $0x11c] ss:$20 sps:$4 sm:$0xff]   ;;  %v1680_v1 = vld [vmem:[%s2438_s0 + $0x124] ss:$20 sps:$4 sm:$0xff]   ;;  %v1688_v8 = vld [vmem:[%s2438_s0 + $0x60] ss:$20 sps:$4 sm:$0xff]  }
  0x18   :  { %1436 = vmatpush3.bf16.msra.mxu0 %v1622_v22  ;;  %v1684_v4 = vld [vmem:[%s2438_s0 + $0x10] ss:$20 sps:$4 sm:$0xff]   ;;  %v1686_v6 = vld [vmem:[%s2438_s0 + $0x38] ss:$20 sps:$4 sm:$0xff]   ;;  %v1689_v9 = vld [vmem:[%s2438_s0 + $0x100] ss:$20 sps:$4 sm:$0xff]  }
  0x19   :  { %1500 = vmatpush3.bf16.msra.mxu1 %v1623_v23  ;;  %1437 = vmatprep.subr.bf16.mxu0 %v1624_v24  ;;  %v1685_v5 = vld [vmem:[%s2438_s0 + $0xb0] ss:$20 sps:$4 sm:$0xff]   ;;  %v1687_v7 = vld [vmem:[%s2438_s0 + $0xd8] ss:$20 sps:$4 sm:$0xff]   ;;  %v1690_v10 = vld [vmem:[%s2438_s0 + $0x88] ss:$20 sps:$4 sm:$0xff]  }
  0x1a   :  { %1501 = vmatprep.subr.bf16.mxu1 %v1625_v25  ;;  %v1691_v11 = vld [vmem:[%s2438_s0 + $0x128] ss:$20 sps:$4 sm:$0xff]   ;;  %s1694_s0 = smov 64  }
  0x1c   :  { %1438 = vmatpush3.bf16.msra.mxu0 %v1626_v26 }
  0x1d   :  { %1502 = vmatpush3.bf16.msra.mxu1 %v1627_v27  ;;  %1439 = vmatprep.subr.bf16.mxu0 %v1628_v28 }
  0x1e   :  { %1503 = vmatprep.subr.bf16.mxu1 %v1629_v29 }
  0x20   :  { %1440 = vmatpush3.bf16.msra.mxu0 %v1630_v30 }
  0x21   :  { %1504 = vmatpush3.bf16.msra.mxu1 %v1631_v31  ;;  %1565 = vmatprep.subr.bf16.mxu0 %v1638_v36 }
  0x22   :  { %1589 = vmatprep.subr.bf16.mxu1 %v1638_v36 }
  0x23   :  { %612 = vmatmul.mubr.bf16.vlgmr.msra.gmra.mxu0 %v1632_v32 }
  0x24   :  { %709 = vmatmul.mubr.bf16.vlgmr.msra.gmra.mxu1 %v1635_v34  ;;  %1566 = vmatpush3.bf16.msra.mxu0 %v1638_v36 }
  0x25   :  { %619 = vmatprep.mubr.bf16.mxu0 %v1639_v37  ;;  %716 = vmatprep.mubr.bf16.mxu1 %v1641_v38 }
  0x26   :  { %1593 = vmatpush3.bf16.msra.mxu1 %v1638_v36  ;;  %1567 = vmatprep.subr.bf16.mxu0 %v1651_v42 }
  0x27   :  { %1590 = vmatprep.subr.bf16.mxu1 %v1651_v42 }
  0x28   :  { %1568 = vmatpush3.bf16.msra.mxu0 %v1651_v42 }
  0x29   :  { %1569 = vmatprep.subr.bf16.mxu0 %v1664_v46 }
  0x2a   :  { %1594 = vmatpush3.bf16.msra.mxu1 %v1651_v42 }
  0x2b   :  { %620 = vmatmul.mubr.bf16.gmra.mxu0 %v1643_v39  ;;  %1591 = vmatprep.subr.bf16.mxu1 %v1664_v46 }
  0x2c   :  { %717 = vmatmul.mubr.bf16.gmra.mxu1 %v1644_v40  ;;  %627 = vmatprep.mubr.bf16.mxu0 %v1645_v41 }
  0x2d   :  { %724 = vmatprep.mubr.bf16.mxu1 %v1647_v43  ;;  %1570 = vmatpush3.bf16.msra.mxu0 %v1664_v46 }
  0x2e   :  { %1595 = vmatpush3.bf16.msra.mxu1 %v1664_v46  ;;  %1571 = vmatprep.subr.bf16.mxu0 %v1677_v49 }
  0x2f   :  { %1592 = vmatprep.subr.bf16.mxu1 %v1677_v49 }
  0x31   :  { %1572 = vmatpush3.bf16.msra.mxu0 %v1677_v49 }
  0x32   :  { %1596 = vmatpush3.bf16.msra.mxu1 %v1677_v49 }
  0x33   :  { %628 = vmatmul.mubr.bf16.gmra.mxu0 %v1649_v44 }
  0x34   :  { %725 = vmatmul.mubr.bf16.gmra.mxu1 %v1650_v45  ;;  %635 = vmatprep.mubr.bf16.mxu0 %v1652_v47 }
  0x35   :  { %732 = vmatprep.mubr.bf16.mxu1 %v1654_v48 }
  0x3b   :  { %636 = vmatmul.mubr.bf16.gmra.mxu0 %v1656_v50 }
  0x3c   :  { %733 = vmatmul.mubr.bf16.gmra.mxu1 %v1657_v51  ;;  %643 = vmatprep.mubr.bf16.mxu0 %v1658_v52 }
  0x3d   :  { %740 = vmatprep.mubr.bf16.mxu1 %v1660_v53 }
  0x43   :  { %644 = vmatmul.mubr.bf16.gmra.mxu0 %v1662_v54 }
  0x44   :  { %741 = vmatmul.mubr.bf16.gmra.mxu1 %v1663_v55  ;;  %651 = vmatprep.mubr.bf16.mxu0 %v1665_v56 }
  0x45   :  { %748 = vmatprep.mubr.bf16.mxu1 %v1667_v57 }
  0x4b   :  { %652 = vmatmul.mubr.bf16.gmra.mxu0 %v1669_v58 }
  0x4c   :  { %749 = vmatmul.mubr.bf16.gmra.mxu1 %v1670_v59  ;;  %659 = vmatprep.mubr.bf16.mxu0 %v1671_v60 }
  0x4d   :  { %756 = vmatprep.mubr.bf16.mxu1 %v1673_v61 }
  0x53   :  { %660 = vmatmul.mubr.bf16.gmra.mxu0 %v1675_v62 }
  0x54   :  { %757 = vmatmul.mubr.bf16.gmra.mxu1 %v1676_v63  ;;  %667 = vmatprep.mubr.bf16.mxu0 %v1678_v0 }
  0x55   :  { %764 = vmatprep.mubr.bf16.mxu1 %v1680_v1 }
  0x5b   :  { %668 = vmatmul.mubr.bf16.gmra.mxu0 %v1682_v2 }
  0x5c   :  { %765 = vmatmul.mubr.bf16.gmra.mxu1 %v1683_v3  ;;  %1573 = vmatprep.mubr.msk.bf16.mxu0 %vm554_vm0, %v1684_v4 }
  0x5d   :  { %1581 = vmatprep.mubr.msk.bf16.mxu1 %vm554_vm0, %v1685_v5 }
  0x63   :  { %1574 = vmatmul.mubr.msk.bf16.vlgmr.msra.gmra.mxu0 %vm554_vm0, %v1686_v6 }
  0x64   :  { %1582 = vmatmul.mubr.msk.bf16.vlgmr.msra.gmra.mxu1 %vm554_vm0, %v1687_v7  ;;  %1577 = vmatprep.mubr.msk.bf16.mxu0 %vm554_vm0, %v1688_v8 }
  0x65   :  { %1585 = vmatprep.mubr.msk.bf16.mxu1 %vm554_vm0, %v1689_v9 }
  0x6b   :  { %1578 = vmatmul.mubr.msk.bf16.gmra.mxu0 %vm554_vm0, %v1690_v10 }
  0x6c   :  { %1586 = vmatmul.mubr.msk.bf16.gmra.mxu1 %vm554_vm0, %v1691_v11 }
  0xe3   :  { %v1441_v12 = vpop.f32.mrf.mxu0 }
  0xe4   :  { %v1505_v13 = vpop.f32.mrf.mxu1 }
  0xe5   :  { %v1442_v14 = vpop.f32.mrf.mxu0 }
  0xe6   :  { %v1958_v15 = vadd.f32 %v1442_v14, %v1441_v12  ;;  %v1506_v16 = vpop.f32.mrf.mxu1 }
  0xe7   :  { %v1444_v17 = vpop.f32.mrf.mxu0  ;;  %v1507_v7 = vadd.f32 %v1506_v16, %v1505_v13 }
  0xe8   :  { %2446 = vst [vmem:[#allocation2_spill] sm:$0xff] %v1958_v15  ;;  %v1508_v18 = vpop.f32.mrf.mxu1 }
  0xe9   :  { %v1445_v19 = vpop.f32.mrf.mxu0 }
  0xea   :  { %v1509_v20 = vpop.f32.mrf.mxu1  ;;  %v1446_v9 = vadd.f32 %v1445_v19, %v1444_v17 }
  0xeb   :  { %v1447_v21 = vpop.f32.mrf.mxu0  ;;  %v1510_v10 = vadd.f32 %v1509_v20, %v1508_v18 }
  0xec   :  { %v1511_v22 = vpop.f32.mrf.mxu1 }
  0xed   :  { %v1448_v23 = vpop.f32.mrf.mxu0 }
  0xee   :  { %v1512_v24 = vpop.f32.mrf.mxu1  ;;  %v1449_v11 = vadd.f32 %v1448_v23, %v1447_v21  ;;  %v714_v21 = vadd.f32 %v1510_v10, %v1446_v9 }
  0xef   :  { %v1960_v25 = vpop.f32.mrf.mxu0  ;;  %v1513_v12 = vadd.f32 %v1512_v24, %v1511_v22  ;;  %v2449_v13 = vld [vmem:[#allocation2_spill] sm:$0xff] }
  0xf0   :  { %2447 = vst [vmem:[#allocation3_spill] sm:$0xff] %v1960_v25  ;;  %v1962_v26 = vpop.f32.mrf.mxu1  ;;  %v711_v16 = vadd.f32 %v1507_v7, %v2449_v13 }
  0xf1   :  { %2448 = vst [vmem:[#allocation4_spill] sm:$0xff] %v1962_v26  ;;  %v1451_v27 = vpop.f32.mrf.mxu0  ;;  %v719_v20 = vadd.f32 %v1513_v12, %v1449_v11 }
  0xf2   :  { %v1515_v28 = vpop.f32.mrf.mxu1 }
  0xf3   :  { %v1453_v29 = vpop.f32.mrf.mxu0 }
  0xf4   :  { %v1517_v30 = vpop.f32.mrf.mxu1 }
  0xf5   :  { %v1454_v31 = vpop.f32.mrf.mxu0 }
  0xf6   :  { %v1518_v32 = vpop.f32.mrf.mxu1  ;;  %v1455_v13 = vadd.f32 %v1454_v31, %v1453_v29 }
  0xf7   :  { %v1456_v33 = vpop.f32.mrf.mxu0  ;;  %v2450_v23 = vld [vmem:[#allocation3_spill] sm:$0xff] }
  0xf8   :  { %v1520_v34 = vpop.f32.mrf.mxu1  ;;  %v1452_v22 = vadd.f32 %v1451_v27, %v2450_v23  ;;  %v2451_v24 = vld [vmem:[#allocation4_spill] sm:$0xff] }
  0xf9   :  { %v1457_v35 = vpop.f32.mrf.mxu0  ;;  %v1516_v7 = vadd.f32 %v1515_v28, %v2451_v24 }
  0xfa   :  { %v1521_v36 = vpop.f32.mrf.mxu1 }
  0xfb   :  { %v1459_v37 = vpop.f32.mrf.mxu0 }
  0xfc   :  { %v1523_v38 = vpop.f32.mrf.mxu1 }
  0xfd   :  { %v1460_v39 = vpop.f32.mrf.mxu0 }
  0xfe   :  { %v1524_v40 = vpop.f32.mrf.mxu1  ;;  %v1461_v11 = vadd.f32 %v1460_v39, %v1459_v37 }
  0xff   :  { %v1462_v41 = vpop.f32.mrf.mxu0  ;;  %v1525_v12 = vadd.f32 %v1524_v40, %v1523_v38 }
 0x100   :  { %v1526_v42 = vpop.f32.mrf.mxu1 }
 0x101   :  { %v1463_v43 = vpop.f32.mrf.mxu0 }
 0x102   :  { %v1527_v44 = vpop.f32.mrf.mxu1  ;;  %v1464_v9 = vadd.f32 %v1463_v43, %v1462_v41 }
 0x103   :  { %v1465_v45 = vpop.f32.mrf.mxu0  ;;  %v1528_v10 = vadd.f32 %v1527_v44, %v1526_v42 }
 0x104   :  { %v1529_v46 = vpop.f32.mrf.mxu1 }
 0x105   :  { %v1466_v47 = vpop.f32.mrf.mxu0 }
 0x106   :  { %v1530_v48 = vpop.f32.mrf.mxu1  ;;  %v1467_v23 = vadd.f32 %v1466_v47, %v1465_v45 }
 0x107   :  { %v1468_v49 = vpop.f32.mrf.mxu0  ;;  %v1531_v27 = vadd.f32 %v1530_v48, %v1529_v46  ;;  %v722_v46 = vadd.f32 %v1516_v7, %v1452_v22  ;;  %v1971_v48 = vadd.f32 %v1525_v12, %v1461_v11 }
 0x108   :  { %v1532_v50 = vpop.f32.mrf.mxu1 }
 0x109   :  { %v1469_v51 = vpop.f32.mrf.mxu0 }
 0x10a   :  { %v1533_v52 = vpop.f32.mrf.mxu1  ;;  %v1470_v29 = vadd.f32 %v1469_v51, %v1468_v49 }
 0x10b   :  { %v1471_v53 = vpop.f32.mrf.mxu0  ;;  %v1534_v31 = vadd.f32 %v1533_v52, %v1532_v50  ;;  %v1975_v50 = vadd.f32 %v1528_v10, %v1464_v9 }
 0x10c   :  { %v1535_v54 = vpop.f32.mrf.mxu1 }
 0x10d   :  { %v1472_v55 = vpop.f32.mrf.mxu0 }
 0x10e   :  { %v1536_v56 = vpop.f32.mrf.mxu1  ;;  %v1473_v17 = vadd.f32 %v1472_v55, %v1471_v53  ;;  %v1519_v53 = vadd.f32 %v1518_v32, %v1517_v30 }
 0x10f   :  { %v1474_v57 = vpop.f32.mrf.mxu0  ;;  %v1537_v19 = vadd.f32 %v1536_v56, %v1535_v54  ;;  %v1458_v54 = vadd.f32 %v1457_v35, %v1456_v33  ;;  %v1522_v56 = vadd.f32 %v1521_v36, %v1520_v34 }
 0x110   :  { %v1538_v58 = vpop.f32.mrf.mxu1  ;;  %v1973_v49 = vadd.f32 %v1519_v53, %v1455_v13 }
 0x111   :  { %v1475_v59 = vpop.f32.mrf.mxu0  ;;  %v751_v32 = vadd.f32 %v1537_v19, %v1473_v17  ;;  %v1977_v51 = vadd.f32 %v1522_v56, %v1458_v54 }
 0x112   :  { %v1539_v60 = vpop.f32.mrf.mxu1  ;;  %v1476_v30 = vadd.f32 %v1475_v59, %v1474_v57 }
 0x113   :  { %v1477_v61 = vpop.f32.mrf.mxu0  ;;  %v1540_v33 = vadd.f32 %v1539_v60, %v1538_v58 }
 0x114   :  { %v1541_v62 = vpop.f32.mrf.mxu1 }
 0x115   :  { %v1478_v63 = vpop.f32.mrf.mxu0 }
 0x116   :  { %v1542_v0 = vpop.f32.mrf.mxu1  ;;  %v1479_v35 = vadd.f32 %v1478_v63, %v1477_v61 }
 0x117   :  { %v1480_v1 = vpop.f32.mrf.mxu0  ;;  %v1543_v34 = vadd.f32 %v1542_v0, %v1541_v62 }
 0x118   :  { %v1544_v2 = vpop.f32.mrf.mxu1 }
 0x119   :  { %v1481_v3 = vpop.f32.mrf.mxu0  ;;  %v1985_v59 = vadd.f32 %v1543_v34, %v1479_v35 }
 0x11a   :  { %v1545_v4 = vpop.f32.mrf.mxu1  ;;  %v1482_v39 = vadd.f32 %v1481_v3, %v1480_v1 }
 0x11b   :  { %v1483_v5 = vpop.f32.mrf.mxu0  ;;  %v1546_v38 = vadd.f32 %v1545_v4, %v1544_v2 }
 0x11c   :  { %v1547_v6 = vpop.f32.mrf.mxu1 }
 0x11d   :  { %v1484_v8 = vpop.f32.mrf.mxu0  ;;  %v1987_v60 = vadd.f32 %v1546_v38, %v1482_v39 }
 0x11e   :  { %v1548_v14 = vpop.f32.mrf.mxu1  ;;  %v1485_v40 = vadd.f32 %v1484_v8, %v1483_v5 }
 0x11f   :  { %v1486_v26 = vpop.f32.mrf.mxu0  ;;  %v1549_v41 = vadd.f32 %v1548_v14, %v1547_v6 }
 0x120   :  { %v1550_v25 = vpop.f32.mrf.mxu1 }
 0x121   :  { %v1487_v15 = vpop.f32.mrf.mxu0  ;;  %v1983_v58 = vadd.f32 %v1549_v41, %v1485_v40 }
 0x122   :  { %v1551_v18 = vpop.f32.mrf.mxu1  ;;  %v1488_v42 = vadd.f32 %v1487_v15, %v1486_v26  ;;  %v743_v15 = vadd.f32 %v1531_v27, %v1467_v23  ;;  %v754_v26 = vadd.f32 %v1540_v33, %v1476_v30 }
 0x123   :  { %v1575_v55 = vpop.f32.mrf.mxu0  ;;  %v1552_v43 = vadd.f32 %v1551_v18, %v1550_v25  ;;  %v746_v25 = vadd.f32 %v1534_v31, %v1470_v29 }
 0x124   :  { %v1583_v24 = vpop.f32.mrf.mxu1  ;;  %v1967_v36 = vadd.f32 %v1575_v55, %v719_v20 }
 0x125   :  { %v807_v28 = vpop.f32.mrf.mxu0  ;;  %v1969_v44 = vadd.f32 %v1583_v24, %v751_v32  ;;  %v1997_v1 = vadd.f32 %v1552_v43, %v1488_v42 }
 0x126   :  { %v839_v45 = vpop.f32.mrf.mxu1  ;;  %v911_v52 = vmul.f32 %v1967_v36, %v1967_v36  ;;  %v1981_v57 = vadd.f32 %v807_v28, %v711_v16  ;;  %v967_v61 = vsel %vm963_vm1, %v1967_v36, 0.0  ;;  %v1052_v2 = vsel %vm1048_vm2, %v1967_v36, 0.0 }
 0x127   :  { %v1576_v37 = vpop.f32.mrf.mxu0  ;;  %2452 = vst [vmem:[#allocation2_spill] sm:$0xff] %v1969_v44  ;;  %v1993_v62 = vmul.f32 %v1969_v44, %v1969_v44  ;;  %v1137_v3 = vsel %vm1133_vm3, %v1967_v36, 0.0  ;;  %v2005_v4 = vsel %vm1133_vm3, %v1969_v44, 0.0  ;;  %v2007_v5 = vadd.f32 %v839_v45, %v743_v15 }
 0x128   :  { %v1584_v63 = vpop.f32.mrf.mxu1  ;;  %v928_v6 = vsel %vm870_vm4, %v911_v52, 0.0  ;;  %v1009_v8 = vsel %vm963_vm1, %v911_v52, 0.0  ;;  %v1094_v14 = vsel %vm1048_vm2, %v911_v52, 0.0  ;;  %v909_v16 = vmul.f32 %v1981_v57, %v1981_v57 }
 0x129   :  { %v810_v47 = vpop.f32.mrf.mxu0  ;;  %v1179_v17 = vsel %vm1133_vm3, %v911_v52, 0.0  ;;  %v2015_v19 = vadd.f32 %v1576_v37, %v722_v46  ;;  %v2017_v18 = vadd.f32 %v1584_v63, %v754_v26  ;;  %v2021_v20 = vsel %vm1048_vm2, %v1969_v44, 0.0 }
 0x12a   :  { %v1995_v0 = vadd.f32 %v810_v47, %v714_v21  ;;  %v964_v21 = vsel %vm963_vm1, %v1981_v57, 0.0  ;;  %v2029_v7 = vsel %vm963_vm1, %v1969_v44, 0.0  ;;  %v2033_v13 = vsel %vm1048_vm2, %v1993_v62, 0.0  ;;  %v842_v23 = vpop.f32.mrf.mxu1 }
 0x12b   :  { %v1049_v53 = vsel %vm1048_vm2, %v1981_v57, 0.0  ;;  %v1134_v55 = vsel %vm1133_vm3, %v1981_v57, 0.0  ;;  %v2041_v54 = vmul.f32 %v2007_v5, %v2007_v5  ;;  %v2045_v56 = vsel %vm963_vm1, %v2007_v5, 0.0  ;;  %v1579_v31 = vpop.f32.mrf.mxu0 }
 0x12c   :  { %v910_v22 = vmul.f32 %v1995_v0, %v1995_v0  ;;  %v925_v11 = vsel %vm870_vm4, %v909_v16, 0.0  ;;  %v1006_v12 = vsel %vm963_vm1, %v909_v16, 0.0  ;;  %v1091_v9 = vsel %vm1048_vm2, %v909_v16, 0.0  ;;  %v1587_v45 = vpop.f32.mrf.mxu1 }
 0x12d   :  { %v965_v24 = vsel %vm963_vm1, %v1995_v0, 0.0  ;;  %v1050_v29 = vsel %vm1048_vm2, %v1995_v0, 0.0  ;;  %v1176_v30 = vsel %vm1133_vm3, %v909_v16, 0.0  ;;  %v2059_v32 = vsel %vm1048_vm2, %v2007_v5, 0.0  ;;  %v823_v26 = vpop.f32.mrf.mxu0 }
 0x12e   :  { %v926_v10 = vsel %vm870_vm4, %v910_v22, 0.0  ;;  %v1007_v28 = vsel %vm963_vm1, %v910_v22, 0.0  ;;  %v2063_v33 = vsel %vm1133_vm3, %v2007_v5, 0.0  ;;  %v1135_v35 = vsel %vm1133_vm3, %v1995_v0, 0.0 }
 0x12f   :  { %v927_v27 = vadd.f32 %v926_v10, %v925_v11  ;;  %v912_v34 = vmul.f32 %v2015_v19, %v2015_v19  ;;  %v1092_v39 = vsel %vm1048_vm2, %v910_v22, 0.0  ;;  %v1177_v38 = vsel %vm1133_vm3, %v910_v22, 0.0 }
 0x130   :  { %v969_v40 = vsel %vm963_vm1, %v2015_v19, 0.0  ;;  %v966_v41 = vadd.f32 %v965_v24, %v964_v21  ;;  %v1008_v42 = vadd.f32 %v1007_v28, %v1006_v12  ;;  %v1051_v43 = vadd.f32 %v1050_v29, %v1049_v53  ;;  %v1580_v29 = vpop.f32.mrf.mxu0 }
 0x131   :  { %v929_v37 = vadd.f32 %v928_v6, %v927_v27  ;;  %v1054_v46 = vsel %vm1048_vm2, %v2015_v19, 0.0  ;;  %v1139_v47 = vsel %vm1133_vm3, %v2015_v19, 0.0  ;;  %v2079_v52 = vmul.f32 %v2017_v18, %v2017_v18 }
 0x132   :  { %v1136_v15 = vadd.f32 %v1135_v35, %v1134_v55  ;;  %v1093_v63 = vadd.f32 %v1092_v39, %v1091_v9  ;;  %v1178_v6 = vadd.f32 %v1177_v38, %v1176_v30  ;;  %v2081_v16 = vadd.f32 %v842_v23, %v746_v25  ;;  %v855_v25 = vpop.f32.mrf.mxu1 }
 0x133   :  { %v2084_v21 = vadd.f32 %v1579_v31, %v1971_v48  ;;  %v930_v22 = vsel %vm870_vm4, %v912_v34, 0.0  ;;  %v1011_v53 = vsel %vm963_vm1, %v912_v34, 0.0  ;;  %v1096_v11 = vsel %vm1048_vm2, %v912_v34, 0.0 }
 0x134   :  { %2453 = vst [vmem:[#allocation3_spill] sm:$0xff] %v2081_v16  ;;  %v1181_v12 = vsel %vm1133_vm3, %v912_v34, 0.0  ;;  %v2092_v10 = vsel %vm1133_vm3, %v2017_v18, 0.0  ;;  %v968_v55 = vadd.f32 %v967_v61, %v966_v41  ;;  %v1010_v9 = vadd.f32 %v1009_v8, %v1008_v42 }
 0x135   :  { %v1053_v27 = vadd.f32 %v1052_v2, %v1051_v43  ;;  %v1138_v23 = vadd.f32 %v1137_v3, %v1136_v15  ;;  %v2095_v48 = vadd.f32 %v1587_v45, %v1983_v58  ;;  %v2098_v24 = vadd.f32 %v823_v26, %v1973_v49  ;;  %v826_v43 = vpop.f32.mrf.mxu0 }
 0x136   :  { %v931_v28 = vadd.f32 %v930_v22, %v929_v37  ;;  %v1095_v31 = vadd.f32 %v1094_v14, %v1093_v63  ;;  %v1180_v30 = vadd.f32 %v1179_v17, %v1178_v6  ;;  %v2102_v35 = vmul.f32 %v2081_v16, %v2081_v16  ;;  %v1588_v37 = vpop.f32.mrf.mxu1 }
 0x137   :  { %v2106_v61 = vmul.f32 %v2084_v21, %v2084_v21  ;;  %v2110_v2 = vsel %vm963_vm1, %v2081_v16, 0.0  ;;  %v2114_v49 = vsel %vm1048_vm2, %v2081_v16, 0.0  ;;  %v2118_v58 = vsel %vm1133_vm3, %v2081_v16, 0.0 }
 0x138   :  { %v913_v3 = vmul.f32 %v2098_v24, %v2098_v24  ;;  %v975_v8 = vsel %vm963_vm1, %v2084_v21, 0.0  ;;  %v1060_v14 = vsel %vm1048_vm2, %v2084_v21, 0.0  ;;  %v1145_v17 = vsel %vm1133_vm3, %v2084_v21, 0.0 }
 0x139   :  { %v970_v34 = vadd.f32 %v969_v40, %v968_v55  ;;  %v2130_v39 = vmul.f32 %v2095_v48, %v2095_v48  ;;  %v1055_v41 = vadd.f32 %v1054_v46, %v1053_v27  ;;  %v1140_v42 = vadd.f32 %v1139_v47, %v1138_v23 }
 0x13a   :  { %v932_v38 = vsel %vm870_vm4, %v913_v3, 0.0  ;;  %v2135_v45 = vsel %vm963_vm1, %v2106_v61, 0.0  ;;  %v1102_v15 = vsel %vm1048_vm2, %v2106_v61, 0.0  ;;  %v1012_v63 = vadd.f32 %v1011_v53, %v1010_v9  ;;  %v858_v53 = vpop.f32.mrf.mxu1 }
 0x13b   :  { %v933_v26 = vadd.f32 %v932_v38, %v931_v28  ;;  %v2141_v40 = vsel %vm1133_vm3, %v2106_v61, 0.0  ;;  %v971_v6 = vsel %vm963_vm1, %v2098_v24, 0.0  ;;  %v1097_v22 = vadd.f32 %v1096_v11, %v1095_v31 }
 0x13c   :  { %v1182_v46 = vadd.f32 %v1181_v12, %v1180_v30  ;;  %v972_v47 = vadd.f32 %v971_v6, %v970_v34  ;;  %v1056_v55 = vsel %vm1048_vm2, %v2098_v24, 0.0  ;;  %v1141_v27 = vsel %vm1133_vm3, %v2098_v24, 0.0 }
 0x13d   :  { %v2150_v23 = vadd.f32 %v826_v43, %v1977_v51  ;;  %v1013_v9 = vsel %vm963_vm1, %v913_v3, 0.0  ;;  %v1057_v28 = vadd.f32 %v1056_v55, %v1055_v41  ;;  %v1142_v38 = vadd.f32 %v1141_v27, %v1140_v42 }
 0x13e   :  { %v2154_v44 = vadd.f32 %v1580_v29, %v1975_v50  ;;  %v1014_v11 = vadd.f32 %v1013_v9, %v1012_v63  ;;  %v1098_v12 = vsel %vm1048_vm2, %v913_v3, 0.0  ;;  %v1183_v31 = vsel %vm1133_vm3, %v913_v3, 0.0 }
 0x13f   :  { %v2159_v30 = vadd.f32 %v855_v25, %v1985_v59  ;;  %v1099_v34 = vadd.f32 %v1098_v12, %v1097_v22  ;;  %v1184_v6 = vadd.f32 %v1183_v31, %v1182_v46  ;;  %v2162_v51 = vadd.f32 %v1588_v37, %v1997_v1 }
 0x140   :  { %v2165_v43 = vadd.f32 %v858_v53, %v1987_v60  ;;  %v914_v50 = vmul.f32 %v2150_v23, %v2150_v23  ;;  %v973_v29 = vsel %vm963_vm1, %v2150_v23, 0.0  ;;  %v1058_v3 = vsel %vm1048_vm2, %v2150_v23, 0.0 }
 0x141   :  { %v1143_v59 = vsel %vm1133_vm3, %v2150_v23, 0.0  ;;  %v2177_v25 = vmul.f32 %v2154_v44, %v2154_v44  ;;  %v974_v1 = vadd.f32 %v973_v29, %v972_v47  ;;  %v1059_v37 = vadd.f32 %v1058_v3, %v1057_v28 }
 0x142   :  { %v1144_v60 = vadd.f32 %v1143_v59, %v1142_v38  ;;  %v2181_v41 = vmul.f32 %v2159_v30, %v2159_v30  ;;  %v934_v42 = vsel %vm870_vm4, %v914_v50, 0.0  ;;  %v1100_v63 = vsel %vm1048_vm2, %v914_v50, 0.0 }
 0x143   :  { %v1070_v22 = vsel %vm1048_vm2, %v2017_v18, 0.0  ;;  %v977_v46 = vsel %vm963_vm1, %v2154_v44, 0.0  ;;  %v1062_v55 = vsel %vm1048_vm2, %v2154_v44, 0.0  ;;  %v2191_v47 = vadd.f32 %v934_v42, %v933_v26 }
 0x144   :  { %v976_v27 = vadd.f32 %v975_v8, %v974_v1  ;;  %v1015_v53 = vsel %vm963_vm1, %v914_v50, 0.0  ;;  %v1061_v9 = vadd.f32 %v1060_v14, %v1059_v37  ;;  %v1101_v28 = vadd.f32 %v1100_v63, %v1099_v34 }
 0x145   :  { %v1185_v38 = vsel %vm1133_vm3, %v914_v50, 0.0  ;;  %v1019_v12 = vsel %vm963_vm1, %v2177_v25, 0.0  ;;  %v1147_v31 = vsel %vm1133_vm3, %v2154_v44, 0.0  ;;  %v2201_v29 = vmul.f32 %v2162_v51, %v2162_v51 }
 0x146   :  { %v1146_v3 = vadd.f32 %v1145_v17, %v1144_v60  ;;  %v1104_v8 = vsel %vm1048_vm2, %v2177_v25, 0.0  ;;  %v1189_v14 = vsel %vm1133_vm3, %v2177_v25, 0.0  ;;  %v1063_v26 = vadd.f32 %v1062_v55, %v1061_v9 }
 0x147   :  { %v978_v34 = vadd.f32 %v977_v46, %v976_v27  ;;  %v1016_v50 = vadd.f32 %v1015_v53, %v1014_v11  ;;  %v1186_v59 = vadd.f32 %v1185_v38, %v1184_v6  ;;  %v2209_v1 = vmul.f32 %v2165_v43, %v2165_v43 }
 0x148   :  { %v1072_v37 = vsel %vm1048_vm2, %v2159_v30, 0.0  ;;  %v1065_v42 = vadd.f32 %v2059_v32, %v1063_v26  ;;  %v1074_v17 = vsel %vm1048_vm2, %v2165_v43, 0.0  ;;  %v1103_v63 = vadd.f32 %v1102_v15, %v1101_v28 }
 0x149   :  { %v980_v60 = vadd.f32 %v2045_v56, %v978_v34  ;;  %v1148_v16 = vadd.f32 %v1147_v31, %v1146_v3  ;;  %v1076_v11 = vsel %vm1048_vm2, %v2095_v48, 0.0  ;;  %v1078_v6 = vsel %vm1048_vm2, %v2162_v51, 0.0 }
 0x14a   :  { %v985_v46 = vsel %vm963_vm1, %v2017_v18, 0.0  ;;  %v1067_v55 = vadd.f32 %v2114_v49, %v1065_v42  ;;  %v987_v27 = vsel %vm963_vm1, %v2159_v30, 0.0  ;;  %v1105_v53 = vadd.f32 %v1104_v8, %v1103_v63 }
 0x14b   :  { %v982_v32 = vadd.f32 %v2110_v2, %v980_v60  ;;  %v989_v56 = vsel %vm963_vm1, %v2165_v43, 0.0  ;;  %v991_v15 = vsel %vm963_vm1, %v2095_v48, 0.0  ;;  %v1106_v9 = vsel %vm1048_vm2, %v2041_v54, 0.0 }
 0x14c   :  { %v1018_v28 = vadd.f32 %v2135_v45, %v1016_v50  ;;  %v1069_v38 = vadd.f32 %v2021_v20, %v1067_v55  ;;  %v993_v2 = vsel %vm963_vm1, %v2162_v51, 0.0  ;;  %v1107_v31 = vadd.f32 %v1106_v9, %v1105_v53 }
 0x14d   :  { %v984_v49 = vadd.f32 %v2029_v7, %v982_v32  ;;  %v1108_v3 = vsel %vm1048_vm2, %v2102_v35, 0.0  ;;  %v1112_v8 = vsel %vm1048_vm2, %v2079_v52, 0.0  ;;  %v1114_v26 = vsel %vm1048_vm2, %v2181_v41, 0.0 }
 0x14e   :  { %v1020_v34 = vadd.f32 %v1019_v12, %v1018_v28  ;;  %v1071_v42 = vadd.f32 %v1070_v22, %v1069_v38  ;;  %v1109_v50 = vadd.f32 %v1108_v3, %v1107_v31  ;;  %v1021_v20 = vsel %vm963_vm1, %v2041_v54, 0.0 }
 0x14f   :  { %v986_v45 = vadd.f32 %v985_v46, %v984_v49  ;;  %v1116_v7 = vsel %vm1048_vm2, %v2209_v1, 0.0  ;;  %v1118_v60 = vsel %vm1048_vm2, %v2130_v39, 0.0  ;;  %v1188_v55 = vadd.f32 %v2141_v40, %v1186_v59 }
 0x150   :  { %v1022_v63 = vadd.f32 %v1021_v20, %v1020_v34  ;;  %v1073_v32 = vadd.f32 %v1072_v37, %v1071_v42  ;;  %v1111_v9 = vadd.f32 %v2033_v13, %v1109_v50  ;;  %v1023_v22 = vsel %vm963_vm1, %v2102_v35, 0.0 }
 0x151   :  { %v988_v53 = vadd.f32 %v987_v27, %v986_v45  ;;  %v1120_v12 = vsel %vm1048_vm2, %v2201_v29, 0.0  ;;  %v1025_v28 = vsel %vm963_vm1, %v1993_v62, 0.0  ;;  %v1190_v38 = vadd.f32 %v1189_v14, %v1188_v55 }
 0x152   :  { %v1024_v46 = vadd.f32 %v1023_v22, %v1022_v63  ;;  %v1075_v49 = vadd.f32 %v1074_v17, %v1073_v32  ;;  %v1113_v3 = vadd.f32 %v1112_v8, %v1111_v9  ;;  %v1191_v40 = vsel %vm1133_vm3, %v2041_v54, 0.0 }
 0x153   :  { %v990_v31 = vadd.f32 %v989_v56, %v988_v53  ;;  %v1027_v13 = vsel %vm963_vm1, %v2079_v52, 0.0  ;;  %v1029_v37 = vsel %vm963_vm1, %v2181_v41, 0.0  ;;  %v1192_v27 = vadd.f32 %v1191_v40, %v1190_v38 }
 0x154   :  { %v1026_v59 = vadd.f32 %v1025_v28, %v1024_v46  ;;  %v1077_v34 = vadd.f32 %v1076_v11, %v1075_v49  ;;  %v1115_v45 = vadd.f32 %v1114_v26, %v1113_v3  ;;  %v1193_v14 = vsel %vm1133_vm3, %v2102_v35, 0.0 }
 0x155   :  { %v992_v42 = vadd.f32 %v991_v15, %v990_v31  ;;  %v1031_v56 = vsel %vm963_vm1, %v2209_v1, 0.0  ;;  %v1194_v8 = vadd.f32 %v1193_v14, %v1192_v27  ;;  %v1150_v50 = vadd.f32 %v2063_v33, %v1148_v16 }
 0x156   :  { %v1028_v17 = vadd.f32 %v1027_v13, %v1026_v59  ;;  %v1079_v20 = vadd.f32 %v1078_v6, %v1077_v34  ;;  %v1117_v55 = vadd.f32 %v1116_v7, %v1115_v45  ;;  %v1195_v32 = vsel %vm1133_vm3, %v1993_v62, 0.0 }
 0x157   :  { %v994_v63 = vadd.f32 %v993_v2, %v992_v42  ;;  %v1033_v11 = vsel %vm963_vm1, %v2130_v39, 0.0  ;;  %v1196_v15 = vadd.f32 %v1195_v32, %v1194_v8  ;;  %v1152_v26 = vadd.f32 %v2118_v58, %v1150_v50 }
 0x158   :  { %v1030_v53 = vadd.f32 %v1029_v37, %v1028_v17  ;;  %v1080_v9 = vrot.slane %v1079_v20, 4  ;;  %v1119_v46 = vadd.f32 %v1118_v60, %v1117_v55  ;;  %v1197_v28 = vsel %vm1133_vm3, %v2079_v52, 0.0 }
 0x159   :  { %v995_v22 = vrot.slane %v994_v63, 4  ;;  %v1035_v16 = vsel %vm963_vm1, %v2201_v29, 0.0  ;;  %v1198_v6 = vadd.f32 %v1197_v28, %v1196_v15  ;;  %v1154_v2 = vadd.f32 %v2005_v4, %v1152_v26 }
 0x15a   :  { %v1032_v33 = vadd.f32 %v1031_v56, %v1030_v53  ;;  %v1081_v7 = vadd.f32 %v1080_v9, %v1079_v20  ;;  %v1121_v49 = vadd.f32 %v1120_v12, %v1119_v46  ;;  %v1199_v31 = vsel %vm1133_vm3, %v2181_v41, 0.0 }
 0x15b   :  { %v996_v38 = vadd.f32 %v995_v22, %v994_v63  ;;  %v1200_v3 = vadd.f32 %v1199_v31, %v1198_v6  ;;  %v1201_v60 = vsel %vm1133_vm3, %v2209_v1, 0.0  ;;  %v1156_v40 = vadd.f32 %v2092_v10, %v1154_v2 }
 0x15c   :  { %v1034_v58 = vadd.f32 %v1033_v11, %v1032_v33  ;;  %v1082_v59 = vrot.slane %v1081_v7, 2  ;;  %v1122_v37 = vrot.slane %v1121_v49, 4  ;;  %v1157_v27 = vsel %vm1133_vm3, %v2159_v30, 0.0 }
 0x15d   :  { %v997_v13 = vrot.slane %v996_v38, 2  ;;  %v1202_v34 = vadd.f32 %v1201_v60, %v1200_v3  ;;  %v1203_v12 = vsel %vm1133_vm3, %v2130_v39, 0.0  ;;  %v1158_v42 = vadd.f32 %v1157_v27, %v1156_v40 }
 0x15e   :  { %v1036_v4 = vadd.f32 %v1035_v16, %v1034_v58  ;;  %v1083_v45 = vadd.f32 %v1082_v59, %v1081_v7  ;;  %v1123_v17 = vadd.f32 %v1122_v37, %v1121_v49  ;;  %v1159_v56 = vsel %vm1133_vm3, %v2165_v43, 0.0 }
 0x15f   :  { %v998_v14 = vadd.f32 %v997_v13, %v996_v38  ;;  %v1204_v10 = vadd.f32 %v1203_v12, %v1202_v34  ;;  %v1205_v50 = vsel %vm1133_vm3, %v2201_v29, 0.0  ;;  %v1160_v20 = vadd.f32 %v1159_v56, %v1158_v42 }
 0x160   :  { %v1037_v8 = vrot.slane %v1036_v4, 4  ;;  %v1084_v63 = vrot.slane %v1083_v45, 1  ;;  %v1124_v32 = vrot.slane %v1123_v17, 2  ;;  %v1161_v53 = vsel %vm1133_vm3, %v2095_v48, 0.0 }
 0x161   :  { %v999_v55 = vrot.slane %v998_v14, 1  ;;  %v1206_v15 = vadd.f32 %v1205_v50, %v1204_v10  ;;  %v1162_v26 = vadd.f32 %v1161_v53, %v1160_v20  ;;  %v1163_v28 = vsel %vm1133_vm3, %v2162_v51, 0.0 }
 0x162   :  { %v1038_v11 = vadd.f32 %v1037_v8, %v1036_v4  ;;  %v1085_v9 = vadd.f32 %v1084_v63, %v1083_v45  ;;  %v1125_v46 = vadd.f32 %v1124_v32, %v1123_v17  ;;  %v936_v58 = vsel %vm870_vm4, %v2106_v61, 0.0 }
 0x163   :  { %v1000_v22 = vadd.f32 %v999_v55, %v998_v14  ;;  %v1207_v16 = vrot.slane %v1206_v15, 4  ;;  %v1164_v6 = vadd.f32 %v1163_v28, %v1162_v26  ;;  %v937_v59 = vadd.f32 %v936_v58, %v2191_v47 }
 0x164   :  { %v1039_v33 = vrot.slane %v1038_v11, 2  ;;  %1087 = vrot.lane.b32.xlu1 %v1085_v9, %s1694_s0  ;;  %v1126_v2 = vrot.slane %v1125_v46, 1  ;;  %v938_v4 = vsel %vm870_vm4, %v2177_v25, 0.0  ;;  %v940_v61 = vsel %vm870_vm4, %v2041_v54, 0.0 }
 0x165   :  { %1002 = vrot.lane.b32.xlu0 %v1000_v22, %s1695_s9  ;;  %v1208_v38 = vadd.f32 %v1207_v16, %v1206_v15  ;;  %v1165_v49 = vrot.slane %v1164_v6, 4  ;;  %v939_v34 = vadd.f32 %v938_v4, %v937_v59  ;;  %v942_v47 = vsel %vm870_vm4, %v2102_v35, 0.0 }
 0x166   :  { %v1040_v7 = vadd.f32 %v1039_v33, %v1038_v11  ;;  %v1127_v31 = vadd.f32 %v1126_v2, %v1125_v46  ;;  %v944_v25 = vsel %vm870_vm4, %v1993_v62, 0.0  ;;  %v946_v54 = vsel %vm870_vm4, %v2079_v52, 0.0 }
 0x167   :  { %v1209_v60 = vrot.slane %v1208_v38, 2  ;;  %v1166_v40 = vadd.f32 %v1165_v49, %v1164_v6  ;;  %v941_v45 = vadd.f32 %v940_v61, %v939_v34  ;;  %v948_v20 = vsel %vm870_vm4, %v2181_v41, 0.0  ;;  %v2454_v49 = vld [vmem:[#allocation3_spill] sm:$0xff] }
 0x168   :  { %v1041_v3 = vrot.slane %v1040_v7, 1  ;;  %1129 = vrot.lane.b32.xlu1 %v1127_v31, %s1694_s0  ;;  %v950_v35 = vsel %vm870_vm4, %v2209_v1, 0.0  ;;  %v952_v32 = vsel %vm870_vm4, %v2130_v39, 0.0  ;;  %v954_v62 = vsel %vm870_vm4, %v2201_v29, 0.0 }
 0x169   :  { %v1210_v37 = vadd.f32 %v1209_v60, %v1208_v38  ;;  %v1167_v27 = vrot.slane %v1166_v40, 2  ;;  %v943_v56 = vadd.f32 %v942_v47, %v941_v45  ;;  %v872_v52 = vsel %vm870_vm4, %v1995_v0, 0.0 }
 0x16a   :  { %v1042_v13 = vadd.f32 %v1041_v3, %v1040_v7  ;;  %v871_v15 = vsel %vm870_vm4, %v1981_v57, 0.0  ;;  %v874_v26 = vsel %vm870_vm4, %v1967_v36, 0.0  ;;  %v876_v9 = vsel %vm870_vm4, %v2015_v19, 0.0  ;;  %v2455_v3 = vld [vmem:[#allocation2_spill] sm:$0xff] }
 0x16b   :  { %v1211_v12 = vrot.slane %v1210_v37, 1  ;;  %v1168_v42 = vadd.f32 %v1167_v27, %v1166_v40  ;;  %v945_v10 = vadd.f32 %v944_v25, %v943_v56  ;;  %v873_v41 = vadd.f32 %v872_v52, %v871_v15 }
 0x16c   :  { %1044 = vrot.lane.b32.xlu0 %v1042_v13, %s1695_s9  ;;  %v878_v22 = vsel %vm870_vm4, %v2098_v24, 0.0  ;;  %v880_v46 = vsel %vm870_vm4, %v2150_v23, 0.0  ;;  %v882_v33 = vsel %vm870_vm4, %v2084_v21, 0.0  ;;  %v884_v6 = vsel %vm870_vm4, %v2154_v44, 0.0 }
 0x16d   :  { %v1212_v14 = vadd.f32 %v1211_v12, %v1210_v37  ;;  %v1169_v17 = vrot.slane %v1168_v42, 1  ;;  %v947_v50 = vadd.f32 %v946_v54, %v945_v10  ;;  %v875_v1 = vadd.f32 %v874_v26, %v873_v41 }
 0x16e   :  { %v886_v7 = vsel %vm870_vm4, %v2007_v5, 0.0  ;;  %v888_v31 = vsel %vm870_vm4, %v2454_v49, 0.0  ;;  %v890_v60 = vsel %vm870_vm4, %v2455_v3, 0.0  ;;  %v892_v59 = vsel %vm870_vm4, %v2017_v18, 0.0 }
 0x16f   :  { %1214 = vrot.lane.b32.xlu1 %v1212_v14, %s1696_s10  ;;  %v1170_v8 = vadd.f32 %v1169_v17, %v1168_v42  ;;  %v949_v63 = vadd.f32 %v948_v20, %v947_v50  ;;  %v877_v39 = vadd.f32 %v876_v9, %v875_v1  ;;  %v894_v37 = vsel %vm870_vm4, %v2159_v30, 0.0 }
 0x170   :  { %v896_v4 = vsel %vm870_vm4, %v2165_v43, 0.0  ;;  %v898_v12 = vsel %vm870_vm4, %v2095_v48, 0.0  ;;  %v900_v61 = vsel %vm870_vm4, %v2162_v51, 0.0 }
 0x171   :  { %1172 = vrot.lane.b32.xlu0 %v1170_v8, %s1696_s10  ;;  %v951_v55 = vadd.f32 %v950_v35, %v949_v63  ;;  %v879_v29 = vadd.f32 %v878_v22, %v877_v39 }
 0x173   :  { %v953_v53 = vadd.f32 %v952_v32, %v951_v55  ;;  %v881_v28 = vadd.f32 %v880_v46, %v879_v29 }
 0x175   :  { %v955_v11 = vadd.f32 %v954_v62, %v953_v53  ;;  %v883_v16 = vadd.f32 %v882_v33, %v881_v28 }
 0x177   :  { %v885_v2 = vadd.f32 %v884_v6, %v883_v16  ;;  %v956_v17 = vrot.slane %v955_v11, 4  ;;  %v1231_v16 = vlaneseq }
 0x179   :  { %v887_v38 = vadd.f32 %v886_v7, %v885_v2  ;;  %v957_v56 = vadd.f32 %v956_v17, %v955_v11  ;;  %v1232_v6 = vshrl.u32 %v1231_v16, 7  ;;  %v1223_v2 = vld [vmem:[%s2439_s2] sm:$0x1] }
 0x17b   :  { %v889_v58 = vadd.f32 %v888_v31, %v887_v38  ;;  %v958_v25 = vrot.slane %v957_v56, 2  ;;  %v1233_v7 = vsub.s32 0, %v1232_v6 }
 0x17d   :  { %v891_v40 = vadd.f32 %v890_v60, %v889_v58  ;;  %v959_v54 = vadd.f32 %v958_v25, %v957_v56  ;;  %v1227_v58 = vld [vmem:[%s2440_s3] sm:$0x1] }
 0x17f   :  { %v893_v13 = vadd.f32 %v892_v59, %v891_v40  ;;  %v960_v35 = vrot.slane %v959_v54, 1 }
 0x181   :  { %v895_v27 = vadd.f32 %v894_v37, %v893_v13  ;;  %v961_v53 = vadd.f32 %v960_v35, %v959_v54 }
 0x183   :  { %v897_v34 = vadd.f32 %v896_v4, %v895_v27 }
 0x185   :  { %v899_v42 = vadd.f32 %v898_v12, %v897_v34 }
 0x187   :  { %v901_v45 = vadd.f32 %v900_v61, %v899_v42 }
 0x189   :  { %v902_v14 = vrot.slane %v901_v45, 4 }
 0x18b   :  { %v903_v47 = vadd.f32 %v902_v14, %v901_v45 }
 0x18d   :  { %v904_v8 = vrot.slane %v903_v47, 2 }
 0x18f   :  { %v905_v10 = vadd.f32 %v904_v8, %v903_v47 }
 0x191   :  { %v906_v63 = vrot.slane %v905_v10, 1 }
 0x193   :  { %v907_v32 = vadd.f32 %v906_v63, %v905_v10 }
 0x1d6   :  { %v1088_v50 = vpop.permute.xlu1 %1087 }
 0x1d7   :  { %v1003_v20 = vpop.permute.xlu0 %1002 }
 0x1d8   :  { %v1005_v52 = vadd.f32 %v1003_v20, %v907_v32 }
 0x1da   :  { %v1130_v55 = vpop.permute.xlu1 %1129  ;;  %v1090_v1 = vadd.f32 %v1088_v50, %v1005_v52 }
 0x1de   :  { %v1045_v62 = vpop.permute.xlu0 %1044 }
 0x1df   :  { %v1047_v15 = vadd.f32 %v1045_v62, %v961_v53 }
 0x1e1   :  { %v1132_v41 = vadd.f32 %v1130_v55, %v1047_v15  ;;  %v1215_v26 = vpop.permute.xlu1 %1214 }
 0x1e3   :  { %v1173_v9 = vpop.permute.xlu0 %1172  ;;  %v1217_v39 = vadd.f32 %v1215_v26, %v1132_v41 }
 0x1e4   :  { %v1175_v11 = vadd.f32 %v1173_v9, %v1090_v1 }
 0x1e5   :  { %v1220_v29 = vmul.f32 0.001953125, %v1217_v39 }
 0x1e6   :  { %v1219_v22 = vmul.f32 0.001953125, %v1175_v11 }
 0x1e8   :  { %v1221_v46 = vmul.f32 %v1219_v22, %v1219_v22 }
 0x1ea   :  { %v1222_v28 = vsub.f32 %v1220_v29, %v1221_v46 }
 0x1ec   :  { %v1224_v33 = vadd.f32 1e-05, %v1222_v28 }
 0x1ee   :  { %1692 = vrsqrt.f32 %v1224_v33 }
 0x1fb   :  { %v1693_v38 = vpop.eup %1692 }
 0x1fc   :  { %v1226_v31 = vmul.f32 %v1693_v38, %v1223_v2 }
 0x1fe   :  { %v1228_v60 = vmul.f32 %v1226_v31, %v1219_v22  ;;  %v1234_v40 = vrot.slane %v1226_v31, %v1233_v7 }
 0x200   :  { %v1229_v59 = vsub.f32 %v1227_v58, %v1228_v60  ;;  %1238 = vrot.lane.b32.xlu1 %v1234_v40, %s1694_s0  ;;  %1235 = vrot.lane.b32.xlu0 %v1234_v40, %s1696_s10 }
 0x202   :  { %v1252_v13 = vrot.slane %v1229_v59, %v1233_v7 }
 0x204   :  { %1241 = vrot.lane.b32.xlu0 %v1234_v40, %s1695_s9  ;;  %1253 = vrot.lane.b32.xlu1 %v1252_v13, %s1696_s10 }
 0x208   :  { %1256 = vrot.lane.b32.xlu0 %v1252_v13, %s1694_s0  ;;  %1259 = vrot.lane.b32.xlu1 %v1252_v13, %s1695_s9 }
 0x272   :  { %v1239_v37 = vpop.permute.xlu1 %1238  ;;  %v1236_v27 = vpop.permute.xlu0 %1235 }
 0x273   :  { %v1244_v4 = vsel %vm870_vm4, %v1226_v31, %v1236_v27 }
 0x274   :  { %v1245_v34 = vsel %vm554_vm0, %v1244_v4, %v1239_v37 }
 0x276   :  { %v1242_v12 = vpop.permute.xlu0 %1241  ;;  %v1254_v42 = vpop.permute.xlu1 %1253 }
 0x277   :  { %v1247_v61 = vsel %vm1246_vm5, %v1245_v34, %v1242_v12  ;;  %v1262_v25 = vsel %vm870_vm4, %v1229_v59, %v1254_v42 }
 0x278   :  { %v1268_v45 = vrot.slane %v1247_v61, %v1233_v7 }
 0x27a   :  { %v1257_v14 = vpop.permute.xlu0 %1256  ;;  %v1260_v17 = vpop.permute.xlu1 %1259  ;;  %v1269_v47 = vmul.f32 %v1268_v45, %v1981_v57  ;;  %v1270_v56 = vmul.f32 %v1268_v45, %v1995_v0  ;;  %v1271_v8 = vmul.f32 %v1268_v45, %v1967_v36  ;;  %v1272_v10 = vmul.f32 %v1268_v45, %v2015_v19 }
 0x27b   :  { %v1273_v54 = vmul.f32 %v1268_v45, %v2098_v24  ;;  %v1274_v50 = vmul.f32 %v1268_v45, %v2150_v23  ;;  %v1263_v20 = vsel %vm554_vm0, %v1262_v25, %v1257_v14  ;;  %v1275_v63 = vmul.f32 %v1268_v45, %v2084_v21 }
 0x27c   :  { %v1276_v35 = vmul.f32 %v1268_v45, %v2154_v44  ;;  %v1277_v57 = vmul.f32 %v1268_v45, %v2007_v5  ;;  %v1264_v0 = vsel %vm1246_vm5, %v1263_v20, %v1260_v17  ;;  %v1278_v36 = vmul.f32 %v1268_v45, %v2454_v49 }
 0x27d   :  { %v1279_v55 = vmul.f32 %v1268_v45, %v2455_v3  ;;  %v1280_v19 = vmul.f32 %v1268_v45, %v2017_v18  ;;  %v1288_v32 = vrot.slane %v1264_v0, %v1233_v7  ;;  %v1281_v24 = vmul.f32 %v1268_v45, %v2159_v30 }
 0x27e   :  { %v1282_v23 = vmul.f32 %v1268_v45, %v2165_v43  ;;  %v1283_v53 = vmul.f32 %v1268_v45, %v2095_v48  ;;  %v1284_v21 = vmul.f32 %v1268_v45, %v2162_v51 }
 0x27f   :  { %v1289_v44 = vadd.f32 %v1288_v32, %v1269_v47  ;;  %v1290_v62 = vadd.f32 %v1288_v32, %v1270_v56  ;;  %v1291_v5 = vadd.f32 %v1288_v32, %v1271_v8  ;;  %v1292_v52 = vadd.f32 %v1288_v32, %v1272_v10 }
 0x280   :  { %v1293_v15 = vadd.f32 %v1288_v32, %v1273_v54  ;;  %v1294_v41 = vadd.f32 %v1288_v32, %v1274_v50  ;;  %v1295_v49 = vadd.f32 %v1288_v32, %v1275_v63  ;;  %v1296_v26 = vadd.f32 %v1288_v32, %v1276_v35 }
 0x281   :  { %v1297_v3 = vadd.f32 %v1288_v32, %v1277_v57  ;;  %v1298_v1 = vadd.f32 %v1288_v32, %v1278_v36  ;;  %v1299_v18 = vadd.f32 %v1288_v32, %v1279_v55  ;;  %v1300_v9 = vadd.f32 %v1288_v32, %v1280_v19 }
 0x282   :  { %v1301_v39 = vadd.f32 %v1288_v32, %v1281_v24  ;;  %v1302_v30 = vadd.f32 %v1288_v32, %v1282_v23  ;;  %v1303_v11 = vadd.f32 %v1288_v32, %v1283_v53  ;;  %v1304_v43 = vadd.f32 %v1288_v32, %v1284_v21 }
 0x283   :  { %v1305_v22 = vmax.f32 %v1289_v44, 0.0  ;;  %v1306_v48 = vmax.f32 %v1290_v62, 0.0  ;;  %v1307_v29 = vmax.f32 %v1291_v5, 0.0  ;;  %v1308_v51 = vmax.f32 %v1292_v52, 0.0 }
 0x284   :  { %v1309_v46 = vmax.f32 %v1293_v15, 0.0  ;;  %v1310_v28 = vmax.f32 %v1294_v41, 0.0  ;;  %v1311_v33 = vmax.f32 %v1295_v49, 0.0  ;;  %v1312_v16 = vmax.f32 %v1296_v26, 0.0 }
 0x285   :  { %v1313_v6 = vmax.f32 %v1297_v3, 0.0  ;;  %v1314_v2 = vmax.f32 %v1298_v1, 0.0  ;;  %v1315_v7 = vmax.f32 %v1299_v18, 0.0  ;;  %v1316_v38 = vmax.f32 %v1300_v9, 0.0  ;;  %1321 = vst [vmem:[%s2441_s4] sm:$0xff] %v1305_v22  ;;  %1322 = vst [vmem:[%s2441_s4 + $0x8] sm:$0xff] %v1306_v48 }
 0x286   :  { %1323 = vst [vmem:[%s2441_s4 + $0x10] sm:$0xff] %v1307_v29  ;;  %1324 = vst [vmem:[%s2441_s4 + $0x18] sm:$0xff] %v1308_v51  ;;  %v1317_v31 = vmax.f32 %v1301_v39, 0.0  ;;  %v1318_v58 = vmax.f32 %v1302_v30, 0.0  ;;  %v1319_v60 = vmax.f32 %v1303_v11, 0.0  ;;  %v1320_v40 = vmax.f32 %v1304_v43, 0.0 }
 0x287   :  { %1325 = vst [vmem:[%s2441_s4 + $0x20] sm:$0xff] %v1309_v46  ;;  %1326 = vst [vmem:[%s2441_s4 + $0x28] sm:$0xff] %v1310_v28 }
 0x288   :  { %1327 = vst [vmem:[%s2441_s4 + $0x30] sm:$0xff] %v1311_v33  ;;  %1328 = vst [vmem:[%s2441_s4 + $0x38] sm:$0xff] %v1312_v16 }
 0x289   :  { %1329 = vst [vmem:[%s2441_s4 + $0x40] sm:$0xff] %v1313_v6  ;;  %1330 = vst [vmem:[%s2441_s4 + $0x48] sm:$0xff] %v1314_v2 }
 0x28a   :  { %1331 = vst [vmem:[%s2441_s4 + $0x50] sm:$0xff] %v1315_v7  ;;  %1332 = vst [vmem:[%s2441_s4 + $0x58] sm:$0xff] %v1316_v38 }
 0x28b   :  { %1333 = vst [vmem:[%s2441_s4 + $0x60] sm:$0xff] %v1317_v31  ;;  %1334 = vst [vmem:[%s2441_s4 + $0x68] sm:$0xff] %v1318_v58 }
 0x28c   :  { %1335 = vst [vmem:[%s2441_s4 + $0x70] sm:$0xff] %v1319_v60  ;;  %1336 = vst [vmem:[%s2441_s4 + $0x78] sm:$0xff] %v1320_v40 }

// kernel: dc_generator_forward.8
= control target key start
LH: loop header
LB: loop body
LE: loop exit
PB: predicated region body
PF: predicated region fallthrough
CT: control target
= control target key end

     0   :  { %v3362_v0 = vmov 0   ;;  %vm770_vm0 = vcmask 261120   ;;  %vm1445_vm1 = vcmask 130048   ;;  %vm1778_vm2 = vcmask 261248   ;;  %s3364_s28 = smov 112   ;;  %s3365_s29 = smov 80   ;;  %s6504_s1 = inlined_call_operand.vmem [shape: bf16[288,128], index: 1, kind: input, shape index: {}]   ;;  %s6505_s0 = inlined_call_operand.vmem [shape: bf16[512,288], index: 0, kind: input, shape index: {}]   ;;  %s6506_s2 = inlined_call_operand.vmem [shape: f32[1,16], index: 2, kind: input, shape index: {}]   ;;  %s6507_s3 = inlined_call_operand.vmem [shape: f32[1,16], index: 3, kind: input, shape index: {}]   ;;  %s6508_s4 = inlined_call_operand.vmem [shape: f32[512,128], index: 4, kind: output, shape index: {}]  }
   0x1   :  { %867 = vmatprep.subr.bf16.mxu0 %v3362_v0  ;;  %3175 = vmatprep.subr.bf16.mxu1 %v3362_v0  ;;  %v3214_v1 = vld [vmem:[%s6504_s1 + $0x38] sm:$0xff]   ;;  %v3215_v2 = vld [vmem:[%s6504_s1 + $0x30] sm:$0xff]   ;;  %v3216_v3 = vld [vmem:[%s6504_s1 + $0x28] sm:$0xff]   ;;  %vm2055_vm3 = vcmask 392448   ;;  %vm2332_vm4 = vcmask 523648   ;;  %s3366_s8 = smov 32  }
   0x2   :  { %868 = vmatpush1.bf16.msra.mxu0 %v3214_v1  ;;  %3191 = vmatpush1.bf16.msra.mxu1 %v3214_v1  ;;  %v3217_v4 = vld [vmem:[%s6504_s1 + $0x20] sm:$0xff]   ;;  %v3218_v5 = vld [vmem:[%s6504_s1 + $0x18] sm:$0xff]   ;;  %v3219_v7 = vld [vmem:[%s6504_s1 + $0x10] sm:$0xff]   ;;  %s3367_s9 = smov 16   ;;  %s3368_s10 = smov 48   ;;  %vm2637_vm5 = vcmask 392192  }
   0x3   :  { %869 = vmatprep.subr.bf16.mxu0 %v3362_v0  ;;  %3176 = vmatprep.subr.bf16.mxu1 %v3362_v0  ;;  %v3232_v6 = vld [vmem:[%s6505_s0 + $0x4] ss:$12 sps:$4 sm:$0xff]   ;;  %v3220_v9 = vld [vmem:[%s6504_s1 + $0x8] sm:$0xff]   ;;  %v3222_v11 = vld [vmem:[%s6504_s1 + $0x78] sm:$0xff]   ;;  %vm2639_vm6 = vcmask 523264  }
   0x4   :  { %v3235_v8 = vld [vmem:[%s6505_s0 + $0x244] ss:$12 sps:$4 sm:$0xff]   ;;  %899 = vmatprep.mubr.bf16.mxu0 %v3232_v6  ;;  %v3224_v13 = vld [vmem:[%s6504_s1 + $0x68] sm:$0xff]   ;;  %v3226_v15 = vld [vmem:[%s6504_s1 + $0x58] sm:$0xff]  }
   0x5   :  { %1091 = vmatprep.mubr.bf16.mxu1 %v3235_v8  ;;  %v3221_v10 = vld [vmem:[%s6504_s1] sm:$0xff]   ;;  %v3223_v12 = vld [vmem:[%s6504_s1 + $0x70] sm:$0xff]   ;;  %v3228_v17 = vld [vmem:[%s6504_s1 + $0x48] sm:$0xff]  }
   0x6   :  { %870 = vmatpush1.bf16.msra.mxu0 %v3215_v2  ;;  %3192 = vmatpush1.bf16.msra.mxu1 %v3215_v2  ;;  %v3225_v14 = vld [vmem:[%s6504_s1 + $0x60] sm:$0xff]   ;;  %v3227_v16 = vld [vmem:[%s6504_s1 + $0x50] sm:$0xff]   ;;  %v3254_v19 = vld [vmem:[%s6504_s1 + $0x88] sm:$0xff]  }
   0x7   :  { %871 = vmatprep.subr.bf16.mxu0 %v3362_v0  ;;  %3177 = vmatprep.subr.bf16.mxu1 %v3362_v0  ;;  %v3229_v18 = vld [vmem:[%s6504_s1 + $0x40] sm:$0xff]   ;;  %v3236_v22 = vld [vmem:[%s6505_s0 + $0x1c] ss:$12 sps:$4 sm:$0xff]   ;;  %v3248_v31 = vld [vmem:[%s6505_s0 + $0x4c] ss:$12 sps:$4 sm:$0xff]  }
   0x8   :  { %v3230_v20 = vld [vmem:[%s6505_s0] ss:$12 sps:$4 sm:$0xff]   ;;  %v3238_v23 = vld [vmem:[%s6505_s0 + $0x25c] ss:$12 sps:$4 sm:$0xff]   ;;  %v3240_v25 = vld [vmem:[%s6505_s0 + $0x18] ss:$12 sps:$4 sm:$0xff]  }
   0x9   :  { %v3233_v21 = vld [vmem:[%s6505_s0 + $0x240] ss:$12 sps:$4 sm:$0xff]   ;;  %v3241_v26 = vld [vmem:[%s6505_s0 + $0x258] ss:$12 sps:$4 sm:$0xff]   ;;  %v3246_v29 = vld [vmem:[%s6505_s0 + $0x30] ss:$12 sps:$4 sm:$0xff]  }
   0xa   :  { %872 = vmatpush1.bf16.msra.mxu0 %v3216_v3  ;;  %3193 = vmatpush1.bf16.msra.mxu1 %v3216_v3  ;;  %v3279_v24 = vld [vmem:[%s6504_s1 + $0x80] sm:$0xff]   ;;  %v3247_v30 = vld [vmem:[%s6505_s0 + $0x270] ss:$12 sps:$4 sm:$0xff]   ;;  %v3250_v32 = vld [vmem:[%s6505_s0 + $0x28c] ss:$12 sps:$4 sm:$0xff]  }
   0xb   :  { %873 = vmatprep.subr.bf16.mxu0 %v3362_v0  ;;  %3178 = vmatprep.subr.bf16.mxu1 %v3362_v0  ;;  %v3242_v27 = vld [vmem:[%s6505_s0 + $0x34] ss:$12 sps:$4 sm:$0xff]   ;;  %v3255_v35 = vld [vmem:[%s6505_s0 + $0x64] ss:$12 sps:$4 sm:$0xff]   ;;  %v3261_v39 = vld [vmem:[%s6505_s0 + $0x7c] ss:$12 sps:$4 sm:$0xff]  }
   0xc   :  { %v3244_v28 = vld [vmem:[%s6505_s0 + $0x274] ss:$12 sps:$4 sm:$0xff]   ;;  %v3257_v36 = vld [vmem:[%s6505_s0 + $0x2a4] ss:$12 sps:$4 sm:$0xff]   ;;  %v3263_v40 = vld [vmem:[%s6505_s0 + $0x2bc] ss:$12 sps:$4 sm:$0xff]  }
   0xd   :  { %v3252_v33 = vld [vmem:[%s6505_s0 + $0x48] ss:$12 sps:$4 sm:$0xff]   ;;  %v3259_v37 = vld [vmem:[%s6505_s0 + $0x60] ss:$12 sps:$4 sm:$0xff]   ;;  %v3265_v41 = vld [vmem:[%s6505_s0 + $0x78] ss:$12 sps:$4 sm:$0xff]  }
   0xe   :  { %874 = vmatpush1.bf16.msra.mxu0 %v3217_v4  ;;  %3194 = vmatpush1.bf16.msra.mxu1 %v3217_v4  ;;  %v3253_v34 = vld [vmem:[%s6505_s0 + $0x288] ss:$12 sps:$4 sm:$0xff]   ;;  %v3260_v38 = vld [vmem:[%s6505_s0 + $0x2a0] ss:$12 sps:$4 sm:$0xff]   ;;  %v3266_v42 = vld [vmem:[%s6505_s0 + $0x2b8] ss:$12 sps:$4 sm:$0xff]  }
   0xf   :  { %875 = vmatprep.subr.bf16.mxu0 %v3362_v0  ;;  %3179 = vmatprep.subr.bf16.mxu1 %v3362_v0  ;;  %v3267_v43 = vld [vmem:[%s6505_s0 + $0x94] ss:$12 sps:$4 sm:$0xff]   ;;  %v3271_v45 = vld [vmem:[%s6505_s0 + $0x90] ss:$12 sps:$4 sm:$0xff]   ;;  %v3273_v47 = vld [vmem:[%s6505_s0 + $0xac] ss:$12 sps:$4 sm:$0xff]  }
  0x10   :  { %v3269_v44 = vld [vmem:[%s6505_s0 + $0x2d4] ss:$12 sps:$4 sm:$0xff]   ;;  %v3272_v46 = vld [vmem:[%s6505_s0 + $0x2d0] ss:$12 sps:$4 sm:$0xff]   ;;  %v3275_v48 = vld [vmem:[%s6505_s0 + $0x2ec] ss:$12 sps:$4 sm:$0xff]  }
  0x11   :  { %v3277_v49 = vld [vmem:[%s6505_s0 + $0xa8] ss:$12 sps:$4 sm:$0xff]   ;;  %v3280_v51 = vld [vmem:[%s6505_s0 + $0xc4] ss:$12 sps:$4 sm:$0xff]   ;;  %v3283_v53 = vld [vmem:[%s6505_s0 + $0xc0] ss:$12 sps:$4 sm:$0xff]  }
  0x12   :  { %876 = vmatpush1.bf16.msra.mxu0 %v3218_v5  ;;  %3195 = vmatpush1.bf16.msra.mxu1 %v3218_v5  ;;  %v3278_v50 = vld [vmem:[%s6505_s0 + $0x2e8] ss:$12 sps:$4 sm:$0xff]   ;;  %v3284_v54 = vld [vmem:[%s6505_s0 + $0x20] ss:$12 sps:$4 sm:$0xff]   ;;  %v3287_v56 = vld [vmem:[%s6505_s0 + $0x38] ss:$12 sps:$4 sm:$0xff]  }
  0x13   :  { %877 = vmatprep.subr.bf16.mxu0 %v3362_v0  ;;  %3180 = vmatprep.subr.bf16.mxu1 %v3362_v0  ;;  %v3282_v52 = vld [vmem:[%s6505_s0 + $0x8] ss:$12 sps:$4 sm:$0xff]   ;;  %v3288_v57 = vld [vmem:[%s6505_s0 + $0xd8] ss:$12 sps:$4 sm:$0xff]   ;;  %v3289_v58 = vld [vmem:[%s6505_s0 + $0x50] ss:$12 sps:$4 sm:$0xff]  }
  0x14   :  { %v3285_v55 = vld [vmem:[%s6505_s0 + $0xdc] ss:$12 sps:$4 sm:$0xff]   ;;  %v3290_v59 = vld [vmem:[%s6505_s0 + $0xf4] ss:$12 sps:$4 sm:$0xff]   ;;  %v3295_v63 = vld [vmem:[%s6505_s0 + $0x10c] ss:$12 sps:$4 sm:$0xff]  }
  0x15   :  { %v3292_v60 = vld [vmem:[%s6505_s0 + $0x68] ss:$12 sps:$4 sm:$0xff]   ;;  %v3293_v61 = vld [vmem:[%s6505_s0 + $0xf0] ss:$12 sps:$4 sm:$0xff]   ;;  %v3294_v62 = vld [vmem:[%s6505_s0 + $0x80] ss:$12 sps:$4 sm:$0xff]  }
  0x16   :  { %878 = vmatpush1.bf16.msra.mxu0 %v3219_v7  ;;  %3196 = vmatpush1.bf16.msra.mxu1 %v3219_v7  ;;  %v3298_v1 = vld [vmem:[%s6505_s0 + $0x108] ss:$12 sps:$4 sm:$0xff]   ;;  %v3299_v2 = vld [vmem:[%s6505_s0 + $0xb0] ss:$12 sps:$4 sm:$0xff]   ;;  %v3303_v5 = vld [vmem:[%s6505_s0 + $0x120] ss:$12 sps:$4 sm:$0xff]  }
  0x17   :  { %879 = vmatprep.subr.bf16.mxu0 %v3362_v0  ;;  %3181 = vmatprep.subr.bf16.mxu1 %v3362_v0  ;;  %v3300_v3 = vld [vmem:[%s6505_s0 + $0x124] ss:$12 sps:$4 sm:$0xff]   ;;  %v3302_v4 = vld [vmem:[%s6505_s0 + $0xc8] ss:$12 sps:$4 sm:$0xff]   ;;  %v3304_v6 = vld [vmem:[%s6505_s0 + $0xe0] ss:$12 sps:$4 sm:$0xff]  }
  0x18   :  { %v3305_v7 = vld [vmem:[%s6505_s0 + $0x13c] ss:$12 sps:$4 sm:$0xff]   ;;  %v3307_v8 = vld [vmem:[%s6505_s0 + $0xf8] ss:$12 sps:$4 sm:$0xff]  }
  0x1a   :  { %880 = vmatpush1.bf16.msra.mxu0 %v3220_v9  ;;  %3197 = vmatpush1.bf16.msra.mxu1 %v3220_v9  ;;  %v3308_v9 = vld [vmem:[%s6505_s0 + $0x138] ss:$12 sps:$4 sm:$0xff]  }
  0x1b   :  { %881 = vmatprep.subr.bf16.mxu0 %v3362_v0  ;;  %3182 = vmatprep.subr.bf16.mxu1 %v3362_v0 }
  0x1e   :  { %882 = vmatpush1.bf16.msra.mxu0 %v3221_v10  ;;  %3198 = vmatpush1.bf16.msra.mxu1 %v3221_v10  ;;  %v3309_v10 = vld [vmem:[%s6505_s0 + $0x110] ss:$12 sps:$4 sm:$0xff]  }
  0x1f   :  { %883 = vmatprep.subr.bf16.mxu0 %v3362_v0  ;;  %3183 = vmatprep.subr.bf16.mxu1 %v3362_v0 }
  0x22   :  { %884 = vmatpush2.bf16.msra.mxu0 %v3222_v11  ;;  %3199 = vmatpush2.bf16.msra.mxu1 %v3222_v11  ;;  %v3310_v11 = vld [vmem:[%s6505_s0 + $0x154] ss:$12 sps:$4 sm:$0xff]  }
  0x23   :  { %885 = vmatprep.subr.bf16.mxu0 %v3362_v0  ;;  %3184 = vmatprep.subr.bf16.mxu1 %v3362_v0 }
  0x26   :  { %886 = vmatpush2.bf16.msra.mxu0 %v3223_v12  ;;  %3200 = vmatpush2.bf16.msra.mxu1 %v3223_v12  ;;  %v3312_v12 = vld [vmem:[%s6505_s0 + $0x128] ss:$12 sps:$4 sm:$0xff]  }
  0x27   :  { %887 = vmatprep.subr.bf16.mxu0 %v3362_v0  ;;  %3185 = vmatprep.subr.bf16.mxu1 %v3362_v0 }
  0x2a   :  { %888 = vmatpush2.bf16.msra.mxu0 %v3224_v13  ;;  %3201 = vmatpush2.bf16.msra.mxu1 %v3224_v13  ;;  %v3313_v13 = vld [vmem:[%s6505_s0 + $0x150] ss:$12 sps:$4 sm:$0xff]  }
  0x2b   :  { %889 = vmatprep.subr.bf16.mxu0 %v3362_v0  ;;  %3186 = vmatprep.subr.bf16.mxu1 %v3362_v0 }
  0x2e   :  { %890 = vmatpush2.bf16.msra.mxu0 %v3225_v14  ;;  %3202 = vmatpush2.bf16.msra.mxu1 %v3225_v14  ;;  %v3314_v14 = vld [vmem:[%s6505_s0 + $0x140] ss:$12 sps:$4 sm:$0xff]  }
  0x2f   :  { %891 = vmatprep.subr.bf16.mxu0 %v3362_v0  ;;  %3187 = vmatprep.subr.bf16.mxu1 %v3362_v0 }
  0x32   :  { %892 = vmatpush2.bf16.msra.mxu0 %v3226_v15  ;;  %3203 = vmatpush2.bf16.msra.mxu1 %v3226_v15  ;;  %v3315_v15 = vld [vmem:[%s6505_s0 + $0x16c] ss:$12 sps:$4 sm:$0xff]  }
  0x33   :  { %893 = vmatprep.subr.bf16.mxu0 %v3362_v0  ;;  %3188 = vmatprep.subr.bf16.mxu1 %v3362_v0 }
  0x36   :  { %894 = vmatpush2.bf16.msra.mxu0 %v3227_v16  ;;  %3204 = vmatpush2.bf16.msra.mxu1 %v3227_v16  ;;  %v3317_v16 = vld [vmem:[%s6505_s0 + $0x158] ss:$12 sps:$4 sm:$0xff]  }
  0x37   :  { %895 = vmatprep.subr.bf16.mxu0 %v3362_v0  ;;  %3189 = vmatprep.subr.bf16.mxu1 %v3362_v0 }
  0x3a   :  { %896 = vmatpush2.bf16.msra.mxu0 %v3228_v17  ;;  %3205 = vmatpush2.bf16.msra.mxu1 %v3228_v17  ;;  %v3318_v17 = vld [vmem:[%s6505_s0 + $0x168] ss:$12 sps:$4 sm:$0xff]  }
  0x3b   :  { %897 = vmatprep.subr.bf16.mxu0 %v3362_v0  ;;  %3190 = vmatprep.subr.bf16.mxu1 %v3362_v0  ;;  %v3297_v0 = vld [vmem:[%s6505_s0 + $0x98] ss:$12 sps:$4 sm:$0xff]  }
  0x3e   :  { %898 = vmatpush2.bf16.msra.mxu0 %v3229_v18  ;;  %3206 = vmatpush2.bf16.msra.mxu1 %v3229_v18  ;;  %v3319_v18 = vld [vmem:[%s6505_s0 + $0x170] ss:$12 sps:$4 sm:$0xff]  }
  0x3f   :  { %3107 = vmatprep.subr.bf16.mxu1 %v3254_v19 }
  0x41   :  { %900 = vmatmul.mubr.bf16.vlgmr.msra.gmra.mxu0 %v3230_v20  ;;  %1092 = vmatmul.mubr.bf16.vlgmr.msra.gmra.mxu1 %v3233_v21  ;;  %v3322_v20 = vld [vmem:[%s6505_s0 + $0x188] ss:$12 sps:$4 sm:$0xff]   ;;  %v3323_v21 = vld [vmem:[%s6505_s0 + $0x180] ss:$12 sps:$4 sm:$0xff]  }
  0x42   :  { %907 = vmatprep.mubr.bf16.mxu0 %v3236_v22  ;;  %1099 = vmatprep.mubr.bf16.mxu1 %v3238_v23  ;;  %v3324_v22 = vld [vmem:[%s6505_s0 + $0x1a0] ss:$12 sps:$4 sm:$0xff]   ;;  %v3325_v23 = vld [vmem:[%s6505_s0 + $0x19c] ss:$12 sps:$4 sm:$0xff]  }
  0x43   :  { %3108 = vmatpush3.bf16.msra.mxu1 %v3254_v19  ;;  %v3320_v19 = vld [vmem:[%s6505_s0 + $0x184] ss:$12 sps:$4 sm:$0xff]  }
  0x44   :  { %3109 = vmatprep.subr.bf16.mxu1 %v3279_v24 }
  0x47   :  { %3110 = vmatpush3.bf16.msra.mxu1 %v3279_v24  ;;  %v3327_v24 = vld [vmem:[%s6505_s0 + $0x1b8] ss:$12 sps:$4 sm:$0xff]  }
  0x49   :  { %908 = vmatmul.mubr.bf16.gmra.mxu0 %v3240_v25  ;;  %1100 = vmatmul.mubr.bf16.gmra.mxu1 %v3241_v26  ;;  %v3328_v25 = vld [vmem:[%s6505_s0 + $0x198] ss:$12 sps:$4 sm:$0xff]   ;;  %v3329_v26 = vld [vmem:[%s6505_s0 + $0x1d0] ss:$12 sps:$4 sm:$0xff]  }
  0x4a   :  { %915 = vmatprep.mubr.bf16.mxu0 %v3242_v27  ;;  %1107 = vmatprep.mubr.bf16.mxu1 %v3244_v28  ;;  %v3330_v27 = vld [vmem:[%s6505_s0 + $0x1b4] ss:$12 sps:$4 sm:$0xff]  }
  0x4b   :  { %v3332_v28 = vld [vmem:[%s6505_s0 + $0x1e8] ss:$12 sps:$4 sm:$0xff]  }
  0x51   :  { %916 = vmatmul.mubr.bf16.gmra.mxu0 %v3246_v29  ;;  %1108 = vmatmul.mubr.bf16.gmra.mxu1 %v3247_v30  ;;  %v3333_v29 = vld [vmem:[%s6505_s0 + $0x1b0] ss:$12 sps:$4 sm:$0xff]   ;;  %v3334_v30 = vld [vmem:[%s6505_s0 + $0x200] ss:$12 sps:$4 sm:$0xff]  }
  0x52   :  { %923 = vmatprep.mubr.bf16.mxu0 %v3248_v31  ;;  %1115 = vmatprep.mubr.bf16.mxu1 %v3250_v32  ;;  %v3335_v31 = vld [vmem:[%s6505_s0 + $0x1cc] ss:$12 sps:$4 sm:$0xff]  }
  0x53   :  { %v3337_v32 = vld [vmem:[%s6505_s0 + $0x218] ss:$12 sps:$4 sm:$0xff]  }
  0x59   :  { %924 = vmatmul.mubr.bf16.gmra.mxu0 %v3252_v33  ;;  %1116 = vmatmul.mubr.bf16.gmra.mxu1 %v3253_v34  ;;  %v3338_v33 = vld [vmem:[%s6505_s0 + $0x1c8] ss:$12 sps:$4 sm:$0xff]   ;;  %v3339_v34 = vld [vmem:[%s6505_s0 + $0x230] ss:$12 sps:$4 sm:$0xff]  }
  0x5a   :  { %931 = vmatprep.mubr.bf16.mxu0 %v3255_v35  ;;  %1123 = vmatprep.mubr.bf16.mxu1 %v3257_v36  ;;  %v3340_v35 = vld [vmem:[%s6505_s0 + $0x1e4] ss:$12 sps:$4 sm:$0xff]   ;;  %v3342_v36 = vld [vmem:[%s6505_s0 + $0x248] ss:$12 sps:$4 sm:$0xff]  }
  0x61   :  { %932 = vmatmul.mubr.bf16.gmra.mxu0 %v3259_v37  ;;  %1124 = vmatmul.mubr.bf16.gmra.mxu1 %v3260_v38  ;;  %v3343_v37 = vld [vmem:[%s6505_s0 + $0x1e0] ss:$12 sps:$4 sm:$0xff]  }
  0x62   :  { %939 = vmatprep.mubr.bf16.mxu0 %v3261_v39  ;;  %1131 = vmatprep.mubr.bf16.mxu1 %v3263_v40  ;;  %v3344_v38 = vld [vmem:[%s6505_s0 + $0x260] ss:$12 sps:$4 sm:$0xff]   ;;  %v3345_v39 = vld [vmem:[%s6505_s0 + $0x1fc] ss:$12 sps:$4 sm:$0xff]   ;;  %v3347_v40 = vld [vmem:[%s6505_s0 + $0x278] ss:$12 sps:$4 sm:$0xff]  }
  0x69   :  { %940 = vmatmul.mubr.bf16.gmra.mxu0 %v3265_v41  ;;  %1132 = vmatmul.mubr.bf16.gmra.mxu1 %v3266_v42  ;;  %v3348_v41 = vld [vmem:[%s6505_s0 + $0x1f8] ss:$12 sps:$4 sm:$0xff]   ;;  %v3349_v42 = vld [vmem:[%s6505_s0 + $0x290] ss:$12 sps:$4 sm:$0xff]  }
  0x6a   :  { %947 = vmatprep.mubr.bf16.mxu0 %v3267_v43  ;;  %1139 = vmatprep.mubr.bf16.mxu1 %v3269_v44  ;;  %v3350_v43 = vld [vmem:[%s6505_s0 + $0x214] ss:$12 sps:$4 sm:$0xff]  }
  0x6b   :  { %v3352_v44 = vld [vmem:[%s6505_s0 + $0x2a8] ss:$12 sps:$4 sm:$0xff]  }
  0x71   :  { %948 = vmatmul.mubr.bf16.gmra.mxu0 %v3271_v45  ;;  %1140 = vmatmul.mubr.bf16.gmra.mxu1 %v3272_v46  ;;  %v3353_v45 = vld [vmem:[%s6505_s0 + $0x210] ss:$12 sps:$4 sm:$0xff]   ;;  %v3354_v46 = vld [vmem:[%s6505_s0 + $0x2c0] ss:$12 sps:$4 sm:$0xff]  }
  0x72   :  { %955 = vmatprep.mubr.bf16.mxu0 %v3273_v47  ;;  %1147 = vmatprep.mubr.bf16.mxu1 %v3275_v48  ;;  %v3355_v47 = vld [vmem:[%s6505_s0 + $0x22c] ss:$12 sps:$4 sm:$0xff]  }
  0x73   :  { %v3357_v48 = vld [vmem:[%s6505_s0 + $0x2d8] ss:$12 sps:$4 sm:$0xff]  }
  0x79   :  { %956 = vmatmul.mubr.bf16.gmra.mxu0 %v3277_v49  ;;  %1148 = vmatmul.mubr.bf16.gmra.mxu1 %v3278_v50  ;;  %v3358_v49 = vld [vmem:[%s6505_s0 + $0x228] ss:$12 sps:$4 sm:$0xff]   ;;  %v3359_v50 = vld [vmem:[%s6505_s0 + $0x2f0] ss:$12 sps:$4 sm:$0xff]   ;;  %s3363_s0 = smov 96  }
  0x7a   :  { %963 = vmatprep.mubr.bf16.mxu0 %v3280_v51  ;;  %3111 = vmatprep.mubr.msk.bf16.mxu1 %vm770_vm0, %v3282_v52 }
  0x81   :  { %964 = vmatmul.mubr.bf16.gmra.mxu0 %v3283_v53  ;;  %3112 = vmatmul.mubr.msk.bf16.vlgmr.msra.gmra.mxu1 %vm770_vm0, %v3284_v54 }
  0x82   :  { %971 = vmatprep.mubr.bf16.mxu0 %v3285_v55  ;;  %3115 = vmatprep.mubr.msk.bf16.mxu1 %vm770_vm0, %v3287_v56 }
  0x89   :  { %972 = vmatmul.mubr.bf16.gmra.mxu0 %v3288_v57  ;;  %3116 = vmatmul.mubr.msk.bf16.gmra.mxu1 %vm770_vm0, %v3289_v58 }
  0x8a   :  { %979 = vmatprep.mubr.bf16.mxu0 %v3290_v59  ;;  %3119 = vmatprep.mubr.msk.bf16.mxu1 %vm770_vm0, %v3292_v60 }
  0x91   :  { %980 = vmatmul.mubr.bf16.gmra.mxu0 %v3293_v61  ;;  %3120 = vmatmul.mubr.msk.bf16.gmra.mxu1 %vm770_vm0, %v3294_v62 }
  0x92   :  { %987 = vmatprep.mubr.bf16.mxu0 %v3295_v63  ;;  %3123 = vmatprep.mubr.msk.bf16.mxu1 %vm770_vm0, %v3297_v0 }
  0x99   :  { %988 = vmatmul.mubr.bf16.gmra.mxu0 %v3298_v1  ;;  %3124 = vmatmul.mubr.msk.bf16.gmra.mxu1 %vm770_vm0, %v3299_v2 }
  0x9a   :  { %995 = vmatprep.mubr.bf16.mxu0 %v3300_v3  ;;  %3127 = vmatprep.mubr.msk.bf16.mxu1 %vm770_vm0, %v3302_v4 }
  0xa1   :  { %996 = vmatmul.mubr.bf16.gmra.mxu0 %v3303_v5  ;;  %3128 = vmatmul.mubr.msk.bf16.gmra.mxu1 %vm770_vm0, %v3304_v6 }
  0xa2   :  { %1003 = vmatprep.mubr.bf16.mxu0 %v3305_v7  ;;  %3131 = vmatprep.mubr.msk.bf16.mxu1 %vm770_vm0, %v3307_v8 }
  0xa9   :  { %1004 = vmatmul.mubr.bf16.gmra.mxu0 %v3308_v9  ;;  %3132 = vmatmul.mubr.msk.bf16.gmra.mxu1 %vm770_vm0, %v3309_v10 }
  0xaa   :  { %1011 = vmatprep.mubr.bf16.mxu0 %v3310_v11  ;;  %3135 = vmatprep.mubr.msk.bf16.mxu1 %vm770_vm0, %v3312_v12 }
  0xb1   :  { %1012 = vmatmul.mubr.bf16.gmra.mxu0 %v3313_v13  ;;  %3136 = vmatmul.mubr.msk.bf16.gmra.mxu1 %vm770_vm0, %v3314_v14 }
  0xb2   :  { %1019 = vmatprep.mubr.bf16.mxu0 %v3315_v15  ;;  %3139 = vmatprep.mubr.msk.bf16.mxu1 %vm770_vm0, %v3317_v16 }
  0xb9   :  { %1020 = vmatmul.mubr.bf16.gmra.mxu0 %v3318_v17  ;;  %3140 = vmatmul.mubr.msk.bf16.gmra.mxu1 %vm770_vm0, %v3319_v18 }
  0xba   :  { %1027 = vmatprep.mubr.bf16.mxu0 %v3320_v19  ;;  %3143 = vmatprep.mubr.msk.bf16.mxu1 %vm770_vm0, %v3322_v20 }
  0xc1   :  { %1028 = vmatmul.mubr.bf16.gmra.mxu0 %v3323_v21  ;;  %3144 = vmatmul.mubr.msk.bf16.gmra.mxu1 %vm770_vm0, %v3324_v22 }
  0xc2   :  { %1035 = vmatprep.mubr.bf16.mxu0 %v3325_v23  ;;  %3147 = vmatprep.mubr.msk.bf16.mxu1 %vm770_vm0, %v3327_v24 }
  0xc9   :  { %1036 = vmatmul.mubr.bf16.gmra.mxu0 %v3328_v25  ;;  %3148 = vmatmul.mubr.msk.bf16.gmra.mxu1 %vm770_vm0, %v3329_v26 }
  0xca   :  { %1043 = vmatprep.mubr.bf16.mxu0 %v3330_v27  ;;  %3151 = vmatprep.mubr.msk.bf16.mxu1 %vm770_vm0, %v3332_v28 }
  0xd1   :  { %1044 = vmatmul.mubr.bf16.gmra.mxu0 %v3333_v29  ;;  %3152 = vmatmul.mubr.msk.bf16.gmra.mxu1 %vm770_vm0, %v3334_v30 }
  0xd2   :  { %1051 = vmatprep.mubr.bf16.mxu0 %v3335_v31  ;;  %3155 = vmatprep.mubr.msk.bf16.mxu1 %vm770_vm0, %v3337_v32 }
  0xd9   :  { %1052 = vmatmul.mubr.bf16.gmra.mxu0 %v3338_v33  ;;  %3156 = vmatmul.mubr.msk.bf16.gmra.mxu1 %vm770_vm0, %v3339_v34 }
  0xda   :  { %1059 = vmatprep.mubr.bf16.mxu0 %v3340_v35  ;;  %3159 = vmatprep.mubr.msk.bf16.mxu1 %vm770_vm0, %v3342_v36 }
  0xe1   :  { %1060 = vmatmul.mubr.bf16.gmra.mxu0 %v3343_v37  ;;  %3160 = vmatmul.mubr.msk.bf16.gmra.mxu1 %vm770_vm0, %v3344_v38 }
  0xe2   :  { %1067 = vmatprep.mubr.bf16.mxu0 %v3345_v39  ;;  %3163 = vmatprep.mubr.msk.bf16.mxu1 %vm770_vm0, %v3347_v40 }
  0xe9   :  { %1068 = vmatmul.mubr.bf16.gmra.mxu0 %v3348_v41  ;;  %3164 = vmatmul.mubr.msk.bf16.gmra.mxu1 %vm770_vm0, %v3349_v42 }
  0xea   :  { %1075 = vmatprep.mubr.bf16.mxu0 %v3350_v43  ;;  %3167 = vmatprep.mubr.msk.bf16.mxu1 %vm770_vm0, %v3352_v44 }
  0xf1   :  { %1076 = vmatmul.mubr.bf16.gmra.mxu0 %v3353_v45  ;;  %3168 = vmatmul.mubr.msk.bf16.gmra.mxu1 %vm770_vm0, %v3354_v46 }
  0xf2   :  { %1083 = vmatprep.mubr.bf16.mxu0 %v3355_v47  ;;  %3171 = vmatprep.mubr.msk.bf16.mxu1 %vm770_vm0, %v3357_v48 }
  0xf9   :  { %1084 = vmatmul.mubr.bf16.gmra.mxu0 %v3358_v49  ;;  %3172 = vmatmul.mubr.msk.bf16.gmra.mxu1 %vm770_vm0, %v3359_v50 }
 0x101   :  { %v3800_v51 = vpop.f32.mrf.mxu0  ;;  %v3802_v52 = vpop.f32.mrf.mxu1 }
 0x102   :  { %6592 = vst [vmem:[#allocation2_spill] sm:$0xff] %v3802_v52 }
 0x103   :  { %v903_v53 = vpop.f32.mrf.mxu0  ;;  %v1095_v54 = vpop.f32.mrf.mxu1 }
 0x105   :  { %v3804_v55 = vpop.f32.mrf.mxu0  ;;  %v3806_v56 = vpop.f32.mrf.mxu1 }
 0x106   :  { %6593 = vst [vmem:[#allocation3_spill] sm:$0xff] %v3806_v56 }
 0x107   :  { %v906_v57 = vpop.f32.mrf.mxu0  ;;  %v1098_v58 = vpop.f32.mrf.mxu1 }
 0x109   :  { %v3808_v59 = vpop.f32.mrf.mxu0  ;;  %v3810_v60 = vpop.f32.mrf.mxu1 }
 0x10a   :  { %6594 = vst [vmem:[#allocation4_spill] sm:$0xff] %v3810_v60 }
 0x10b   :  { %v911_v61 = vpop.f32.mrf.mxu0  ;;  %v1103_v62 = vpop.f32.mrf.mxu1 }
 0x10d   :  { %v3812_v63 = vpop.f32.mrf.mxu0  ;;  %v3814_v0 = vpop.f32.mrf.mxu1 }
 0x10e   :  { %6595 = vst [vmem:[#allocation5_spill] sm:$0xff] %v3814_v0 }
 0x10f   :  { %v914_v1 = vpop.f32.mrf.mxu0  ;;  %v1106_v2 = vpop.f32.mrf.mxu1 }
 0x111   :  { %v3816_v3 = vpop.f32.mrf.mxu0  ;;  %v3818_v4 = vpop.f32.mrf.mxu1 }
 0x112   :  { %6596 = vst [vmem:[#allocation6_spill] sm:$0xff] %v3818_v4 }
 0x113   :  { %v919_v5 = vpop.f32.mrf.mxu0  ;;  %v1111_v6 = vpop.f32.mrf.mxu1 }
 0x115   :  { %v3820_v7 = vpop.f32.mrf.mxu0  ;;  %v3822_v8 = vpop.f32.mrf.mxu1 }
 0x116   :  { %6597 = vst [vmem:[#allocation7_spill] sm:$0xff] %v3822_v8 }
 0x117   :  { %v922_v9 = vpop.f32.mrf.mxu0  ;;  %v1114_v10 = vpop.f32.mrf.mxu1 }
 0x119   :  { %v3824_v11 = vpop.f32.mrf.mxu0  ;;  %v3826_v12 = vpop.f32.mrf.mxu1 }
 0x11a   :  { %6598 = vst [vmem:[#allocation8_spill] sm:$0xff] %v3826_v12 }
 0x11b   :  { %v927_v13 = vpop.f32.mrf.mxu0  ;;  %v1119_v14 = vpop.f32.mrf.mxu1 }
 0x11d   :  { %v3828_v15 = vpop.f32.mrf.mxu0  ;;  %v3830_v16 = vpop.f32.mrf.mxu1 }
 0x11e   :  { %6599 = vst [vmem:[#allocation9_spill] sm:$0xff] %v3830_v16 }
 0x11f   :  { %v930_v17 = vpop.f32.mrf.mxu0  ;;  %v1122_v18 = vpop.f32.mrf.mxu1 }
 0x121   :  { %v3832_v19 = vpop.f32.mrf.mxu0  ;;  %v3834_v20 = vpop.f32.mrf.mxu1 }
 0x122   :  { %6600 = vst [vmem:[#allocation10_spill] sm:$0xff] %v3834_v20 }
 0x123   :  { %v935_v21 = vpop.f32.mrf.mxu0  ;;  %v1127_v22 = vpop.f32.mrf.mxu1 }
 0x125   :  { %v3836_v23 = vpop.f32.mrf.mxu0  ;;  %v3838_v24 = vpop.f32.mrf.mxu1 }
 0x126   :  { %6601 = vst [vmem:[#allocation11_spill] sm:$0xff] %v3838_v24 }
 0x127   :  { %v938_v25 = vpop.f32.mrf.mxu0  ;;  %v1130_v26 = vpop.f32.mrf.mxu1 }
 0x129   :  { %v3840_v27 = vpop.f32.mrf.mxu0  ;;  %v3842_v28 = vpop.f32.mrf.mxu1 }
 0x12a   :  { %6602 = vst [vmem:[#allocation12_spill] sm:$0xff] %v3842_v28 }
 0x12b   :  { %v943_v29 = vpop.f32.mrf.mxu0  ;;  %v1135_v30 = vpop.f32.mrf.mxu1 }
 0x12d   :  { %v3844_v31 = vpop.f32.mrf.mxu0  ;;  %v3846_v32 = vpop.f32.mrf.mxu1 }
 0x12e   :  { %6603 = vst [vmem:[#allocation13_spill] sm:$0xff] %v3846_v32 }
 0x12f   :  { %v946_v33 = vpop.f32.mrf.mxu0  ;;  %v1138_v34 = vpop.f32.mrf.mxu1 }
 0x131   :  { %v3848_v35 = vpop.f32.mrf.mxu0  ;;  %v3850_v36 = vpop.f32.mrf.mxu1 }
 0x132   :  { %6604 = vst [vmem:[#allocation14_spill] sm:$0xff] %v3850_v36 }
 0x133   :  { %v951_v37 = vpop.f32.mrf.mxu0  ;;  %v1143_v38 = vpop.f32.mrf.mxu1 }
 0x135   :  { %v3852_v39 = vpop.f32.mrf.mxu0  ;;  %v3854_v40 = vpop.f32.mrf.mxu1 }
 0x136   :  { %6605 = vst [vmem:[#allocation15_spill] sm:$0xff] %v3854_v40 }
 0x137   :  { %v954_v41 = vpop.f32.mrf.mxu0  ;;  %v1146_v42 = vpop.f32.mrf.mxu1 }
 0x139   :  { %v3856_v43 = vpop.f32.mrf.mxu0  ;;  %v3858_v44 = vpop.f32.mrf.mxu1 }
 0x13a   :  { %6606 = vst [vmem:[#allocation16_spill] sm:$0xff] %v3858_v44 }
 0x13b   :  { %v959_v45 = vpop.f32.mrf.mxu0  ;;  %v1151_v46 = vpop.f32.mrf.mxu1 }
 0x13d   :  { %v3860_v47 = vpop.f32.mrf.mxu0  ;;  %v3862_v48 = vpop.f32.mrf.mxu1 }
 0x13e   :  { %6607 = vst [vmem:[#allocation17_spill] sm:$0xff] %v3862_v48 }
 0x13f   :  { %v962_v49 = vpop.f32.mrf.mxu0  ;;  %v1154_v50 = vpop.f32.mrf.mxu1 }
 0x141   :  { %v3864_v53 = vpop.f32.mrf.mxu0  ;;  %v3113_v54 = vpop.f32.mrf.mxu1 }
 0x142   :  { %v3872_v2 = vadd.f32 %v3113_v54, %v3808_v59 }
 0x143   :  { %v967_v57 = vpop.f32.mrf.mxu0  ;;  %v1190_v58 = vpop.f32.mrf.mxu1 }
 0x144   :  { %v3867_v61 = vadd.f32 %v1190_v58, %v3800_v51  ;;  %6609 = vst [vmem:[#allocation19_spill] sm:$0xff] %v3872_v2  ;;  %v1582_v17 = vmul.f32 %v3872_v2, %v3872_v2 }
 0x145   :  { %v3869_v62 = vpop.f32.mrf.mxu0  ;;  %v3114_v1 = vpop.f32.mrf.mxu1 }
 0x146   :  { %6608 = vst [vmem:[#allocation18_spill] sm:$0xff] %v3867_v61  ;;  %v3879_v10 = vmul.f32 %v3867_v61, %v3867_v61  ;;  %v3882_v13 = vadd.f32 %v3114_v1, %v3812_v63  ;;  %v1647_v30 = vsel %vm1445_vm1, %v1582_v17, 0.0  ;;  %v2056_v48 = vsel %vm2055_vm3, %v3867_v61, 0.0 }
 0x147   :  { %v970_v5 = vpop.f32.mrf.mxu0  ;;  %v1193_v6 = vpop.f32.mrf.mxu1  ;;  %v2474_v8 = vsel %vm2332_vm4, %v1582_v17, 0.0 }
 0x148   :  { %v3875_v9 = vadd.f32 %v1193_v6, %v3804_v55  ;;  %6611 = vst [vmem:[#allocation21_spill] sm:$0xff] %v3882_v13  ;;  %v1644_v21 = vsel %vm1445_vm1, %v3879_v10, 0.0  ;;  %v3896_v63 = vmul.f32 %v3882_v13, %v3882_v13 }
 0x149   :  { %v3884_v51 = vpop.f32.mrf.mxu0  ;;  %v3117_v14 = vpop.f32.mrf.mxu1 }
 0x14a   :  { %6610 = vst [vmem:[#allocation20_spill] sm:$0xff] %v3875_v9  ;;  %v3890_v59 = vmul.f32 %v3875_v9, %v3875_v9  ;;  %v1649_v37 = vsel %vm1445_vm1, %v3896_v63, 0.0  ;;  %v3923_v5 = vadd.f32 %v3117_v14, %v3824_v11  ;;  %v1780_v11 = vsel %vm1778_vm2, %v3875_v9, 0.0 }
 0x14b   :  { %v975_v18 = vpop.f32.mrf.mxu0  ;;  %v1206_v55 = vpop.f32.mrf.mxu1  ;;  %v2334_v24 = vsel %vm2332_vm4, %v3875_v9, 0.0 }
 0x14c   :  { %v1645_v22 = vsel %vm1445_vm1, %v3890_v59, 0.0  ;;  %v3908_v45 = vadd.f32 %v1206_v55, %v3816_v3  ;;  %v1449_v3 = vsel %vm1445_vm1, %v3872_v2, 0.0  ;;  %6613 = vst [vmem:[#allocation23_spill] sm:$0xff] %v3923_v5  ;;  %v1782_v55 = vsel %vm1778_vm2, %v3872_v2, 0.0 }
 0x14d   :  { %v3900_v25 = vpop.f32.mrf.mxu0  ;;  %v3118_v26 = vpop.f32.mrf.mxu1  ;;  %v1646_v29 = vadd.f32 %v1645_v22, %v1644_v21  ;;  %v2059_v21 = vsel %vm2055_vm3, %v3872_v2, 0.0  ;;  %v2336_v22 = vsel %vm2332_vm4, %v3872_v2, 0.0  ;;  %v1918_v14 = vsel %vm1778_vm2, %v3890_v59, 0.0 }
 0x14e   :  { %6612 = vst [vmem:[#allocation22_spill] sm:$0xff] %v3908_v45  ;;  %v3912_v49 = vmul.f32 %v3908_v45, %v3908_v45  ;;  %v3971_v32 = vadd.f32 %v3118_v26, %v3828_v15  ;;  %v2472_v15 = vsel %vm2332_vm4, %v3890_v59, 0.0  ;;  %v2063_v56 = vsel %vm2055_vm3, %v3908_v45, 0.0 }
 0x14f   :  { %v978_v33 = vpop.f32.mrf.mxu0  ;;  %v1648_v34 = vadd.f32 %v1647_v30, %v1646_v29  ;;  %v1209_v38 = vpop.f32.mrf.mxu1  ;;  %v1447_v29 = vsel %vm1445_vm1, %v3875_v9, 0.0  ;;  %v1920_v30 = vsel %vm1778_vm2, %v1582_v17, 0.0 }
 0x150   :  { %v1651_v57 = vsel %vm1445_vm1, %v3912_v49, 0.0  ;;  %v3941_v33 = vadd.f32 %v1209_v38, %v3820_v7  ;;  %v3954_v7 = vmul.f32 %v3923_v5, %v3923_v5  ;;  %6615 = vst [vmem:[#allocation25_spill] sm:$0xff] %v3971_v32  ;;  %v1924_v12 = vsel %vm1778_vm2, %v3912_v49, 0.0 }
 0x151   :  { %v3905_v41 = vpop.f32.mrf.mxu0  ;;  %v1650_v42 = vadd.f32 %v1649_v37, %v1648_v34  ;;  %v3914_v50 = vpop.f32.mrf.mxu1  ;;  %v2197_v37 = vsel %vm2055_vm3, %v1582_v17, 0.0  ;;  %v1792_v52 = vsel %vm1778_vm2, %v3971_v32, 0.0 }
 0x152   :  { %6614 = vst [vmem:[#allocation24_spill] sm:$0xff] %v3941_v33  ;;  %v3958_v38 = vmul.f32 %v3941_v33, %v3941_v33  ;;  %v1655_v26 = vsel %vm1445_vm1, %v3954_v7, 0.0 }
 0x153   :  { %v983_v46 = vpop.f32.mrf.mxu0  ;;  %v1652_v1 = vadd.f32 %v1651_v57, %v1650_v42  ;;  %v1222_v6 = vpop.f32.mrf.mxu1  ;;  %v1446_v42 = vsel %vm1445_vm1, %v3867_v61, 0.0  ;;  %v2057_v57 = vsel %vm2055_vm3, %v3875_v9, 0.0 }
 0x154   :  { %v1779_v46 = vsel %vm1778_vm2, %v3867_v61, 0.0  ;;  %v1448_v2 = vadd.f32 %v1447_v29, %v1446_v42  ;;  %v2195_v29 = vsel %vm2055_vm3, %v3890_v59, 0.0  ;;  %v2058_v42 = vadd.f32 %v2057_v57, %v2056_v48 }
 0x155   :  { %v3916_v54 = vpop.f32.mrf.mxu0  ;;  %v1781_v36 = vadd.f32 %v1780_v11, %v1779_v46  ;;  %v1653_v20 = vsel %vm1445_vm1, %v3958_v38, 0.0  ;;  %v2194_v11 = vsel %vm2055_vm3, %v3879_v10, 0.0  ;;  %v2471_v48 = vsel %vm2332_vm4, %v3879_v10, 0.0 }
 0x156   :  { %v1654_v46 = vadd.f32 %v1653_v20, %v1652_v1  ;;  %v1450_v57 = vadd.f32 %v1449_v3, %v1448_v2  ;;  %v2196_v9 = vadd.f32 %v2195_v29, %v2194_v11  ;;  %v1451_v20 = vsel %vm1445_vm1, %v3882_v13, 0.0 }
 0x157   :  { %v986_v58 = vpop.f32.mrf.mxu0  ;;  %v1783_v17 = vadd.f32 %v1782_v55, %v1781_v36  ;;  %v3992_v2 = vmul.f32 %v3971_v32, %v3971_v32  ;;  %v1784_v59 = vsel %vm1778_vm2, %v3882_v13, 0.0  ;;  %v2061_v3 = vsel %vm2055_vm3, %v3882_v13, 0.0 }
 0x158   :  { %v1917_v58 = vsel %vm1778_vm2, %v3879_v10, 0.0  ;;  %v1656_v4 = vadd.f32 %v1655_v26, %v1654_v46  ;;  %v2473_v36 = vadd.f32 %v2472_v15, %v2471_v48  ;;  %v1922_v55 = vsel %vm1778_vm2, %v3896_v63, 0.0 }
 0x159   :  { %v3925_v18 = vpop.f32.mrf.mxu0  ;;  %v1919_v44 = vadd.f32 %v1918_v14, %v1917_v58  ;;  %v2333_v14 = vsel %vm2332_vm4, %v3867_v61, 0.0  ;;  %v2060_v61 = vadd.f32 %v2059_v21, %v2058_v42  ;;  %v2476_v21 = vsel %vm2332_vm4, %v3896_v63, 0.0 }
 0x15a   :  { %v2335_v16 = vadd.f32 %v2334_v24, %v2333_v14  ;;  %v2338_v24 = vsel %vm2332_vm4, %v3882_v13, 0.0  ;;  %v1452_v11 = vadd.f32 %v1451_v20, %v1450_v57  ;;  %v2198_v14 = vadd.f32 %v2197_v37, %v2196_v9 }
 0x15b   :  { %v991_v34 = vpop.f32.mrf.mxu0  ;;  %v1921_v1 = vadd.f32 %v1920_v30, %v1919_v44  ;;  %v2199_v44 = vsel %vm2055_vm3, %v3896_v63, 0.0  ;;  %v4007_v30 = vadd.f32 %v1222_v6, %v3832_v19  ;;  %v1785_v48 = vadd.f32 %v1784_v59, %v1783_v17 }
 0x15c   :  { %v3960_v34 = vpop.f32.mrf.mxu1  ;;  %v2337_v46 = vadd.f32 %v2336_v22, %v2335_v16  ;;  %v2062_v26 = vadd.f32 %v2061_v3, %v2060_v61  ;;  %v2475_v19 = vadd.f32 %v2474_v8, %v2473_v36  ;;  %v1457_v6 = vsel %vm1445_vm1, %v3923_v5, 0.0 }
 0x15d   :  { %v3962_v40 = vpop.f32.mrf.mxu0  ;;  %6616 = vst [vmem:[#allocation26_spill] sm:$0xff] %v4007_v30  ;;  %v1923_v15 = vadd.f32 %v1922_v55, %v1921_v1  ;;  %v4017_v13 = vmul.f32 %v4007_v30, %v4007_v30  ;;  %v4023_v57 = vsel %vm1778_vm2, %v3923_v5, 0.0  ;;  %v4027_v61 = vsel %vm2055_vm3, %v3923_v5, 0.0 }
 0x15e   :  { %v4031_v9 = vsel %vm2332_vm4, %v3923_v5, 0.0  ;;  %v1453_v22 = vsel %vm1445_vm1, %v3908_v45, 0.0  ;;  %v4045_v20 = vsel %vm2055_vm3, %v3954_v7, 0.0  ;;  %v4049_v1 = vsel %vm2332_vm4, %v3954_v7, 0.0 }
 0x15f   :  { %v994_v28 = vpop.f32.mrf.mxu0  ;;  %v1659_v8 = vsel %vm1445_vm1, %v4017_v13, 0.0  ;;  %v1454_v3 = vadd.f32 %v1453_v22, %v1452_v11  ;;  %v1786_v36 = vsel %vm1778_vm2, %v3908_v45, 0.0  ;;  %v2200_v55 = vadd.f32 %v2199_v44, %v2198_v14 }
 0x160   :  { %v1225_v28 = vpop.f32.mrf.mxu1  ;;  %v1787_v5 = vadd.f32 %v1786_v36, %v1785_v48  ;;  %v1925_v0 = vadd.f32 %v1924_v12, %v1923_v15  ;;  %v1455_v11 = vsel %vm1445_vm1, %v3941_v33, 0.0  ;;  %v2340_v48 = vsel %vm2332_vm4, %v3908_v45, 0.0 }
 0x161   :  { %v3986_v58 = vpop.f32.mrf.mxu0  ;;  %v4064_v44 = vadd.f32 %v1225_v28, %v3836_v23  ;;  %v2477_v22 = vadd.f32 %v2476_v21, %v2475_v19  ;;  %v1926_v21 = vsel %vm1778_vm2, %v3958_v38, 0.0  ;;  %v2203_v19 = vsel %vm2055_vm3, %v3958_v38, 0.0 }
 0x162   :  { %v4009_v29 = vpop.f32.mrf.mxu1  ;;  %v4094_v36 = vadd.f32 %v3960_v34, %v3844_v31 }
 0x163   :  { %v999_v10 = vpop.f32.mrf.mxu0  ;;  %6618 = vst [vmem:[#allocation28_spill] sm:$0xff] %v4064_v44  ;;  %v4082_v28 = vmul.f32 %v4064_v44, %v4064_v44 }
 0x164   :  { %v1657_v10 = vsel %vm1445_vm1, %v3992_v2, 0.0  ;;  %v4037_v37 = vpop.f32.mrf.mxu1  ;;  %6620 = vst [vmem:[#allocation30_spill] sm:$0xff] %v4094_v36 }
 0x165   :  { %v4011_v42 = vpop.f32.mrf.mxu0  ;;  %v1658_v16 = vadd.f32 %v1657_v10, %v1656_v4  ;;  %v1928_v4 = vsel %vm1778_vm2, %v3954_v7, 0.0  ;;  %v4055_v10 = vadd.f32 %v3914_v50, %v3840_v27  ;;  %v2339_v7 = vadd.f32 %v2338_v24, %v2337_v46 }
 0x166   :  { %v4066_v14 = vpop.f32.mrf.mxu1  ;;  %v2201_v50 = vsel %vm2055_vm3, %v3912_v49, 0.0  ;;  %v1788_v24 = vsel %vm1778_vm2, %v3941_v33, 0.0 }
 0x167   :  { %v1002_v63 = vpop.f32.mrf.mxu0  ;;  %v1660_v59 = vadd.f32 %v1659_v8, %v1658_v16  ;;  %6617 = vst [vmem:[#allocation27_spill] sm:$0xff] %v4055_v10  ;;  %v2064_v16 = vadd.f32 %v2063_v56, %v2062_v26  ;;  %v2478_v56 = vsel %vm2332_vm4, %v3912_v49, 0.0  ;;  %v2202_v12 = vadd.f32 %v2201_v50, %v2200_v55 }
 0x168   :  { %v1590_v23 = vmul.f32 %v4055_v10, %v4055_v10  ;;  %v2341_v15 = vadd.f32 %v2340_v48, %v2339_v7  ;;  %v1456_v26 = vadd.f32 %v1455_v11, %v1454_v3  ;;  %v2065_v49 = vsel %vm2055_vm3, %v3941_v33, 0.0  ;;  %v4098_v3 = vpop.f32.mrf.mxu1 }
 0x169   :  { %v4039_v17 = vpop.f32.mrf.mxu0  ;;  %v2342_v8 = vsel %vm2332_vm4, %v3941_v33, 0.0  ;;  %v1661_v55 = vsel %vm1445_vm1, %v4082_v28, 0.0  ;;  %v2479_v7 = vadd.f32 %v2478_v56, %v2477_v22  ;;  %v1459_v11 = vsel %vm1445_vm1, %v3971_v32, 0.0 }
 0x16a   :  { %v1789_v50 = vadd.f32 %v1788_v24, %v1787_v5  ;;  %v1662_v48 = vadd.f32 %v1661_v55, %v1660_v59  ;;  %v2066_v45 = vadd.f32 %v2065_v49, %v2064_v16  ;;  %v2480_v33 = vsel %vm2332_vm4, %v3958_v38, 0.0  ;;  %v4117_v38 = vpop.f32.mrf.mxu1 }
 0x16b   :  { %v1007_v63 = vpop.f32.mrf.mxu0  ;;  %v1663_v31 = vsel %vm1445_vm1, %v1590_v23, 0.0  ;;  %v2204_v60 = vadd.f32 %v2203_v19, %v2202_v12  ;;  %v2069_v22 = vsel %vm2055_vm3, %v3971_v32, 0.0  ;;  %v2346_v5 = vsel %vm2332_vm4, %v3971_v32, 0.0 }
 0x16c   :  { %v4115_v59 = vmul.f32 %v4094_v36, %v4094_v36  ;;  %v1930_v56 = vsel %vm1778_vm2, %v3992_v2, 0.0  ;;  %v2207_v12 = vsel %vm2055_vm3, %v3992_v2, 0.0  ;;  %v1791_v24 = vadd.f32 %v4023_v57, %v1789_v50  ;;  %v4153_v57 = vpop.f32.mrf.mxu1 }
 0x16d   :  { %v4068_v27 = vpop.f32.mrf.mxu0  ;;  %v4131_v49 = vadd.f32 %v4037_v37, %v3848_v35  ;;  %v4160_v37 = vsel %vm2332_vm4, %v4055_v10, 0.0 }
 0x16e   :  { %6619 = vst [vmem:[#allocation29_spill] sm:$0xff] %v4068_v27  ;;  %v2343_v27 = vadd.f32 %v2342_v8, %v2341_v15  ;;  %v2481_v15 = vadd.f32 %v2480_v33, %v2479_v7  ;;  %v2206_v8 = vadd.f32 %v4045_v20, %v2204_v60  ;;  %v4141_v33 = vsel %vm1778_vm2, %v4055_v10, 0.0 }
 0x16f   :  { %v1010_v46 = vpop.f32.mrf.mxu0  ;;  %6622 = vst [vmem:[#allocation32_spill] sm:$0xff] %v4131_v49  ;;  %v1665_v35 = vsel %vm1445_vm1, %v4115_v59, 0.0  ;;  %v4151_v60 = vmul.f32 %v4131_v49, %v4131_v49 }
 0x170   :  { %v1927_v46 = vadd.f32 %v1926_v21, %v1925_v0  ;;  %v1458_v0 = vadd.f32 %v1457_v6, %v1456_v26  ;;  %v2484_v6 = vsel %vm2332_vm4, %v3992_v2, 0.0  ;;  %v2068_v21 = vadd.f32 %v4027_v61, %v2066_v45 }
 0x171   :  { %v4100_v63 = vpop.f32.mrf.mxu0  ;;  %v2345_v55 = vadd.f32 %v4031_v9, %v2343_v27  ;;  %v4145_v45 = vsel %vm2055_vm3, %v4055_v10, 0.0  ;;  %v2483_v9 = vadd.f32 %v4049_v1, %v2481_v15  ;;  %v4163_v27 = vsel %vm1778_vm2, %v1590_v23, 0.0 }
 0x172   :  { %6621 = vst [vmem:[#allocation31_spill] sm:$0xff] %v4100_v63  ;;  %v1664_v63 = vadd.f32 %v1663_v31, %v1662_v48  ;;  %v1929_v26 = vadd.f32 %v1928_v4, %v1927_v46  ;;  %v4137_v48 = vsel %vm1445_vm1, %v4055_v10, 0.0  ;;  %v1460_v2 = vadd.f32 %v1459_v11, %v1458_v0 }
 0x173   :  { %v1015_v34 = vpop.f32.mrf.mxu0  ;;  %v1793_v4 = vadd.f32 %v1792_v52, %v1791_v24  ;;  %v2070_v11 = vadd.f32 %v2069_v22, %v2068_v21  ;;  %v1667_v50 = vsel %vm1445_vm1, %v4151_v60, 0.0  ;;  %v4168_v31 = vsel %vm2055_vm3, %v1590_v23, 0.0  ;;  %v4181_v24 = vpop.f32.mrf.mxu1 }
 0x174   :  { %v1666_v20 = vadd.f32 %v1665_v35, %v1664_v63  ;;  %v1931_v7 = vadd.f32 %v1930_v56, %v1929_v26  ;;  %v4171_v1 = vsel %vm2332_vm4, %v1590_v23, 0.0  ;;  %v1461_v34 = vsel %vm1445_vm1, %v4007_v30, 0.0 }
 0x175   :  { %v4119_v16 = vpop.f32.mrf.mxu0  ;;  %v1462_v63 = vadd.f32 %v1461_v34, %v1460_v2  ;;  %v1794_v0 = vsel %vm1778_vm2, %v4007_v30, 0.0  ;;  %v2208_v56 = vadd.f32 %v2207_v12, %v2206_v8  ;;  %v4179_v22 = vadd.f32 %v4009_v29, %v3856_v43 }
 0x176   :  { %v1668_v52 = vadd.f32 %v1667_v50, %v1666_v20  ;;  %v1795_v26 = vadd.f32 %v1794_v0, %v1793_v4  ;;  %v1932_v23 = vsel %vm1778_vm2, %v4017_v13, 0.0  ;;  %v2071_v21 = vsel %vm2055_vm3, %v4007_v30, 0.0 }
 0x177   :  { %v1018_v19 = vpop.f32.mrf.mxu0  ;;  %6623 = vst [vmem:[#allocation33_spill] sm:$0xff] %v4179_v22  ;;  %v1933_v2 = vadd.f32 %v1932_v23, %v1931_v7  ;;  %v2072_v35 = vadd.f32 %v2071_v21, %v2070_v11  ;;  %v1463_v12 = vsel %vm1445_vm1, %v4064_v44, 0.0  ;;  %v4193_v43 = vadd.f32 %v4098_v3, %v3852_v39  ;;  %v4209_v3 = vpop.f32.mrf.mxu1 }
 0x178   :  { %v2347_v19 = vadd.f32 %v2346_v5, %v2345_v55  ;;  %v2209_v8 = vsel %vm2055_vm3, %v4017_v13, 0.0  ;;  %v2348_v4 = vsel %vm2332_vm4, %v4007_v30, 0.0  ;;  %v2485_v20 = vadd.f32 %v2484_v6, %v2483_v9 }
 0x179   :  { %v4155_v61 = vpop.f32.mrf.mxu0  ;;  %6624 = vst [vmem:[#allocation34_spill] sm:$0xff] %v4193_v43  ;;  %v2486_v5 = vsel %vm2332_vm4, %v4017_v13, 0.0  ;;  %v2210_v55 = vadd.f32 %v2209_v8, %v2208_v56  ;;  %v1796_v7 = vsel %vm1778_vm2, %v4064_v44, 0.0  ;;  %v1594_v11 = vmul.f32 %v4179_v22, %v4179_v22  ;;  %v4232_v30 = vpop.f32.mrf.mxu1 }
 0x17a   :  { %v4207_v39 = vmul.f32 %v4193_v43, %v4193_v43  ;;  %v1464_v6 = vadd.f32 %v1463_v12, %v1462_v63  ;;  %v1934_v13 = vsel %vm1778_vm2, %v4082_v28, 0.0  ;;  %v2073_v9 = vsel %vm2055_vm3, %v4064_v44, 0.0 }
 0x17b   :  { %v1023_v46 = vpop.f32.mrf.mxu0  ;;  %v2211_v34 = vsel %vm2055_vm3, %v4082_v28, 0.0  ;;  %v2350_v0 = vsel %vm2332_vm4, %v4064_v44, 0.0  ;;  %v4223_v56 = vadd.f32 %v4066_v14, %v3860_v47  ;;  %v2487_v21 = vadd.f32 %v2486_v5, %v2485_v20 }
 0x17c   :  { %v2349_v46 = vadd.f32 %v2348_v4, %v2347_v19  ;;  %v1669_v23 = vsel %vm1445_vm1, %v4207_v39, 0.0  ;;  %v1467_v19 = vsel %vm1445_vm1, %v4094_v36, 0.0  ;;  %v1797_v12 = vadd.f32 %v1796_v7, %v1795_v26 }
 0x17d   :  { %v4183_v15 = vpop.f32.mrf.mxu0  ;;  %6625 = vst [vmem:[#allocation35_spill] sm:$0xff] %v4223_v56  ;;  %v1935_v8 = vadd.f32 %v1934_v13, %v1933_v2  ;;  %v2074_v4 = vadd.f32 %v2073_v9, %v2072_v35  ;;  %v2488_v10 = vsel %vm2332_vm4, %v4082_v28, 0.0  ;;  %v1671_v44 = vsel %vm1445_vm1, %v1594_v11, 0.0 }
 0x17e   :  { %v1800_v14 = vsel %vm1778_vm2, %v4094_v36, 0.0  ;;  %v2212_v20 = vadd.f32 %v2211_v34, %v2210_v55  ;;  %v2351_v5 = vadd.f32 %v2350_v0, %v2349_v46  ;;  %v2354_v26 = vsel %vm2332_vm4, %v4094_v36, 0.0  ;;  %v4260_v34 = vpop.f32.mrf.mxu1 }
 0x17f   :  { %v1026_v29 = vpop.f32.mrf.mxu0  ;;  %v1466_v28 = vadd.f32 %v4137_v48, %v1464_v6  ;;  %v4245_v2 = vmul.f32 %v4223_v56, %v4223_v56  ;;  %v1938_v7 = vsel %vm1778_vm2, %v4115_v59, 0.0  ;;  %v2215_v55 = vsel %vm2055_vm3, %v4115_v59, 0.0 }
 0x180   :  { %v1670_v29 = vadd.f32 %v1669_v23, %v1668_v52  ;;  %v2077_v52 = vsel %vm2055_vm3, %v4094_v36, 0.0  ;;  %v2489_v46 = vadd.f32 %v2488_v10, %v2487_v21  ;;  %v2492_v13 = vsel %vm2332_vm4, %v4115_v59, 0.0 }
 0x181   :  { %v4211_v50 = vpop.f32.mrf.mxu0  ;;  %v1937_v9 = vadd.f32 %v4163_v27, %v1935_v8  ;;  %v2076_v48 = vadd.f32 %v4145_v45, %v2074_v4  ;;  %v4258_v6 = vadd.f32 %v4153_v57, %v3864_v53  ;;  %v2214_v23 = vadd.f32 %v4168_v31, %v2212_v20 }
 0x182   :  { %v4268_v10 = vsel %vm1445_vm1, %v4179_v22, 0.0  ;;  %v4272_v59 = vsel %vm1778_vm2, %v4179_v22, 0.0  ;;  %v4276_v53 = vsel %vm2055_vm3, %v4179_v22, 0.0  ;;  %v1468_v45 = vadd.f32 %v1467_v19, %v1466_v28 }
 0x183   :  { %v1031_v63 = vpop.f32.mrf.mxu0  ;;  %6626 = vst [vmem:[#allocation36_spill] sm:$0xff] %v4258_v6  ;;  %v1673_v57 = vsel %vm1445_vm1, %v4245_v2, 0.0  ;;  %v4282_v27 = vmul.f32 %v4258_v6, %v4258_v6  ;;  %v2491_v31 = vadd.f32 %v4171_v1, %v2489_v46  ;;  %v4287_v21 = vsel %vm2332_vm4, %v4179_v22, 0.0 }
 0x184   :  { %v1672_v63 = vadd.f32 %v1671_v44, %v1670_v29  ;;  %v1799_v44 = vadd.f32 %v4141_v33, %v1797_v12  ;;  %v2353_v33 = vadd.f32 %v4160_v37, %v2351_v5  ;;  %v4290_v8 = vsel %vm1778_vm2, %v1594_v11, 0.0  ;;  %v4294_v5 = vpop.f32.mrf.mxu1 }
 0x185   :  { %v4234_v47 = vpop.f32.mrf.mxu0  ;;  %v1939_v19 = vadd.f32 %v1938_v7, %v1937_v9  ;;  %v2078_v4 = vadd.f32 %v2077_v52, %v2076_v48  ;;  %v1675_v20 = vsel %vm1445_vm1, %v4282_v27, 0.0  ;;  %v4299_v1 = vsel %vm2055_vm3, %v1594_v11, 0.0 }
 0x186   :  { %v1801_v12 = vadd.f32 %v1800_v14, %v1799_v44  ;;  %v1674_v29 = vadd.f32 %v1673_v57, %v1672_v63  ;;  %v1469_v14 = vsel %vm1445_vm1, %v4131_v49, 0.0  ;;  %v1802_v52 = vsel %vm1778_vm2, %v4131_v49, 0.0 }
 0x187   :  { %v1034_v35 = vpop.f32.mrf.mxu0  ;;  %v1470_v44 = vadd.f32 %v1469_v14, %v1468_v45  ;;  %v2216_v7 = vadd.f32 %v2215_v55, %v2214_v23  ;;  %v4310_v46 = vadd.f32 %v4117_v38, %v3884_v51  ;;  %v1940_v57 = vsel %vm1778_vm2, %v4151_v60, 0.0  ;;  %v4322_v51 = vpop.f32.mrf.mxu1 }
 0x188   :  { %v4302_v35 = vsel %vm2332_vm4, %v1594_v11, 0.0  ;;  %v1676_v63 = vadd.f32 %v1675_v20, %v1674_v29  ;;  %v1803_v48 = vadd.f32 %v1802_v52, %v1801_v12  ;;  %v2079_v11 = vsel %vm2055_vm3, %v4131_v49, 0.0 }
 0x189   :  { %v4262_v0 = vpop.f32.mrf.mxu0  ;;  %6627 = vst [vmem:[#allocation37_spill] sm:$0xff] %v4310_v46  ;;  %v1941_v22 = vadd.f32 %v1940_v57, %v1939_v19  ;;  %v2080_v29 = vadd.f32 %v2079_v11, %v2078_v4  ;;  %v1471_v45 = vsel %vm1445_vm1, %v4193_v43, 0.0  ;;  %v4320_v55 = vadd.f32 %v4209_v3, %v3869_v62 }
 0x18a   :  { %v2217_v23 = vsel %vm2055_vm3, %v4151_v60, 0.0  ;;  %v2356_v12 = vsel %vm2332_vm4, %v4131_v49, 0.0  ;;  %v1804_v4 = vsel %vm1778_vm2, %v4193_v43, 0.0  ;;  %v1598_v62 = vmul.f32 %v4310_v46, %v4310_v46 }
 0x18b   :  { %v1039_v37 = vpop.f32.mrf.mxu0  ;;  %6628 = vst [vmem:[#allocation38_spill] sm:$0xff] %v4320_v55  ;;  %v2218_v19 = vadd.f32 %v2217_v23, %v2216_v7  ;;  %v4338_v3 = vmul.f32 %v4320_v55, %v4320_v55  ;;  %v1472_v52 = vadd.f32 %v1471_v45, %v1470_v44  ;;  %v2358_v7 = vsel %vm2332_vm4, %v4193_v43, 0.0  ;;  %v4354_v44 = vpop.f32.mrf.mxu1 }
 0x18c   :  { %v2355_v37 = vadd.f32 %v2354_v26, %v2353_v33  ;;  %v2493_v26 = vadd.f32 %v2492_v13, %v2491_v31  ;;  %v2494_v33 = vsel %vm2332_vm4, %v4151_v60, 0.0  ;;  %v1942_v13 = vsel %vm1778_vm2, %v4207_v39, 0.0 }
 0x18d   :  { %v4296_v28 = vpop.f32.mrf.mxu0  ;;  %v2081_v60 = vsel %vm2055_vm3, %v4193_v43, 0.0  ;;  %v2219_v31 = vsel %vm2055_vm3, %v4207_v39, 0.0  ;;  %v1677_v57 = vsel %vm1445_vm1, %v4338_v3, 0.0  ;;  %v1475_v45 = vsel %vm1445_vm1, %v4223_v56, 0.0 }
 0x18e   :  { %v2357_v14 = vadd.f32 %v2356_v12, %v2355_v37  ;;  %v2495_v37 = vadd.f32 %v2494_v33, %v2493_v26  ;;  %v1805_v23 = vadd.f32 %v1804_v4, %v1803_v48  ;;  %v1678_v12 = vadd.f32 %v1677_v57, %v1676_v63  ;;  %v4374_v48 = vpop.f32.mrf.mxu1 }
 0x18f   :  { %v1042_v9 = vpop.f32.mrf.mxu0  ;;  %v2082_v49 = vadd.f32 %v2081_v60, %v2080_v29  ;;  %v2496_v43 = vsel %vm2332_vm4, %v4207_v39, 0.0  ;;  %v1808_v36 = vsel %vm1778_vm2, %v4223_v56, 0.0  ;;  %v2220_v32 = vadd.f32 %v2219_v31, %v2218_v19 }
 0x190   :  { %v4350_v9 = vadd.f32 %v4181_v24, %v3900_v25  ;;  %v1679_v25 = vsel %vm1445_vm1, %v1598_v62, 0.0  ;;  %v2085_v26 = vsel %vm2055_vm3, %v4223_v56, 0.0  ;;  %v2362_v63 = vsel %vm2332_vm4, %v4223_v56, 0.0 }
 0x191   :  { %v4324_v38 = vpop.f32.mrf.mxu0  ;;  %v1946_v33 = vsel %vm1778_vm2, %v4245_v2, 0.0  ;;  %v2223_v19 = vsel %vm2055_vm3, %v4245_v2, 0.0  ;;  %v1807_v4 = vadd.f32 %v4272_v59, %v1805_v23  ;;  %v4389_v60 = vadd.f32 %v4260_v34, %v3905_v41  ;;  %v4411_v34 = vpop.f32.mrf.mxu1 }
 0x192   :  { %6629 = vst [vmem:[#allocation39_spill] sm:$0xff] %v4324_v38  ;;  %6630 = vst [vmem:[#allocation40_spill] sm:$0xff] %v4350_v9  ;;  %v2359_v38 = vadd.f32 %v2358_v7, %v2357_v14  ;;  %v4372_v39 = vmul.f32 %v4350_v9, %v4350_v9  ;;  %v2497_v14 = vadd.f32 %v2496_v43, %v2495_v37  ;;  %v4395_v59 = vsel %vm1445_vm1, %v4310_v46, 0.0 }
 0x193   :  { %v1047_v20 = vpop.f32.mrf.mxu0  ;;  %6632 = vst [vmem:[#allocation42_spill] sm:$0xff] %v4389_v60  ;;  %v2222_v7 = vadd.f32 %v4299_v1, %v2220_v32  ;;  %v4399_v43 = vsel %vm1778_vm2, %v4310_v46, 0.0  ;;  %v4409_v32 = vmul.f32 %v4389_v60, %v4389_v60  ;;  %v1809_v1 = vadd.f32 %v1808_v36, %v1807_v4  ;;  %v4441_v4 = vpop.f32.mrf.mxu1 }
 0x194   :  { %v1943_v20 = vadd.f32 %v1942_v13, %v1941_v22  ;;  %v1474_v22 = vadd.f32 %v4268_v10, %v1472_v52  ;;  %v2500_v10 = vsel %vm2332_vm4, %v4245_v2, 0.0  ;;  %v2084_v13 = vadd.f32 %v4276_v53, %v2082_v49 }
 0x195   :  { %v4356_v11 = vpop.f32.mrf.mxu0  ;;  %v2361_v57 = vadd.f32 %v4287_v21, %v2359_v38  ;;  %v4403_v49 = vsel %vm2055_vm3, %v4310_v46, 0.0  ;;  %v1681_v41 = vsel %vm1445_vm1, %v4372_v39, 0.0  ;;  %v2499_v21 = vadd.f32 %v4302_v35, %v2497_v14 }
 0x196   :  { %6631 = vst [vmem:[#allocation41_spill] sm:$0xff] %v4356_v11  ;;  %v1680_v11 = vadd.f32 %v1679_v25, %v1678_v12  ;;  %v1945_v52 = vadd.f32 %v4290_v8, %v1943_v20  ;;  %v1476_v2 = vadd.f32 %v1475_v45, %v1474_v22  ;;  %v4418_v8 = vsel %vm2332_vm4, %v4310_v46, 0.0 }
 0x197   :  { %v1050_v24 = vpop.f32.mrf.mxu0  ;;  %v4421_v37 = vsel %vm1778_vm2, %v1598_v62, 0.0  ;;  %v2086_v23 = vadd.f32 %v2085_v26, %v2084_v13  ;;  %v1683_v12 = vsel %vm1445_vm1, %v4409_v32, 0.0  ;;  %v4426_v25 = vsel %vm2055_vm3, %v1598_v62, 0.0 }
 0x198   :  { %v1682_v38 = vadd.f32 %v1681_v41, %v1680_v11  ;;  %v1947_v45 = vadd.f32 %v1946_v33, %v1945_v52  ;;  %v4429_v35 = vsel %vm2332_vm4, %v1598_v62, 0.0  ;;  %v1477_v24 = vsel %vm1445_vm1, %v4258_v6, 0.0 }
 0x199   :  { %v4376_v29 = vpop.f32.mrf.mxu0  ;;  %v1478_v11 = vadd.f32 %v1477_v24, %v1476_v2  ;;  %v1810_v22 = vsel %vm1778_vm2, %v4258_v6, 0.0  ;;  %v1948_v26 = vsel %vm1778_vm2, %v4282_v27, 0.0  ;;  %v4439_v33 = vadd.f32 %v4232_v30, %v3925_v18 }
 0x19a   :  { %v1684_v36 = vadd.f32 %v1683_v12, %v1682_v38  ;;  %v1811_v62 = vadd.f32 %v1810_v22, %v1809_v1  ;;  %v2087_v52 = vsel %vm2055_vm3, %v4258_v6, 0.0  ;;  %v2224_v13 = vadd.f32 %v2223_v19, %v2222_v7 }
 0x19b   :  { %v1055_v31 = vpop.f32.mrf.mxu0  ;;  %6633 = vst [vmem:[#allocation43_spill] sm:$0xff] %v4439_v33  ;;  %v1949_v2 = vadd.f32 %v1948_v26, %v1947_v45  ;;  %v2088_v41 = vadd.f32 %v2087_v52, %v2086_v23  ;;  %v1479_v38 = vsel %vm1445_vm1, %v4320_v55, 0.0  ;;  %v4451_v12 = vadd.f32 %v4322_v51, %v3916_v54 }
 0x19c   :  { %v2363_v31 = vadd.f32 %v2362_v63, %v2361_v57  ;;  %v2225_v30 = vsel %vm2055_vm3, %v4282_v27, 0.0  ;;  %v2364_v1 = vsel %vm2332_vm4, %v4258_v6, 0.0  ;;  %v2502_v63 = vsel %vm2332_vm4, %v4282_v27, 0.0  ;;  %v4469_v57 = vpop.f32.mrf.mxu1 }
 0x19d   :  { %v4413_v53 = vpop.f32.mrf.mxu0  ;;  %6634 = vst [vmem:[#allocation44_spill] sm:$0xff] %v4451_v12  ;;  %v1812_v19 = vsel %vm1778_vm2, %v4320_v55, 0.0  ;;  %v1950_v7 = vsel %vm1778_vm2, %v4338_v3, 0.0  ;;  %v1602_v54 = vmul.f32 %v4439_v33, %v4439_v33  ;;  %v4467_v51 = vmul.f32 %v4451_v12, %v4451_v12 }
 0x19e   :  { %v1480_v27 = vadd.f32 %v1479_v38, %v1478_v11  ;;  %v2089_v23 = vsel %vm2055_vm3, %v4320_v55, 0.0  ;;  %v2227_v24 = vsel %vm2055_vm3, %v4338_v3, 0.0  ;;  %v2366_v22 = vsel %vm2332_vm4, %v4320_v55, 0.0  ;;  %v4490_v6 = vpop.f32.mrf.mxu1 }
 0x19f   :  { %v1058_v20 = vpop.f32.mrf.mxu0  ;;  %v4481_v26 = vadd.f32 %v4294_v5, %v3962_v40  ;;  %v1685_v52 = vsel %vm1445_vm1, %v4467_v51, 0.0  ;;  %v1951_v11 = vadd.f32 %v1950_v7, %v1949_v2  ;;  %v2090_v46 = vadd.f32 %v2089_v23, %v2088_v41 }
 0x1a0   :  { %v2501_v20 = vadd.f32 %v2500_v10, %v2499_v21  ;;  %v2226_v10 = vadd.f32 %v2225_v30, %v2224_v13  ;;  %v2365_v21 = vadd.f32 %v2364_v1, %v2363_v31  ;;  %v1813_v31 = vadd.f32 %v1812_v19, %v1811_v62 }
 0x1a1   :  { %v4443_v14 = vpop.f32.mrf.mxu0  ;;  %6635 = vst [vmem:[#allocation45_spill] sm:$0xff] %v4481_v26  ;;  %v1686_v38 = vadd.f32 %v1685_v52, %v1684_v36  ;;  %v1483_v30 = vsel %vm1445_vm1, %v4350_v9, 0.0  ;;  %v1816_v1 = vsel %vm1778_vm2, %v4350_v9, 0.0  ;;  %v1687_v55 = vsel %vm1445_vm1, %v1602_v54, 0.0 }
 0x1a2   :  { %v2503_v13 = vadd.f32 %v2502_v63, %v2501_v20  ;;  %v2228_v5 = vadd.f32 %v2227_v24, %v2226_v10  ;;  %v2367_v56 = vadd.f32 %v2366_v22, %v2365_v21  ;;  %v2504_v62 = vsel %vm2332_vm4, %v4338_v3, 0.0  ;;  %v4518_v24 = vpop.f32.mrf.mxu1 }
 0x1a3   :  { %v1063_v18 = vpop.f32.mrf.mxu0  ;;  %v1688_v2 = vadd.f32 %v1687_v55, %v1686_v38  ;;  %v2093_v36 = vsel %vm2055_vm3, %v4350_v9, 0.0  ;;  %v2370_v20 = vsel %vm2332_vm4, %v4350_v9, 0.0  ;;  %v1482_v41 = vadd.f32 %v4395_v59, %v1480_v27 }
 0x1a4   :  { %v4503_v63 = vmul.f32 %v4481_v26, %v4481_v26  ;;  %v1954_v7 = vsel %vm1778_vm2, %v4372_v39, 0.0  ;;  %v2231_v3 = vsel %vm2055_vm3, %v4372_v39, 0.0  ;;  %v1815_v55 = vadd.f32 %v4399_v43, %v1813_v31 }
 0x1a5   :  { %v4471_v45 = vpop.f32.mrf.mxu0  ;;  %v1953_v10 = vadd.f32 %v4421_v37, %v1951_v11  ;;  %v2508_v21 = vsel %vm2332_vm4, %v4372_v39, 0.0  ;;  %v2092_v59 = vadd.f32 %v4403_v49, %v2090_v46  ;;  %v2505_v27 = vadd.f32 %v2504_v62, %v2503_v13 }
 0x1a6   :  { %v4516_v23 = vadd.f32 %v4374_v48, %v3986_v58  ;;  %v2230_v52 = vadd.f32 %v4426_v25, %v2228_v5  ;;  %v2369_v43 = vadd.f32 %v4418_v8, %v2367_v56  ;;  %v4526_v37 = vsel %vm1445_vm1, %v4439_v33, 0.0  ;;  %v4555_v5 = vpop.f32.mrf.mxu1 }
 0x1a7   :  { %v1066_v18 = vpop.f32.mrf.mxu0  ;;  %v4530_v46 = vsel %vm1778_vm2, %v4439_v33, 0.0  ;;  %v4534_v58 = vsel %vm2055_vm3, %v4439_v33, 0.0  ;;  %v1484_v39 = vadd.f32 %v1483_v30, %v1482_v41  ;;  %v1689_v48 = vsel %vm1445_vm1, %v4503_v63, 0.0 }
 0x1a8   :  { %6636 = vst [vmem:[#allocation46_spill] sm:$0xff] %v4516_v23  ;;  %v4540_v49 = vmul.f32 %v4516_v23, %v4516_v23  ;;  %v4544_v8 = vsel %vm2332_vm4, %v4439_v33, 0.0  ;;  %v1817_v25 = vadd.f32 %v1816_v1, %v1815_v55  ;;  %v1955_v18 = vadd.f32 %v1954_v7, %v1953_v10 }
 0x1a9   :  { %v4492_v40 = vpop.f32.mrf.mxu0  ;;  %v1690_v13 = vadd.f32 %v1689_v48, %v1688_v2  ;;  %v2507_v31 = vadd.f32 %v4429_v35, %v2505_v27  ;;  %v4548_v11 = vsel %vm1778_vm2, %v1602_v54, 0.0  ;;  %v4551_v38 = vsel %vm2055_vm3, %v1602_v54, 0.0 }
 0x1aa   :  { %v1691_v30 = vsel %vm1445_vm1, %v4540_v49, 0.0  ;;  %v4560_v41 = vsel %vm2332_vm4, %v1602_v54, 0.0  ;;  %v1485_v1 = vsel %vm1445_vm1, %v4389_v60, 0.0  ;;  %v2094_v35 = vadd.f32 %v2093_v36, %v2092_v59 }
 0x1ab   :  { %v1071_v19 = vpop.f32.mrf.mxu0  ;;  %v1692_v2 = vadd.f32 %v1691_v30, %v1690_v13  ;;  %v1818_v7 = vsel %vm1778_vm2, %v4389_v60, 0.0  ;;  %v1956_v55 = vsel %vm1778_vm2, %v4409_v32, 0.0  ;;  %v4570_v10 = vadd.f32 %v4354_v44, %v4039_v17  ;;  %v4580_v30 = vpop.f32.mrf.mxu1 }
 0x1ac   :  { %v1486_v19 = vadd.f32 %v1485_v1, %v1484_v39  ;;  %v1819_v48 = vadd.f32 %v1818_v7, %v1817_v25  ;;  %v1957_v54 = vadd.f32 %v1956_v55, %v1955_v18  ;;  %v2371_v33 = vadd.f32 %v2370_v20, %v2369_v43  ;;  %v6639_v55 = vld [vmem:[#allocation29_spill] sm:$0xff] }
 0x1ad   :  { %v4520_v22 = vpop.f32.mrf.mxu0  ;;  %6637 = vst [vmem:[#allocation47_spill] sm:$0xff] %v4570_v10  ;;  %v2095_v36 = vsel %vm2055_vm3, %v4389_v60, 0.0  ;;  %v2509_v59 = vadd.f32 %v2508_v21, %v2507_v31  ;;  %v1487_v39 = vsel %vm1445_vm1, %v4451_v12, 0.0  ;;  %v4578_v13 = vadd.f32 %v4441_v4, %v4011_v42 }
 0x1ae   :  { %v2096_v44 = vadd.f32 %v2095_v36, %v2094_v35  ;;  %v2372_v20 = vsel %vm2332_vm4, %v4389_v60, 0.0  ;;  %v2510_v21 = vsel %vm2332_vm4, %v4409_v32, 0.0  ;;  %v1958_v42 = vsel %vm1778_vm2, %v4467_v51, 0.0  ;;  %v4612_v60 = vpop.f32.mrf.mxu1 }
 0x1af   :  { %v1074_v56 = vpop.f32.mrf.mxu0  ;;  %6638 = vst [vmem:[#allocation48_spill] sm:$0xff] %v4578_v13  ;;  %v4596_v4 = vmul.f32 %v4570_v10, %v4570_v10  ;;  %v4600_v43 = vmul.f32 %v4578_v13, %v4578_v13  ;;  %v2373_v31 = vadd.f32 %v2372_v20, %v2371_v33  ;;  %v1488_v1 = vadd.f32 %v1487_v39, %v1486_v19 }
 0x1b0   :  { %v2232_v56 = vadd.f32 %v2231_v3, %v2230_v52  ;;  %v2233_v3 = vsel %vm2055_vm3, %v4409_v32, 0.0  ;;  %v1820_v52 = vsel %vm1778_vm2, %v4451_v12, 0.0  ;;  %v2097_v32 = vsel %vm2055_vm3, %v4451_v12, 0.0 }
 0x1b1   :  { %v4557_v62 = vpop.f32.mrf.mxu0  ;;  %v2511_v35 = vadd.f32 %v2510_v21, %v2509_v59  ;;  %v2235_v7 = vsel %vm2055_vm3, %v4467_v51, 0.0  ;;  %v1693_v36 = vsel %vm1445_vm1, %v4600_v43, 0.0  ;;  %v1821_v33 = vadd.f32 %v1820_v52, %v1819_v48 }
 0x1b2   :  { %v2234_v18 = vadd.f32 %v2233_v3, %v2232_v56  ;;  %v1959_v19 = vadd.f32 %v1958_v42, %v1957_v54  ;;  %v2374_v56 = vsel %vm2332_vm4, %v4451_v12, 0.0  ;;  %v1694_v59 = vadd.f32 %v1693_v36, %v1692_v2 }
 0x1b3   :  { %v1079_v27 = vpop.f32.mrf.mxu0  ;;  %v1491_v39 = vsel %vm1445_vm1, %v4481_v26, 0.0  ;;  %v2098_v3 = vadd.f32 %v2097_v32, %v2096_v44  ;;  %v1695_v20 = vsel %vm1445_vm1, %v4596_v4, 0.0  ;;  %v1490_v48 = vadd.f32 %v4526_v37, %v1488_v1  ;;  %v4635_v32 = vpop.f32.mrf.mxu1 }
 0x1b4   :  { %v4608_v27 = vadd.f32 %v4411_v34, %v6639_v55  ;;  %v2512_v34 = vsel %vm2332_vm4, %v4467_v51, 0.0  ;;  %v1824_v55 = vsel %vm1778_vm2, %v4481_v26, 0.0  ;;  %v2236_v54 = vadd.f32 %v2235_v7, %v2234_v18 }
 0x1b5   :  { %v4582_v17 = vpop.f32.mrf.mxu0  ;;  %v1696_v52 = vadd.f32 %v1695_v20, %v1694_v59  ;;  %v2101_v2 = vsel %vm2055_vm3, %v4481_v26, 0.0  ;;  %v2378_v44 = vsel %vm2332_vm4, %v4481_v26, 0.0  ;;  %v2375_v42 = vadd.f32 %v2374_v56, %v2373_v31  ;;  %v6641_v20 = vld [vmem:[#allocation31_spill] sm:$0xff] }
 0x1b6   :  { %6640 = vst [vmem:[#allocation29_spill] sm:$0xff] %v4608_v27  ;;  %v4633_v51 = vmul.f32 %v4608_v27, %v4608_v27  ;;  %v1962_v37 = vsel %vm1778_vm2, %v4503_v63, 0.0  ;;  %v1823_v18 = vadd.f32 %v4530_v46, %v1821_v33  ;;  %v1961_v1 = vadd.f32 %v4548_v11, %v1959_v19 }
 0x1b7   :  { %v1082_v25 = vpop.f32.mrf.mxu0  ;;  %v2513_v7 = vadd.f32 %v2512_v34, %v2511_v35  ;;  %v2239_v59 = vsel %vm2055_vm3, %v4503_v63, 0.0  ;;  %v2516_v31 = vsel %vm2332_vm4, %v4503_v63, 0.0  ;;  %v2100_v56 = vadd.f32 %v4534_v58, %v2098_v3  ;;  %v4670_v58 = vpop.f32.mrf.mxu1 }
 0x1b8   :  { %v2238_v12 = vadd.f32 %v4551_v38, %v2236_v54  ;;  %v4655_v46 = vsel %vm1445_vm1, %v4570_v10, 0.0  ;;  %v1830_v11 = vsel %vm1778_vm2, %v4570_v10, 0.0  ;;  %v1492_v35 = vadd.f32 %v1491_v39, %v1490_v48 }
 0x1b9   :  { %v4614_v25 = vpop.f32.mrf.mxu0  ;;  %v2377_v33 = vadd.f32 %v4544_v8, %v2375_v42  ;;  %v4662_v63 = vsel %vm2055_vm3, %v4570_v10, 0.0  ;;  %v2515_v38 = vadd.f32 %v4560_v41, %v2513_v7  ;;  %v1825_v19 = vadd.f32 %v1824_v55, %v1823_v18 }
 0x1ba   :  { %v1963_v3 = vadd.f32 %v1962_v37, %v1961_v1  ;;  %v4675_v8 = vsel %vm2332_vm4, %v4570_v10, 0.0  ;;  %v1493_v34 = vsel %vm1445_vm1, %v4516_v23, 0.0  ;;  %v2102_v48 = vadd.f32 %v2101_v2, %v2100_v56  ;;  %v4691_v2 = vpop.f32.mrf.mxu1 }
 0x1bb   :  { %v1087_v21 = vpop.f32.mrf.mxu0  ;;  %v1968_v42 = vsel %vm1778_vm2, %v4596_v4, 0.0  ;;  %v1826_v41 = vsel %vm1778_vm2, %v4516_v23, 0.0  ;;  %v2240_v37 = vadd.f32 %v2239_v59, %v2238_v12  ;;  %v2379_v18 = vadd.f32 %v2378_v44, %v2377_v33 }
 0x1bc   :  { %v4650_v21 = vadd.f32 %v4490_v6, %v6641_v20  ;;  %v1697_v6 = vsel %vm1445_vm1, %v4633_v51, 0.0  ;;  %v1494_v20 = vadd.f32 %v1493_v34, %v1492_v35  ;;  %v4689_v1 = vadd.f32 %v4469_v57, %v4155_v61 }
 0x1bd   :  { %v4637_v36 = vpop.f32.mrf.mxu0  ;;  %v1698_v39 = vadd.f32 %v1697_v6, %v1696_v52  ;;  %v1964_v52 = vsel %vm1778_vm2, %v4540_v49, 0.0  ;;  %v1827_v7 = vadd.f32 %v1826_v41, %v1825_v19  ;;  %v2103_v35 = vsel %vm2055_vm3, %v4516_v23, 0.0 }
 0x1be   :  { %6642 = vst [vmem:[#allocation31_spill] sm:$0xff] %v4650_v21  ;;  %6643 = vst [vmem:[#allocation49_spill] sm:$0xff] %v4689_v1  ;;  %v1965_v56 = vadd.f32 %v1964_v52, %v1963_v3  ;;  %v2517_v6 = vadd.f32 %v2516_v31, %v2515_v38  ;;  %v2104_v34 = vadd.f32 %v2103_v35, %v2102_v48  ;;  %v1828_v12 = vsel %vm1778_vm2, %v4578_v13, 0.0 }
 0x1bf   :  { %v1090_v26 = vpop.f32.mrf.mxu0  ;;  %v4701_v44 = vadd.f32 %v4555_v5, %v4119_v16  ;;  %v2380_v61 = vsel %vm2332_vm4, %v4516_v23, 0.0  ;;  %v2518_v57 = vsel %vm2332_vm4, %v4540_v49, 0.0  ;;  %v1966_v59 = vsel %vm1778_vm2, %v4600_v43, 0.0  ;;  %v4721_v5 = vpop.f32.mrf.mxu1 }
 0x1c0   :  { %v4668_v26 = vmul.f32 %v4650_v21, %v4650_v21  ;;  %v4711_v31 = vadd.f32 %v4518_v24, %v4183_v15  ;;  %v2381_v38 = vadd.f32 %v2380_v61, %v2379_v18  ;;  %v4715_v19 = vmul.f32 %v4689_v1, %v4689_v1 }
 0x1c1   :  { %6644 = vst [vmem:[#allocation50_spill] sm:$0xff] %v4701_v44  ;;  %v4719_v16 = vmul.f32 %v4701_v44, %v4701_v44  ;;  %v1829_v3 = vadd.f32 %v1828_v12, %v1827_v7  ;;  %v2105_v48 = vsel %vm2055_vm3, %v4578_v13, 0.0  ;;  %v2243_v15 = vsel %vm2055_vm3, %v4600_v43, 0.0  ;;  %v4747_v61 = vpop.f32.mrf.mxu1 }
 0x1c2   :  { %v1699_v54 = vsel %vm1445_vm1, %v4668_v26, 0.0  ;;  %6645 = vst [vmem:[#allocation51_spill] sm:$0xff] %v4711_v31  ;;  %v1495_v24 = vsel %vm1445_vm1, %v4578_v13, 0.0  ;;  %v2382_v41 = vsel %vm2332_vm4, %v4578_v13, 0.0  ;;  %v4737_v18 = vmul.f32 %v4711_v31, %v4711_v31 }
 0x1c3   :  { %v1700_v55 = vadd.f32 %v1699_v54, %v1698_v39  ;;  %v2241_v39 = vsel %vm2055_vm3, %v4540_v49, 0.0  ;;  %v2519_v49 = vadd.f32 %v2518_v57, %v2517_v6  ;;  %v1967_v54 = vadd.f32 %v1966_v59, %v1965_v56 }
 0x1c4   :  { %v2242_v33 = vadd.f32 %v2241_v39, %v2240_v37  ;;  %v1701_v52 = vsel %vm1445_vm1, %v4719_v16, 0.0  ;;  %v2520_v37 = vsel %vm2332_vm4, %v4600_v43, 0.0  ;;  %v4741_v35 = vadd.f32 %v4612_v60, %v4211_v50 }
 0x1c5   :  { %v1702_v7 = vadd.f32 %v1701_v52, %v1700_v55  ;;  %v2245_v56 = vsel %vm2055_vm3, %v4596_v4, 0.0  ;;  %v2106_v6 = vadd.f32 %v2105_v48, %v2104_v34  ;;  %v1703_v12 = vsel %vm1445_vm1, %v4715_v19, 0.0 }
 0x1c6   :  { %6646 = vst [vmem:[#allocation52_spill] sm:$0xff] %v4741_v35  ;;  %v2244_v39 = vadd.f32 %v2243_v15, %v2242_v33  ;;  %v2522_v43 = vsel %vm2332_vm4, %v4596_v4, 0.0  ;;  %v1496_v57 = vadd.f32 %v1495_v24, %v1494_v20  ;;  %v1831_v59 = vadd.f32 %v1830_v11, %v1829_v3 }
 0x1c7   :  { %v1704_v55 = vadd.f32 %v1703_v12, %v1702_v7  ;;  %v1499_v50 = vsel %vm1445_vm1, %v4608_v27, 0.0  ;;  %v1969_v60 = vadd.f32 %v1968_v42, %v1967_v54  ;;  %v2383_v52 = vadd.f32 %v2382_v41, %v2381_v38 }
 0x1c8   :  { %v2521_v10 = vadd.f32 %v2520_v37, %v2519_v49  ;;  %v1832_v34 = vsel %vm1778_vm2, %v4608_v27, 0.0  ;;  %v2109_v33 = vsel %vm2055_vm3, %v4608_v27, 0.0  ;;  %v1705_v48 = vsel %vm1445_vm1, %v4737_v18, 0.0  ;;  %v4766_v49 = vpop.f32.mrf.mxu1 }
 0x1c9   :  { %v4761_v4 = vmul.f32 %v4741_v35, %v4741_v35  ;;  %v2386_v11 = vsel %vm2332_vm4, %v4608_v27, 0.0  ;;  %v2108_v42 = vadd.f32 %v4662_v63, %v2106_v6  ;;  %v2246_v20 = vadd.f32 %v2245_v56, %v2244_v39 }
 0x1ca   :  { %v1706_v38 = vadd.f32 %v1705_v48, %v1704_v55  ;;  %v1970_v3 = vsel %vm1778_vm2, %v4633_v51, 0.0  ;;  %v1498_v15 = vadd.f32 %v4655_v46, %v1496_v57  ;;  %v1833_v24 = vadd.f32 %v1832_v34, %v1831_v59  ;;  %v4788_v57 = vpop.f32.mrf.mxu1 }
 0x1cb   :  { %v1707_v54 = vsel %vm1445_vm1, %v4761_v4, 0.0  ;;  %v2385_v41 = vadd.f32 %v4675_v8, %v2383_v52  ;;  %v2523_v37 = vadd.f32 %v2522_v43, %v2521_v10  ;;  %v1971_v7 = vadd.f32 %v1970_v3, %v1969_v60 }
 0x1cc   :  { %v1708_v12 = vadd.f32 %v1707_v54, %v1706_v38  ;;  %v2247_v63 = vsel %vm2055_vm3, %v4633_v51, 0.0  ;;  %v2524_v56 = vsel %vm2332_vm4, %v4633_v51, 0.0  ;;  %v4780_v6 = vsel %vm1445_vm1, %v4689_v1, 0.0 }
 0x1cd   :  { %v1838_v46 = vsel %vm1778_vm2, %v4689_v1, 0.0  ;;  %v2115_v39 = vsel %vm2055_vm3, %v4689_v1, 0.0  ;;  %v1834_v10 = vsel %vm1778_vm2, %v4650_v21, 0.0  ;;  %v2110_v8 = vadd.f32 %v2109_v33, %v2108_v42 }
 0x1ce   :  { %v2248_v43 = vadd.f32 %v2247_v63, %v2246_v20  ;;  %v1500_v59 = vadd.f32 %v1499_v50, %v1498_v15  ;;  %v1835_v55 = vadd.f32 %v1834_v10, %v1833_v24  ;;  %v1972_v51 = vsel %vm1778_vm2, %v4668_v26, 0.0  ;;  %v4814_v15 = vpop.f32.mrf.mxu1 }
 0x1cf   :  { %v4794_v60 = vadd.f32 %v4670_v58, %v4234_v47  ;;  %v1973_v52 = vadd.f32 %v1972_v51, %v1971_v7  ;;  %v2111_v34 = vsel %vm2055_vm3, %v4650_v21, 0.0  ;;  %v2387_v48 = vadd.f32 %v2386_v11, %v2385_v41 }
 0x1d0   :  { %v2525_v38 = vadd.f32 %v2524_v56, %v2523_v37  ;;  %v2249_v33 = vsel %vm2055_vm3, %v4668_v26, 0.0  ;;  %v1836_v50 = vsel %vm1778_vm2, %v4701_v44, 0.0  ;;  %v4808_v47 = vadd.f32 %v4580_v30, %v4262_v0 }
 0x1d1   :  { %6647 = vst [vmem:[#allocation53_spill] sm:$0xff] %v4794_v60  ;;  %v4804_v42 = vmul.f32 %v4794_v60, %v4794_v60  ;;  %v2112_v58 = vadd.f32 %v2111_v34, %v2110_v8  ;;  %v2250_v20 = vadd.f32 %v2249_v33, %v2248_v43  ;;  %v2388_v11 = vsel %vm2332_vm4, %v4650_v21, 0.0  ;;  %v4838_v34 = vpop.f32.mrf.mxu1 }
 0x1d2   :  { %6648 = vst [vmem:[#allocation54_spill] sm:$0xff] %v4808_v47  ;;  %v2526_v3 = vsel %vm2332_vm4, %v4668_v26, 0.0  ;;  %v1974_v24 = vsel %vm1778_vm2, %v4719_v16, 0.0  ;;  %v2113_v54 = vsel %vm2055_vm3, %v4701_v44, 0.0  ;;  %v2251_v0 = vsel %vm2055_vm3, %v4719_v16, 0.0 }
 0x1d3   :  { %v1709_v30 = vsel %vm1445_vm1, %v4804_v42, 0.0  ;;  %v2389_v41 = vadd.f32 %v2388_v11, %v2387_v48  ;;  %v2527_v37 = vadd.f32 %v2526_v3, %v2525_v38  ;;  %v1837_v7 = vadd.f32 %v1836_v50, %v1835_v55 }
 0x1d4   :  { %v1710_v63 = vadd.f32 %v1709_v30, %v1708_v12  ;;  %v2390_v26 = vsel %vm2332_vm4, %v4701_v44, 0.0  ;;  %v2528_v56 = vsel %vm2332_vm4, %v4719_v16, 0.0  ;;  %v4830_v10 = vmul.f32 %v4808_v47, %v4808_v47  ;;  %v4860_v30 = vpop.f32.mrf.mxu1 }
 0x1d5   :  { %v4834_v8 = vadd.f32 %v4635_v32, %v4296_v28  ;;  %v1501_v43 = vsel %vm1445_vm1, %v4650_v21, 0.0  ;;  %v1975_v51 = vadd.f32 %v1974_v24, %v1973_v52  ;;  %v2114_v55 = vadd.f32 %v2113_v54, %v2112_v58 }
 0x1d6   :  { %v2252_v12 = vadd.f32 %v2251_v0, %v2250_v20  ;;  %v2392_v48 = vsel %vm2332_vm4, %v4689_v1, 0.0  ;;  %v1502_v16 = vadd.f32 %v1501_v43, %v1500_v59  ;;  %v1503_v38 = vsel %vm1445_vm1, %v4701_v44, 0.0  ;;  %v6650_v59 = vld [vmem:[#allocation39_spill] sm:$0xff] }
 0x1d7   :  { %6649 = vst [vmem:[#allocation55_spill] sm:$0xff] %v4834_v8  ;;  %v1711_v33 = vsel %vm1445_vm1, %v4830_v10, 0.0  ;;  %v1839_v28 = vadd.f32 %v1838_v46, %v1837_v7  ;;  %v2391_v32 = vadd.f32 %v2390_v26, %v2389_v41  ;;  %v2529_v50 = vadd.f32 %v2528_v56, %v2527_v37 }
 0x1d8   :  { %v1712_v11 = vadd.f32 %v1711_v33, %v1710_v63  ;;  %v1976_v52 = vsel %vm1778_vm2, %v4715_v19, 0.0  ;;  %v2253_v58 = vsel %vm2055_vm3, %v4715_v19, 0.0  ;;  %v4852_v20 = vmul.f32 %v4834_v8, %v4834_v8  ;;  %v4880_v33 = vpop.f32.mrf.mxu1 }
 0x1d9   :  { %v4856_v3 = vadd.f32 %v4721_v5, %v6650_v59  ;;  %v2530_v46 = vsel %vm2332_vm4, %v4715_v19, 0.0  ;;  %v1977_v24 = vadd.f32 %v1976_v52, %v1975_v51  ;;  %v2116_v54 = vadd.f32 %v2115_v39, %v2114_v55 }
 0x1da   :  { %v2254_v0 = vadd.f32 %v2253_v58, %v2252_v12  ;;  %v1507_v41 = vsel %vm1445_vm1, %v4711_v31, 0.0  ;;  %v1840_v37 = vsel %vm1778_vm2, %v4711_v31, 0.0  ;;  %v1504_v7 = vadd.f32 %v1503_v38, %v1502_v16 }
 0x1db   :  { %6651 = vst [vmem:[#allocation39_spill] sm:$0xff] %v4856_v3  ;;  %v1713_v63 = vsel %vm1445_vm1, %v4852_v20, 0.0  ;;  %v2393_v5 = vadd.f32 %v2392_v48, %v2391_v32  ;;  %v2531_v26 = vadd.f32 %v2530_v46, %v2529_v50  ;;  %v1841_v56 = vadd.f32 %v1840_v37, %v1839_v28 }
 0x1dc   :  { %v1714_v43 = vadd.f32 %v1713_v63, %v1712_v11  ;;  %v1978_v19 = vsel %vm1778_vm2, %v4737_v18, 0.0  ;;  %v2117_v39 = vsel %vm2055_vm3, %v4711_v31, 0.0  ;;  %v2255_v51 = vsel %vm2055_vm3, %v4737_v18, 0.0 }
 0x1dd   :  { %v4876_v55 = vmul.f32 %v4856_v3, %v4856_v3  ;;  %v2394_v12 = vsel %vm2332_vm4, %v4711_v31, 0.0  ;;  %v1979_v48 = vadd.f32 %v1978_v19, %v1977_v24  ;;  %v2118_v16 = vadd.f32 %v2117_v39, %v2116_v54 }
 0x1de   :  { %v2256_v38 = vadd.f32 %v2255_v51, %v2254_v0  ;;  %v2532_v28 = vsel %vm2332_vm4, %v4737_v18, 0.0  ;;  %v1506_v32 = vadd.f32 %v4780_v6, %v1504_v7  ;;  %v1842_v50 = vsel %vm1778_vm2, %v4741_v35, 0.0  ;;  %v6652_v6 = vld [vmem:[#allocation41_spill] sm:$0xff] }
 0x1df   :  { %v1715_v11 = vsel %vm1445_vm1, %v4876_v55, 0.0  ;;  %v1843_v52 = vadd.f32 %v1842_v50, %v1841_v56  ;;  %v2395_v58 = vadd.f32 %v2394_v12, %v2393_v5  ;;  %v2533_v59 = vadd.f32 %v2532_v28, %v2531_v26  ;;  %v4901_v26 = vpop.f32.mrf.mxu1 }
 0x1e0   :  { %v1716_v46 = vadd.f32 %v1715_v11, %v1714_v43  ;;  %v1980_v24 = vsel %vm1778_vm2, %v4761_v4, 0.0  ;;  %v2119_v54 = vsel %vm2055_vm3, %v4741_v35, 0.0  ;;  %v2257_v18 = vsel %vm2055_vm3, %v4761_v4, 0.0 }
 0x1e1   :  { %v4897_v0 = vadd.f32 %v4766_v49, %v6652_v6  ;;  %v1981_v37 = vadd.f32 %v1980_v24, %v1979_v48  ;;  %v2120_v7 = vadd.f32 %v2119_v54, %v2118_v16  ;;  %v2258_v63 = vadd.f32 %v2257_v18, %v2256_v38 }
 0x1e2   :  { %v2396_v5 = vsel %vm2332_vm4, %v4741_v35, 0.0  ;;  %v2534_v56 = vsel %vm2332_vm4, %v4761_v4, 0.0  ;;  %v1844_v43 = vsel %vm1778_vm2, %v4794_v60, 0.0  ;;  %v4913_v49 = vadd.f32 %v4691_v2, %v4376_v29 }
 0x1e3   :  { %6653 = vst [vmem:[#allocation41_spill] sm:$0xff] %v4897_v0  ;;  %v4909_v19 = vmul.f32 %v4897_v0, %v4897_v0  ;;  %v2397_v39 = vadd.f32 %v2396_v5, %v2395_v58  ;;  %v2535_v51 = vadd.f32 %v2534_v56, %v2533_v59  ;;  %v2121_v12 = vsel %vm2055_vm3, %v4794_v60, 0.0  ;;  %v4933_v58 = vpop.f32.mrf.mxu1 }
 0x1e4   :  { %6654 = vst [vmem:[#allocation56_spill] sm:$0xff] %v4913_v49  ;;  %v2398_v48 = vsel %vm2332_vm4, %v4794_v60, 0.0  ;;  %v1982_v4 = vsel %vm1778_vm2, %v4804_v42, 0.0  ;;  %v2259_v16 = vsel %vm2055_vm3, %v4804_v42, 0.0  ;;  %v2536_v38 = vsel %vm2332_vm4, %v4804_v42, 0.0 }
 0x1e5   :  { %v1717_v29 = vsel %vm1445_vm1, %v4909_v19, 0.0  ;;  %v4927_v2 = vadd.f32 %v1507_v41, %v1506_v32  ;;  %v4931_v28 = vsel %vm1445_vm1, %v4741_v35, 0.0  ;;  %v1845_v50 = vadd.f32 %v1844_v43, %v1843_v52 }
 0x1e6   :  { %6656 = vst [vmem:[#allocation58_spill] sm:$0xff] %v4931_v28  ;;  %v1718_v11 = vadd.f32 %v1717_v29, %v1716_v46  ;;  %v2122_v59 = vadd.f32 %v2121_v12, %v2120_v7  ;;  %v1846_v24 = vsel %vm1778_vm2, %v4808_v47, 0.0  ;;  %v4939_v42 = vmul.f32 %v4913_v49, %v4913_v49 }
 0x1e7   :  { %6655 = vst [vmem:[#allocation57_spill] sm:$0xff] %v4927_v2  ;;  %v4943_v41 = vadd.f32 %v4747_v61, %v4413_v53  ;;  %v1983_v32 = vadd.f32 %v1982_v4, %v1981_v37  ;;  %v2260_v54 = vadd.f32 %v2259_v16, %v2258_v63  ;;  %v2399_v18 = vadd.f32 %v2398_v48, %v2397_v39  ;;  %v4957_v63 = vpop.f32.mrf.mxu1 }
 0x1e8   :  { %v2537_v6 = vadd.f32 %v2536_v38, %v2535_v51  ;;  %v1984_v52 = vsel %vm1778_vm2, %v4830_v10, 0.0  ;;  %v2123_v46 = vsel %vm2055_vm3, %v4808_v47, 0.0  ;;  %v2261_v7 = vsel %vm2055_vm3, %v4830_v10, 0.0 }
 0x1e9   :  { %6657 = vst [vmem:[#allocation59_spill] sm:$0xff] %v4943_v41  ;;  %v1719_v5 = vsel %vm1445_vm1, %v4939_v42, 0.0  ;;  %v1847_v56 = vadd.f32 %v1846_v24, %v1845_v50  ;;  %v2400_v53 = vsel %vm2332_vm4, %v4808_v47, 0.0  ;;  %v2538_v61 = vsel %vm2332_vm4, %v4830_v10, 0.0 }
 0x1ea   :  { %v1720_v37 = vadd.f32 %v1719_v5, %v1718_v11  ;;  %v1848_v43 = vsel %vm1778_vm2, %v4834_v8, 0.0  ;;  %v2125_v39 = vsel %vm2055_vm3, %v4834_v8, 0.0  ;;  %v4965_v51 = vmul.f32 %v4943_v41, %v4943_v41 }
 0x1eb   :  { %v4969_v12 = vadd.f32 %v4814_v15, %v4443_v14  ;;  %v1985_v48 = vadd.f32 %v1984_v52, %v1983_v32  ;;  %v2124_v4 = vadd.f32 %v2123_v46, %v2122_v59  ;;  %v2262_v10 = vadd.f32 %v2261_v7, %v2260_v54  ;;  %v3161_v32 = vpop.f32.mrf.mxu1 }
 0x1ec   :  { %v1986_v16 = vsel %vm1778_vm2, %v4852_v20, 0.0  ;;  %v2401_v38 = vadd.f32 %v2400_v53, %v2399_v18  ;;  %v2539_v29 = vadd.f32 %v2538_v61, %v2537_v6  ;;  %v2263_v50 = vsel %vm2055_vm3, %v4852_v20, 0.0 }
 0x1ed   :  { %6658 = vst [vmem:[#allocation60_spill] sm:$0xff] %v4969_v12  ;;  %v1721_v11 = vsel %vm1445_vm1, %v4965_v51, 0.0  ;;  %v1849_v24 = vadd.f32 %v1848_v43, %v1847_v56  ;;  %v2126_v5 = vadd.f32 %v2125_v39, %v2124_v4  ;;  %v2402_v14 = vsel %vm2332_vm4, %v4834_v8, 0.0 }
 0x1ee   :  { %v1722_v15 = vadd.f32 %v1721_v11, %v1720_v37  ;;  %v1987_v59 = vadd.f32 %v1986_v16, %v1985_v48  ;;  %v2540_v54 = vsel %vm2332_vm4, %v4852_v20, 0.0  ;;  %v1850_v18 = vsel %vm1778_vm2, %v4856_v3, 0.0 }
 0x1ef   :  { %v4985_v6 = vmul.f32 %v4969_v12, %v4969_v12  ;;  %v2264_v52 = vadd.f32 %v2263_v50, %v2262_v10  ;;  %v1988_v46 = vsel %vm1778_vm2, %v4876_v55, 0.0  ;;  %v2127_v7 = vsel %vm2055_vm3, %v4856_v3, 0.0  ;;  %v1382_v10 = vpop.f32.mrf.mxu1 }
 0x1f0   :  { %v2265_v56 = vsel %vm2055_vm3, %v4876_v55, 0.0  ;;  %v2403_v53 = vadd.f32 %v2402_v14, %v2401_v38  ;;  %v2404_v20 = vsel %vm2332_vm4, %v4856_v3, 0.0  ;;  %v2542_v61 = vsel %vm2332_vm4, %v4876_v55, 0.0 }
 0x1f1   :  { %v1723_v37 = vsel %vm1445_vm1, %v4985_v6, 0.0  ;;  %v2541_v43 = vadd.f32 %v2540_v54, %v2539_v29  ;;  %v1851_v39 = vadd.f32 %v1850_v18, %v1849_v24  ;;  %v1852_v48 = vsel %vm1778_vm2, %v4897_v0, 0.0 }
 0x1f2   :  { %v1724_v4 = vadd.f32 %v1723_v37, %v1722_v15  ;;  %v1989_v16 = vadd.f32 %v1988_v46, %v1987_v59  ;;  %v2128_v50 = vadd.f32 %v2127_v7, %v2126_v5  ;;  %v2266_v11 = vadd.f32 %v2265_v56, %v2264_v52  ;;  %v3162_v7 = vpop.f32.mrf.mxu1 }
 0x1f3   :  { %v2129_v38 = vsel %vm2055_vm3, %v4897_v0, 0.0  ;;  %v2405_v14 = vadd.f32 %v2404_v20, %v2403_v53  ;;  %v2543_v35 = vadd.f32 %v2542_v61, %v2541_v43  ;;  %v1990_v55 = vsel %vm1778_vm2, %v4909_v19, 0.0 }
 0x1f4   :  { %v2406_v29 = vsel %vm2332_vm4, %v4897_v0, 0.0  ;;  %v1853_v24 = vadd.f32 %v1852_v48, %v1851_v39  ;;  %v2267_v54 = vsel %vm2055_vm3, %v4909_v19, 0.0  ;;  %v2544_v15 = vsel %vm2332_vm4, %v4909_v19, 0.0 }
 0x1f5   :  { %v5013_v5 = vadd.f32 %v4860_v30, %v4471_v45  ;;  %v2130_v59 = vadd.f32 %v2129_v38, %v2128_v50  ;;  %v1854_v18 = vsel %vm1778_vm2, %v4913_v49, 0.0  ;;  %v1992_v52 = vsel %vm1778_vm2, %v4939_v42, 0.0 }
 0x1f6   :  { %v2131_v46 = vsel %vm2055_vm3, %v4913_v49, 0.0  ;;  %v1991_v56 = vadd.f32 %v1990_v55, %v1989_v16  ;;  %v2407_v53 = vadd.f32 %v2406_v29, %v2405_v14  ;;  %v2269_v19 = vsel %vm2055_vm3, %v4939_v42, 0.0  ;;  %v6660_v29 = vld [vmem:[#allocation4_spill] sm:$0xff] }
 0x1f7   :  { %6659 = vst [vmem:[#allocation61_spill] sm:$0xff] %v5013_v5  ;;  %v2408_v45 = vsel %vm2332_vm4, %v4913_v49, 0.0  ;;  %v2268_v30 = vadd.f32 %v2267_v54, %v2266_v11  ;;  %v2545_v20 = vadd.f32 %v2544_v15, %v2543_v35  ;;  %v2546_v61 = vsel %vm2332_vm4, %v4939_v42, 0.0  ;;  %v1385_v11 = vpop.f32.mrf.mxu1 }
 0x1f8   :  { %v1856_v37 = vsel %vm1778_vm2, %v4943_v41, 0.0  ;;  %v1855_v43 = vadd.f32 %v1854_v18, %v1853_v24  ;;  %v1993_v39 = vadd.f32 %v1992_v52, %v1991_v56  ;;  %v2132_v48 = vadd.f32 %v2131_v46, %v2130_v59  ;;  %v6662_v18 = vld [vmem:[#allocation2_spill] sm:$0xff] }
 0x1f9   :  { %v1621_v16 = vmul.f32 %v5013_v5, %v5013_v5  ;;  %v2270_v50 = vadd.f32 %v2269_v19, %v2268_v30  ;;  %v2409_v38 = vadd.f32 %v2408_v45, %v2407_v53  ;;  %v1994_v14 = vsel %vm1778_vm2, %v4965_v51, 0.0 }
 0x1fa   :  { %v2133_v35 = vsel %vm2055_vm3, %v4943_v41, 0.0  ;;  %v2547_v55 = vadd.f32 %v2546_v61, %v2545_v20  ;;  %v1857_v42 = vadd.f32 %v1856_v37, %v1855_v43  ;;  %v5036_v54 = vadd.f32 %v3161_v32, %v6660_v29 }
 0x1fb   :  { %v1725_v24 = vsel %vm1445_vm1, %v1621_v16, 0.0  ;;  %v2271_v15 = vsel %vm2055_vm3, %v4965_v51, 0.0  ;;  %v2410_v59 = vsel %vm2332_vm4, %v4943_v41, 0.0  ;;  %v5044_v52 = vadd.f32 %v1382_v10, %v6662_v18  ;;  %v3165_v10 = vpop.f32.mrf.mxu1 }
 0x1fc   :  { %6661 = vst [vmem:[#allocation4_spill] sm:$0xff] %v5036_v54  ;;  %v1726_v46 = vadd.f32 %v1725_v24, %v1724_v4  ;;  %v1995_v56 = vadd.f32 %v1994_v14, %v1993_v39  ;;  %v2134_v53 = vadd.f32 %v2133_v35, %v2132_v48  ;;  %v2548_v19 = vsel %vm2332_vm4, %v4965_v51, 0.0 }
 0x1fd   :  { %6663 = vst [vmem:[#allocation2_spill] sm:$0xff] %v5044_v52  ;;  %v1858_v32 = vsel %vm1778_vm2, %v4969_v12, 0.0  ;;  %v1996_v45 = vsel %vm1778_vm2, %v4985_v6, 0.0  ;;  %v2135_v30 = vsel %vm2055_vm3, %v4969_v12, 0.0  ;;  %v2273_v20 = vsel %vm2055_vm3, %v4985_v6, 0.0 }
 0x1fe   :  { %v2412_v4 = vsel %vm2332_vm4, %v4969_v12, 0.0  ;;  %v2272_v61 = vadd.f32 %v2271_v15, %v2270_v50  ;;  %v2411_v37 = vadd.f32 %v2410_v59, %v2409_v38  ;;  %v2550_v51 = vsel %vm2332_vm4, %v4985_v6, 0.0  ;;  %v1398_v59 = vpop.f32.mrf.mxu1 }
 0x1ff   :  { %v1630_v43 = vmul.f32 %v5036_v54, %v5036_v54  ;;  %v2549_v39 = vadd.f32 %v2548_v19, %v2547_v55  ;;  %v1859_v48 = vadd.f32 %v1858_v32, %v1857_v42  ;;  %v1628_v14 = vmul.f32 %v5044_v52, %v5044_v52  ;;  %v6665_v42 = vld [vmem:[#allocation5_spill] sm:$0xff] }
 0x200   :  { %v5066_v35 = vadd.f32 %v4788_v57, %v4492_v40  ;;  %v1997_v29 = vadd.f32 %v1996_v45, %v1995_v56  ;;  %v2136_v24 = vadd.f32 %v2135_v30, %v2134_v53  ;;  %v2274_v18 = vadd.f32 %v2273_v20, %v2272_v61 }
 0x201   :  { %v2413_v50 = vadd.f32 %v2412_v4, %v2411_v37  ;;  %v2551_v38 = vadd.f32 %v2550_v51, %v2549_v39  ;;  %v5070_v6 = vsel %vm1778_vm2, %v5036_v54, 0.0  ;;  %v5074_v55 = vsel %vm2055_vm3, %v5036_v54, 0.0 }
 0x202   :  { %6664 = vst [vmem:[#allocation62_spill] sm:$0xff] %v5066_v35  ;;  %v5077_v15 = vadd.f32 %v3162_v7, %v6665_v42  ;;  %v5080_v40 = vsel %vm1445_vm1, %v1630_v43, 0.0  ;;  %v5084_v57 = vsel %vm2332_vm4, %v5036_v54, 0.0  ;;  %v5088_v56 = vsel %vm1778_vm2, %v5044_v52, 0.0  ;;  %v3166_v42 = vpop.f32.mrf.mxu1 }
 0x203   :  { %v1622_v53 = vmul.f32 %v5066_v35, %v5066_v35  ;;  %v5093_v19 = vsel %vm1778_vm2, %v1630_v43, 0.0  ;;  %v5096_v7 = vsel %vm2055_vm3, %v1630_v43, 0.0  ;;  %v5099_v32 = vsel %vm2332_vm4, %v1630_v43, 0.0 }
 0x204   :  { %6666 = vst [vmem:[#allocation5_spill] sm:$0xff] %v5077_v15  ;;  %6667 = vst [vmem:[#allocation63_spill] sm:$0xff] %v5099_v32  ;;  %v5102_v45 = vsel %vm1445_vm1, %v1628_v14, 0.0  ;;  %v5105_v30 = vsel %vm1778_vm2, %v1628_v14, 0.0  ;;  %v5109_v20 = vsel %vm2055_vm3, %v5044_v52, 0.0  ;;  %v1860_v4 = vsel %vm1778_vm2, %v5013_v5, 0.0 }
 0x205   :  { %v1727_v61 = vsel %vm1445_vm1, %v1622_v53, 0.0  ;;  %v1998_v37 = vsel %vm1778_vm2, %v1621_v16, 0.0  ;;  %v2137_v51 = vsel %vm2055_vm3, %v5013_v5, 0.0  ;;  %v2414_v43 = vsel %vm2332_vm4, %v5013_v5, 0.0 }
 0x206   :  { %v1728_v39 = vadd.f32 %v1727_v61, %v1726_v46  ;;  %v5120_v31 = vsel %vm2055_vm3, %v1628_v14, 0.0  ;;  %v2275_v1 = vsel %vm2055_vm3, %v1621_v16, 0.0  ;;  %v2552_v44 = vsel %vm2332_vm4, %v1621_v16, 0.0  ;;  %v6669_v46 = vld [vmem:[#allocation3_spill] sm:$0xff] }
 0x207   :  { %v5126_v21 = vmul.f32 %v5077_v15, %v5077_v15  ;;  %v5130_v27 = vsel %vm2332_vm4, %v5044_v52, 0.0  ;;  %v5133_v13 = vsel %vm2332_vm4, %v1628_v14, 0.0  ;;  %v5136_v61 = vadd.f32 %v1385_v11, %v6669_v46  ;;  %v1401_v11 = vpop.f32.mrf.mxu1 }
 0x208   :  { %v5140_v23 = vadd.f32 %v4838_v34, %v4520_v22  ;;  %v1861_v9 = vadd.f32 %v1860_v4, %v1859_v48  ;;  %v1999_v16 = vadd.f32 %v1998_v37, %v1997_v29  ;;  %v2138_v54 = vadd.f32 %v2137_v51, %v2136_v24  ;;  %v6676_v48 = vld [vmem:[#allocation8_spill] sm:$0xff]  ;;  %v6678_v24 = vld [vmem:[#allocation6_spill] sm:$0xff]  ;;  %v6680_v4 = vld [vmem:[#allocation9_spill] sm:$0xff] }
 0x209   :  { %6668 = vst [vmem:[#allocation64_spill] sm:$0xff] %v5126_v21  ;;  %6670 = vst [vmem:[#allocation3_spill] sm:$0xff] %v5136_v61  ;;  %v2415_v5 = vadd.f32 %v2414_v43, %v2413_v50  ;;  %v2276_v12 = vadd.f32 %v2275_v1, %v2274_v18  ;;  %v2553_v41 = vadd.f32 %v2552_v44, %v2551_v38  ;;  %v5144_v52 = vsel %vm1778_vm2, %v5077_v15, 0.0  ;;  %v6682_v51 = vld [vmem:[#allocation7_spill] sm:$0xff] }
 0x20a   :  { %6671 = vst [vmem:[#allocation65_spill] sm:$0xff] %v5140_v23  ;;  %v5148_v14 = vsel %vm2055_vm3, %v5077_v15, 0.0  ;;  %v5152_v46 = vsel %vm1778_vm2, %v5126_v21, 0.0  ;;  %v5156_v22 = vsel %vm2055_vm3, %v5126_v21, 0.0  ;;  %v5160_v1 = vsel %vm2332_vm4, %v5077_v15, 0.0 }
 0x20b   :  { %6672 = vst [vmem:[#allocation66_spill] sm:$0xff] %v5152_v46  ;;  %6673 = vst [vmem:[#allocation67_spill] sm:$0xff] %v5156_v22  ;;  %v5164_v44 = vsel %vm2332_vm4, %v5126_v21, 0.0  ;;  %v1629_v34 = vmul.f32 %v5136_v61, %v5136_v61  ;;  %v5169_v29 = vadd.f32 %v3165_v10, %v6676_v48  ;;  %v5172_v18 = vadd.f32 %v1398_v59, %v6678_v24 }
 0x20c   :  { %6674 = vst [vmem:[#allocation68_spill] sm:$0xff] %v5160_v1  ;;  %6675 = vst [vmem:[#allocation69_spill] sm:$0xff] %v5164_v44  ;;  %v1623_v50 = vmul.f32 %v5140_v23, %v5140_v23  ;;  %v5178_v38 = vsel %vm1778_vm2, %v5136_v61, 0.0  ;;  %v5181_v37 = vadd.f32 %v3166_v42, %v6680_v4  ;;  %v5184_v43 = vadd.f32 %v1401_v11, %v6682_v51 }
 0x20d   :  { %6677 = vst [vmem:[#allocation8_spill] sm:$0xff] %v5169_v29  ;;  %6679 = vst [vmem:[#allocation6_spill] sm:$0xff] %v5172_v18  ;;  %v5188_v10 = vadd.f32 %v4901_v26, %v4557_v62  ;;  %v5192_v59 = vsel %vm2055_vm3, %v5136_v61, 0.0  ;;  %v1862_v48 = vsel %vm1778_vm2, %v5066_v35, 0.0  ;;  %v2000_v24 = vsel %vm1778_vm2, %v1622_v53, 0.0 }
 0x20e   :  { %6681 = vst [vmem:[#allocation9_spill] sm:$0xff] %v5181_v37  ;;  %6683 = vst [vmem:[#allocation7_spill] sm:$0xff] %v5184_v43  ;;  %v1729_v15 = vsel %vm1445_vm1, %v1623_v50, 0.0  ;;  %v2139_v42 = vsel %vm2055_vm3, %v5066_v35, 0.0  ;;  %v2277_v11 = vsel %vm2055_vm3, %v1622_v53, 0.0  ;;  %v2416_v62 = vsel %vm2332_vm4, %v5066_v35, 0.0 }
 0x20f   :  { %6684 = vst [vmem:[#allocation70_spill] sm:$0xff] %v5188_v10  ;;  %v1730_v26 = vadd.f32 %v1729_v15, %v1728_v39  ;;  %v5204_v4 = vsel %vm1445_vm1, %v1629_v34, 0.0  ;;  %v5208_v51 = vsel %vm2332_vm4, %v5136_v61, 0.0  ;;  %v2554_v49 = vsel %vm2332_vm4, %v1622_v53, 0.0 }
 0x210   :  { %v5213_v0 = vmul.f32 %v5169_v29, %v5169_v29  ;;  %v5216_v3 = vsel %vm1778_vm2, %v1629_v34, 0.0  ;;  %v5219_v8 = vsel %vm2055_vm3, %v1629_v34, 0.0  ;;  %v5222_v15 = vsel %vm2332_vm4, %v1629_v34, 0.0  ;;  %v3169_v34 = vpop.f32.mrf.mxu1 }
 0x211   :  { %v1863_v39 = vadd.f32 %v1862_v48, %v1861_v9  ;;  %v2001_v35 = vadd.f32 %v2000_v24, %v1999_v16  ;;  %v2140_v47 = vadd.f32 %v2139_v42, %v2138_v54  ;;  %v2278_v61 = vadd.f32 %v2277_v11, %v2276_v12 }
 0x212   :  { %6685 = vst [vmem:[#allocation71_spill] sm:$0xff] %v5213_v0  ;;  %v2417_v21 = vadd.f32 %v2416_v62, %v2415_v5  ;;  %v2555_v60 = vadd.f32 %v2554_v49, %v2553_v41  ;;  %v5226_v53 = vsel %vm1778_vm2, %v5169_v29, 0.0  ;;  %v5230_v28 = vsel %vm2055_vm3, %v5169_v29, 0.0 }
 0x213   :  { %6686 = vst [vmem:[#allocation72_spill] sm:$0xff] %v5226_v53  ;;  %6687 = vst [vmem:[#allocation73_spill] sm:$0xff] %v5230_v28  ;;  %v5234_v2 = vsel %vm2332_vm4, %v5169_v29, 0.0  ;;  %v5238_v9 = vsel %vm1778_vm2, %v5213_v0, 0.0  ;;  %v5242_v49 = vsel %vm2055_vm3, %v5213_v0, 0.0  ;;  %v5246_v41 = vsel %vm2332_vm4, %v5213_v0, 0.0 }
 0x214   :  { %6688 = vst [vmem:[#allocation74_spill] sm:$0xff] %v5234_v2  ;;  %6689 = vst [vmem:[#allocation75_spill] sm:$0xff] %v5238_v9  ;;  %v5250_v12 = vmul.f32 %v5172_v18, %v5172_v18  ;;  %v5254_v5 = vsel %vm1778_vm2, %v5172_v18, 0.0  ;;  %v5258_v54 = vsel %vm2055_vm3, %v5172_v18, 0.0  ;;  %v5262_v16 = vsel %vm2332_vm4, %v5172_v18, 0.0  ;;  %v6714_v28 = vld [vmem:[#allocation11_spill] sm:$0xff] }
 0x215   :  { %6690 = vst [vmem:[#allocation76_spill] sm:$0xff] %v5242_v49  ;;  %6691 = vst [vmem:[#allocation77_spill] sm:$0xff] %v5246_v41  ;;  %v1624_v48 = vmul.f32 %v5188_v10, %v5188_v10  ;;  %v1864_v24 = vsel %vm1778_vm2, %v5140_v23, 0.0  ;;  %v2002_v42 = vsel %vm1778_vm2, %v1623_v50, 0.0  ;;  %v2141_v11 = vsel %vm2055_vm3, %v5140_v23, 0.0  ;;  %v1414_v41 = vpop.f32.mrf.mxu1 }
 0x216   :  { %6692 = vst [vmem:[#allocation78_spill] sm:$0xff] %v5250_v12  ;;  %6693 = vst [vmem:[#allocation79_spill] sm:$0xff] %v5262_v16  ;;  %v2279_v62 = vsel %vm2055_vm3, %v1623_v50, 0.0  ;;  %v2418_v29 = vsel %vm2332_vm4, %v5140_v23, 0.0  ;;  %v2556_v0 = vsel %vm2332_vm4, %v1623_v50, 0.0  ;;  %v5277_v18 = vmul.f32 %v5181_v37, %v5181_v37 }
 0x217   :  { %v1731_v2 = vsel %vm1445_vm1, %v1624_v48, 0.0  ;;  %v5282_v9 = vsel %vm1778_vm2, %v5250_v12, 0.0  ;;  %v5286_v44 = vsel %vm2055_vm3, %v5250_v12, 0.0  ;;  %v5290_v23 = vmul.f32 %v5184_v43, %v5184_v43 }
 0x218   :  { %6694 = vst [vmem:[#allocation80_spill] sm:$0xff] %v5277_v18  ;;  %6695 = vst [vmem:[#allocation81_spill] sm:$0xff] %v5282_v9  ;;  %v1732_v50 = vadd.f32 %v1731_v2, %v1730_v26  ;;  %v5294_v49 = vsel %vm2332_vm4, %v5250_v12, 0.0  ;;  %v1865_v16 = vadd.f32 %v1864_v24, %v1863_v39  ;;  %v2003_v46 = vadd.f32 %v2002_v42, %v2001_v35 }
 0x219   :  { %6696 = vst [vmem:[#allocation82_spill] sm:$0xff] %v5286_v44  ;;  %6697 = vst [vmem:[#allocation83_spill] sm:$0xff] %v5290_v23  ;;  %v2142_v53 = vadd.f32 %v2141_v11, %v2140_v47  ;;  %v2280_v32 = vadd.f32 %v2279_v62, %v2278_v61  ;;  %v2419_v1 = vadd.f32 %v2418_v29, %v2417_v21  ;;  %v5302_v44 = vsel %vm1778_vm2, %v5181_v37, 0.0 }
 0x21a   :  { %6698 = vst [vmem:[#allocation84_spill] sm:$0xff] %v5294_v49  ;;  %v2557_v22 = vadd.f32 %v2556_v0, %v2555_v60  ;;  %v5298_v9 = vadd.f32 %v4957_v63, %v4582_v17  ;;  %6700 = vst [vmem:[#allocation86_spill] sm:$0xff] %v5302_v44  ;;  %v5306_v2 = vsel %vm1778_vm2, %v5277_v18, 0.0  ;;  %v5310_v26 = vsel %vm2055_vm3, %v5181_v37, 0.0  ;;  %v3170_v60 = vpop.f32.mrf.mxu1 }
 0x21b   :  { %6701 = vst [vmem:[#allocation87_spill] sm:$0xff] %v5306_v2  ;;  %6702 = vst [vmem:[#allocation88_spill] sm:$0xff] %v5310_v26  ;;  %v5314_v21 = vsel %vm2332_vm4, %v5181_v37, 0.0  ;;  %v5318_v17 = vsel %vm2055_vm3, %v5277_v18, 0.0  ;;  %v5322_v47 = vsel %vm2332_vm4, %v5277_v18, 0.0  ;;  %v5326_v0 = vsel %vm1778_vm2, %v5184_v43, 0.0 }
 0x21c   :  { %6699 = vst [vmem:[#allocation85_spill] sm:$0xff] %v5298_v9  ;;  %6703 = vst [vmem:[#allocation89_spill] sm:$0xff] %v5314_v21  ;;  %v5330_v63 = vsel %vm1778_vm2, %v5290_v23, 0.0  ;;  %v5334_v35 = vsel %vm2055_vm3, %v5184_v43, 0.0  ;;  %v5338_v61 = vsel %vm2055_vm3, %v5290_v23, 0.0  ;;  %v1866_v29 = vsel %vm1778_vm2, %v5188_v10, 0.0  ;;  %v1417_v49 = vpop.f32.mrf.mxu1 }
 0x21d   :  { %6704 = vst [vmem:[#allocation90_spill] sm:$0xff] %v5318_v17  ;;  %6705 = vst [vmem:[#allocation91_spill] sm:$0xff] %v5322_v47  ;;  %v1625_v39 = vmul.f32 %v5298_v9, %v5298_v9  ;;  %v2004_v24 = vsel %vm1778_vm2, %v1624_v48, 0.0  ;;  %v2143_v42 = vsel %vm2055_vm3, %v5188_v10, 0.0  ;;  %v2281_v11 = vsel %vm2055_vm3, %v1624_v48, 0.0  ;;  %v6709_v18 = vld [vmem:[#allocation12_spill] sm:$0xff] }
 0x21e   :  { %6706 = vst [vmem:[#allocation92_spill] sm:$0xff] %v5326_v0  ;;  %6707 = vst [vmem:[#allocation93_spill] sm:$0xff] %v5330_v63  ;;  %v2420_v62 = vsel %vm2332_vm4, %v5188_v10, 0.0  ;;  %v2558_v37 = vsel %vm2332_vm4, %v1624_v48, 0.0  ;;  %v5352_v12 = vadd.f32 %v3169_v34, %v6709_v18  ;;  %v6710_v21 = vld [vmem:[#allocation10_spill] sm:$0xff]  ;;  %v5360_v17 = vsel %vm2332_vm4, %v5184_v43, 0.0 }
 0x21f   :  { %6708 = vst [vmem:[#allocation94_spill] sm:$0xff] %v5338_v61  ;;  %v5355_v47 = vadd.f32 %v1414_v41, %v6710_v21  ;;  %v1733_v2 = vsel %vm1445_vm1, %v1625_v39, 0.0  ;;  %6711 = vst [vmem:[#allocation12_spill] sm:$0xff] %v5360_v17  ;;  %v5364_v63 = vsel %vm2332_vm4, %v5290_v23, 0.0  ;;  %v1867_v10 = vadd.f32 %v1866_v29, %v1865_v16  ;;  %v6713_v26 = vld [vmem:[#allocation13_spill] sm:$0xff] }
 0x220   :  { %6712 = vst [vmem:[#allocation10_spill] sm:$0xff] %v5364_v63  ;;  %v1734_v61 = vadd.f32 %v1733_v2, %v1732_v50  ;;  %v2005_v48 = vadd.f32 %v2004_v24, %v2003_v46  ;;  %v2144_v44 = vadd.f32 %v2143_v42, %v2142_v53  ;;  %v2421_v18 = vadd.f32 %v2420_v62, %v2419_v1  ;;  %v3173_v42 = vpop.f32.mrf.mxu1 }
 0x221   :  { %v1868_v34 = vsel %vm1778_vm2, %v5298_v9, 0.0  ;;  %v2282_v41 = vadd.f32 %v2281_v11, %v2280_v32  ;;  %v2559_v21 = vadd.f32 %v2558_v37, %v2557_v22  ;;  %v5369_v0 = vadd.f32 %v3170_v60, %v6713_v26 }
 0x222   :  { %v5372_v43 = vadd.f32 %v1417_v49, %v6714_v28  ;;  %v5376_v23 = vmul.f32 %v5352_v12, %v5352_v12  ;;  %v5380_v46 = vsel %vm2332_vm4, %v5352_v12, 0.0  ;;  %v5384_v1 = vmul.f32 %v5355_v47, %v5355_v47 }
 0x223   :  { %6716 = vst [vmem:[#allocation11_spill] sm:$0xff] %v5380_v46  ;;  %v5388_v32 = vadd.f32 %v4880_v33, %v4614_v25  ;;  %v5392_v28 = vsel %vm1778_vm2, %v5355_v47, 0.0  ;;  %v1869_v22 = vadd.f32 %v1868_v34, %v1867_v10  ;;  %v2145_v37 = vsel %vm2055_vm3, %v5298_v9, 0.0 }
 0x224   :  { %6715 = vst [vmem:[#allocation13_spill] sm:$0xff] %v5376_v23  ;;  %v2422_v53 = vsel %vm2332_vm4, %v5298_v9, 0.0  ;;  %v2006_v49 = vsel %vm1778_vm2, %v1625_v39, 0.0  ;;  %v2283_v16 = vsel %vm2055_vm3, %v1625_v39, 0.0  ;;  %v2560_v50 = vsel %vm2332_vm4, %v1625_v39, 0.0 }
 0x225   :  { %6717 = vst [vmem:[#allocation95_spill] sm:$0xff] %v5388_v32  ;;  %v1626_v25 = vmul.f32 %v5388_v32, %v5388_v32  ;;  %v1870_v33 = vsel %vm1778_vm2, %v5388_v32, 0.0  ;;  %v2147_v10 = vsel %vm2055_vm3, %v5388_v32, 0.0  ;;  %v2424_v2 = vsel %vm2332_vm4, %v5388_v32, 0.0 }
 0x226   :  { %v5411_v26 = vadd.f32 %v4933_v58, %v4637_v36  ;;  %v2146_v60 = vadd.f32 %v2145_v37, %v2144_v44  ;;  %v2423_v29 = vadd.f32 %v2422_v53, %v2421_v18  ;;  %v2007_v11 = vadd.f32 %v2006_v49, %v2005_v48  ;;  %v1430_v18 = vpop.f32.mrf.mxu1 }
 0x227   :  { %v1735_v39 = vsel %vm1445_vm1, %v1626_v25, 0.0  ;;  %v2008_v24 = vsel %vm1778_vm2, %v1626_v25, 0.0  ;;  %v2284_v62 = vadd.f32 %v2283_v16, %v2282_v41  ;;  %v2561_v34 = vadd.f32 %v2560_v50, %v2559_v21 }
 0x228   :  { %v1736_v9 = vadd.f32 %v1735_v39, %v1734_v61  ;;  %v1871_v46 = vadd.f32 %v1870_v33, %v1869_v22  ;;  %v2148_v17 = vadd.f32 %v2147_v10, %v2146_v60  ;;  %v2285_v63 = vsel %vm2055_vm3, %v1626_v25, 0.0 }
 0x229   :  { %v2425_v32 = vadd.f32 %v2424_v2, %v2423_v29  ;;  %v2009_v23 = vadd.f32 %v2008_v24, %v2007_v11  ;;  %v1627_v36 = vmul.f32 %v5411_v26, %v5411_v26  ;;  %v1872_v58 = vsel %vm1778_vm2, %v5411_v26, 0.0 }
 0x22a   :  { %v2149_v44 = vsel %vm2055_vm3, %v5411_v26, 0.0  ;;  %v2562_v48 = vsel %vm2332_vm4, %v1626_v25, 0.0  ;;  %v1873_v41 = vadd.f32 %v1872_v58, %v1871_v46  ;;  %v2426_v21 = vsel %vm2332_vm4, %v5411_v26, 0.0  ;;  %v6718_v58 = vld [vmem:[#allocation16_spill] sm:$0xff] }
 0x22b   :  { %v2150_v61 = vadd.f32 %v2149_v44, %v2148_v17  ;;  %v2286_v22 = vadd.f32 %v2285_v63, %v2284_v62  ;;  %v1737_v37 = vsel %vm1445_vm1, %v1627_v36, 0.0  ;;  %v2010_v53 = vsel %vm1778_vm2, %v1627_v36, 0.0 }
 0x22c   :  { %v2287_v49 = vsel %vm2055_vm3, %v1627_v36, 0.0  ;;  %v1738_v16 = vadd.f32 %v1737_v37, %v1736_v9  ;;  %v1875_v50 = vadd.f32 %v5088_v56, %v1873_v41  ;;  %v2011_v33 = vadd.f32 %v2010_v53, %v2009_v23  ;;  %v3174_v9 = vpop.f32.mrf.mxu1 }
 0x22d   :  { %v2152_v10 = vadd.f32 %v5109_v20, %v2150_v61  ;;  %v2563_v25 = vadd.f32 %v2562_v48, %v2561_v34  ;;  %v2288_v2 = vadd.f32 %v2287_v49, %v2286_v22  ;;  %v2427_v46 = vadd.f32 %v2426_v21, %v2425_v32 }
 0x22e   :  { %v2564_v17 = vsel %vm2332_vm4, %v1627_v36, 0.0  ;;  %v2167_v63 = vsel %vm2055_vm3, %v5355_v47, 0.0  ;;  %v1740_v60 = vadd.f32 %v5102_v45, %v1738_v16  ;;  %v1877_v29 = vadd.f32 %v5178_v38, %v1875_v50  ;;  %v1433_v34 = vpop.f32.mrf.mxu1  ;;  %v6722_v16 = vld [vmem:[#allocation73_spill] sm:$0xff] }
 0x22f   :  { %v2154_v39 = vadd.f32 %v5192_v59, %v2152_v10  ;;  %v2013_v56 = vadd.f32 %v5105_v30, %v2011_v33  ;;  %v2290_v23 = vadd.f32 %v5120_v31, %v2288_v2  ;;  %v2429_v20 = vadd.f32 %v5130_v27, %v2427_v46  ;;  %v6724_v10 = vld [vmem:[#allocation67_spill] sm:$0xff]  ;;  %v6725_v2 = vld [vmem:[#allocation68_spill] sm:$0xff] }
 0x230   :  { %v2565_v24 = vadd.f32 %v2564_v17, %v2563_v25  ;;  %v5441_v32 = vsel %vm2332_vm4, %v5355_v47, 0.0  ;;  %v1742_v11 = vadd.f32 %v5204_v4, %v1740_v60  ;;  %v1879_v45 = vadd.f32 %v5070_v6, %v1877_v29  ;;  %v6726_v29 = vld [vmem:[#allocation63_spill] sm:$0xff] }
 0x231   :  { %v2156_v38 = vadd.f32 %v5074_v55, %v2154_v39  ;;  %v5448_v59 = vmul.f32 %v5369_v0, %v5369_v0  ;;  %v5452_v31 = vsel %vm2332_vm4, %v5369_v0, 0.0  ;;  %v2292_v27 = vadd.f32 %v5219_v8, %v2290_v23  ;;  %v6719_v8 = vld [vmem:[#allocation14_spill] sm:$0xff]  ;;  %v6728_v23 = vld [vmem:[#allocation72_spill] sm:$0xff] }
 0x232   :  { %v2431_v30 = vadd.f32 %v5208_v51, %v2429_v20  ;;  %v5457_v62 = vadd.f32 %v5080_v40, %v1742_v11  ;;  %v1881_v4 = vadd.f32 %v5144_v52, %v1879_v45  ;;  %v2567_v55 = vadd.f32 %v5133_v13, %v2565_v24  ;;  %v6720_v51 = vld [vmem:[#allocation17_spill] sm:$0xff]  ;;  %v6729_v24 = vld [vmem:[#allocation82_spill] sm:$0xff] }
 0x233   :  { %v2158_v6 = vadd.f32 %v5148_v14, %v2156_v38  ;;  %v5464_v36 = vmul.f32 %v5372_v43, %v5372_v43  ;;  %v5467_v44 = vadd.f32 %v3173_v42, %v6718_v58  ;;  %v5470_v48 = vadd.f32 %v1430_v18, %v6719_v8  ;;  %v6732_v8 = vld [vmem:[#allocation94_spill] sm:$0xff] }
 0x234   :  { %v2015_v40 = vadd.f32 %v5216_v3, %v2013_v56  ;;  %v1892_v52 = vsel %vm1778_vm2, %v5372_v43, 0.0  ;;  %v2294_v14 = vadd.f32 %v5096_v7, %v2292_v27  ;;  %v5477_v13 = vadd.f32 %v3174_v9, %v6720_v51  ;;  %v6721_v3 = vld [vmem:[#allocation15_spill] sm:$0xff]  ;;  %v6727_v9 = vld [vmem:[#allocation88_spill] sm:$0xff] }
 0x235   :  { %v2160_v41 = vadd.f32 %v5258_v54, %v2158_v6  ;;  %v2169_v61 = vsel %vm2055_vm3, %v5372_v43, 0.0  ;;  %v5484_v42 = vsel %vm2332_vm4, %v5372_v43, 0.0  ;;  %v2433_v18 = vadd.f32 %v5084_v57, %v2431_v30  ;;  %v6730_v30 = vld [vmem:[#allocation66_spill] sm:$0xff] }
 0x236   :  { %v5488_v21 = vadd.f32 %v1433_v34, %v6721_v3  ;;  %v2569_v22 = vadd.f32 %v5222_v15, %v2567_v55  ;;  %v2171_v37 = vsel %vm2055_vm3, %v5352_v12, 0.0  ;;  %v1883_v54 = vadd.f32 %v5254_v5, %v1881_v4  ;;  %v6723_v5 = vld [vmem:[#allocation92_spill] sm:$0xff]  ;;  %v6731_v55 = vld [vmem:[#allocation86_spill] sm:$0xff]  ;;  %v6734_v3 = vld [vmem:[#allocation81_spill] sm:$0xff] }
 0x237   :  { %v2162_v7 = vadd.f32 %v5334_v35, %v2160_v41  ;;  %v5497_v53 = vmul.f32 %v5467_v44, %v5467_v44  ;;  %v5501_v49 = vmul.f32 %v5470_v48, %v5470_v48  ;;  %v2017_v57 = vadd.f32 %v5093_v19, %v2015_v40 }
 0x238   :  { %v2173_v15 = vsel %vm2055_vm3, %v5369_v0, 0.0  ;;  %v5508_v35 = vmul.f32 %v5477_v13, %v5477_v13  ;;  %v1885_v33 = vadd.f32 %v6723_v5, %v1883_v54  ;;  %v2296_v25 = vadd.f32 %v6724_v10, %v2294_v14  ;;  %v6733_v14 = vld [vmem:[#allocation79_spill] sm:$0xff]  ;;  %v6736_v10 = vld [vmem:[#allocation93_spill] sm:$0xff] }
 0x239   :  { %v2164_v50 = vadd.f32 %v6722_v16, %v2162_v7  ;;  %v2435_v46 = vadd.f32 %v6725_v2, %v2433_v18  ;;  %v5516_v17 = vmul.f32 %v5488_v21, %v5488_v21  ;;  %v2175_v19 = vsel %vm2055_vm3, %v5470_v48, 0.0 }
 0x23a   :  { %v2177_v60 = vsel %vm2055_vm3, %v5488_v21, 0.0  ;;  %v2571_v39 = vadd.f32 %v6726_v29, %v2569_v22  ;;  %v1887_v20 = vadd.f32 %v6728_v23, %v1885_v33  ;;  %v2298_v11 = vadd.f32 %v6729_v24, %v2296_v25  ;;  %v6738_v29 = vld [vmem:[#allocation69_spill] sm:$0xff] }
 0x23b   :  { %v2166_v56 = vadd.f32 %v6727_v9, %v2164_v50  ;;  %v2179_v45 = vsel %vm2055_vm3, %v5467_v44, 0.0  ;;  %v2181_v38 = vsel %vm2055_vm3, %v5477_v13, 0.0  ;;  %v1894_v27 = vsel %vm1778_vm2, %v5352_v12, 0.0 }
 0x23c   :  { %v2019_v4 = vadd.f32 %v6730_v30, %v2017_v57  ;;  %v1889_v34 = vadd.f32 %v6731_v55, %v1887_v20  ;;  %v1896_v58 = vsel %vm1778_vm2, %v5369_v0, 0.0  ;;  %v2300_v40 = vadd.f32 %v6732_v8, %v2298_v11  ;;  %v6735_v57 = vld [vmem:[#allocation76_spill] sm:$0xff]  ;;  %v6740_v11 = vld [vmem:[#allocation75_spill] sm:$0xff] }
 0x23d   :  { %v2168_v6 = vadd.f32 %v2167_v63, %v2166_v56  ;;  %v2437_v51 = vadd.f32 %v6733_v14, %v2435_v46  ;;  %v1898_v41 = vsel %vm1778_vm2, %v5470_v48, 0.0  ;;  %v1900_v18 = vsel %vm1778_vm2, %v5488_v21, 0.0  ;;  %v6737_v46 = vld [vmem:[#allocation90_spill] sm:$0xff]  ;;  %v6739_v56 = vld [vmem:[#allocation13_spill] sm:$0xff]  ;;  %v6742_v8 = vld [vmem:[#allocation87_spill] sm:$0xff] }
 0x23e   :  { %v2021_v22 = vadd.f32 %v6734_v3, %v2019_v4  ;;  %v1891_v63 = vadd.f32 %v5392_v28, %v1889_v34  ;;  %v1902_v54 = vsel %vm1778_vm2, %v5467_v44, 0.0  ;;  %v2302_v16 = vadd.f32 %v6735_v57, %v2300_v40 }
 0x23f   :  { %v2170_v7 = vadd.f32 %v2169_v61, %v2168_v6  ;;  %v1904_v50 = vsel %vm1778_vm2, %v5477_v13, 0.0  ;;  %v2305_v5 = vsel %vm2055_vm3, %v5384_v1, 0.0  ;;  %v2307_v33 = vsel %vm2055_vm3, %v5464_v36, 0.0 }
 0x240   :  { %v2023_v25 = vadd.f32 %v6736_v10, %v2021_v22  ;;  %v1893_v61 = vadd.f32 %v1892_v52, %v1891_v63  ;;  %v2304_v28 = vadd.f32 %v6737_v46, %v2302_v16  ;;  %v2573_v9 = vadd.f32 %v6738_v29, %v2571_v39  ;;  %v6743_v63 = vld [vmem:[#allocation10_spill] sm:$0xff]  ;;  %v6745_v46 = vld [vmem:[#allocation77_spill] sm:$0xff] }
 0x241   :  { %v2172_v2 = vadd.f32 %v2171_v37, %v2170_v7  ;;  %v2309_v23 = vsel %vm2055_vm3, %v6739_v56, 0.0  ;;  %v2311_v20 = vsel %vm2055_vm3, %v5448_v59, 0.0  ;;  %v2313_v24 = vsel %vm2055_vm3, %v5501_v49, 0.0  ;;  %v6741_v37 = vld [vmem:[#allocation84_spill] sm:$0xff] }
 0x242   :  { %v2025_v30 = vadd.f32 %v6740_v11, %v2023_v25  ;;  %v1895_v6 = vadd.f32 %v1894_v27, %v1893_v61  ;;  %v2306_v55 = vadd.f32 %v2305_v5, %v2304_v28  ;;  %v2575_v52 = vadd.f32 %v6741_v37, %v2573_v9  ;;  %v6744_v5 = vld [vmem:[#allocation12_spill] sm:$0xff] }
 0x243   :  { %v2174_v4 = vadd.f32 %v2173_v15, %v2172_v2  ;;  %v2315_v34 = vsel %vm2055_vm3, %v5516_v17, 0.0  ;;  %v2317_v39 = vsel %vm2055_vm3, %v5497_v53, 0.0  ;;  %v2028_v14 = vsel %vm1778_vm2, %v5384_v1, 0.0 }
 0x244   :  { %v2027_v40 = vadd.f32 %v6742_v8, %v2025_v30  ;;  %v1897_v22 = vadd.f32 %v1896_v58, %v1895_v6  ;;  %v2308_v7 = vadd.f32 %v2307_v33, %v2306_v55  ;;  %v2577_v15 = vadd.f32 %v6743_v63, %v2575_v52  ;;  %v6746_v33 = vld [vmem:[#allocation74_spill] sm:$0xff]  ;;  %v6747_v6 = vld [vmem:[#allocation91_spill] sm:$0xff] }
 0x245   :  { %v2176_v3 = vadd.f32 %v2175_v19, %v2174_v4  ;;  %v2319_v27 = vsel %vm2055_vm3, %v5508_v35, 0.0  ;;  %v2030_v16 = vsel %vm1778_vm2, %v5464_v36, 0.0  ;;  %v2439_v10 = vadd.f32 %v6744_v5, %v2437_v51 }
 0x246   :  { %v2029_v57 = vadd.f32 %v2028_v14, %v2027_v40  ;;  %v1899_v2 = vadd.f32 %v1898_v41, %v1897_v22  ;;  %v2310_v61 = vadd.f32 %v2309_v23, %v2308_v7  ;;  %v2579_v28 = vadd.f32 %v6745_v46, %v2577_v15  ;;  %v6748_v23 = vld [vmem:[#allocation89_spill] sm:$0xff] }
 0x247   :  { %v2178_v25 = vadd.f32 %v2177_v60, %v2176_v3  ;;  %v2032_v19 = vsel %vm1778_vm2, %v6739_v56, 0.0  ;;  %v2034_v58 = vsel %vm1778_vm2, %v5448_v59, 0.0  ;;  %v2441_v9 = vadd.f32 %v6746_v33, %v2439_v10 }
 0x248   :  { %v2031_v29 = vadd.f32 %v2030_v16, %v2029_v57  ;;  %v1901_v30 = vadd.f32 %v1900_v18, %v1899_v2  ;;  %v2312_v4 = vadd.f32 %v2311_v20, %v2310_v61  ;;  %v2581_v55 = vadd.f32 %v6747_v6, %v2579_v28 }
 0x249   :  { %v2180_v11 = vadd.f32 %v2179_v45, %v2178_v25  ;;  %v2036_v60 = vsel %vm1778_vm2, %v5501_v49, 0.0  ;;  %v2582_v41 = vsel %vm2332_vm4, %v5384_v1, 0.0  ;;  %v2443_v37 = vadd.f32 %v6748_v23, %v2441_v9 }
 0x24a   :  { %v2033_v51 = vadd.f32 %v2032_v19, %v2031_v29  ;;  %v1903_v8 = vadd.f32 %v1902_v54, %v1901_v30  ;;  %v2314_v40 = vadd.f32 %v2313_v24, %v2312_v4  ;;  %v2583_v14 = vadd.f32 %v2582_v41, %v2581_v55 }
 0x24b   :  { %v2182_v52 = vadd.f32 %v2181_v38, %v2180_v11  ;;  %v2038_v45 = vsel %vm1778_vm2, %v5516_v17, 0.0  ;;  %v2584_v18 = vsel %vm2332_vm4, %v5464_v36, 0.0  ;;  %v2445_v20 = vadd.f32 %v5441_v32, %v2443_v37 }
 0x24c   :  { %v2035_v3 = vadd.f32 %v2034_v58, %v2033_v51  ;;  %v1905_v7 = vadd.f32 %v1904_v50, %v1903_v8  ;;  %v2316_v63 = vadd.f32 %v2315_v34, %v2314_v40  ;;  %v2585_v15 = vadd.f32 %v2584_v18, %v2583_v14  ;;  %v6749_v34 = vld [vmem:[#allocation11_spill] sm:$0xff] }
 0x24d   :  { %v2183_v22 = vrot.slane %v2182_v52, 4  ;;  %v2040_v38 = vsel %vm1778_vm2, %v5497_v53, 0.0  ;;  %v2586_v54 = vsel %vm2332_vm4, %v6739_v56, 0.0  ;;  %v2447_v24 = vadd.f32 %v5484_v42, %v2445_v20  ;;  %v6750_v20 = vld [vmem:[#allocation57_spill] sm:$0xff] }
 0x24e   :  { %v2037_v57 = vadd.f32 %v2036_v60, %v2035_v3  ;;  %v1906_v5 = vrot.slane %v1905_v7, 4  ;;  %v2318_v10 = vadd.f32 %v2317_v39, %v2316_v63  ;;  %v2587_v25 = vadd.f32 %v2586_v54, %v2585_v15 }
 0x24f   :  { %v2184_v16 = vadd.f32 %v2183_v22, %v2182_v52  ;;  %v2042_v32 = vsel %vm1778_vm2, %v5508_v35, 0.0  ;;  %v2588_v50 = vsel %vm2332_vm4, %v5448_v59, 0.0  ;;  %v2449_v61 = vadd.f32 %v6749_v34, %v2447_v24  ;;  %v6751_v22 = vld [vmem:[#allocation58_spill] sm:$0xff]  ;;  %v6753_v34 = vld [vmem:[#allocation64_spill] sm:$0xff] }
 0x250   :  { %v2039_v2 = vadd.f32 %v2038_v45, %v2037_v57  ;;  %v1907_v28 = vadd.f32 %v1906_v5, %v1905_v7  ;;  %v2320_v29 = vadd.f32 %v2319_v27, %v2318_v10  ;;  %v2589_v19 = vadd.f32 %v2588_v50, %v2587_v25  ;;  %v6752_v5 = vld [vmem:[#allocation53_spill] sm:$0xff] }
 0x251   :  { %v2185_v46 = vrot.slane %v2184_v16, 2  ;;  %v2590_v42 = vsel %vm2332_vm4, %v5501_v49, 0.0  ;;  %v2451_v39 = vadd.f32 %v5452_v31, %v2449_v61  ;;  %v2452_v33 = vsel %vm2332_vm4, %v5470_v48, 0.0 }
 0x252   :  { %v2041_v58 = vadd.f32 %v2040_v38, %v2039_v2  ;;  %v1908_v11 = vrot.slane %v1907_v28, 2  ;;  %v2321_v30 = vrot.slane %v2320_v29, 4  ;;  %v2591_v4 = vadd.f32 %v2590_v42, %v2589_v19 }
 0x253   :  { %v2186_v9 = vadd.f32 %v2185_v46, %v2184_v16  ;;  %v2592_v55 = vsel %vm2332_vm4, %v5516_v17, 0.0  ;;  %v2453_v51 = vadd.f32 %v2452_v33, %v2451_v39  ;;  %v2454_v27 = vsel %vm2332_vm4, %v5488_v21, 0.0  ;;  %v6754_v39 = vld [vmem:[#allocation54_spill] sm:$0xff] }
 0x254   :  { %v2043_v6 = vadd.f32 %v2042_v32, %v2041_v58  ;;  %v1909_v41 = vadd.f32 %v1908_v11, %v1907_v28  ;;  %v2322_v23 = vadd.f32 %v2321_v30, %v2320_v29  ;;  %v2593_v37 = vadd.f32 %v2592_v55, %v2591_v4 }
 0x255   :  { %v2187_v60 = vrot.slane %v2186_v9, 1  ;;  %v2594_v52 = vsel %vm2332_vm4, %v5497_v53, 0.0  ;;  %v2455_v8 = vadd.f32 %v2454_v27, %v2453_v51  ;;  %v2456_v40 = vsel %vm2332_vm4, %v5467_v44, 0.0  ;;  %v6756_v51 = vld [vmem:[#allocation55_spill] sm:$0xff] }
 0x256   :  { %v2044_v31 = vrot.slane %v2043_v6, 4  ;;  %v1910_v3 = vrot.slane %v1909_v41, 1  ;;  %v2323_v45 = vrot.slane %v2322_v23, 2  ;;  %v2595_v18 = vadd.f32 %v2594_v52, %v2593_v37 }
 0x257   :  { %v2188_v14 = vadd.f32 %v2187_v60, %v2186_v9  ;;  %v1510_v7 = vadd.f32 %v6751_v22, %v6750_v20  ;;  %v2596_v15 = vsel %vm2332_vm4, %v5508_v35, 0.0  ;;  %v2457_v57 = vadd.f32 %v2456_v40, %v2455_v8  ;;  %v6755_v9 = vld [vmem:[#allocation78_spill] sm:$0xff]  ;;  %v6757_v60 = vld [vmem:[#allocation83_spill] sm:$0xff] }
 0x258   :  { %v2045_v63 = vadd.f32 %v2044_v31, %v2043_v6  ;;  %v1911_v38 = vadd.f32 %v1910_v3, %v1909_v41  ;;  %v2324_v54 = vadd.f32 %v2323_v45, %v2322_v23  ;;  %v2597_v24 = vadd.f32 %v2596_v15, %v2595_v18  ;;  %v6758_v8 = vld [vmem:[#allocation39_spill] sm:$0xff] }
 0x259   :  { %2190 = vrot.lane.b32.xlu1 %v2188_v14, %s3363_s0  ;;  %v2458_v16 = vsel %vm2332_vm4, %v5477_v13, 0.0  ;;  %v1511_v10 = vsel %vm1445_vm1, %v6752_v5, 0.0  ;;  %v1745_v61 = vsel %vm1445_vm1, %v6753_v34, 0.0  ;;  %v1513_v33 = vsel %vm1445_vm1, %v6754_v39, 0.0  ;;  %v6759_v14 = vld [vmem:[#allocation71_spill] sm:$0xff] }
 0x25a   :  { %v2046_v25 = vrot.slane %v2045_v63, 2  ;;  %v2459_v2 = vadd.f32 %v2458_v16, %v2457_v57  ;;  %1913 = vrot.lane.b32.xlu0 %v1911_v38, %s3364_s28  ;;  %v2325_v32 = vrot.slane %v2324_v54, 1  ;;  %v2598_v50 = vrot.slane %v2597_v24, 4  ;;  %v6761_v57 = vld [vmem:[#allocation80_spill] sm:$0xff] }
 0x25b   :  { %v1512_v29 = vadd.f32 %v1511_v10, %v1510_v7  ;;  %v1746_v42 = vadd.f32 %v1745_v61, %v5457_v62  ;;  %v1747_v11 = vsel %vm1445_vm1, %v6755_v9, 0.0  ;;  %v1515_v27 = vsel %vm1445_vm1, %v6756_v51, 0.0  ;;  %v6760_v7 = vld [vmem:[#allocation41_spill] sm:$0xff]  ;;  %v6762_v10 = vld [vmem:[#allocation56_spill] sm:$0xff]  ;;  %v6763_v61 = vld [vmem:[#allocation59_spill] sm:$0xff] }
 0x25c   :  { %v2047_v46 = vadd.f32 %v2046_v25, %v2045_v63  ;;  %v2460_v28 = vrot.slane %v2459_v2, 4  ;;  %v2326_v19 = vadd.f32 %v2325_v32, %v2324_v54  ;;  %v2599_v58 = vadd.f32 %v2598_v50, %v2597_v24 }
 0x25d   :  { %v1748_v55 = vadd.f32 %v1747_v11, %v1746_v42  ;;  %v1749_v41 = vsel %vm1445_vm1, %v6757_v60, 0.0  ;;  %v1514_v62 = vadd.f32 %v1513_v33, %v1512_v29  ;;  %v1517_v40 = vsel %vm1445_vm1, %v6758_v8, 0.0  ;;  %v6765_v11 = vld [vmem:[#allocation61_spill] sm:$0xff] }
 0x25e   :  { %v2048_v30 = vrot.slane %v2047_v46, 1  ;;  %v2461_v4 = vadd.f32 %v2460_v28, %v2459_v2  ;;  %2328 = vrot.lane.b32.xlu1 %v2326_v19, %s3363_s0  ;;  %v2600_v6 = vrot.slane %v2599_v58, 2  ;;  %v1751_v3 = vsel %vm1445_vm1, %v6759_v14, 0.0 }
 0x25f   :  { %v1750_v52 = vadd.f32 %v1749_v41, %v1748_v55  ;;  %v1516_v18 = vadd.f32 %v1515_v27, %v1514_v62  ;;  %v1519_v63 = vsel %vm1445_vm1, %v6760_v7, 0.0  ;;  %v1753_v38 = vsel %vm1445_vm1, %v6761_v57, 0.0  ;;  %v6766_v27 = vld [vmem:[#allocation62_spill] sm:$0xff] }
 0x260   :  { %v2049_v23 = vadd.f32 %v2048_v30, %v2047_v46  ;;  %v2462_v37 = vrot.slane %v2461_v4, 2  ;;  %v2601_v31 = vadd.f32 %v2600_v6, %v2599_v58  ;;  %v1521_v25 = vsel %vm1445_vm1, %v6762_v10, 0.0  ;;  %v6764_v58 = vld [vmem:[#allocation60_spill] sm:$0xff] }
 0x261   :  { %v1752_v22 = vadd.f32 %v1751_v3, %v1750_v52  ;;  %v1518_v54 = vadd.f32 %v1517_v40, %v1516_v18  ;;  %v1755_v32 = vsel %vm1445_vm1, %v5384_v1, 0.0  ;;  %v1523_v46 = vsel %vm1445_vm1, %v6763_v61, 0.0  ;;  %v6768_v40 = vld [vmem:[#allocation70_spill] sm:$0xff]  ;;  %v6769_v18 = vld [vmem:[#allocation85_spill] sm:$0xff] }
 0x262   :  { %2051 = vrot.lane.b32.xlu0 %v2049_v23, %s3364_s28  ;;  %v2463_v45 = vadd.f32 %v2462_v37, %v2461_v4  ;;  %v2602_v20 = vrot.slane %v2601_v31, 1  ;;  %v1757_v28 = vsel %vm1445_vm1, %v5464_v36, 0.0  ;;  %v1525_v42 = vsel %vm1445_vm1, %v6764_v58, 0.0  ;;  %v6767_v37 = vld [vmem:[#allocation65_spill] sm:$0xff] }
 0x263   :  { %v1754_v16 = vadd.f32 %v1753_v38, %v1752_v22  ;;  %v1520_v50 = vadd.f32 %v1519_v63, %v1518_v54  ;;  %v1759_v33 = vsel %vm1445_vm1, %v6739_v56, 0.0  ;;  %v1527_v30 = vsel %vm1445_vm1, %v6765_v11, 0.0 }
 0x264   :  { %v2464_v15 = vrot.slane %v2463_v45, 1  ;;  %v2603_v24 = vadd.f32 %v2602_v20, %v2601_v31  ;;  %v1761_v4 = vsel %vm1445_vm1, %v5448_v59, 0.0  ;;  %v1529_v36 = vsel %vm1445_vm1, %v6766_v27, 0.0 }
 0x265   :  { %v1756_v34 = vadd.f32 %v1755_v32, %v1754_v16  ;;  %v1522_v29 = vadd.f32 %v1521_v25, %v1520_v50  ;;  %v1763_v60 = vsel %vm1445_vm1, %v5501_v49, 0.0  ;;  %v1531_v56 = vsel %vm1445_vm1, %v6767_v37, 0.0 }
 0x266   :  { %v2465_v2 = vadd.f32 %v2464_v15, %v2463_v45  ;;  %2605 = vrot.lane.b32.xlu1 %v2603_v24, %s3365_s29  ;;  %v1765_v62 = vsel %vm1445_vm1, %v5516_v17, 0.0  ;;  %v1533_v59 = vsel %vm1445_vm1, %v6768_v40, 0.0  ;;  %v1767_v14 = vsel %vm1445_vm1, %v5497_v53, 0.0  ;;  %v6770_v15 = vld [vmem:[#allocation95_spill] sm:$0xff]  ;;  %v6771_v53 = vld [vmem:[#allocation2_spill] sm:$0xff] }
 0x267   :  { %v1758_v19 = vadd.f32 %v1757_v28, %v1756_v34  ;;  %v1524_v1 = vadd.f32 %v1523_v46, %v1522_v29  ;;  %v1535_v49 = vsel %vm1445_vm1, %v6769_v18, 0.0  ;;  %v1769_v20 = vsel %vm1445_vm1, %v5508_v35, 0.0  ;;  %v6773_v35 = vld [vmem:[#allocation4_spill] sm:$0xff]  ;;  %v6774_v28 = vld [vmem:[#allocation5_spill] sm:$0xff] }
 0x268   :  { %2467 = vrot.lane.b32.xlu0 %v2465_v2, %s3365_s29  ;;  %v1537_v17 = vsel %vm1445_vm1, %v6770_v15, 0.0  ;;  %v1539_v38 = vsel %vm1445_vm1, %v5411_v26, 0.0  ;;  %v1541_v16 = vsel %vm1445_vm1, %v6771_v53, 0.0  ;;  %v6772_v2 = vld [vmem:[#allocation3_spill] sm:$0xff]  ;;  %v1545_v34 = vsel %vm1445_vm1, %v6773_v35, 0.0 }
 0x269   :  { %v1760_v9 = vadd.f32 %v1759_v33, %v1758_v19  ;;  %v1526_v6 = vadd.f32 %v1525_v42, %v1524_v1  ;;  %v1543_v32 = vsel %vm1445_vm1, %v6772_v2, 0.0  ;;  %v1547_v29 = vsel %vm1445_vm1, %v6774_v28, 0.0  ;;  %v6775_v42 = vld [vmem:[#allocation6_spill] sm:$0xff] }
 0x26a   :  { %v1549_v33 = vsel %vm1445_vm1, %v6775_v42, 0.0 }
 0x26b   :  { %v1762_v55 = vadd.f32 %v1761_v4, %v1760_v9  ;;  %v1528_v41 = vadd.f32 %v1527_v30, %v1526_v6  ;;  %v6776_v9 = vld [vmem:[#allocation7_spill] sm:$0xff]  ;;  %v6777_v6 = vld [vmem:[#allocation8_spill] sm:$0xff] }
 0x26c   :  { %v1551_v30 = vsel %vm1445_vm1, %v6776_v9, 0.0 }
 0x26d   :  { %v1764_v23 = vadd.f32 %v1763_v60, %v1762_v55  ;;  %v1530_v31 = vadd.f32 %v1529_v36, %v1528_v41  ;;  %v1553_v55 = vsel %vm1445_vm1, %v6777_v6, 0.0  ;;  %v6778_v60 = vld [vmem:[#allocation9_spill] sm:$0xff] }
 0x26e   :  { %v1555_v41 = vsel %vm1445_vm1, %v6778_v60, 0.0 }
 0x26f   :  { %v1766_v52 = vadd.f32 %v1765_v62, %v1764_v23  ;;  %v1532_v3 = vadd.f32 %v1531_v56, %v1530_v31  ;;  %v1557_v56 = vsel %vm1445_vm1, %v5355_v47, 0.0  ;;  %v1559_v31 = vsel %vm1445_vm1, %v5372_v43, 0.0 }
 0x271   :  { %v1768_v45 = vadd.f32 %v1767_v14, %v1766_v52  ;;  %v1534_v22 = vadd.f32 %v1533_v59, %v1532_v3  ;;  %v1561_v59 = vsel %vm1445_vm1, %v5352_v12, 0.0  ;;  %v1563_v3 = vsel %vm1445_vm1, %v5369_v0, 0.0 }
 0x273   :  { %v1770_v63 = vadd.f32 %v1769_v20, %v1768_v45  ;;  %v1536_v57 = vadd.f32 %v1535_v49, %v1534_v22  ;;  %v1565_v49 = vsel %vm1445_vm1, %v5470_v48, 0.0  ;;  %v1567_v22 = vsel %vm1445_vm1, %v5488_v21, 0.0 }
 0x275   :  { %v1538_v54 = vadd.f32 %v1537_v17, %v1536_v57  ;;  %v1569_v57 = vsel %vm1445_vm1, %v5467_v44, 0.0 }
 0x277   :  { %v1540_v24 = vadd.f32 %v1539_v38, %v1538_v54  ;;  %v1571_v54 = vsel %vm1445_vm1, %v5477_v13, 0.0 }
 0x279   :  { %v1542_v25 = vadd.f32 %v1541_v16, %v1540_v24 }
 0x27b   :  { %v1544_v50 = vadd.f32 %v1543_v32, %v1542_v25  ;;  %v1771_v25 = vrot.slane %v1770_v63, 4 }
 0x27d   :  { %v1546_v46 = vadd.f32 %v1545_v34, %v1544_v50  ;;  %v1772_v50 = vadd.f32 %v1771_v25, %v1770_v63 }
 0x27f   :  { %v1548_v19 = vadd.f32 %v1547_v29, %v1546_v46  ;;  %v1773_v46 = vrot.slane %v1772_v50, 2 }
 0x281   :  { %v1550_v1 = vadd.f32 %v1549_v33, %v1548_v19  ;;  %v1774_v19 = vadd.f32 %v1773_v46, %v1772_v50 }
 0x283   :  { %v1552_v4 = vadd.f32 %v1551_v30, %v1550_v1 }
 0x285   :  { %v1554_v36 = vadd.f32 %v1553_v55, %v1552_v4  ;;  %v1775_v4 = vrot.slane %v1774_v19, 1 }
 0x287   :  { %v1556_v23 = vadd.f32 %v1555_v41, %v1554_v36  ;;  %v1776_v41 = vadd.f32 %v1775_v4, %v1774_v19 }
 0x289   :  { %v1558_v62 = vadd.f32 %v1557_v56, %v1556_v23 }
 0x28b   :  { %v1560_v52 = vadd.f32 %v1559_v31, %v1558_v62 }
 0x28d   :  { %v1562_v14 = vadd.f32 %v1561_v59, %v1560_v52 }
 0x28f   :  { %v1564_v45 = vadd.f32 %v1563_v3, %v1562_v14 }
 0x291   :  { %v1566_v20 = vadd.f32 %v1565_v49, %v1564_v45 }
 0x293   :  { %v1568_v17 = vadd.f32 %v1567_v22, %v1566_v20 }
 0x295   :  { %v1570_v38 = vadd.f32 %v1569_v57, %v1568_v17  ;;  %v2622_v57 = vlaneseq }
 0x297   :  { %v1572_v24 = vadd.f32 %v1571_v54, %v1570_v38  ;;  %v2623_v38 = vshrl.u32 %v2622_v57, 7  ;;  %v2614_v54 = vld [vmem:[%s6506_s2] sm:$0x1]  ;;  %v6785_v57 = vld [vmem:[#allocation23_spill] sm:$0xff] }
 0x299   :  { %v1573_v16 = vrot.slane %v1572_v24, 4 }
 0x29b   :  { %v1574_v32 = vadd.f32 %v1573_v16, %v1572_v24  ;;  %v5715_v24 = vsub.s32 0, %v2623_v38 }
 0x29d   :  { %v1575_v34 = vrot.slane %v1574_v32, 2 }
 0x29f   :  { %v1576_v29 = vadd.f32 %v1575_v34, %v1574_v32  ;;  %v2618_v32 = vld [vmem:[%s6507_s3] sm:$0x1] }
 0x2a1   :  { %v1577_v30 = vrot.slane %v1576_v29, 1 }
 0x2a3   :  { %v1578_v55 = vadd.f32 %v1577_v30, %v1576_v29 }
 0x2cb   :  { %v2191_v33 = vpop.permute.xlu1 %2190 }
 0x2cc   :  { %v1914_v1 = vpop.permute.xlu0 %1913 }
 0x2cd   :  { %v1916_v56 = vadd.f32 %v1914_v1, %v1578_v55 }
 0x2cf   :  { %v2193_v59 = vadd.f32 %v2191_v33, %v1916_v56 }
 0x2d0   :  { %v2329_v36 = vpop.permute.xlu1 %2328 }
 0x2d4   :  { %v2052_v23 = vpop.permute.xlu0 %2051 }
 0x2d5   :  { %v2054_v62 = vadd.f32 %v2052_v23, %v1776_v41 }
 0x2d7   :  { %v2331_v31 = vadd.f32 %v2329_v36, %v2054_v62  ;;  %v6779_v62 = vld [vmem:[#allocation18_spill] sm:$0xff] }
 0x2d8   :  { %v2606_v52 = vpop.permute.xlu1 %2605 }
 0x2d9   :  { %v2608_v3 = vadd.f32 %v2606_v52, %v2331_v31  ;;  %v6780_v52 = vld [vmem:[#allocation20_spill] sm:$0xff] }
 0x2da   :  { %v2468_v14 = vpop.permute.xlu0 %2467 }
 0x2db   :  { %v2470_v63 = vadd.f32 %v2468_v14, %v2193_v59  ;;  %v2611_v49 = vmul.f32 0.00048828125, %v2608_v3  ;;  %v6781_v14 = vld [vmem:[#allocation19_spill] sm:$0xff] }
 0x2dd   :  { %v2610_v45 = vmul.f32 0.00048828125, %v2470_v63  ;;  %v6782_v63 = vld [vmem:[#allocation21_spill] sm:$0xff] }
 0x2df   :  { %v2612_v20 = vmul.f32 %v2610_v45, %v2610_v45 }
 0x2e1   :  { %v2613_v22 = vsub.f32 %v2611_v49, %v2612_v20  ;;  %v6783_v49 = vld [vmem:[#allocation22_spill] sm:$0xff] }
 0x2e3   :  { %v2615_v17 = vadd.f32 1e-05, %v2613_v22  ;;  %v6784_v22 = vld [vmem:[#allocation24_spill] sm:$0xff] }
 0x2e5   :  { %3360 = vrsqrt.f32 %v2615_v17 }
 0x2f2   :  { %v3361_v16 = vpop.eup %3360 }
 0x2f3   :  { %v2617_v25 = vmul.f32 %v3361_v16, %v2614_v54  ;;  %v6786_v54 = vld [vmem:[#allocation25_spill] sm:$0xff] }
 0x2f5   :  { %v2619_v50 = vmul.f32 %v2617_v25, %v2610_v45  ;;  %v2625_v34 = vrot.slane %v2617_v25, %v5715_v24 }
 0x2f7   :  { %v2620_v46 = vsub.f32 %v2618_v32, %v2619_v50  ;;  %2629 = vrot.lane.b32.xlu1 %v2625_v34, %s3366_s8  ;;  %2626 = vrot.lane.b32.xlu0 %v2625_v34, %s3367_s9  ;;  %v6788_v50 = vld [vmem:[#allocation28_spill] sm:$0xff] }
 0x2f9   :  { %v2645_v29 = vrot.slane %v2620_v46, %v5715_v24 }
 0x2fb   :  { %2632 = vrot.lane.b32.xlu0 %v2625_v34, %s3368_s10  ;;  %2646 = vrot.lane.b32.xlu1 %v2645_v29, %s3367_s9 }
 0x2ff   :  { %2649 = vrot.lane.b32.xlu0 %v2645_v29, %s3366_s8  ;;  %2652 = vrot.lane.b32.xlu1 %v2645_v29, %s3368_s10 }
 0x369   :  { %v2627_v19 = vpop.permute.xlu0 %2626  ;;  %v2630_v33 = vpop.permute.xlu1 %2629 }
 0x36a   :  { %v2635_v1 = vsel %vm1445_vm1, %v2617_v25, %v2627_v19  ;;  %v6787_v25 = vld [vmem:[#allocation26_spill] sm:$0xff] }
 0x36b   :  { %v2636_v30 = vsel %vm770_vm0, %v2635_v1, %v2630_v33  ;;  %v6790_v19 = vld [vmem:[#allocation30_spill] sm:$0xff]  ;;  %v6791_v1 = vld [vmem:[#allocation32_spill] sm:$0xff] }
 0x36d   :  { %v2633_v4 = vpop.permute.xlu0 %2632  ;;  %v2647_v23 = vpop.permute.xlu1 %2646 }
 0x36e   :  { %v2638_v55 = vsel %vm2637_vm5, %v2636_v30, %v2633_v4  ;;  %v2655_v56 = vsel %vm1445_vm1, %v2620_v46, %v2647_v23  ;;  %v6789_v46 = vld [vmem:[#allocation27_spill] sm:$0xff]  ;;  %v6792_v4 = vld [vmem:[#allocation34_spill] sm:$0xff] }
 0x36f   :  { %v2640_v36 = vsel %vm2639_vm6, %v2638_v55, 0.0 }
 0x370   :  { %v5727_v41 = vrot.slane %v2640_v36, %v5715_v24  ;;  %v6793_v36 = vld [vmem:[#allocation33_spill] sm:$0xff] }
 0x372   :  { %v5732_v31 = vmul.f32 %v5727_v41, %v6779_v62  ;;  %v5736_v59 = vmul.f32 %v5727_v41, %v6780_v52  ;;  %v5740_v3 = vmul.f32 %v5727_v41, %v6781_v14  ;;  %v5744_v45 = vmul.f32 %v5727_v41, %v6782_v63  ;;  %v6794_v62 = vld [vmem:[#allocation35_spill] sm:$0xff]  ;;  %v6795_v14 = vld [vmem:[#allocation36_spill] sm:$0xff] }
 0x373   :  { %v5748_v20 = vmul.f32 %v5727_v41, %v6783_v49  ;;  %v5752_v17 = vmul.f32 %v5727_v41, %v6784_v22  ;;  %v5756_v38 = vmul.f32 %v5727_v41, %v6785_v57  ;;  %v5760_v16 = vmul.f32 %v5727_v41, %v6786_v54  ;;  %v6796_v49 = vld [vmem:[#allocation38_spill] sm:$0xff]  ;;  %v6797_v57 = vld [vmem:[#allocation37_spill] sm:$0xff] }
 0x374   :  { %v5764_v32 = vmul.f32 %v5727_v41, %v6787_v25  ;;  %v5768_v34 = vmul.f32 %v5727_v41, %v6788_v50  ;;  %v5772_v29 = vmul.f32 %v5727_v41, %v6789_v46  ;;  %v5776_v33 = vmul.f32 %v5727_v41, %v6790_v19  ;;  %v6798_v25 = vld [vmem:[#allocation40_spill] sm:$0xff]  ;;  %v6800_v46 = vld [vmem:[#allocation42_spill] sm:$0xff] }
 0x375   :  { %v5780_v30 = vmul.f32 %v5727_v41, %v6791_v1  ;;  %v5784_v55 = vmul.f32 %v5727_v41, %v6792_v4  ;;  %v5788_v23 = vmul.f32 %v5727_v41, %v6793_v36  ;;  %v5792_v52 = vmul.f32 %v5727_v41, %v6794_v62  ;;  %v6802_v1 = vld [vmem:[#allocation44_spill] sm:$0xff]  ;;  %v6804_v36 = vld [vmem:[#allocation43_spill] sm:$0xff] }
 0x376   :  { %v5796_v63 = vmul.f32 %v5727_v41, %v6795_v14  ;;  %v5800_v22 = vmul.f32 %v5727_v41, %v6796_v49  ;;  %v5804_v54 = vmul.f32 %v5727_v41, %v6797_v57  ;;  %v5808_v50 = vmul.f32 %v5727_v41, %v6798_v25  ;;  %v6806_v14 = vld [vmem:[#allocation45_spill] sm:$0xff]  ;;  %v6808_v57 = vld [vmem:[#allocation46_spill] sm:$0xff] }
 0x377   :  { %v5812_v19 = vmul.f32 %v5727_v41, %v6800_v46  ;;  %v5816_v4 = vmul.f32 %v5727_v41, %v6802_v1  ;;  %v5820_v62 = vmul.f32 %v5727_v41, %v6804_v36  ;;  %v5824_v49 = vmul.f32 %v5727_v41, %v6806_v14 }
 0x378   :  { %6799 = vst [vmem:[#allocation16_spill] sm:$0xff] %v5808_v50  ;;  %v5828_v25 = vmul.f32 %v5727_v41, %v6808_v57  ;;  %v6810_v50 = vld [vmem:[#allocation48_spill] sm:$0xff] }
 0x379   :  { %6801 = vst [vmem:[#allocation14_spill] sm:$0xff] %v5812_v19  ;;  %6803 = vst [vmem:[#allocation17_spill] sm:$0xff] %v5816_v4  ;;  %v5832_v46 = vmul.f32 %v5727_v41, %v6810_v50  ;;  %v6812_v19 = vld [vmem:[#allocation47_spill] sm:$0xff]  ;;  %v6814_v4 = vld [vmem:[#allocation29_spill] sm:$0xff] }
 0x37a   :  { %6805 = vst [vmem:[#allocation15_spill] sm:$0xff] %v5820_v62  ;;  %6807 = vst [vmem:[#allocation73_spill] sm:$0xff] %v5824_v49  ;;  %v5836_v1 = vmul.f32 %v5727_v41, %v6812_v19  ;;  %v5840_v36 = vmul.f32 %v5727_v41, %v6814_v4  ;;  %v6815_v62 = vld [vmem:[#allocation31_spill] sm:$0xff]  ;;  %v6816_v49 = vld [vmem:[#allocation50_spill] sm:$0xff] }
 0x37b   :  { %6809 = vst [vmem:[#allocation92_spill] sm:$0xff] %v5828_v25  ;;  %6811 = vst [vmem:[#allocation67_spill] sm:$0xff] %v5832_v46  ;;  %v5844_v14 = vmul.f32 %v5727_v41, %v6815_v62  ;;  %v5848_v57 = vmul.f32 %v5727_v41, %v6816_v49  ;;  %v6817_v25 = vld [vmem:[#allocation49_spill] sm:$0xff]  ;;  %v6818_v46 = vld [vmem:[#allocation51_spill] sm:$0xff]  ;;  %v5864_v62 = vmul.f32 %v5727_v41, %v6752_v5 }
 0x37c   :  { %6813 = vst [vmem:[#allocation68_spill] sm:$0xff] %v5836_v1  ;;  %v5852_v50 = vmul.f32 %v5727_v41, %v6817_v25  ;;  %v5856_v19 = vmul.f32 %v5727_v41, %v6818_v46  ;;  %v6819_v1 = vld [vmem:[#allocation52_spill] sm:$0xff]  ;;  %v5868_v49 = vmul.f32 %v5727_v41, %v6754_v39  ;;  %v5872_v25 = vmul.f32 %v5727_v41, %v6756_v51 }
 0x37d   :  { %v5860_v4 = vmul.f32 %v5727_v41, %v6819_v1  ;;  %v5876_v46 = vmul.f32 %v5727_v41, %v6758_v8  ;;  %v5880_v1 = vmul.f32 %v5727_v41, %v6760_v7  ;;  %v5884_v5 = vmul.f32 %v5727_v41, %v6762_v10 }
 0x37e   :  { %6820 = vst [vmem:[#allocation63_spill] sm:$0xff] %v5868_v49  ;;  %v5888_v39 = vmul.f32 %v5727_v41, %v6763_v61  ;;  %v2650_v49 = vpop.permute.xlu0 %2649  ;;  %v5892_v51 = vmul.f32 %v5727_v41, %v6764_v58  ;;  %v5896_v8 = vmul.f32 %v5727_v41, %v6765_v11  ;;  %v5900_v7 = vmul.f32 %v5727_v41, %v6766_v27 }
 0x37f   :  { %6821 = vst [vmem:[#allocation88_spill] sm:$0xff] %v5884_v5  ;;  %v5904_v10 = vmul.f32 %v5727_v41, %v6767_v37  ;;  %v2653_v5 = vpop.permute.xlu1 %2652  ;;  %v5908_v61 = vmul.f32 %v5727_v41, %v6768_v40  ;;  %v5912_v58 = vmul.f32 %v5727_v41, %v6769_v18  ;;  %v5916_v11 = vmul.f32 %v5727_v41, %v6770_v15 }
 0x380   :  { %v5920_v27 = vmul.f32 %v5727_v41, %v5411_v26  ;;  %v5924_v37 = vmul.f32 %v5727_v41, %v6771_v53  ;;  %v5928_v40 = vmul.f32 %v5727_v41, %v6772_v2  ;;  %v5932_v18 = vmul.f32 %v5727_v41, %v6773_v35 }
 0x381   :  { %6822 = vst [vmem:[#allocation72_spill] sm:$0xff] %v5912_v58  ;;  %v2656_v58 = vsel %vm770_vm0, %v2655_v56, %v2650_v49  ;;  %v5937_v15 = vmul.f32 %v5727_v41, %v6774_v28  ;;  %v5941_v26 = vmul.f32 %v5727_v41, %v6775_v42  ;;  %v5945_v53 = vmul.f32 %v5727_v41, %v6776_v9 }
 0x382   :  { %v2657_v2 = vsel %vm2637_vm5, %v2656_v58, %v2653_v5  ;;  %v5950_v35 = vmul.f32 %v5727_v41, %v6777_v6  ;;  %v5954_v56 = vmul.f32 %v5727_v41, %v6778_v60  ;;  %v5958_v28 = vmul.f32 %v5727_v41, %v5355_v47  ;;  %v6828_v58 = vld [vmem:[#allocation17_spill] sm:$0xff] }
 0x383   :  { %v2658_v42 = vsel %vm2639_vm6, %v2657_v2, 0.0  ;;  %v5963_v9 = vmul.f32 %v5727_v41, %v5372_v43  ;;  %v5967_v49 = vmul.f32 %v5727_v41, %v5352_v12  ;;  %v5971_v6 = vmul.f32 %v5727_v41, %v5369_v0  ;;  %v6829_v2 = vld [vmem:[#allocation15_spill] sm:$0xff] }
 0x384   :  { %v5974_v60 = vrot.slane %v2658_v42, %v5715_v24  ;;  %v5978_v47 = vmul.f32 %v5727_v41, %v5470_v48  ;;  %v5982_v5 = vmul.f32 %v5727_v41, %v5488_v21  ;;  %v5986_v43 = vmul.f32 %v5727_v41, %v5467_v44  ;;  %v6830_v42 = vld [vmem:[#allocation73_spill] sm:$0xff] }
 0x385   :  { %v5990_v12 = vmul.f32 %v5727_v41, %v5477_v13 }
 0x386   :  { %v5994_v0 = vadd.f32 %v5974_v60, %v5732_v31  ;;  %v5998_v48 = vadd.f32 %v5974_v60, %v5736_v59  ;;  %v6002_v21 = vadd.f32 %v5974_v60, %v5740_v3  ;;  %v6006_v44 = vadd.f32 %v5974_v60, %v5744_v45 }
 0x387   :  { %v6010_v13 = vadd.f32 %v5974_v60, %v5748_v20  ;;  %v6014_v24 = vadd.f32 %v5974_v60, %v5752_v17  ;;  %v6018_v41 = vadd.f32 %v5974_v60, %v5756_v38  ;;  %v6022_v31 = vadd.f32 %v5974_v60, %v5760_v16 }
 0x388   :  { %v6026_v59 = vadd.f32 %v5974_v60, %v5764_v32  ;;  %v6030_v3 = vadd.f32 %v5974_v60, %v5768_v34  ;;  %v6034_v45 = vadd.f32 %v5974_v60, %v5772_v29  ;;  %v6038_v20 = vadd.f32 %v5974_v60, %v5776_v33 }
 0x389   :  { %v6042_v17 = vadd.f32 %v5974_v60, %v5780_v30  ;;  %v6046_v38 = vadd.f32 %v5974_v60, %v5784_v55  ;;  %v6050_v16 = vadd.f32 %v5974_v60, %v5788_v23  ;;  %v6054_v32 = vadd.f32 %v5974_v60, %v5792_v52  ;;  %v6824_v30 = vld [vmem:[#allocation16_spill] sm:$0xff]  ;;  %v6826_v23 = vld [vmem:[#allocation14_spill] sm:$0xff] }
 0x38a   :  { %v6058_v34 = vadd.f32 %v5974_v60, %v5796_v63  ;;  %v6062_v29 = vadd.f32 %v5974_v60, %v5800_v22  ;;  %v6066_v33 = vadd.f32 %v5974_v60, %v5804_v54  ;;  %v6070_v55 = vadd.f32 %v5974_v60, %v6824_v30 }
 0x38b   :  { %v6074_v52 = vadd.f32 %v5974_v60, %v6826_v23  ;;  %v6078_v63 = vadd.f32 %v5974_v60, %v6828_v58  ;;  %v6082_v22 = vadd.f32 %v5974_v60, %v6829_v2  ;;  %v6086_v54 = vadd.f32 %v5974_v60, %v6830_v42 }
 0x38c   :  { %6823 = vst [vmem:[#allocation82_spill] sm:$0xff] %v6066_v33  ;;  %6825 = vst [vmem:[#allocation66_spill] sm:$0xff] %v6070_v55  ;;  %v6831_v33 = vld [vmem:[#allocation92_spill] sm:$0xff]  ;;  %v6832_v55 = vld [vmem:[#allocation67_spill] sm:$0xff]  ;;  %v6102_v2 = vadd.f32 %v5974_v60, %v5840_v36  ;;  %v6106_v42 = vadd.f32 %v5974_v60, %v5844_v14  ;;  %v6122_v36 = vadd.f32 %v5974_v60, %v5860_v4 }
 0x38d   :  { %6827 = vst [vmem:[#allocation86_spill] sm:$0xff] %v6074_v52  ;;  %v6090_v30 = vadd.f32 %v5974_v60, %v6831_v33  ;;  %v6094_v23 = vadd.f32 %v5974_v60, %v6832_v55  ;;  %v6833_v52 = vld [vmem:[#allocation68_spill] sm:$0xff]  ;;  %v6110_v33 = vadd.f32 %v5974_v60, %v5848_v57  ;;  %v6114_v55 = vadd.f32 %v5974_v60, %v5852_v50 }
 0x38e   :  { %v6098_v58 = vadd.f32 %v5974_v60, %v6833_v52  ;;  %6834 = vst [vmem:[#allocation94_spill] sm:$0xff] %v6106_v42  ;;  %v6118_v52 = vadd.f32 %v5974_v60, %v5856_v19  ;;  %6835 = vst [vmem:[#allocation79_spill] sm:$0xff] %v6122_v36  ;;  %v6126_v14 = vadd.f32 %v5974_v60, %v5864_v62  ;;  %v6836_v42 = vld [vmem:[#allocation63_spill] sm:$0xff]  ;;  %v6837_v36 = vld [vmem:[#allocation88_spill] sm:$0xff] }
 0x38f   :  { %v6130_v57 = vadd.f32 %v5974_v60, %v6836_v42  ;;  %v6134_v50 = vadd.f32 %v5974_v60, %v5872_v25  ;;  %v6138_v19 = vadd.f32 %v5974_v60, %v5876_v46  ;;  %v6142_v4 = vadd.f32 %v5974_v60, %v5880_v1 }
 0x390   :  { %v6146_v62 = vadd.f32 %v5974_v60, %v6837_v36  ;;  %v6150_v42 = vadd.f32 %v5974_v60, %v5888_v39  ;;  %v6154_v25 = vadd.f32 %v5974_v60, %v5892_v51  ;;  %v6158_v46 = vadd.f32 %v5974_v60, %v5896_v8 }
 0x391   :  { %v6162_v1 = vadd.f32 %v5974_v60, %v5900_v7  ;;  %v6166_v36 = vadd.f32 %v5974_v60, %v5904_v10  ;;  %v6170_v39 = vadd.f32 %v5974_v60, %v5908_v61  ;;  %v6178_v8 = vadd.f32 %v5974_v60, %v5916_v11 }
 0x392   :  { %6838 = vst [vmem:[#allocation81_spill] sm:$0xff] %v6150_v42  ;;  %v6839_v42 = vld [vmem:[#allocation72_spill] sm:$0xff]  ;;  %v6182_v7 = vadd.f32 %v5974_v60, %v5920_v27  ;;  %v6186_v10 = vadd.f32 %v5974_v60, %v5924_v37  ;;  %v6190_v61 = vadd.f32 %v5974_v60, %v5928_v40  ;;  %v6198_v11 = vadd.f32 %v5974_v60, %v5937_v15 }
 0x393   :  { %v6174_v51 = vadd.f32 %v5974_v60, %v6839_v42  ;;  %v6194_v42 = vadd.f32 %v5974_v60, %v5932_v18  ;;  %v6202_v27 = vadd.f32 %v5974_v60, %v5941_v26  ;;  %v6206_v37 = vadd.f32 %v5974_v60, %v5945_v53 }
 0x394   :  { %v6210_v40 = vadd.f32 %v5974_v60, %v5950_v35  ;;  %v6214_v18 = vadd.f32 %v5974_v60, %v5954_v56  ;;  %v6218_v15 = vadd.f32 %v5974_v60, %v5958_v28  ;;  %v6222_v26 = vadd.f32 %v5974_v60, %v5963_v9 }
 0x395   :  { %v6226_v53 = vadd.f32 %v5974_v60, %v5967_v49  ;;  %v6230_v35 = vadd.f32 %v5974_v60, %v5971_v6  ;;  %v6234_v56 = vadd.f32 %v5974_v60, %v5978_v47  ;;  %v6238_v28 = vadd.f32 %v5974_v60, %v5982_v5 }
 0x396   :  { %v6242_v9 = vadd.f32 %v5974_v60, %v5986_v43  ;;  %v6246_v49 = vadd.f32 %v5974_v60, %v5990_v12  ;;  %v2796_v6 = vmax.f32 %v5998_v48, 0.0  ;;  %v2798_v47 = vmax.f32 %v6006_v44, 0.0 }
 0x397   :  { %6840 = vst [vmem:[#allocation76_spill] sm:$0xff] %v6226_v53  ;;  %6841 = vst [vmem:[#allocation93_spill] sm:$0xff] %v6230_v35  ;;  %v2795_v53 = vmax.f32 %v5994_v0, 0.0  ;;  %v2797_v35 = vmax.f32 %v6002_v21, 0.0  ;;  %v2800_v5 = vmax.f32 %v6014_v24, 0.0  ;;  %v2802_v43 = vmax.f32 %v6022_v31, 0.0 }
 0x398   :  { %6842 = vst [vmem:[#allocation90_spill] sm:$0xff] %v6234_v56  ;;  %6843 = vst [vmem:[#allocation69_spill] sm:$0xff] %v6238_v28  ;;  %v2799_v56 = vmax.f32 %v6010_v13, 0.0  ;;  %v2801_v28 = vmax.f32 %v6018_v41, 0.0  ;;  %v2804_v60 = vmax.f32 %v6030_v3, 0.0  ;;  %v2805_v12 = vmax.f32 %v6034_v45, 0.0 }
 0x399   :  { %6844 = vst [vmem:[#allocation13_spill] sm:$0xff] %v6242_v9  ;;  %v2803_v9 = vmax.f32 %v6026_v59, 0.0  ;;  %v2806_v0 = vmax.f32 %v6038_v20, 0.0  ;;  %2859 = vst [vmem:[%s6508_s4] sm:$0xff] %v2795_v53  ;;  %v2807_v48 = vmax.f32 %v6042_v17, 0.0  ;;  %v2808_v21 = vmax.f32 %v6046_v38, 0.0  ;;  %v6845_v31 = vld [vmem:[#allocation82_spill] sm:$0xff] }
 0x39a   :  { %2860 = vst [vmem:[%s6508_s4 + $0x8] sm:$0xff] %v2796_v6  ;;  %2861 = vst [vmem:[%s6508_s4 + $0x10] sm:$0xff] %v2797_v35  ;;  %v2809_v44 = vmax.f32 %v6050_v16, 0.0  ;;  %v2810_v13 = vmax.f32 %v6054_v32, 0.0  ;;  %v2811_v24 = vmax.f32 %v6058_v34, 0.0  ;;  %v2812_v41 = vmax.f32 %v6062_v29, 0.0 }
 0x39b   :  { %2862 = vst [vmem:[%s6508_s4 + $0x18] sm:$0xff] %v2798_v47  ;;  %2863 = vst [vmem:[%s6508_s4 + $0x20] sm:$0xff] %v2799_v56  ;;  %v2813_v59 = vmax.f32 %v6845_v31, 0.0  ;;  %v6846_v3 = vld [vmem:[#allocation66_spill] sm:$0xff]  ;;  %v2816_v38 = vmax.f32 %v6078_v63, 0.0  ;;  %v2817_v16 = vmax.f32 %v6082_v22, 0.0 }
 0x39c   :  { %2864 = vst [vmem:[%s6508_s4 + $0x28] sm:$0xff] %v2800_v5  ;;  %2865 = vst [vmem:[%s6508_s4 + $0x30] sm:$0xff] %v2801_v28  ;;  %v2814_v45 = vmax.f32 %v6846_v3, 0.0  ;;  %v6847_v20 = vld [vmem:[#allocation86_spill] sm:$0xff]  ;;  %v2818_v32 = vmax.f32 %v6086_v54, 0.0  ;;  %v2819_v34 = vmax.f32 %v6090_v30, 0.0 }
 0x39d   :  { %2866 = vst [vmem:[%s6508_s4 + $0x38] sm:$0xff] %v2802_v43  ;;  %2867 = vst [vmem:[%s6508_s4 + $0x40] sm:$0xff] %v2803_v9  ;;  %v2815_v17 = vmax.f32 %v6847_v20, 0.0  ;;  %v2820_v29 = vmax.f32 %v6094_v23, 0.0  ;;  %v2821_v63 = vmax.f32 %v6098_v58, 0.0  ;;  %v2822_v22 = vmax.f32 %v6102_v2, 0.0 }
 0x39e   :  { %2868 = vst [vmem:[%s6508_s4 + $0x48] sm:$0xff] %v2804_v60  ;;  %2869 = vst [vmem:[%s6508_s4 + $0x50] sm:$0xff] %v2805_v12  ;;  %v6848_v54 = vld [vmem:[#allocation94_spill] sm:$0xff]  ;;  %v2824_v23 = vmax.f32 %v6110_v33, 0.0  ;;  %v2825_v58 = vmax.f32 %v6114_v55, 0.0  ;;  %v2826_v2 = vmax.f32 %v6118_v52, 0.0 }
 0x39f   :  { %2870 = vst [vmem:[%s6508_s4 + $0x58] sm:$0xff] %v2806_v0  ;;  %2871 = vst [vmem:[%s6508_s4 + $0x60] sm:$0xff] %v2807_v48  ;;  %v2823_v30 = vmax.f32 %v6848_v54, 0.0  ;;  %v6849_v33 = vld [vmem:[#allocation79_spill] sm:$0xff]  ;;  %v2828_v52 = vmax.f32 %v6126_v14, 0.0  ;;  %v2829_v53 = vmax.f32 %v6130_v57, 0.0 }
 0x3a0   :  { %2872 = vst [vmem:[%s6508_s4 + $0x68] sm:$0xff] %v2808_v21  ;;  %2873 = vst [vmem:[%s6508_s4 + $0x70] sm:$0xff] %v2809_v44  ;;  %v2827_v55 = vmax.f32 %v6849_v33, 0.0  ;;  %v2830_v35 = vmax.f32 %v6134_v50, 0.0  ;;  %v2831_v14 = vmax.f32 %v6138_v19, 0.0  ;;  %v2832_v57 = vmax.f32 %v6142_v4, 0.0 }
 0x3a1   :  { %2874 = vst [vmem:[%s6508_s4 + $0x78] sm:$0xff] %v2810_v13  ;;  %2875 = vst [vmem:[%s6508_s4 + $0x80] sm:$0xff] %v2811_v24  ;;  %v2833_v50 = vmax.f32 %v6146_v62, 0.0  ;;  %v6850_v56 = vld [vmem:[#allocation81_spill] sm:$0xff]  ;;  %v2835_v19 = vmax.f32 %v6154_v25, 0.0  ;;  %v2836_v4 = vmax.f32 %v6158_v46, 0.0 }
 0x3a2   :  { %2876 = vst [vmem:[%s6508_s4 + $0x88] sm:$0xff] %v2812_v41  ;;  %2877 = vst [vmem:[%s6508_s4 + $0x90] sm:$0xff] %v2813_v59  ;;  %v2834_v28 = vmax.f32 %v6850_v56, 0.0  ;;  %v2837_v62 = vmax.f32 %v6162_v1, 0.0  ;;  %v2838_v9 = vmax.f32 %v6166_v36, 0.0  ;;  %v2839_v25 = vmax.f32 %v6170_v39, 0.0 }
 0x3a3   :  { %2878 = vst [vmem:[%s6508_s4 + $0x98] sm:$0xff] %v2814_v45  ;;  %2879 = vst [vmem:[%s6508_s4 + $0xa0] sm:$0xff] %v2815_v17  ;;  %v2840_v46 = vmax.f32 %v6174_v51, 0.0  ;;  %v2841_v1 = vmax.f32 %v6178_v8, 0.0  ;;  %v2842_v36 = vmax.f32 %v6182_v7, 0.0  ;;  %v2843_v39 = vmax.f32 %v6186_v10, 0.0 }
 0x3a4   :  { %2880 = vst [vmem:[%s6508_s4 + $0xa8] sm:$0xff] %v2816_v38  ;;  %2881 = vst [vmem:[%s6508_s4 + $0xb0] sm:$0xff] %v2817_v16  ;;  %v2844_v51 = vmax.f32 %v6190_v61, 0.0  ;;  %v2845_v8 = vmax.f32 %v6194_v42, 0.0  ;;  %v2846_v7 = vmax.f32 %v6198_v11, 0.0  ;;  %v2847_v10 = vmax.f32 %v6202_v27, 0.0 }
 0x3a5   :  { %2882 = vst [vmem:[%s6508_s4 + $0xb8] sm:$0xff] %v2818_v32  ;;  %2883 = vst [vmem:[%s6508_s4 + $0xc0] sm:$0xff] %v2819_v34  ;;  %v2848_v61 = vmax.f32 %v6206_v37, 0.0  ;;  %v2849_v42 = vmax.f32 %v6210_v40, 0.0  ;;  %v2850_v11 = vmax.f32 %v6214_v18, 0.0  ;;  %v2851_v27 = vmax.f32 %v6218_v15, 0.0 }
 0x3a6   :  { %2884 = vst [vmem:[%s6508_s4 + $0xc8] sm:$0xff] %v2820_v29  ;;  %2885 = vst [vmem:[%s6508_s4 + $0xd0] sm:$0xff] %v2821_v63  ;;  %v2852_v37 = vmax.f32 %v6222_v26, 0.0  ;;  %v6851_v40 = vld [vmem:[#allocation76_spill] sm:$0xff]  ;;  %v6852_v6 = vld [vmem:[#allocation93_spill] sm:$0xff]  ;;  %v2858_v0 = vmax.f32 %v6246_v49, 0.0 }
 0x3a7   :  { %2886 = vst [vmem:[%s6508_s4 + $0xd8] sm:$0xff] %v2822_v22  ;;  %2887 = vst [vmem:[%s6508_s4 + $0xe0] sm:$0xff] %v2823_v30  ;;  %v2853_v18 = vmax.f32 %v6851_v40, 0.0  ;;  %v2854_v47 = vmax.f32 %v6852_v6, 0.0  ;;  %v6853_v15 = vld [vmem:[#allocation90_spill] sm:$0xff]  ;;  %v6854_v5 = vld [vmem:[#allocation69_spill] sm:$0xff] }
 0x3a8   :  { %2888 = vst [vmem:[%s6508_s4 + $0xe8] sm:$0xff] %v2824_v23  ;;  %2889 = vst [vmem:[%s6508_s4 + $0xf0] sm:$0xff] %v2825_v58  ;;  %v2855_v26 = vmax.f32 %v6853_v15, 0.0  ;;  %v2856_v43 = vmax.f32 %v6854_v5, 0.0  ;;  %v6855_v60 = vld [vmem:[#allocation13_spill] sm:$0xff] }
 0x3a9   :  { %2890 = vst [vmem:[%s6508_s4 + $0xf8] sm:$0xff] %v2826_v2  ;;  %2891 = vst [vmem:[%s6508_s4 + $0x100] sm:$0xff] %v2827_v55  ;;  %v2857_v12 = vmax.f32 %v6855_v60, 0.0 }
 0x3aa   :  { %2892 = vst [vmem:[%s6508_s4 + $0x108] sm:$0xff] %v2828_v52  ;;  %2893 = vst [vmem:[%s6508_s4 + $0x110] sm:$0xff] %v2829_v53 }
 0x3ab   :  { %2894 = vst [vmem:[%s6508_s4 + $0x118] sm:$0xff] %v2830_v35  ;;  %2895 = vst [vmem:[%s6508_s4 + $0x120] sm:$0xff] %v2831_v14 }
 0x3ac   :  { %2896 = vst [vmem:[%s6508_s4 + $0x128] sm:$0xff] %v2832_v57  ;;  %2897 = vst [vmem:[%s6508_s4 + $0x130] sm:$0xff] %v2833_v50 }
 0x3ad   :  { %2898 = vst [vmem:[%s6508_s4 + $0x138] sm:$0xff] %v2834_v28  ;;  %2899 = vst [vmem:[%s6508_s4 + $0x140] sm:$0xff] %v2835_v19 }
 0x3ae   :  { %2900 = vst [vmem:[%s6508_s4 + $0x148] sm:$0xff] %v2836_v4  ;;  %2901 = vst [vmem:[%s6508_s4 + $0x150] sm:$0xff] %v2837_v62 }
 0x3af   :  { %2902 = vst [vmem:[%s6508_s4 + $0x158] sm:$0xff] %v2838_v9  ;;  %2903 = vst [vmem:[%s6508_s4 + $0x160] sm:$0xff] %v2839_v25 }
 0x3b0   :  { %2904 = vst [vmem:[%s6508_s4 + $0x168] sm:$0xff] %v2840_v46  ;;  %2905 = vst [vmem:[%s6508_s4 + $0x170] sm:$0xff] %v2841_v1 }
 0x3b1   :  { %2906 = vst [vmem:[%s6508_s4 + $0x178] sm:$0xff] %v2842_v36  ;;  %2907 = vst [vmem:[%s6508_s4 + $0x180] sm:$0xff] %v2843_v39 }
 0x3b2   :  { %2908 = vst [vmem:[%s6508_s4 + $0x188] sm:$0xff] %v2844_v51  ;;  %2909 = vst [vmem:[%s6508_s4 + $0x190] sm:$0xff] %v2845_v8 }
 0x3b3   :  { %2910 = vst [vmem:[%s6508_s4 + $0x198] sm:$0xff] %v2846_v7  ;;  %2911 = vst [vmem:[%s6508_s4 + $0x1a0] sm:$0xff] %v2847_v10 }
 0x3b4   :  { %2912 = vst [vmem:[%s6508_s4 + $0x1a8] sm:$0xff] %v2848_v61  ;;  %2913 = vst [vmem:[%s6508_s4 + $0x1b0] sm:$0xff] %v2849_v42 }
 0x3b5   :  { %2914 = vst [vmem:[%s6508_s4 + $0x1b8] sm:$0xff] %v2850_v11  ;;  %2915 = vst [vmem:[%s6508_s4 + $0x1c0] sm:$0xff] %v2851_v27 }
 0x3b6   :  { %2916 = vst [vmem:[%s6508_s4 + $0x1c8] sm:$0xff] %v2852_v37  ;;  %2917 = vst [vmem:[%s6508_s4 + $0x1d0] sm:$0xff] %v2853_v18 }
 0x3b7   :  { %2918 = vst [vmem:[%s6508_s4 + $0x1d8] sm:$0xff] %v2854_v47  ;;  %2919 = vst [vmem:[%s6508_s4 + $0x1e0] sm:$0xff] %v2855_v26 }
 0x3b8   :  { %2920 = vst [vmem:[%s6508_s4 + $0x1e8] sm:$0xff] %v2856_v43  ;;  %2921 = vst [vmem:[%s6508_s4 + $0x1f0] sm:$0xff] %v2857_v12 }
 0x3b9   :  { %2922 = vst [vmem:[%s6508_s4 + $0x1f8] sm:$0xff] %v2858_v0 }

// kernel: dc_generator_forward.9
= control target key start
LH: loop header
LB: loop body
LE: loop exit
PB: predicated region body
PF: predicated region fallthrough
CT: control target
= control target key end

     0   :  { %s2699_s9 = smov 0   ;;  %s3074_s0 = inlined_call_operand.vmem [shape: bf16[2048,144], index: 0, kind: input, shape index: {}]   ;;  %s3075_s1 = inlined_call_operand.vmem [shape: bf16[144,128], index: 1, kind: input, shape index: {}]   ;;  %s3076_s2 = inlined_call_operand.vmem [shape: f32[2048,128], index: 2, kind: output, shape index: {}]  }
   0x1 LB: > { %s1977_s10 = sadd.s32 4294967295, %s2681_s9   ;;  %p1981_p0 = scmp.ge.s32.totalorder %s2681_s9, 1  ;;  %s2681_s9 = sphi %s2699_s9, %s12_s9  }
   0x2   : > { %p114_p1 = scmp.lt.s32.totalorder %s2681_s9, 3 }
   0x4   : > { %p115_p2 = pnand %p1981_p0, %p114_p1 }
   0x5   : > { %s1982_s13 = sshll.u32 (!%p115_p2), %s1977_s10, 7 }
   0x6   : > { %118 = sbr.rel (%p115_p2) target bundleno = 509 (0x1fd), region = 28  ;;  %p138_p3 = scmp.lt.s32.totalorder (!%p115_p2), %s1982_s13, 255 }
   0xb   : > { %v2218_v0 = vld [vmem:[%s3075_s1 + $0x38] sm:$0xff]   ;;  %v2683_v1 = vmov 0   ;;  %v2219_v2 = vld [vmem:[%s3075_s1 + $0x30] sm:$0xff]   ;;  %s3078_s13 = smov (!%p138_p3, %s1982_s13), 255  ;;  %v2220_v3 = vld [vmem:[%s3075_s1 + $0x28] sm:$0xff]   ;;  %vm927_vm0 = vcmask 130048  }
   0xc   : > { %1120 = vmatprep.subr.bf16.mxu0 %v2683_v1  ;;  %2191 = vmatprep.subr.bf16.mxu1 %v2683_v1  ;;  %s2190_s18 = sshll.u32 %s3078_s13, 3  ;;  %v2221_v4 = vld [vmem:[%s3075_s1 + $0x20] sm:$0xff]   ;;  %v2222_v7 = vld [vmem:[%s3075_s1 + $0x18] sm:$0xff]   ;;  %v2223_v8 = vld [vmem:[%s3075_s1 + $0x10] sm:$0xff]  }
   0xd   : > { %1121 = vmatpush1.bf16.msra.mxu0 %v2218_v0  ;;  %2200 = vmatpush1.bf16.msra.mxu1 %v2218_v0  ;;  %s2724_s21 = scalar_lea.vmem %s3074_s0, %s2190_s18  ;;  %v2224_v9 = vld [vmem:[%s3075_s1 + $0x8] sm:$0xff]   ;;  %v2225_v10 = vld [vmem:[%s3075_s1] sm:$0xff]   ;;  %s2909_s8 = scalar_lea.vmem %s3076_s2, %s2190_s18 }
   0xe   : > { %1122 = vmatprep.subr.bf16.mxu0 %v2683_v1  ;;  %2192 = vmatprep.subr.bf16.mxu1 %v2683_v1  ;;  %v2229_v5 = vld [vmem:[%s2724_s21 + $0x4] ss:$8 sps:$4 sm:$0xff]   ;;  %v2227_v12 = vld [vmem:[%s2724_s21] ss:$8 sps:$4 sm:$0xff]   ;;  %v2233_v14 = vld [vmem:[%s2724_s21 + $0x14] ss:$8 sps:$4 sm:$0xff]  }
   0xf   : > { %v2232_v6 = vld [vmem:[%s2724_s21 + $0x204] ss:$8 sps:$4 sm:$0xff]   ;;  %2124 = vmatprep.mubr.msk.bf16.mxu0 %vm927_vm0, %v2229_v5  ;;  %v2230_v13 = vld [vmem:[%s2724_s21 + $0x200] ss:$8 sps:$4 sm:$0xff]   ;;  %v2235_v15 = vld [vmem:[%s2724_s21 + $0x214] ss:$8 sps:$4 sm:$0xff]  }
  0x10   : > { %2156 = vmatprep.mubr.msk.bf16.mxu1 %vm927_vm0, %v2232_v6  ;;  %v2226_v11 = vld [vmem:[%s3075_s1 + $0x40] sm:$0xff]   ;;  %v2237_v16 = vld [vmem:[%s2724_s21 + $0x10] ss:$8 sps:$4 sm:$0xff]   ;;  %v2245_v22 = vld [vmem:[%s2724_s21 + $0x34] ss:$8 sps:$4 sm:$0xff]  }
  0x11   : > { %1123 = vmatpush1.bf16.msra.mxu0 %v2219_v2  ;;  %2201 = vmatpush1.bf16.msra.mxu1 %v2219_v2  ;;  %v2238_v17 = vld [vmem:[%s2724_s21 + $0x210] ss:$8 sps:$4 sm:$0xff]   ;;  %v2239_v18 = vld [vmem:[%s2724_s21 + $0x24] ss:$8 sps:$4 sm:$0xff]   ;;  %v2243_v20 = vld [vmem:[%s2724_s21 + $0x20] ss:$8 sps:$4 sm:$0xff]  }
  0x12   : > { %1124 = vmatprep.subr.bf16.mxu0 %v2683_v1  ;;  %2193 = vmatprep.subr.bf16.mxu1 %v2683_v1  ;;  %v2241_v19 = vld [vmem:[%s2724_s21 + $0x224] ss:$8 sps:$4 sm:$0xff]   ;;  %v2244_v21 = vld [vmem:[%s2724_s21 + $0x220] ss:$8 sps:$4 sm:$0xff]   ;;  %v2247_v23 = vld [vmem:[%s2724_s21 + $0x234] ss:$8 sps:$4 sm:$0xff]  }
  0x13   : > { %v2249_v24 = vld [vmem:[%s2724_s21 + $0x30] ss:$8 sps:$4 sm:$0xff]   ;;  %v2251_v26 = vld [vmem:[%s2724_s21 + $0x44] ss:$8 sps:$4 sm:$0xff]   ;;  %v2255_v28 = vld [vmem:[%s2724_s21 + $0x40] ss:$8 sps:$4 sm:$0xff]  }
  0x14   : > { %v2250_v25 = vld [vmem:[%s2724_s21 + $0x230] ss:$8 sps:$4 sm:$0xff]   ;;  %v2253_v27 = vld [vmem:[%s2724_s21 + $0x244] ss:$8 sps:$4 sm:$0xff]   ;;  %v2256_v29 = vld [vmem:[%s2724_s21 + $0x240] ss:$8 sps:$4 sm:$0xff]  }
  0x15   : > { %1125 = vmatpush1.bf16.msra.mxu0 %v2220_v3  ;;  %2202 = vmatpush1.bf16.msra.mxu1 %v2220_v3  ;;  %v2257_v30 = vld [vmem:[%s2724_s21 + $0x54] ss:$8 sps:$4 sm:$0xff]   ;;  %v2261_v32 = vld [vmem:[%s2724_s21 + $0x50] ss:$8 sps:$4 sm:$0xff]   ;;  %v2263_v34 = vld [vmem:[%s2724_s21 + $0x64] ss:$8 sps:$4 sm:$0xff]  }
  0x16   : > { %1126 = vmatprep.subr.bf16.mxu0 %v2683_v1  ;;  %2194 = vmatprep.subr.bf16.mxu1 %v2683_v1  ;;  %v2259_v31 = vld [vmem:[%s2724_s21 + $0x254] ss:$8 sps:$4 sm:$0xff]   ;;  %v2262_v33 = vld [vmem:[%s2724_s21 + $0x250] ss:$8 sps:$4 sm:$0xff]   ;;  %v2265_v35 = vld [vmem:[%s2724_s21 + $0x264] ss:$8 sps:$4 sm:$0xff]  }
  0x17   : > { %v2267_v36 = vld [vmem:[%s2724_s21 + $0x60] ss:$8 sps:$4 sm:$0xff]   ;;  %v2269_v38 = vld [vmem:[%s2724_s21 + $0x74] ss:$8 sps:$4 sm:$0xff]   ;;  %v2273_v40 = vld [vmem:[%s2724_s21 + $0x70] ss:$8 sps:$4 sm:$0xff]  }
  0x18   : > { %v2268_v37 = vld [vmem:[%s2724_s21 + $0x260] ss:$8 sps:$4 sm:$0xff]   ;;  %v2271_v39 = vld [vmem:[%s2724_s21 + $0x274] ss:$8 sps:$4 sm:$0xff]   ;;  %v2274_v41 = vld [vmem:[%s2724_s21 + $0x270] ss:$8 sps:$4 sm:$0xff]  }
  0x19   : > { %1127 = vmatpush1.bf16.msra.mxu0 %v2221_v4  ;;  %2203 = vmatpush1.bf16.msra.mxu1 %v2221_v4  ;;  %v2275_v42 = vld [vmem:[%s2724_s21 + $0x84] ss:$8 sps:$4 sm:$0xff]   ;;  %v2279_v44 = vld [vmem:[%s2724_s21 + $0x80] ss:$8 sps:$4 sm:$0xff]   ;;  %v2281_v46 = vld [vmem:[%s2724_s21 + $0x94] ss:$8 sps:$4 sm:$0xff]  }
  0x1a   : > { %1128 = vmatprep.subr.bf16.mxu0 %v2683_v1  ;;  %2195 = vmatprep.subr.bf16.mxu1 %v2683_v1  ;;  %v2277_v43 = vld [vmem:[%s2724_s21 + $0x284] ss:$8 sps:$4 sm:$0xff]   ;;  %v2280_v45 = vld [vmem:[%s2724_s21 + $0x280] ss:$8 sps:$4 sm:$0xff]   ;;  %v2283_v47 = vld [vmem:[%s2724_s21 + $0x294] ss:$8 sps:$4 sm:$0xff]  }
  0x1b   : > { %v2285_v48 = vld [vmem:[%s2724_s21 + $0x90] ss:$8 sps:$4 sm:$0xff]   ;;  %v2287_v50 = vld [vmem:[%s2724_s21 + $0xa4] ss:$8 sps:$4 sm:$0xff]   ;;  %v2291_v52 = vld [vmem:[%s2724_s21 + $0xa0] ss:$8 sps:$4 sm:$0xff]  }
  0x1c   : > { %v2286_v49 = vld [vmem:[%s2724_s21 + $0x290] ss:$8 sps:$4 sm:$0xff]   ;;  %v2289_v51 = vld [vmem:[%s2724_s21 + $0x2a4] ss:$8 sps:$4 sm:$0xff]   ;;  %v2292_v53 = vld [vmem:[%s2724_s21 + $0x2a0] ss:$8 sps:$4 sm:$0xff]  }
  0x1d   : > { %1129 = vmatpush1.bf16.msra.mxu0 %v2222_v7  ;;  %2204 = vmatpush1.bf16.msra.mxu1 %v2222_v7  ;;  %v2293_v54 = vld [vmem:[%s2724_s21 + $0xb4] ss:$8 sps:$4 sm:$0xff]   ;;  %v2297_v56 = vld [vmem:[%s2724_s21 + $0xb0] ss:$8 sps:$4 sm:$0xff]   ;;  %v2299_v58 = vld [vmem:[%s2724_s21 + $0xc4] ss:$8 sps:$4 sm:$0xff]  }
  0x1e   : > { %1130 = vmatprep.subr.bf16.mxu0 %v2683_v1  ;;  %2196 = vmatprep.subr.bf16.mxu1 %v2683_v1  ;;  %v2295_v55 = vld [vmem:[%s2724_s21 + $0x2b4] ss:$8 sps:$4 sm:$0xff]   ;;  %v2298_v57 = vld [vmem:[%s2724_s21 + $0x2b0] ss:$8 sps:$4 sm:$0xff]   ;;  %v2301_v59 = vld [vmem:[%s2724_s21 + $0x2c4] ss:$8 sps:$4 sm:$0xff]  }
  0x1f   : > { %v2303_v60 = vld [vmem:[%s2724_s21 + $0xc0] ss:$8 sps:$4 sm:$0xff]   ;;  %v2305_v62 = vld [vmem:[%s2724_s21 + $0xd4] ss:$8 sps:$4 sm:$0xff]   ;;  %v2309_v0 = vld [vmem:[%s2724_s21 + $0xd0] ss:$8 sps:$4 sm:$0xff]  }
  0x20   : > { %v2304_v61 = vld [vmem:[%s2724_s21 + $0x2c0] ss:$8 sps:$4 sm:$0xff]   ;;  %v2307_v63 = vld [vmem:[%s2724_s21 + $0x2d4] ss:$8 sps:$4 sm:$0xff]   ;;  %v2311_v2 = vld [vmem:[%s2724_s21 + $0xe4] ss:$8 sps:$4 sm:$0xff]  }
  0x21   : > { %1131 = vmatpush1.bf16.msra.mxu0 %v2223_v8  ;;  %2205 = vmatpush1.bf16.msra.mxu1 %v2223_v8  ;;  %v2313_v3 = vld [vmem:[%s2724_s21 + $0x2e4] ss:$8 sps:$4 sm:$0xff]   ;;  %v2315_v4 = vld [vmem:[%s2724_s21 + $0xe0] ss:$8 sps:$4 sm:$0xff]   ;;  %v2317_v6 = vld [vmem:[%s2724_s21 + $0xf4] ss:$8 sps:$4 sm:$0xff]  }
  0x22   : > { %1132 = vmatprep.subr.bf16.mxu0 %v2683_v1  ;;  %2197 = vmatprep.subr.bf16.mxu1 %v2683_v1  ;;  %v2316_v5 = vld [vmem:[%s2724_s21 + $0x2e0] ss:$8 sps:$4 sm:$0xff]   ;;  %v2319_v7 = vld [vmem:[%s2724_s21 + $0x2f4] ss:$8 sps:$4 sm:$0xff]   ;;  %v2321_v8 = vld [vmem:[%s2724_s21 + $0xf0] ss:$8 sps:$4 sm:$0xff]  }
  0x25   : > { %1133 = vmatpush1.bf16.msra.mxu0 %v2224_v9  ;;  %2206 = vmatpush1.bf16.msra.mxu1 %v2224_v9  ;;  %v2322_v9 = vld [vmem:[%s2724_s21 + $0x2f0] ss:$8 sps:$4 sm:$0xff]  }
  0x26   : > { %1134 = vmatprep.subr.bf16.mxu0 %v2683_v1  ;;  %2198 = vmatprep.subr.bf16.mxu1 %v2683_v1 }
  0x29   : > { %1135 = vmatpush1.bf16.msra.mxu0 %v2225_v10  ;;  %2207 = vmatpush1.bf16.msra.mxu1 %v2225_v10  ;;  %v2323_v10 = vld [vmem:[%s2724_s21 + $0x104] ss:$8 sps:$4 sm:$0xff]  }
  0x2a   : > { %1150 = vmatprep.subr.bf16.mxu0 %v2683_v1  ;;  %2199 = vmatprep.subr.bf16.mxu1 %v2683_v1  ;;  %v2310_v1 = vld [vmem:[%s2724_s21 + $0x2d0] ss:$8 sps:$4 sm:$0xff]  }
  0x2d   : > { %1151 = vmatpush2.bf16.msra.mxu0 %v2226_v11  ;;  %2208 = vmatpush2.bf16.msra.mxu1 %v2226_v11  ;;  %v2325_v11 = vld [vmem:[%s2724_s21 + $0x304] ss:$8 sps:$4 sm:$0xff]  }
  0x30   : > { %1153 = vmatmul.mubr.bf16.vlgmr.msra.gmra.mxu0 %v2227_v12  ;;  %1409 = vmatmul.mubr.bf16.vlgmr.msra.gmra.mxu1 %v2230_v13  ;;  %v2327_v12 = vld [vmem:[%s2724_s21 + $0x100] ss:$8 sps:$4 sm:$0xff]  }
  0x31   : > { %2125 = vmatprep.mubr.msk.bf16.mxu0 %vm927_vm0, %v2233_v14  ;;  %2157 = vmatprep.mubr.msk.bf16.mxu1 %vm927_vm0, %v2235_v15  ;;  %v2328_v13 = vld [vmem:[%s2724_s21 + $0x300] ss:$8 sps:$4 sm:$0xff]   ;;  %v2329_v14 = vld [vmem:[%s2724_s21 + $0x114] ss:$8 sps:$4 sm:$0xff]  }
  0x32   : > { %v2331_v15 = vld [vmem:[%s2724_s21 + $0x314] ss:$8 sps:$4 sm:$0xff]  }
  0x38   : > { %1161 = vmatmul.mubr.bf16.gmra.mxu0 %v2237_v16  ;;  %1417 = vmatmul.mubr.bf16.gmra.mxu1 %v2238_v17  ;;  %v2333_v16 = vld [vmem:[%s2724_s21 + $0x110] ss:$8 sps:$4 sm:$0xff]  }
  0x39   : > { %2126 = vmatprep.mubr.msk.bf16.mxu0 %vm927_vm0, %v2239_v18  ;;  %2158 = vmatprep.mubr.msk.bf16.mxu1 %vm927_vm0, %v2241_v19  ;;  %v2334_v17 = vld [vmem:[%s2724_s21 + $0x310] ss:$8 sps:$4 sm:$0xff]   ;;  %v2335_v18 = vld [vmem:[%s2724_s21 + $0x124] ss:$8 sps:$4 sm:$0xff]  }
  0x3a   : > { %v2337_v19 = vld [vmem:[%s2724_s21 + $0x324] ss:$8 sps:$4 sm:$0xff]  }
  0x40   : > { %1169 = vmatmul.mubr.bf16.gmra.mxu0 %v2243_v20  ;;  %1425 = vmatmul.mubr.bf16.gmra.mxu1 %v2244_v21  ;;  %v2339_v20 = vld [vmem:[%s2724_s21 + $0x120] ss:$8 sps:$4 sm:$0xff]  }
  0x41   : > { %2127 = vmatprep.mubr.msk.bf16.mxu0 %vm927_vm0, %v2245_v22  ;;  %2159 = vmatprep.mubr.msk.bf16.mxu1 %vm927_vm0, %v2247_v23  ;;  %v2340_v21 = vld [vmem:[%s2724_s21 + $0x320] ss:$8 sps:$4 sm:$0xff]   ;;  %v2341_v22 = vld [vmem:[%s2724_s21 + $0x134] ss:$8 sps:$4 sm:$0xff]  }
  0x42   : > { %v2343_v23 = vld [vmem:[%s2724_s21 + $0x334] ss:$8 sps:$4 sm:$0xff]  }
  0x48   : > { %1177 = vmatmul.mubr.bf16.gmra.mxu0 %v2249_v24  ;;  %1433 = vmatmul.mubr.bf16.gmra.mxu1 %v2250_v25  ;;  %v2345_v24 = vld [vmem:[%s2724_s21 + $0x130] ss:$8 sps:$4 sm:$0xff]  }
  0x49   : > { %2128 = vmatprep.mubr.msk.bf16.mxu0 %vm927_vm0, %v2251_v26  ;;  %2160 = vmatprep.mubr.msk.bf16.mxu1 %vm927_vm0, %v2253_v27  ;;  %v2346_v25 = vld [vmem:[%s2724_s21 + $0x330] ss:$8 sps:$4 sm:$0xff]   ;;  %v2347_v26 = vld [vmem:[%s2724_s21 + $0x144] ss:$8 sps:$4 sm:$0xff]  }
  0x4a   : > { %v2349_v27 = vld [vmem:[%s2724_s21 + $0x344] ss:$8 sps:$4 sm:$0xff]  }
  0x50   : > { %1185 = vmatmul.mubr.bf16.gmra.mxu0 %v2255_v28  ;;  %1441 = vmatmul.mubr.bf16.gmra.mxu1 %v2256_v29  ;;  %v2351_v28 = vld [vmem:[%s2724_s21 + $0x140] ss:$8 sps:$4 sm:$0xff]  }
  0x51   : > { %2129 = vmatprep.mubr.msk.bf16.mxu0 %vm927_vm0, %v2257_v30  ;;  %2161 = vmatprep.mubr.msk.bf16.mxu1 %vm927_vm0, %v2259_v31  ;;  %v2352_v29 = vld [vmem:[%s2724_s21 + $0x340] ss:$8 sps:$4 sm:$0xff]   ;;  %v2353_v30 = vld [vmem:[%s2724_s21 + $0x154] ss:$8 sps:$4 sm:$0xff]  }
  0x52   : > { %v2355_v31 = vld [vmem:[%s2724_s21 + $0x354] ss:$8 sps:$4 sm:$0xff]  }
  0x58   : > { %1193 = vmatmul.mubr.bf16.gmra.mxu0 %v2261_v32  ;;  %1449 = vmatmul.mubr.bf16.gmra.mxu1 %v2262_v33  ;;  %v2357_v32 = vld [vmem:[%s2724_s21 + $0x150] ss:$8 sps:$4 sm:$0xff]  }
  0x59   : > { %2130 = vmatprep.mubr.msk.bf16.mxu0 %vm927_vm0, %v2263_v34  ;;  %2162 = vmatprep.mubr.msk.bf16.mxu1 %vm927_vm0, %v2265_v35  ;;  %v2358_v33 = vld [vmem:[%s2724_s21 + $0x350] ss:$8 sps:$4 sm:$0xff]   ;;  %v2359_v34 = vld [vmem:[%s2724_s21 + $0x164] ss:$8 sps:$4 sm:$0xff]  }
  0x5a   : > { %v2361_v35 = vld [vmem:[%s2724_s21 + $0x364] ss:$8 sps:$4 sm:$0xff]  }
  0x60   : > { %1201 = vmatmul.mubr.bf16.gmra.mxu0 %v2267_v36  ;;  %1457 = vmatmul.mubr.bf16.gmra.mxu1 %v2268_v37  ;;  %v2363_v36 = vld [vmem:[%s2724_s21 + $0x160] ss:$8 sps:$4 sm:$0xff]  }
  0x61   : > { %2131 = vmatprep.mubr.msk.bf16.mxu0 %vm927_vm0, %v2269_v38  ;;  %2163 = vmatprep.mubr.msk.bf16.mxu1 %vm927_vm0, %v2271_v39  ;;  %v2364_v37 = vld [vmem:[%s2724_s21 + $0x360] ss:$8 sps:$4 sm:$0xff]   ;;  %v2365_v38 = vld [vmem:[%s2724_s21 + $0x174] ss:$8 sps:$4 sm:$0xff]  }
  0x62   : > { %v2367_v39 = vld [vmem:[%s2724_s21 + $0x374] ss:$8 sps:$4 sm:$0xff]  }
  0x68   : > { %1209 = vmatmul.mubr.bf16.gmra.mxu0 %v2273_v40  ;;  %1465 = vmatmul.mubr.bf16.gmra.mxu1 %v2274_v41  ;;  %v2369_v40 = vld [vmem:[%s2724_s21 + $0x170] ss:$8 sps:$4 sm:$0xff]  }
  0x69   : > { %2132 = vmatprep.mubr.msk.bf16.mxu0 %vm927_vm0, %v2275_v42  ;;  %2164 = vmatprep.mubr.msk.bf16.mxu1 %vm927_vm0, %v2277_v43  ;;  %v2370_v41 = vld [vmem:[%s2724_s21 + $0x370] ss:$8 sps:$4 sm:$0xff]   ;;  %v2371_v42 = vld [vmem:[%s2724_s21 + $0x184] ss:$8 sps:$4 sm:$0xff]  }
  0x6a   : > { %v2373_v43 = vld [vmem:[%s2724_s21 + $0x384] ss:$8 sps:$4 sm:$0xff]  }
  0x70   : > { %1217 = vmatmul.mubr.bf16.gmra.mxu0 %v2279_v44  ;;  %1473 = vmatmul.mubr.bf16.gmra.mxu1 %v2280_v45  ;;  %v2375_v44 = vld [vmem:[%s2724_s21 + $0x180] ss:$8 sps:$4 sm:$0xff]  }
  0x71   : > { %2133 = vmatprep.mubr.msk.bf16.mxu0 %vm927_vm0, %v2281_v46  ;;  %2165 = vmatprep.mubr.msk.bf16.mxu1 %vm927_vm0, %v2283_v47  ;;  %v2376_v45 = vld [vmem:[%s2724_s21 + $0x380] ss:$8 sps:$4 sm:$0xff]   ;;  %v2377_v46 = vld [vmem:[%s2724_s21 + $0x194] ss:$8 sps:$4 sm:$0xff]  }
  0x72   : > { %v2379_v47 = vld [vmem:[%s2724_s21 + $0x394] ss:$8 sps:$4 sm:$0xff]  }
  0x78   : > { %1225 = vmatmul.mubr.bf16.gmra.mxu0 %v2285_v48  ;;  %1481 = vmatmul.mubr.bf16.gmra.mxu1 %v2286_v49 }
  0x79   : > { %2134 = vmatprep.mubr.msk.bf16.mxu0 %vm927_vm0, %v2287_v50  ;;  %2166 = vmatprep.mubr.msk.bf16.mxu1 %vm927_vm0, %v2289_v51 }
  0x80   : > { %1233 = vmatmul.mubr.bf16.gmra.mxu0 %v2291_v52  ;;  %1489 = vmatmul.mubr.bf16.gmra.mxu1 %v2292_v53 }
  0x81   : > { %2135 = vmatprep.mubr.msk.bf16.mxu0 %vm927_vm0, %v2293_v54  ;;  %2167 = vmatprep.mubr.msk.bf16.mxu1 %vm927_vm0, %v2295_v55  ;;  %v2381_v54 = vld [vmem:[%s2724_s21 + $0x190] ss:$8 sps:$4 sm:$0xff]  }
  0x82   : > { %v2382_v55 = vld [vmem:[%s2724_s21 + $0x390] ss:$8 sps:$4 sm:$0xff]  }
  0x88   : > { %1241 = vmatmul.mubr.bf16.gmra.mxu0 %v2297_v56  ;;  %1497 = vmatmul.mubr.bf16.gmra.mxu1 %v2298_v57  ;;  %v2383_v56 = vld [vmem:[%s2724_s21 + $0x1a4] ss:$8 sps:$4 sm:$0xff]  }
  0x89   : > { %2136 = vmatprep.mubr.msk.bf16.mxu0 %vm927_vm0, %v2299_v58  ;;  %2168 = vmatprep.mubr.msk.bf16.mxu1 %vm927_vm0, %v2301_v59  ;;  %v2385_v57 = vld [vmem:[%s2724_s21 + $0x3a4] ss:$8 sps:$4 sm:$0xff]  }
  0x90   : > { %1249 = vmatmul.mubr.bf16.gmra.mxu0 %v2303_v60  ;;  %1505 = vmatmul.mubr.bf16.gmra.mxu1 %v2304_v61 }
  0x91   : > { %2137 = vmatprep.mubr.msk.bf16.mxu0 %vm927_vm0, %v2305_v62  ;;  %2169 = vmatprep.mubr.msk.bf16.mxu1 %vm927_vm0, %v2307_v63 }
  0x98   : > { %1257 = vmatmul.mubr.bf16.gmra.mxu0 %v2309_v0  ;;  %1513 = vmatmul.mubr.bf16.gmra.mxu1 %v2310_v1 }
  0x99   : > { %2138 = vmatprep.mubr.msk.bf16.mxu0 %vm927_vm0, %v2311_v2  ;;  %2170 = vmatprep.mubr.msk.bf16.mxu1 %vm927_vm0, %v2313_v3  ;;  %v2387_v2 = vld [vmem:[%s2724_s21 + $0x1a0] ss:$8 sps:$4 sm:$0xff]  }
  0x9a   : > { %v2388_v3 = vld [vmem:[%s2724_s21 + $0x3a0] ss:$8 sps:$4 sm:$0xff]  }
  0xa0   : > { %1265 = vmatmul.mubr.bf16.gmra.mxu0 %v2315_v4  ;;  %1521 = vmatmul.mubr.bf16.gmra.mxu1 %v2316_v5  ;;  %v2389_v4 = vld [vmem:[%s2724_s21 + $0x1b4] ss:$8 sps:$4 sm:$0xff]  }
  0xa1   : > { %2139 = vmatprep.mubr.msk.bf16.mxu0 %vm927_vm0, %v2317_v6  ;;  %2171 = vmatprep.mubr.msk.bf16.mxu1 %vm927_vm0, %v2319_v7  ;;  %v2391_v5 = vld [vmem:[%s2724_s21 + $0x3b4] ss:$8 sps:$4 sm:$0xff]  }
  0xa8   : > { %1273 = vmatmul.mubr.bf16.gmra.mxu0 %v2321_v8  ;;  %1529 = vmatmul.mubr.bf16.gmra.mxu1 %v2322_v9 }
  0xa9   : > { %2140 = vmatprep.mubr.msk.bf16.mxu0 %vm927_vm0, %v2323_v10  ;;  %2172 = vmatprep.mubr.msk.bf16.mxu1 %vm927_vm0, %v2325_v11 }
  0xb0   : > { %1281 = vmatmul.mubr.bf16.gmra.mxu0 %v2327_v12  ;;  %1537 = vmatmul.mubr.bf16.gmra.mxu1 %v2328_v13 }
  0xb1   : > { %2141 = vmatprep.mubr.msk.bf16.mxu0 %vm927_vm0, %v2329_v14  ;;  %2173 = vmatprep.mubr.msk.bf16.mxu1 %vm927_vm0, %v2331_v15 }
  0xb8   : > { %1289 = vmatmul.mubr.bf16.gmra.mxu0 %v2333_v16  ;;  %1545 = vmatmul.mubr.bf16.gmra.mxu1 %v2334_v17 }
  0xb9   : > { %2142 = vmatprep.mubr.msk.bf16.mxu0 %vm927_vm0, %v2335_v18  ;;  %2174 = vmatprep.mubr.msk.bf16.mxu1 %vm927_vm0, %v2337_v19  ;;  %v2393_v18 = vld [vmem:[%s2724_s21 + $0x1b0] ss:$8 sps:$4 sm:$0xff]  }
  0xba   : > { %v2394_v19 = vld [vmem:[%s2724_s21 + $0x3b0] ss:$8 sps:$4 sm:$0xff]  }
  0xc0   : > { %1297 = vmatmul.mubr.bf16.gmra.mxu0 %v2339_v20  ;;  %1553 = vmatmul.mubr.bf16.gmra.mxu1 %v2340_v21  ;;  %v2395_v20 = vld [vmem:[%s2724_s21 + $0x1c4] ss:$8 sps:$4 sm:$0xff]  }
  0xc1   : > { %2143 = vmatprep.mubr.msk.bf16.mxu0 %vm927_vm0, %v2341_v22  ;;  %2175 = vmatprep.mubr.msk.bf16.mxu1 %vm927_vm0, %v2343_v23  ;;  %v2397_v21 = vld [vmem:[%s2724_s21 + $0x3c4] ss:$8 sps:$4 sm:$0xff]  }
  0xc8   : > { %1305 = vmatmul.mubr.bf16.gmra.mxu0 %v2345_v24  ;;  %1561 = vmatmul.mubr.bf16.gmra.mxu1 %v2346_v25 }
  0xc9   : > { %2144 = vmatprep.mubr.msk.bf16.mxu0 %vm927_vm0, %v2347_v26  ;;  %2176 = vmatprep.mubr.msk.bf16.mxu1 %vm927_vm0, %v2349_v27 }
  0xd0   : > { %1313 = vmatmul.mubr.bf16.gmra.mxu0 %v2351_v28  ;;  %1569 = vmatmul.mubr.bf16.gmra.mxu1 %v2352_v29 }
  0xd1   : > { %2145 = vmatprep.mubr.msk.bf16.mxu0 %vm927_vm0, %v2353_v30  ;;  %2177 = vmatprep.mubr.msk.bf16.mxu1 %vm927_vm0, %v2355_v31 }
  0xd8   : > { %1321 = vmatmul.mubr.bf16.gmra.mxu0 %v2357_v32  ;;  %1577 = vmatmul.mubr.bf16.gmra.mxu1 %v2358_v33 }
  0xd9   : > { %2146 = vmatprep.mubr.msk.bf16.mxu0 %vm927_vm0, %v2359_v34  ;;  %2178 = vmatprep.mubr.msk.bf16.mxu1 %vm927_vm0, %v2361_v35  ;;  %v2399_v34 = vld [vmem:[%s2724_s21 + $0x1c0] ss:$8 sps:$4 sm:$0xff]  }
  0xda   : > { %v2400_v35 = vld [vmem:[%s2724_s21 + $0x3c0] ss:$8 sps:$4 sm:$0xff]  }
  0xe0   : > { %1329 = vmatmul.mubr.bf16.gmra.mxu0 %v2363_v36  ;;  %1585 = vmatmul.mubr.bf16.gmra.mxu1 %v2364_v37  ;;  %v2401_v36 = vld [vmem:[%s2724_s21 + $0x1d4] ss:$8 sps:$4 sm:$0xff]  }
  0xe1   : > { %2147 = vmatprep.mubr.msk.bf16.mxu0 %vm927_vm0, %v2365_v38  ;;  %2179 = vmatprep.mubr.msk.bf16.mxu1 %vm927_vm0, %v2367_v39  ;;  %v2403_v37 = vld [vmem:[%s2724_s21 + $0x3d4] ss:$8 sps:$4 sm:$0xff]  }
  0xe8   : > { %1337 = vmatmul.mubr.bf16.gmra.mxu0 %v2369_v40  ;;  %1593 = vmatmul.mubr.bf16.gmra.mxu1 %v2370_v41 }
  0xe9   : > { %2148 = vmatprep.mubr.msk.bf16.mxu0 %vm927_vm0, %v2371_v42  ;;  %2180 = vmatprep.mubr.msk.bf16.mxu1 %vm927_vm0, %v2373_v43 }
  0xf0   : > { %v1154_v48 = vpop.f32.mrf.mxu0  ;;  %1345 = vmatmul.mubr.bf16.gmra.mxu0 %v2375_v44  ;;  %v1410_v49 = vpop.f32.mrf.mxu1  ;;  %1601 = vmatmul.mubr.bf16.gmra.mxu1 %v2376_v45 }
  0xf1   : > { %2419 = vtanh.f32 %v1154_v48  ;;  %2149 = vmatprep.mubr.msk.bf16.mxu0 %vm927_vm0, %v2377_v46  ;;  %2181 = vmatprep.mubr.msk.bf16.mxu1 %vm927_vm0, %v2379_v47 }
  0xf2   : > { %2421 = vtanh.f32 %v1410_v49  ;;  %v1156_v50 = vpop.f32.mrf.mxu0  ;;  %v1412_v51 = vpop.f32.mrf.mxu1 }
  0xf3   : > { %v2405_v50 = vld [vmem:[%s2724_s21 + $0x1d0] ss:$8 sps:$4 sm:$0xff]  }
  0xf4   : > { %v1157_v52 = vpop.f32.mrf.mxu0  ;;  %v1413_v53 = vpop.f32.mrf.mxu1  ;;  %v2406_v51 = vld [vmem:[%s2724_s21 + $0x3d0] ss:$8 sps:$4 sm:$0xff]  }
  0xf5   : > { %2423 = vtanh.f32 %v1157_v52  ;;  %v2407_v52 = vld [vmem:[%s2724_s21 + $0x1e4] ss:$8 sps:$4 sm:$0xff]  }
  0xf6   : > { %2425 = vtanh.f32 %v1413_v53  ;;  %v1159_v58 = vpop.f32.mrf.mxu0  ;;  %v1415_v59 = vpop.f32.mrf.mxu1  ;;  %v2409_v53 = vld [vmem:[%s2724_s21 + $0x3e4] ss:$8 sps:$4 sm:$0xff]  }
  0xf8   : > { %v1162_v60 = vpop.f32.mrf.mxu0  ;;  %1353 = vmatmul.mubr.bf16.gmra.mxu0 %v2381_v54  ;;  %v1418_v61 = vpop.f32.mrf.mxu1  ;;  %1609 = vmatmul.mubr.bf16.gmra.mxu1 %v2382_v55 }
  0xf9   : > { %2427 = vtanh.f32 %v1162_v60  ;;  %2150 = vmatprep.mubr.msk.bf16.mxu0 %vm927_vm0, %v2383_v56  ;;  %2182 = vmatprep.mubr.msk.bf16.mxu1 %vm927_vm0, %v2385_v57 }
  0xfa   : > { %2429 = vtanh.f32 %v1418_v61  ;;  %v1164_v62 = vpop.f32.mrf.mxu0  ;;  %v1420_v63 = vpop.f32.mrf.mxu1 }
  0xfc   : > { %v1165_v0 = vpop.f32.mrf.mxu0  ;;  %v1421_v1 = vpop.f32.mrf.mxu1 }
  0xfd   : > { %2431 = vtanh.f32 %v1165_v0 }
  0xfe   : > { %v2420_v6 = vpop.eup %2419  ;;  %2433 = vtanh.f32 %v1421_v1  ;;  %v1167_v7 = vpop.f32.mrf.mxu0 }
  0xff   : > { %v1423_v8 = vpop.f32.mrf.mxu1  ;;  %v2422_v9 = vpop.eup %2421  ;;  %1793 = vst [vmem:[%s2909_s8] sm:$0xff] %v2420_v6 }
 0x100   : > { %1857 = vst [vmem:[%s2909_s8 + $0x200] sm:$0xff] %v2422_v9  ;;  %v1170_v10 = vpop.f32.mrf.mxu0  ;;  %1361 = vmatmul.mubr.bf16.gmra.mxu0 %v2387_v2  ;;  %1617 = vmatmul.mubr.bf16.gmra.mxu1 %v2388_v3  ;;  %v2411_v2 = vld [vmem:[%s2724_s21 + $0x1e0] ss:$8 sps:$4 sm:$0xff]  }
 0x101   : > { %v1426_v11 = vpop.f32.mrf.mxu1  ;;  %2435 = vtanh.f32 %v1170_v10  ;;  %2151 = vmatprep.mubr.msk.bf16.mxu0 %vm927_vm0, %v2389_v4  ;;  %2183 = vmatprep.mubr.msk.bf16.mxu1 %vm927_vm0, %v2391_v5  ;;  %v2412_v3 = vld [vmem:[%s2724_s21 + $0x3e0] ss:$8 sps:$4 sm:$0xff]   ;;  %v2413_v4 = vld [vmem:[%s2724_s21 + $0x1f4] ss:$8 sps:$4 sm:$0xff]  }
 0x102   : > { %v2424_v12 = vpop.eup %2423  ;;  %2437 = vtanh.f32 %v1426_v11  ;;  %v1172_v13 = vpop.f32.mrf.mxu0  ;;  %v2415_v5 = vld [vmem:[%s2724_s21 + $0x3f4] ss:$8 sps:$4 sm:$0xff]  }
 0x103   : > { %v1428_v14 = vpop.f32.mrf.mxu1  ;;  %v2426_v15 = vpop.eup %2425  ;;  %1794 = vst [vmem:[%s2909_s8 + $0x8] sm:$0xff] %v2424_v12 }
 0x104   : > { %1858 = vst [vmem:[%s2909_s8 + $0x208] sm:$0xff] %v2426_v15  ;;  %v1173_v16 = vpop.f32.mrf.mxu0 }
 0x105   : > { %v1429_v17 = vpop.f32.mrf.mxu1  ;;  %2439 = vtanh.f32 %v1173_v16 }
 0x106   : > { %v2428_v22 = vpop.eup %2427  ;;  %2441 = vtanh.f32 %v1429_v17  ;;  %v1175_v23 = vpop.f32.mrf.mxu0 }
 0x107   : > { %v1431_v24 = vpop.f32.mrf.mxu1  ;;  %v2430_v25 = vpop.eup %2429  ;;  %1795 = vst [vmem:[%s2909_s8 + $0x10] sm:$0xff] %v2428_v22 }
 0x108   : > { %1859 = vst [vmem:[%s2909_s8 + $0x210] sm:$0xff] %v2430_v25  ;;  %v1178_v26 = vpop.f32.mrf.mxu0  ;;  %1369 = vmatmul.mubr.bf16.gmra.mxu0 %v2393_v18  ;;  %1625 = vmatmul.mubr.bf16.gmra.mxu1 %v2394_v19  ;;  %v2417_v18 = vld [vmem:[%s2724_s21 + $0x1f0] ss:$8 sps:$4 sm:$0xff]  }
 0x109   : > { %v1434_v27 = vpop.f32.mrf.mxu1  ;;  %2443 = vtanh.f32 %v1178_v26  ;;  %2152 = vmatprep.mubr.msk.bf16.mxu0 %vm927_vm0, %v2395_v20  ;;  %2184 = vmatprep.mubr.msk.bf16.mxu1 %vm927_vm0, %v2397_v21  ;;  %v2418_v19 = vld [vmem:[%s2724_s21 + $0x3f0] ss:$8 sps:$4 sm:$0xff]  }
 0x10a   : > { %v2432_v28 = vpop.eup %2431  ;;  %2445 = vtanh.f32 %v1434_v27  ;;  %v1180_v29 = vpop.f32.mrf.mxu0 }
 0x10b   : > { %v1436_v30 = vpop.f32.mrf.mxu1  ;;  %v2434_v31 = vpop.eup %2433  ;;  %1796 = vst [vmem:[%s2909_s8 + $0x18] sm:$0xff] %v2432_v28 }
 0x10c   : > { %1860 = vst [vmem:[%s2909_s8 + $0x218] sm:$0xff] %v2434_v31  ;;  %v1181_v32 = vpop.f32.mrf.mxu0 }
 0x10d   : > { %v1437_v33 = vpop.f32.mrf.mxu1  ;;  %2447 = vtanh.f32 %v1181_v32 }
 0x10e   : > { %v2436_v38 = vpop.eup %2435  ;;  %2449 = vtanh.f32 %v1437_v33  ;;  %v1183_v39 = vpop.f32.mrf.mxu0 }
 0x10f   : > { %v1439_v40 = vpop.f32.mrf.mxu1  ;;  %v2438_v41 = vpop.eup %2437  ;;  %1797 = vst [vmem:[%s2909_s8 + $0x20] sm:$0xff] %v2436_v38 }
 0x110   : > { %1861 = vst [vmem:[%s2909_s8 + $0x220] sm:$0xff] %v2438_v41  ;;  %v1186_v42 = vpop.f32.mrf.mxu0  ;;  %1377 = vmatmul.mubr.bf16.gmra.mxu0 %v2399_v34  ;;  %1633 = vmatmul.mubr.bf16.gmra.mxu1 %v2400_v35 }
 0x111   : > { %v1442_v43 = vpop.f32.mrf.mxu1  ;;  %2451 = vtanh.f32 %v1186_v42  ;;  %2153 = vmatprep.mubr.msk.bf16.mxu0 %vm927_vm0, %v2401_v36  ;;  %2185 = vmatprep.mubr.msk.bf16.mxu1 %vm927_vm0, %v2403_v37 }
 0x112   : > { %v2440_v44 = vpop.eup %2439  ;;  %2453 = vtanh.f32 %v1442_v43  ;;  %v1188_v45 = vpop.f32.mrf.mxu0 }
 0x113   : > { %v1444_v46 = vpop.f32.mrf.mxu1  ;;  %v2442_v47 = vpop.eup %2441  ;;  %1798 = vst [vmem:[%s2909_s8 + $0x28] sm:$0xff] %v2440_v44 }
 0x114   : > { %1862 = vst [vmem:[%s2909_s8 + $0x228] sm:$0xff] %v2442_v47  ;;  %v1189_v48 = vpop.f32.mrf.mxu0 }
 0x115   : > { %v1445_v49 = vpop.f32.mrf.mxu1  ;;  %2455 = vtanh.f32 %v1189_v48 }
 0x116   : > { %v2444_v54 = vpop.eup %2443  ;;  %2457 = vtanh.f32 %v1445_v49  ;;  %v1191_v55 = vpop.f32.mrf.mxu0 }
 0x117   : > { %v1447_v56 = vpop.f32.mrf.mxu1  ;;  %v2446_v57 = vpop.eup %2445  ;;  %1799 = vst [vmem:[%s2909_s8 + $0x30] sm:$0xff] %v2444_v54 }
 0x118   : > { %1863 = vst [vmem:[%s2909_s8 + $0x230] sm:$0xff] %v2446_v57  ;;  %v1194_v58 = vpop.f32.mrf.mxu0  ;;  %1385 = vmatmul.mubr.bf16.gmra.mxu0 %v2405_v50  ;;  %1641 = vmatmul.mubr.bf16.gmra.mxu1 %v2406_v51 }
 0x119   : > { %v1450_v59 = vpop.f32.mrf.mxu1  ;;  %2459 = vtanh.f32 %v1194_v58  ;;  %2154 = vmatprep.mubr.msk.bf16.mxu0 %vm927_vm0, %v2407_v52  ;;  %2186 = vmatprep.mubr.msk.bf16.mxu1 %vm927_vm0, %v2409_v53 }
 0x11a   : > { %v2448_v60 = vpop.eup %2447  ;;  %2461 = vtanh.f32 %v1450_v59  ;;  %v1196_v61 = vpop.f32.mrf.mxu0 }
 0x11b   : > { %v1452_v62 = vpop.f32.mrf.mxu1  ;;  %v2450_v63 = vpop.eup %2449  ;;  %1800 = vst [vmem:[%s2909_s8 + $0x38] sm:$0xff] %v2448_v60 }
 0x11c   : > { %1864 = vst [vmem:[%s2909_s8 + $0x238] sm:$0xff] %v2450_v63  ;;  %v1197_v0 = vpop.f32.mrf.mxu0 }
 0x11d   : > { %v1453_v1 = vpop.f32.mrf.mxu1  ;;  %2463 = vtanh.f32 %v1197_v0 }
 0x11e   : > { %v2452_v6 = vpop.eup %2451  ;;  %2465 = vtanh.f32 %v1453_v1  ;;  %v1199_v7 = vpop.f32.mrf.mxu0 }
 0x11f   : > { %v1455_v8 = vpop.f32.mrf.mxu1  ;;  %v2454_v9 = vpop.eup %2453  ;;  %1801 = vst [vmem:[%s2909_s8 + $0x40] sm:$0xff] %v2452_v6 }
 0x120   : > { %1865 = vst [vmem:[%s2909_s8 + $0x240] sm:$0xff] %v2454_v9  ;;  %v1202_v10 = vpop.f32.mrf.mxu0  ;;  %1393 = vmatmul.mubr.bf16.gmra.mxu0 %v2411_v2  ;;  %1649 = vmatmul.mubr.bf16.gmra.mxu1 %v2412_v3 }
 0x121   : > { %v1458_v11 = vpop.f32.mrf.mxu1  ;;  %2467 = vtanh.f32 %v1202_v10  ;;  %2155 = vmatprep.mubr.msk.bf16.mxu0 %vm927_vm0, %v2413_v4  ;;  %2187 = vmatprep.mubr.msk.bf16.mxu1 %vm927_vm0, %v2415_v5 }
 0x122   : > { %v2456_v12 = vpop.eup %2455  ;;  %2469 = vtanh.f32 %v1458_v11  ;;  %v1204_v13 = vpop.f32.mrf.mxu0 }
 0x123   : > { %v1460_v14 = vpop.f32.mrf.mxu1  ;;  %v2458_v15 = vpop.eup %2457  ;;  %1802 = vst [vmem:[%s2909_s8 + $0x48] sm:$0xff] %v2456_v12 }
 0x124   : > { %1866 = vst [vmem:[%s2909_s8 + $0x248] sm:$0xff] %v2458_v15  ;;  %v1205_v16 = vpop.f32.mrf.mxu0 }
 0x125   : > { %v1461_v17 = vpop.f32.mrf.mxu1  ;;  %2471 = vtanh.f32 %v1205_v16 }
 0x126   : > { %v2460_v20 = vpop.eup %2459  ;;  %2473 = vtanh.f32 %v1461_v17  ;;  %v1207_v21 = vpop.f32.mrf.mxu0 }
 0x127   : > { %v1463_v22 = vpop.f32.mrf.mxu1  ;;  %v2462_v23 = vpop.eup %2461  ;;  %1803 = vst [vmem:[%s2909_s8 + $0x50] sm:$0xff] %v2460_v20 }
 0x128   : > { %1867 = vst [vmem:[%s2909_s8 + $0x250] sm:$0xff] %v2462_v23  ;;  %v1210_v24 = vpop.f32.mrf.mxu0  ;;  %1401 = vmatmul.mubr.bf16.gmra.mxu0 %v2417_v18  ;;  %1657 = vmatmul.mubr.bf16.gmra.mxu1 %v2418_v19 }
 0x129   : > { %v1466_v25 = vpop.f32.mrf.mxu1  ;;  %2475 = vtanh.f32 %v1210_v24 }
 0x12a   : > { %v2464_v26 = vpop.eup %2463  ;;  %2477 = vtanh.f32 %v1466_v25  ;;  %v1212_v27 = vpop.f32.mrf.mxu0 }
 0x12b   : > { %v1468_v28 = vpop.f32.mrf.mxu1  ;;  %v2466_v29 = vpop.eup %2465  ;;  %1804 = vst [vmem:[%s2909_s8 + $0x58] sm:$0xff] %v2464_v26 }
 0x12c   : > { %1868 = vst [vmem:[%s2909_s8 + $0x258] sm:$0xff] %v2466_v29  ;;  %v1213_v30 = vpop.f32.mrf.mxu0 }
 0x12d   : > { %v1469_v31 = vpop.f32.mrf.mxu1  ;;  %2479 = vtanh.f32 %v1213_v30 }
 0x12e   : > { %v2468_v32 = vpop.eup %2467  ;;  %2481 = vtanh.f32 %v1469_v31  ;;  %v1215_v33 = vpop.f32.mrf.mxu0 }
 0x12f   : > { %v1471_v34 = vpop.f32.mrf.mxu1  ;;  %v2470_v35 = vpop.eup %2469  ;;  %1805 = vst [vmem:[%s2909_s8 + $0x60] sm:$0xff] %v2468_v32 }
 0x130   : > { %1869 = vst [vmem:[%s2909_s8 + $0x260] sm:$0xff] %v2470_v35  ;;  %v1218_v36 = vpop.f32.mrf.mxu0 }
 0x131   : > { %v1474_v37 = vpop.f32.mrf.mxu1  ;;  %2483 = vtanh.f32 %v1218_v36 }
 0x132   : > { %v2472_v38 = vpop.eup %2471  ;;  %2485 = vtanh.f32 %v1474_v37  ;;  %v1220_v39 = vpop.f32.mrf.mxu0 }
 0x133   : > { %v1476_v40 = vpop.f32.mrf.mxu1  ;;  %v2474_v41 = vpop.eup %2473  ;;  %1806 = vst [vmem:[%s2909_s8 + $0x68] sm:$0xff] %v2472_v38 }
 0x134   : > { %1870 = vst [vmem:[%s2909_s8 + $0x268] sm:$0xff] %v2474_v41  ;;  %v1221_v42 = vpop.f32.mrf.mxu0 }
 0x135   : > { %v1477_v43 = vpop.f32.mrf.mxu1  ;;  %2487 = vtanh.f32 %v1221_v42 }
 0x136   : > { %v2476_v44 = vpop.eup %2475  ;;  %2489 = vtanh.f32 %v1477_v43  ;;  %v1223_v45 = vpop.f32.mrf.mxu0 }
 0x137   : > { %v1479_v46 = vpop.f32.mrf.mxu1  ;;  %v2478_v47 = vpop.eup %2477  ;;  %1807 = vst [vmem:[%s2909_s8 + $0x70] sm:$0xff] %v2476_v44 }
 0x138   : > { %1871 = vst [vmem:[%s2909_s8 + $0x270] sm:$0xff] %v2478_v47  ;;  %v1226_v48 = vpop.f32.mrf.mxu0 }
 0x139   : > { %v1482_v49 = vpop.f32.mrf.mxu1  ;;  %2491 = vtanh.f32 %v1226_v48 }
 0x13a   : > { %v2480_v50 = vpop.eup %2479  ;;  %2493 = vtanh.f32 %v1482_v49  ;;  %v1228_v51 = vpop.f32.mrf.mxu0 }
 0x13b   : > { %v1484_v52 = vpop.f32.mrf.mxu1  ;;  %v2482_v53 = vpop.eup %2481  ;;  %1808 = vst [vmem:[%s2909_s8 + $0x78] sm:$0xff] %v2480_v50 }
 0x13c   : > { %1872 = vst [vmem:[%s2909_s8 + $0x278] sm:$0xff] %v2482_v53  ;;  %v1229_v54 = vpop.f32.mrf.mxu0 }
 0x13d   : > { %v1485_v55 = vpop.f32.mrf.mxu1  ;;  %2495 = vtanh.f32 %v1229_v54 }
 0x13e   : > { %v2484_v56 = vpop.eup %2483  ;;  %2497 = vtanh.f32 %v1485_v55  ;;  %v1231_v57 = vpop.f32.mrf.mxu0 }
 0x13f   : > { %v1487_v58 = vpop.f32.mrf.mxu1  ;;  %v2486_v59 = vpop.eup %2485  ;;  %1809 = vst [vmem:[%s2909_s8 + $0x80] sm:$0xff] %v2484_v56 }
 0x140   : > { %1873 = vst [vmem:[%s2909_s8 + $0x280] sm:$0xff] %v2486_v59  ;;  %v1234_v60 = vpop.f32.mrf.mxu0 }
 0x141   : > { %v1490_v61 = vpop.f32.mrf.mxu1  ;;  %2499 = vtanh.f32 %v1234_v60 }
 0x142   : > { %v2488_v62 = vpop.eup %2487  ;;  %2501 = vtanh.f32 %v1490_v61  ;;  %v1236_v63 = vpop.f32.mrf.mxu0 }
 0x143   : > { %v1492_v0 = vpop.f32.mrf.mxu1  ;;  %v2490_v1 = vpop.eup %2489  ;;  %1810 = vst [vmem:[%s2909_s8 + $0x88] sm:$0xff] %v2488_v62 }
 0x144   : > { %1874 = vst [vmem:[%s2909_s8 + $0x288] sm:$0xff] %v2490_v1  ;;  %v1237_v2 = vpop.f32.mrf.mxu0 }
 0x145   : > { %v1493_v3 = vpop.f32.mrf.mxu1  ;;  %2503 = vtanh.f32 %v1237_v2 }
 0x146   : > { %v2492_v4 = vpop.eup %2491  ;;  %2505 = vtanh.f32 %v1493_v3  ;;  %v1239_v5 = vpop.f32.mrf.mxu0 }
 0x147   : > { %v1495_v6 = vpop.f32.mrf.mxu1  ;;  %v2494_v7 = vpop.eup %2493  ;;  %1811 = vst [vmem:[%s2909_s8 + $0x90] sm:$0xff] %v2492_v4 }
 0x148   : > { %1875 = vst [vmem:[%s2909_s8 + $0x290] sm:$0xff] %v2494_v7  ;;  %v1242_v8 = vpop.f32.mrf.mxu0 }
 0x149   : > { %v1498_v9 = vpop.f32.mrf.mxu1  ;;  %2507 = vtanh.f32 %v1242_v8 }
 0x14a   : > { %v2496_v10 = vpop.eup %2495  ;;  %2509 = vtanh.f32 %v1498_v9  ;;  %v1244_v11 = vpop.f32.mrf.mxu0 }
 0x14b   : > { %v1500_v12 = vpop.f32.mrf.mxu1  ;;  %v2498_v13 = vpop.eup %2497  ;;  %1812 = vst [vmem:[%s2909_s8 + $0x98] sm:$0xff] %v2496_v10 }
 0x14c   : > { %1876 = vst [vmem:[%s2909_s8 + $0x298] sm:$0xff] %v2498_v13  ;;  %v1245_v14 = vpop.f32.mrf.mxu0 }
 0x14d   : > { %v1501_v15 = vpop.f32.mrf.mxu1  ;;  %2511 = vtanh.f32 %v1245_v14 }
 0x14e   : > { %v2500_v16 = vpop.eup %2499  ;;  %2513 = vtanh.f32 %v1501_v15  ;;  %v1247_v17 = vpop.f32.mrf.mxu0 }
 0x14f   : > { %v1503_v18 = vpop.f32.mrf.mxu1  ;;  %v2502_v19 = vpop.eup %2501  ;;  %1813 = vst [vmem:[%s2909_s8 + $0xa0] sm:$0xff] %v2500_v16 }
 0x150   : > { %1877 = vst [vmem:[%s2909_s8 + $0x2a0] sm:$0xff] %v2502_v19  ;;  %v1250_v20 = vpop.f32.mrf.mxu0 }
 0x151   : > { %v1506_v21 = vpop.f32.mrf.mxu1  ;;  %2515 = vtanh.f32 %v1250_v20 }
 0x152   : > { %v2504_v22 = vpop.eup %2503  ;;  %2517 = vtanh.f32 %v1506_v21  ;;  %v1252_v23 = vpop.f32.mrf.mxu0 }
 0x153   : > { %v1508_v24 = vpop.f32.mrf.mxu1  ;;  %v2506_v25 = vpop.eup %2505  ;;  %1814 = vst [vmem:[%s2909_s8 + $0xa8] sm:$0xff] %v2504_v22 }
 0x154   : > { %1878 = vst [vmem:[%s2909_s8 + $0x2a8] sm:$0xff] %v2506_v25  ;;  %v1253_v26 = vpop.f32.mrf.mxu0 }
 0x155   : > { %v1509_v27 = vpop.f32.mrf.mxu1  ;;  %2519 = vtanh.f32 %v1253_v26 }
 0x156   : > { %v2508_v28 = vpop.eup %2507  ;;  %2521 = vtanh.f32 %v1509_v27  ;;  %v1255_v29 = vpop.f32.mrf.mxu0 }
 0x157   : > { %v1511_v30 = vpop.f32.mrf.mxu1  ;;  %v2510_v31 = vpop.eup %2509  ;;  %1815 = vst [vmem:[%s2909_s8 + $0xb0] sm:$0xff] %v2508_v28 }
 0x158   : > { %1879 = vst [vmem:[%s2909_s8 + $0x2b0] sm:$0xff] %v2510_v31  ;;  %v1258_v32 = vpop.f32.mrf.mxu0 }
 0x159   : > { %v1514_v33 = vpop.f32.mrf.mxu1  ;;  %2523 = vtanh.f32 %v1258_v32 }
 0x15a   : > { %v2512_v34 = vpop.eup %2511  ;;  %2525 = vtanh.f32 %v1514_v33  ;;  %v1260_v35 = vpop.f32.mrf.mxu0 }
 0x15b   : > { %v1516_v36 = vpop.f32.mrf.mxu1  ;;  %v2514_v37 = vpop.eup %2513  ;;  %1816 = vst [vmem:[%s2909_s8 + $0xb8] sm:$0xff] %v2512_v34 }
 0x15c   : > { %1880 = vst [vmem:[%s2909_s8 + $0x2b8] sm:$0xff] %v2514_v37  ;;  %v1261_v38 = vpop.f32.mrf.mxu0 }
 0x15d   : > { %v1517_v39 = vpop.f32.mrf.mxu1  ;;  %2527 = vtanh.f32 %v1261_v38 }
 0x15e   : > { %v2516_v40 = vpop.eup %2515  ;;  %2529 = vtanh.f32 %v1517_v39  ;;  %v1263_v41 = vpop.f32.mrf.mxu0 }
 0x15f   : > { %v1519_v42 = vpop.f32.mrf.mxu1  ;;  %v2518_v43 = vpop.eup %2517  ;;  %1817 = vst [vmem:[%s2909_s8 + $0xc0] sm:$0xff] %v2516_v40 }
 0x160   : > { %1881 = vst [vmem:[%s2909_s8 + $0x2c0] sm:$0xff] %v2518_v43  ;;  %v1266_v44 = vpop.f32.mrf.mxu0 }
 0x161   : > { %v1522_v45 = vpop.f32.mrf.mxu1  ;;  %2531 = vtanh.f32 %v1266_v44 }
 0x162   : > { %v2520_v46 = vpop.eup %2519  ;;  %2533 = vtanh.f32 %v1522_v45  ;;  %v1268_v47 = vpop.f32.mrf.mxu0 }
 0x163   : > { %v1524_v48 = vpop.f32.mrf.mxu1  ;;  %v2522_v49 = vpop.eup %2521  ;;  %1818 = vst [vmem:[%s2909_s8 + $0xc8] sm:$0xff] %v2520_v46 }
 0x164   : > { %1882 = vst [vmem:[%s2909_s8 + $0x2c8] sm:$0xff] %v2522_v49  ;;  %v1269_v50 = vpop.f32.mrf.mxu0 }
 0x165   : > { %v1525_v51 = vpop.f32.mrf.mxu1  ;;  %2535 = vtanh.f32 %v1269_v50 }
 0x166   : > { %v2524_v52 = vpop.eup %2523  ;;  %2537 = vtanh.f32 %v1525_v51  ;;  %v1271_v53 = vpop.f32.mrf.mxu0 }
 0x167   : > { %v1527_v54 = vpop.f32.mrf.mxu1  ;;  %v2526_v55 = vpop.eup %2525  ;;  %1819 = vst [vmem:[%s2909_s8 + $0xd0] sm:$0xff] %v2524_v52 }
 0x168   : > { %1883 = vst [vmem:[%s2909_s8 + $0x2d0] sm:$0xff] %v2526_v55  ;;  %v1274_v56 = vpop.f32.mrf.mxu0 }
 0x169   : > { %v1530_v57 = vpop.f32.mrf.mxu1  ;;  %2539 = vtanh.f32 %v1274_v56 }
 0x16a   : > { %v2528_v58 = vpop.eup %2527  ;;  %2541 = vtanh.f32 %v1530_v57  ;;  %v1276_v59 = vpop.f32.mrf.mxu0 }
 0x16b   : > { %v1532_v60 = vpop.f32.mrf.mxu1  ;;  %v2530_v61 = vpop.eup %2529  ;;  %1820 = vst [vmem:[%s2909_s8 + $0xd8] sm:$0xff] %v2528_v58 }
 0x16c   : > { %1884 = vst [vmem:[%s2909_s8 + $0x2d8] sm:$0xff] %v2530_v61  ;;  %v1277_v62 = vpop.f32.mrf.mxu0 }
 0x16d   : > { %v1533_v63 = vpop.f32.mrf.mxu1  ;;  %2543 = vtanh.f32 %v1277_v62 }
 0x16e   : > { %v2532_v0 = vpop.eup %2531  ;;  %2545 = vtanh.f32 %v1533_v63  ;;  %v1279_v1 = vpop.f32.mrf.mxu0 }
 0x16f   : > { %v1535_v2 = vpop.f32.mrf.mxu1  ;;  %v2534_v3 = vpop.eup %2533  ;;  %1821 = vst [vmem:[%s2909_s8 + $0xe0] sm:$0xff] %v2532_v0 }
 0x170   : > { %1885 = vst [vmem:[%s2909_s8 + $0x2e0] sm:$0xff] %v2534_v3  ;;  %v1282_v4 = vpop.f32.mrf.mxu0 }
 0x171   : > { %v1538_v5 = vpop.f32.mrf.mxu1  ;;  %2547 = vtanh.f32 %v1282_v4 }
 0x172   : > { %v2536_v6 = vpop.eup %2535  ;;  %2549 = vtanh.f32 %v1538_v5  ;;  %v1284_v7 = vpop.f32.mrf.mxu0 }
 0x173   : > { %v1540_v8 = vpop.f32.mrf.mxu1  ;;  %v2538_v9 = vpop.eup %2537  ;;  %1822 = vst [vmem:[%s2909_s8 + $0xe8] sm:$0xff] %v2536_v6 }
 0x174   : > { %1886 = vst [vmem:[%s2909_s8 + $0x2e8] sm:$0xff] %v2538_v9  ;;  %v1285_v10 = vpop.f32.mrf.mxu0 }
 0x175   : > { %v1541_v11 = vpop.f32.mrf.mxu1  ;;  %2551 = vtanh.f32 %v1285_v10 }
 0x176   : > { %v2540_v12 = vpop.eup %2539  ;;  %2553 = vtanh.f32 %v1541_v11  ;;  %v1287_v13 = vpop.f32.mrf.mxu0 }
 0x177   : > { %v1543_v14 = vpop.f32.mrf.mxu1  ;;  %v2542_v15 = vpop.eup %2541  ;;  %1823 = vst [vmem:[%s2909_s8 + $0xf0] sm:$0xff] %v2540_v12 }
 0x178   : > { %1887 = vst [vmem:[%s2909_s8 + $0x2f0] sm:$0xff] %v2542_v15  ;;  %v1290_v16 = vpop.f32.mrf.mxu0 }
 0x179   : > { %v1546_v17 = vpop.f32.mrf.mxu1  ;;  %2555 = vtanh.f32 %v1290_v16 }
 0x17a   : > { %v2544_v18 = vpop.eup %2543  ;;  %2557 = vtanh.f32 %v1546_v17  ;;  %v1292_v19 = vpop.f32.mrf.mxu0 }
 0x17b   : > { %v1548_v20 = vpop.f32.mrf.mxu1  ;;  %v2546_v21 = vpop.eup %2545  ;;  %1824 = vst [vmem:[%s2909_s8 + $0xf8] sm:$0xff] %v2544_v18 }
 0x17c   : > { %1888 = vst [vmem:[%s2909_s8 + $0x2f8] sm:$0xff] %v2546_v21  ;;  %v1293_v22 = vpop.f32.mrf.mxu0 }
 0x17d   : > { %v1549_v23 = vpop.f32.mrf.mxu1  ;;  %2559 = vtanh.f32 %v1293_v22 }
 0x17e   : > { %v2548_v24 = vpop.eup %2547  ;;  %2561 = vtanh.f32 %v1549_v23  ;;  %v1295_v25 = vpop.f32.mrf.mxu0 }
 0x17f   : > { %v1551_v26 = vpop.f32.mrf.mxu1  ;;  %v2550_v27 = vpop.eup %2549  ;;  %1825 = vst [vmem:[%s2909_s8 + $0x100] sm:$0xff] %v2548_v24 }
 0x180   : > { %1889 = vst [vmem:[%s2909_s8 + $0x300] sm:$0xff] %v2550_v27  ;;  %v1298_v28 = vpop.f32.mrf.mxu0 }
 0x181   : > { %v1554_v29 = vpop.f32.mrf.mxu1  ;;  %2563 = vtanh.f32 %v1298_v28 }
 0x182   : > { %v2552_v30 = vpop.eup %2551  ;;  %2565 = vtanh.f32 %v1554_v29  ;;  %v1300_v31 = vpop.f32.mrf.mxu0 }
 0x183   : > { %v1556_v32 = vpop.f32.mrf.mxu1  ;;  %v2554_v33 = vpop.eup %2553  ;;  %1826 = vst [vmem:[%s2909_s8 + $0x108] sm:$0xff] %v2552_v30 }
 0x184   : > { %1890 = vst [vmem:[%s2909_s8 + $0x308] sm:$0xff] %v2554_v33  ;;  %v1301_v34 = vpop.f32.mrf.mxu0 }
 0x185   : > { %v1557_v35 = vpop.f32.mrf.mxu1  ;;  %2567 = vtanh.f32 %v1301_v34 }
 0x186   : > { %v2556_v36 = vpop.eup %2555  ;;  %2569 = vtanh.f32 %v1557_v35  ;;  %v1303_v37 = vpop.f32.mrf.mxu0 }
 0x187   : > { %v1559_v38 = vpop.f32.mrf.mxu1  ;;  %v2558_v39 = vpop.eup %2557  ;;  %1827 = vst [vmem:[%s2909_s8 + $0x110] sm:$0xff] %v2556_v36 }
 0x188   : > { %1891 = vst [vmem:[%s2909_s8 + $0x310] sm:$0xff] %v2558_v39  ;;  %v1306_v40 = vpop.f32.mrf.mxu0 }
 0x189   : > { %v1562_v41 = vpop.f32.mrf.mxu1  ;;  %2571 = vtanh.f32 %v1306_v40 }
 0x18a   : > { %v2560_v42 = vpop.eup %2559  ;;  %2573 = vtanh.f32 %v1562_v41  ;;  %v1308_v43 = vpop.f32.mrf.mxu0 }
 0x18b   : > { %v1564_v44 = vpop.f32.mrf.mxu1  ;;  %v2562_v45 = vpop.eup %2561  ;;  %1828 = vst [vmem:[%s2909_s8 + $0x118] sm:$0xff] %v2560_v42 }
 0x18c   : > { %1892 = vst [vmem:[%s2909_s8 + $0x318] sm:$0xff] %v2562_v45  ;;  %v1309_v46 = vpop.f32.mrf.mxu0 }
 0x18d   : > { %v1565_v47 = vpop.f32.mrf.mxu1  ;;  %2575 = vtanh.f32 %v1309_v46 }
 0x18e   : > { %v2564_v48 = vpop.eup %2563  ;;  %2577 = vtanh.f32 %v1565_v47  ;;  %v1311_v49 = vpop.f32.mrf.mxu0 }
 0x18f   : > { %v1567_v50 = vpop.f32.mrf.mxu1  ;;  %v2566_v51 = vpop.eup %2565  ;;  %1829 = vst [vmem:[%s2909_s8 + $0x120] sm:$0xff] %v2564_v48 }
 0x190   : > { %1893 = vst [vmem:[%s2909_s8 + $0x320] sm:$0xff] %v2566_v51  ;;  %v1314_v52 = vpop.f32.mrf.mxu0 }
 0x191   : > { %v1570_v53 = vpop.f32.mrf.mxu1  ;;  %2579 = vtanh.f32 %v1314_v52 }
 0x192   : > { %v2568_v54 = vpop.eup %2567  ;;  %2581 = vtanh.f32 %v1570_v53  ;;  %v1316_v55 = vpop.f32.mrf.mxu0 }
 0x193   : > { %v1572_v56 = vpop.f32.mrf.mxu1  ;;  %v2570_v57 = vpop.eup %2569  ;;  %1830 = vst [vmem:[%s2909_s8 + $0x128] sm:$0xff] %v2568_v54 }
 0x194   : > { %1894 = vst [vmem:[%s2909_s8 + $0x328] sm:$0xff] %v2570_v57  ;;  %v1317_v58 = vpop.f32.mrf.mxu0 }
 0x195   : > { %v1573_v59 = vpop.f32.mrf.mxu1  ;;  %2583 = vtanh.f32 %v1317_v58 }
 0x196   : > { %v2572_v60 = vpop.eup %2571  ;;  %2585 = vtanh.f32 %v1573_v59  ;;  %v1319_v61 = vpop.f32.mrf.mxu0 }
 0x197   : > { %v1575_v62 = vpop.f32.mrf.mxu1  ;;  %v2574_v63 = vpop.eup %2573  ;;  %1831 = vst [vmem:[%s2909_s8 + $0x130] sm:$0xff] %v2572_v60 }
 0x198   : > { %1895 = vst [vmem:[%s2909_s8 + $0x330] sm:$0xff] %v2574_v63  ;;  %v1322_v0 = vpop.f32.mrf.mxu0 }
 0x199   : > { %v1578_v1 = vpop.f32.mrf.mxu1  ;;  %2587 = vtanh.f32 %v1322_v0 }
 0x19a   : > { %v2576_v2 = vpop.eup %2575  ;;  %2589 = vtanh.f32 %v1578_v1  ;;  %v1324_v3 = vpop.f32.mrf.mxu0 }
 0x19b   : > { %v1580_v4 = vpop.f32.mrf.mxu1  ;;  %v2578_v5 = vpop.eup %2577  ;;  %1832 = vst [vmem:[%s2909_s8 + $0x138] sm:$0xff] %v2576_v2 }
 0x19c   : > { %1896 = vst [vmem:[%s2909_s8 + $0x338] sm:$0xff] %v2578_v5  ;;  %v1325_v6 = vpop.f32.mrf.mxu0 }
 0x19d   : > { %v1581_v7 = vpop.f32.mrf.mxu1  ;;  %2591 = vtanh.f32 %v1325_v6 }
 0x19e   : > { %v2580_v8 = vpop.eup %2579  ;;  %2593 = vtanh.f32 %v1581_v7  ;;  %v1327_v9 = vpop.f32.mrf.mxu0 }
 0x19f   : > { %v1583_v10 = vpop.f32.mrf.mxu1  ;;  %v2582_v11 = vpop.eup %2581  ;;  %1833 = vst [vmem:[%s2909_s8 + $0x140] sm:$0xff] %v2580_v8 }
 0x1a0   : > { %1897 = vst [vmem:[%s2909_s8 + $0x340] sm:$0xff] %v2582_v11  ;;  %v1330_v12 = vpop.f32.mrf.mxu0 }
 0x1a1   : > { %v1586_v13 = vpop.f32.mrf.mxu1  ;;  %2595 = vtanh.f32 %v1330_v12 }
 0x1a2   : > { %v2584_v14 = vpop.eup %2583  ;;  %2597 = vtanh.f32 %v1586_v13  ;;  %v1332_v15 = vpop.f32.mrf.mxu0 }
 0x1a3   : > { %v1588_v16 = vpop.f32.mrf.mxu1  ;;  %v2586_v17 = vpop.eup %2585  ;;  %1834 = vst [vmem:[%s2909_s8 + $0x148] sm:$0xff] %v2584_v14 }
 0x1a4   : > { %1898 = vst [vmem:[%s2909_s8 + $0x348] sm:$0xff] %v2586_v17  ;;  %v1333_v18 = vpop.f32.mrf.mxu0 }
 0x1a5   : > { %v1589_v19 = vpop.f32.mrf.mxu1  ;;  %2599 = vtanh.f32 %v1333_v18 }
 0x1a6   : > { %v2588_v20 = vpop.eup %2587  ;;  %2601 = vtanh.f32 %v1589_v19  ;;  %v1335_v21 = vpop.f32.mrf.mxu0 }
 0x1a7   : > { %v1591_v22 = vpop.f32.mrf.mxu1  ;;  %v2590_v23 = vpop.eup %2589  ;;  %1835 = vst [vmem:[%s2909_s8 + $0x150] sm:$0xff] %v2588_v20 }
 0x1a8   : > { %1899 = vst [vmem:[%s2909_s8 + $0x350] sm:$0xff] %v2590_v23  ;;  %v1338_v24 = vpop.f32.mrf.mxu0 }
 0x1a9   : > { %v1594_v25 = vpop.f32.mrf.mxu1  ;;  %2603 = vtanh.f32 %v1338_v24 }
 0x1aa   : > { %v2592_v26 = vpop.eup %2591  ;;  %2605 = vtanh.f32 %v1594_v25  ;;  %v1340_v27 = vpop.f32.mrf.mxu0 }
 0x1ab   : > { %v1596_v28 = vpop.f32.mrf.mxu1  ;;  %v2594_v29 = vpop.eup %2593  ;;  %1836 = vst [vmem:[%s2909_s8 + $0x158] sm:$0xff] %v2592_v26 }
 0x1ac   : > { %1900 = vst [vmem:[%s2909_s8 + $0x358] sm:$0xff] %v2594_v29  ;;  %v1341_v30 = vpop.f32.mrf.mxu0 }
 0x1ad   : > { %v1597_v31 = vpop.f32.mrf.mxu1  ;;  %2607 = vtanh.f32 %v1341_v30 }
 0x1ae   : > { %v2596_v32 = vpop.eup %2595  ;;  %2609 = vtanh.f32 %v1597_v31  ;;  %v1343_v33 = vpop.f32.mrf.mxu0 }
 0x1af   : > { %v1599_v34 = vpop.f32.mrf.mxu1  ;;  %v2598_v35 = vpop.eup %2597  ;;  %1837 = vst [vmem:[%s2909_s8 + $0x160] sm:$0xff] %v2596_v32 }
 0x1b0   : > { %1901 = vst [vmem:[%s2909_s8 + $0x360] sm:$0xff] %v2598_v35  ;;  %v1346_v36 = vpop.f32.mrf.mxu0 }
 0x1b1   : > { %v1602_v37 = vpop.f32.mrf.mxu1  ;;  %2611 = vtanh.f32 %v1346_v36 }
 0x1b2   : > { %v2600_v38 = vpop.eup %2599  ;;  %2613 = vtanh.f32 %v1602_v37  ;;  %v1348_v39 = vpop.f32.mrf.mxu0 }
 0x1b3   : > { %v1604_v40 = vpop.f32.mrf.mxu1  ;;  %v2602_v41 = vpop.eup %2601  ;;  %1838 = vst [vmem:[%s2909_s8 + $0x168] sm:$0xff] %v2600_v38 }
 0x1b4   : > { %1902 = vst [vmem:[%s2909_s8 + $0x368] sm:$0xff] %v2602_v41  ;;  %v1349_v42 = vpop.f32.mrf.mxu0 }
 0x1b5   : > { %v1605_v43 = vpop.f32.mrf.mxu1  ;;  %2615 = vtanh.f32 %v1349_v42 }
 0x1b6   : > { %v2604_v44 = vpop.eup %2603  ;;  %2617 = vtanh.f32 %v1605_v43  ;;  %v1351_v45 = vpop.f32.mrf.mxu0 }
 0x1b7   : > { %v1607_v46 = vpop.f32.mrf.mxu1  ;;  %v2606_v47 = vpop.eup %2605  ;;  %1839 = vst [vmem:[%s2909_s8 + $0x170] sm:$0xff] %v2604_v44 }
 0x1b8   : > { %1903 = vst [vmem:[%s2909_s8 + $0x370] sm:$0xff] %v2606_v47  ;;  %v1354_v48 = vpop.f32.mrf.mxu0 }
 0x1b9   : > { %v1610_v49 = vpop.f32.mrf.mxu1  ;;  %2619 = vtanh.f32 %v1354_v48 }
 0x1ba   : > { %v2608_v50 = vpop.eup %2607  ;;  %2621 = vtanh.f32 %v1610_v49  ;;  %v1356_v51 = vpop.f32.mrf.mxu0 }
 0x1bb   : > { %v1612_v52 = vpop.f32.mrf.mxu1  ;;  %v2610_v53 = vpop.eup %2609  ;;  %1840 = vst [vmem:[%s2909_s8 + $0x178] sm:$0xff] %v2608_v50 }
 0x1bc   : > { %1904 = vst [vmem:[%s2909_s8 + $0x378] sm:$0xff] %v2610_v53  ;;  %v1357_v54 = vpop.f32.mrf.mxu0 }
 0x1bd   : > { %v1613_v55 = vpop.f32.mrf.mxu1  ;;  %2623 = vtanh.f32 %v1357_v54 }
 0x1be   : > { %v2612_v56 = vpop.eup %2611  ;;  %2625 = vtanh.f32 %v1613_v55  ;;  %v1359_v57 = vpop.f32.mrf.mxu0 }
 0x1bf   : > { %v1615_v58 = vpop.f32.mrf.mxu1  ;;  %v2614_v59 = vpop.eup %2613  ;;  %1841 = vst [vmem:[%s2909_s8 + $0x180] sm:$0xff] %v2612_v56 }
 0x1c0   : > { %1905 = vst [vmem:[%s2909_s8 + $0x380] sm:$0xff] %v2614_v59  ;;  %v1362_v60 = vpop.f32.mrf.mxu0 }
 0x1c1   : > { %v1618_v61 = vpop.f32.mrf.mxu1  ;;  %2627 = vtanh.f32 %v1362_v60 }
 0x1c2   : > { %v2616_v62 = vpop.eup %2615  ;;  %2629 = vtanh.f32 %v1618_v61  ;;  %v1364_v63 = vpop.f32.mrf.mxu0 }
 0x1c3   : > { %v1620_v0 = vpop.f32.mrf.mxu1  ;;  %v2618_v1 = vpop.eup %2617  ;;  %1842 = vst [vmem:[%s2909_s8 + $0x188] sm:$0xff] %v2616_v62 }
 0x1c4   : > { %1906 = vst [vmem:[%s2909_s8 + $0x388] sm:$0xff] %v2618_v1  ;;  %v1365_v2 = vpop.f32.mrf.mxu0 }
 0x1c5   : > { %v1621_v3 = vpop.f32.mrf.mxu1  ;;  %2631 = vtanh.f32 %v1365_v2 }
 0x1c6   : > { %v2620_v4 = vpop.eup %2619  ;;  %2633 = vtanh.f32 %v1621_v3  ;;  %v1367_v5 = vpop.f32.mrf.mxu0 }
 0x1c7   : > { %v1623_v6 = vpop.f32.mrf.mxu1  ;;  %v2622_v7 = vpop.eup %2621  ;;  %1843 = vst [vmem:[%s2909_s8 + $0x190] sm:$0xff] %v2620_v4 }
 0x1c8   : > { %1907 = vst [vmem:[%s2909_s8 + $0x390] sm:$0xff] %v2622_v7  ;;  %v1370_v8 = vpop.f32.mrf.mxu0 }
 0x1c9   : > { %v1626_v9 = vpop.f32.mrf.mxu1  ;;  %2635 = vtanh.f32 %v1370_v8 }
 0x1ca   : > { %v2624_v10 = vpop.eup %2623  ;;  %2637 = vtanh.f32 %v1626_v9  ;;  %v1372_v11 = vpop.f32.mrf.mxu0 }
 0x1cb   : > { %v1628_v12 = vpop.f32.mrf.mxu1  ;;  %v2626_v13 = vpop.eup %2625  ;;  %1844 = vst [vmem:[%s2909_s8 + $0x198] sm:$0xff] %v2624_v10 }
 0x1cc   : > { %1908 = vst [vmem:[%s2909_s8 + $0x398] sm:$0xff] %v2626_v13  ;;  %v1373_v14 = vpop.f32.mrf.mxu0 }
 0x1cd   : > { %v1629_v15 = vpop.f32.mrf.mxu1  ;;  %2639 = vtanh.f32 %v1373_v14 }
 0x1ce   : > { %v2628_v16 = vpop.eup %2627  ;;  %2641 = vtanh.f32 %v1629_v15  ;;  %v1375_v17 = vpop.f32.mrf.mxu0 }
 0x1cf   : > { %v1631_v18 = vpop.f32.mrf.mxu1  ;;  %v2630_v19 = vpop.eup %2629  ;;  %1845 = vst [vmem:[%s2909_s8 + $0x1a0] sm:$0xff] %v2628_v16 }
 0x1d0   : > { %1909 = vst [vmem:[%s2909_s8 + $0x3a0] sm:$0xff] %v2630_v19  ;;  %v1378_v20 = vpop.f32.mrf.mxu0 }
 0x1d1   : > { %v1634_v21 = vpop.f32.mrf.mxu1  ;;  %2643 = vtanh.f32 %v1378_v20 }
 0x1d2   : > { %v2632_v22 = vpop.eup %2631  ;;  %2645 = vtanh.f32 %v1634_v21  ;;  %v1380_v23 = vpop.f32.mrf.mxu0 }
 0x1d3   : > { %v1636_v24 = vpop.f32.mrf.mxu1  ;;  %v2634_v25 = vpop.eup %2633  ;;  %1846 = vst [vmem:[%s2909_s8 + $0x1a8] sm:$0xff] %v2632_v22 }
 0x1d4   : > { %1910 = vst [vmem:[%s2909_s8 + $0x3a8] sm:$0xff] %v2634_v25  ;;  %v1381_v26 = vpop.f32.mrf.mxu0 }
 0x1d5   : > { %v1637_v27 = vpop.f32.mrf.mxu1  ;;  %2647 = vtanh.f32 %v1381_v26 }
 0x1d6   : > { %v2636_v28 = vpop.eup %2635  ;;  %2649 = vtanh.f32 %v1637_v27  ;;  %v1383_v29 = vpop.f32.mrf.mxu0 }
 0x1d7   : > { %v1639_v30 = vpop.f32.mrf.mxu1  ;;  %v2638_v31 = vpop.eup %2637  ;;  %1847 = vst [vmem:[%s2909_s8 + $0x1b0] sm:$0xff] %v2636_v28 }
 0x1d8   : > { %1911 = vst [vmem:[%s2909_s8 + $0x3b0] sm:$0xff] %v2638_v31  ;;  %v1386_v32 = vpop.f32.mrf.mxu0 }
 0x1d9   : > { %v1642_v33 = vpop.f32.mrf.mxu1  ;;  %2651 = vtanh.f32 %v1386_v32 }
 0x1da   : > { %v2640_v34 = vpop.eup %2639  ;;  %2653 = vtanh.f32 %v1642_v33  ;;  %v1388_v35 = vpop.f32.mrf.mxu0 }
 0x1db   : > { %v1644_v36 = vpop.f32.mrf.mxu1  ;;  %v2642_v37 = vpop.eup %2641  ;;  %1848 = vst [vmem:[%s2909_s8 + $0x1b8] sm:$0xff] %v2640_v34 }
 0x1dc   : > { %1912 = vst [vmem:[%s2909_s8 + $0x3b8] sm:$0xff] %v2642_v37  ;;  %v1389_v38 = vpop.f32.mrf.mxu0 }
 0x1dd   : > { %v1645_v39 = vpop.f32.mrf.mxu1  ;;  %2655 = vtanh.f32 %v1389_v38 }
 0x1de   : > { %v2644_v40 = vpop.eup %2643  ;;  %2657 = vtanh.f32 %v1645_v39  ;;  %v1391_v41 = vpop.f32.mrf.mxu0 }
 0x1df   : > { %v1647_v42 = vpop.f32.mrf.mxu1  ;;  %v2646_v43 = vpop.eup %2645  ;;  %1849 = vst [vmem:[%s2909_s8 + $0x1c0] sm:$0xff] %v2644_v40 }
 0x1e0   : > { %1913 = vst [vmem:[%s2909_s8 + $0x3c0] sm:$0xff] %v2646_v43  ;;  %v1394_v44 = vpop.f32.mrf.mxu0 }
 0x1e1   : > { %v1650_v45 = vpop.f32.mrf.mxu1  ;;  %2659 = vtanh.f32 %v1394_v44 }
 0x1e2   : > { %v2648_v46 = vpop.eup %2647  ;;  %2661 = vtanh.f32 %v1650_v45  ;;  %v1396_v47 = vpop.f32.mrf.mxu0 }
 0x1e3   : > { %v1652_v48 = vpop.f32.mrf.mxu1  ;;  %v2650_v49 = vpop.eup %2649  ;;  %1850 = vst [vmem:[%s2909_s8 + $0x1c8] sm:$0xff] %v2648_v46 }
 0x1e4   : > { %1914 = vst [vmem:[%s2909_s8 + $0x3c8] sm:$0xff] %v2650_v49  ;;  %v1397_v50 = vpop.f32.mrf.mxu0 }
 0x1e5   : > { %v1653_v51 = vpop.f32.mrf.mxu1  ;;  %2663 = vtanh.f32 %v1397_v50 }
 0x1e6   : > { %v2652_v52 = vpop.eup %2651  ;;  %2665 = vtanh.f32 %v1653_v51  ;;  %v1399_v53 = vpop.f32.mrf.mxu0 }
 0x1e7   : > { %v1655_v54 = vpop.f32.mrf.mxu1  ;;  %v2654_v55 = vpop.eup %2653  ;;  %1851 = vst [vmem:[%s2909_s8 + $0x1d0] sm:$0xff] %v2652_v52 }
 0x1e8   : > { %1915 = vst [vmem:[%s2909_s8 + $0x3d0] sm:$0xff] %v2654_v55  ;;  %v1402_v56 = vpop.f32.mrf.mxu0 }
 0x1e9   : > { %v1658_v57 = vpop.f32.mrf.mxu1  ;;  %2667 = vtanh.f32 %v1402_v56 }
 0x1ea   : > { %v2656_v58 = vpop.eup %2655  ;;  %2669 = vtanh.f32 %v1658_v57  ;;  %v1404_v59 = vpop.f32.mrf.mxu0 }
 0x1eb   : > { %v1660_v60 = vpop.f32.mrf.mxu1  ;;  %v2658_v61 = vpop.eup %2657  ;;  %1852 = vst [vmem:[%s2909_s8 + $0x1d8] sm:$0xff] %v2656_v58 }
 0x1ec   : > { %1916 = vst [vmem:[%s2909_s8 + $0x3d8] sm:$0xff] %v2658_v61  ;;  %v1405_v62 = vpop.f32.mrf.mxu0 }
 0x1ed   : > { %v1661_v63 = vpop.f32.mrf.mxu1  ;;  %2671 = vtanh.f32 %v1405_v62 }
 0x1ee   : > { %v2660_v0 = vpop.eup %2659  ;;  %2673 = vtanh.f32 %v1661_v63  ;;  %v1407_v1 = vpop.f32.mrf.mxu0 }
 0x1ef   : > { %v1663_v2 = vpop.f32.mrf.mxu1  ;;  %v2662_v3 = vpop.eup %2661  ;;  %1853 = vst [vmem:[%s2909_s8 + $0x1e0] sm:$0xff] %v2660_v0 }
 0x1f0   : > { %1917 = vst [vmem:[%s2909_s8 + $0x3e0] sm:$0xff] %v2662_v3 }
 0x1f2   : > { %v2664_v4 = vpop.eup %2663 }
 0x1f3   : > { %v2666_v5 = vpop.eup %2665  ;;  %1854 = vst [vmem:[%s2909_s8 + $0x1e8] sm:$0xff] %v2664_v4 }
 0x1f4   : > { %1918 = vst [vmem:[%s2909_s8 + $0x3e8] sm:$0xff] %v2666_v5 }
 0x1f6   : > { %v2668_v6 = vpop.eup %2667 }
 0x1f7   : > { %v2670_v7 = vpop.eup %2669  ;;  %1855 = vst [vmem:[%s2909_s8 + $0x1f0] sm:$0xff] %v2668_v6 }
 0x1f8   : > { %1919 = vst [vmem:[%s2909_s8 + $0x3f0] sm:$0xff] %v2670_v7 }
 0x1fa   : > { %v2672_v8 = vpop.eup %2671 }
 0x1fb   : > { %v2674_v9 = vpop.eup %2673  ;;  %1856 = vst [vmem:[%s2909_s8 + $0x1f8] sm:$0xff] %v2672_v8 }
 0x1fc   : > { %1920 = vst [vmem:[%s2909_s8 + $0x3f8] sm:$0xff] %v2674_v9 }
 0x1fd PF: > { %s12_s9 = sadd.s32 1, %s2681_s9  }
 0x1fe   : > { %p9_p4 = scmp.ge.s32.totalorder %s12_s9, 4  }
 0x200   :  { %11 = sbr.rel (!%p9_p4) target bundleno = 1 (0x1), region = 58 }

</bundles_post_ra>
